<compile_context>
chip_gen: v5e
topology: v5e:2x2
jax: 0.10.0
libtpu: 0.0.40
codegen_flags: <defaults>
</compile_context>

<pallas_src>
import functools

import jax
import jax.numpy as jnp
from jax.experimental import pallas as pl
from jax.experimental.pallas import tpu as pltpu


def _round_up(n, m):
    return ((n + m - 1) // m) * m


def _pad_to(arr, shape):
    pads = [(0, s - d) for d, s in zip(arr.shape, shape)]
    return jnp.pad(arr, pads)


def _resident_spec(arr):
    """Full-array block with a constant index_map -> stays resident in VMEM."""
    zeros = (0,) * arr.ndim
    return pl.BlockSpec(arr.shape, lambda i, _z=zeros: _z)


def _vanilla_rnn_kernel(num_layers, seq_len, tb_sub, chains, unroll, *refs):
    # refs layout:
    #   x_ref (1, T*TB, Dp)
    #   per layer l: w_ih_ref, w_hh_ref, b_ref   (b = b_ih + b_hh, pre-summed)
    #   fc_w_ref (T, Hp), fc_b_ref (1, 1)
    #   out_ref (1, 1, TB)
    #   seq scratch buffers: 1 or 2 x (T*TB, Hp) f32
    L = num_layers
    T = seq_len
    G = chains
    TBs = tb_sub
    TB = G * TBs

    x_ref = refs[0]
    layer_refs = refs[1:1 + 3 * L]
    fc_w_ref = refs[1 + 3 * L]
    fc_b_ref = refs[2 + 3 * L]
    out_ref = refs[3 + 3 * L]
    seq_refs = refs[4 + 3 * L:]
    n_bufs = len(seq_refs)

    Hp = seq_refs[0].shape[-1]

    for l in range(L):
        w_ih = layer_refs[3 * l + 0][...]
        w_hh = layer_refs[3 * l + 1][...]          # f32 (recurrence accuracy)
        b = layer_refs[3 * l + 2][...]             # (1, Hp) f32

        cur = seq_refs[l % n_bufs]
        if l == 0:
            layer_in = x_ref[0]                    # (T*TB, Dp), matmul dtype
        else:
            prev = seq_refs[(l - 1) % n_bufs]
            layer_in = prev[...].astype(w_ih.dtype)

        # One batched input projection over all timesteps of this layer
        # (single big MXU matmul), bias folded in once. f32 accumulation.
        cur[...] = jnp.dot(layer_in, w_ih,
                           preferred_element_type=jnp.float32) + b

        is_last = (l == L - 1)

        h0 = jnp.zeros((TBs, Hp), jnp.float32)
        if is_last:
            acc0 = jnp.zeros((TBs, Hp), jnp.float32)
            carry0 = tuple(h0 for _ in range(G)) + tuple(acc0 for _ in range(G))
        else:
            carry0 = tuple(h0 for _ in range(G))

        def step(t, carry, cur=cur, w_hh=w_hh, is_last=is_last):
            hs = list(carry[:G])
            accs = list(carry[G:]) if is_last else None
            base = pl.multiple_of(t * TB, TB)
            if is_last:
                fc_row = fc_w_ref[pl.ds(t, 1), :]          # (1, Hp)
            # G independent recurrence chains -> their MXU/EUP latencies overlap.
            for g in range(G):
                off = base + g * TBs
                pre = cur[pl.ds(off, TBs), :] + jnp.dot(
                    hs[g], w_hh, preferred_element_type=jnp.float32)
                h_new = jnp.tanh(pre)
                if is_last:
                    # Deferred FC: VPU multiply-accumulate only; the cross-lane
                    # reduction happens once after the loop.
                    accs[g] = accs[g] + h_new * fc_row
                else:
                    # Store hidden state over its (now consumed) projection rows.
                    cur[pl.ds(off, TBs), :] = h_new
                hs[g] = h_new
            if is_last:
                return tuple(hs) + tuple(accs)
            return tuple(hs)

        carry = jax.lax.fori_loop(0, T, step, carry0, unroll=unroll)

        if is_last:
            accs = carry[G:]
            fc_b = fc_b_ref[...]                           # (1, 1)
            for g in range(G):
                # (TBs, Hp) -> (Hp, TBs) XLU transpose, then sublane reduce ->
                # lane-dense (1, TBs) logits for an unmasked output store.
                acc_t = jnp.transpose(accs[g])
                logits = jnp.sum(acc_t, axis=0, keepdims=True) + fc_b
                sig = jax.nn.sigmoid(logits).astype(out_ref.dtype)   # (1, TBs)
                out_ref[:, :, g * TBs:(g + 1) * TBs] = sig.reshape(1, 1, TBs)


def vanilla_rnn_forward(x, params, *, num_layers, seq_len,
                        batch_tile=128, chains=2,
                        matmul_dtype=jnp.float32):
    """x: (B, T, D_in) float32. params: dict of weights (see init_params).

    batch_tile: rows per recurrence chain (rounded up to a multiple of 8;
                128 recommended).
    chains:     independent recurrence chains processed per grid step (latency
                hiding); total rows per grid step TB = chains * batch_tile.
    matmul_dtype: dtype of the batched input-projection matmul operands
                (jnp.bfloat16 recommended on v5e/v6e/v7x; recurrence stays f32).
    """
    B, T, D = x.shape
    assert T == seq_len
    H = params["w_hh_0"].shape[0]

    TBs = max(8, _round_up(batch_tile, 8))             # rows per chain
    G = max(1, int(chains))
    TB = G * TBs                                       # rows per grid step
    Hp = _round_up(H, 128)                             # lane-dense hidden size
    in_align = 16 if jnp.dtype(matmul_dtype).itemsize == 2 else 8
    Dp = _round_up(D, in_align)                        # layer-0 input pad
    B_pad = _round_up(B, TB)
    ntiles = B_pad // TB

    # Time-major, batch-tiled, pre-flattened input: (ntiles, T*TB, Dp),
    # row index inside a tile = t*TB + b_local (zero padding => exact math).
    x_tm = jnp.transpose(x.astype(jnp.float32), (1, 0, 2))          # (T, B, D)
    x_tm = _pad_to(x_tm, (T, B_pad, Dp))                            # (T, B_pad, Dp)
    x_tiles = (x_tm.reshape(T, ntiles, TB, Dp)
               .transpose(1, 0, 2, 3)
               .reshape(ntiles, T * TB, Dp)
               .astype(matmul_dtype))

    args = [x_tiles]
    for l in range(num_layers):
        in_pad = Dp if l == 0 else Hp
        args.append(_pad_to(params[f"w_ih_{l}"], (in_pad, Hp)).astype(matmul_dtype))
        args.append(_pad_to(params[f"w_hh_{l}"].astype(jnp.float32), (Hp, Hp)))
        b = params[f"b_ih_{l}"] + params[f"b_hh_{l}"]               # pre-summed bias
        args.append(_pad_to(b.astype(jnp.float32), (1, Hp)))
    fc_w_2d = params["fc_w"].reshape(seq_len, H)                    # t-major (T, H)
    args.append(_pad_to(fc_w_2d.astype(jnp.float32), (seq_len, Hp)))
    args.append(params["fc_b"].astype(jnp.float32))                 # (1, 1)

    in_specs = [pl.BlockSpec((1, seq_len * TB, Dp), lambda i: (i, 0, 0))]
    in_specs += [_resident_spec(a) for a in args[1:]]
    # Lane-dense output block: last dim TB (>= 128 with defaults), unmasked vst.
    out_specs = pl.BlockSpec((1, 1, TB), lambda i: (i, 0, 0))

    unroll = True if seq_len <= 16 else 8
    n_bufs = 2 if num_layers > 1 else 1
    scratch_shapes = [pltpu.VMEM((seq_len * TB, Hp), jnp.float32)
                      for _ in range(n_bufs)]

    # VMEM budget estimate (inputs double-buffered, weights resident but
    # conservatively counted twice) with headroom; clamp to v7x physical 64MiB.
    x_item = jnp.dtype(matmul_dtype).itemsize
    est = n_bufs * seq_len * TB * Hp * 4
    est += 2 * seq_len * TB * Dp * x_item
    for l in range(num_layers):
        in_pad = Dp if l == 0 else Hp
        est += 2 * (in_pad * Hp * x_item + Hp * Hp * 4 + Hp * 4)
    est += 2 * (seq_len * Hp * 4 + 4)
    est += 2 * TB * 4
    vmem_limit = int(min(max(int(est * 1.5) + (2 << 20), 32 << 20), 64 << 20))

    kernel = functools.partial(_vanilla_rnn_kernel,
                               num_layers, seq_len, TBs, G, unroll)

    grid_spec = pltpu.PrefetchScalarGridSpec(
        num_scalar_prefetch=0,
        grid=(ntiles,),
        in_specs=in_specs,
        out_specs=out_specs,
        scratch_shapes=scratch_shapes,
    )

    out_padded = pl.pallas_call(
        kernel,
        out_shape=jax.ShapeDtypeStruct((ntiles, 1, TB), jnp.float32),
        grid_spec=grid_spec,
        compiler_params=pltpu.CompilerParams(
            dimension_semantics=("parallel",),
            vmem_limit_bytes=vmem_limit),
    )(*args)

    return out_padded.reshape(B_pad, 1)[:B]


def init_params(key, input_size, hidden_size, seq_len, num_layers):
    """Deterministic init mimicking nn.RNN / nn.Linear uniform(-1/sqrt(H), 1/sqrt(H))."""
    params = {}
    bound = 1.0 / jnp.sqrt(jnp.float32(hidden_size))
    for l in range(num_layers):
        in_l = input_size if l == 0 else hidden_size
        key, k1, k2, k3, k4 = jax.random.split(key, 5)
        params[f"w_ih_{l}"] = jax.random.uniform(
            k1, (in_l, hidden_size), jnp.float32, -bound, bound)
        params[f"w_hh_{l}"] = jax.random.uniform(
            k2, (hidden_size, hidden_size), jnp.float32, -bound, bound)
        params[f"b_ih_{l}"] = jax.random.uniform(
            k3, (1, hidden_size), jnp.float32, -bound, bound)
        params[f"b_hh_{l}"] = jax.random.uniform(
            k4, (1, hidden_size), jnp.float32, -bound, bound)
    fc_in = hidden_size * seq_len
    fc_bound = 1.0 / jnp.sqrt(jnp.float32(fc_in))
    key, k5, k6 = jax.random.split(key, 3)
    params["fc_w"] = jax.random.uniform(k5, (fc_in, 1), jnp.float32, -fc_bound, fc_bound)
    params["fc_b"] = jax.random.uniform(k6, (1, 1), jnp.float32, -fc_bound, fc_bound)
    return params


def vanilla_rnn_reference(x, params, *, num_layers, seq_len):
    """Pure-JAX reference (same math as the PyTorch module)."""
    B = x.shape[0]
    layer_in = x.astype(jnp.float32)
    for l in range(num_layers):
        w_ih, w_hh = params[f"w_ih_{l}"], params[f"w_hh_{l}"]
        b_ih, b_hh = params[f"b_ih_{l}"], params[f"b_hh_{l}"]
        H = w_hh.shape[0]
        h = jnp.zeros((B, H), jnp.float32)
        outs = []
        for t in range(seq_len):
            h = jnp.tanh(layer_in[:, t, :] @ w_ih + b_ih + h @ w_hh + b_hh)
            outs.append(h)
        layer_in = jnp.stack(outs, axis=1)
    flat = layer_in.reshape(B, -1)
    return jax.nn.sigmoid(flat @ params["fc_w"] + params["fc_b"])


if __name__ == "__main__":
    # Small shapes consistent with the module's forward.
    B, T, D_IN, H, L = 2, 8, 4, 32, 2

    key = jax.random.PRNGKey(0)
    key, kx = jax.random.split(key)
    x = jax.random.normal(kx, (B, T, D_IN), jnp.float32)
    params = init_params(key, D_IN, H, T, L)

    ref = vanilla_rnn_reference(x, params, num_layers=L, seq_len=T)

    # f32 matmuls: exact parity with the reference.
    out = vanilla_rnn_forward(x, params, num_layers=L, seq_len=T)
    out = jax.block_until_ready(out)
    assert out.shape == (B, 1)
    assert jnp.allclose(out, ref, atol=1e-3, rtol=1e-3), (out, ref)

    # bf16 input-projection matmuls (recommended perf config); recurrence stays
    # f32, so only a small tolerance relaxation is needed.
    out_bf16 = vanilla_rnn_forward(x, params, num_layers=L, seq_len=T,
                                   matmul_dtype=jnp.bfloat16)
    out_bf16 = jax.block_until_ready(out_bf16)
    assert out_bf16.shape == (B, 1)
    assert jnp.allclose(out_bf16, ref, atol=3e-2, rtol=3e-2), (out_bf16, ref)

    print("KERNEL_OK")
</pallas_src>

<mosaic_0001>
module attributes {stable_mosaic.version = 11 : i64} {
  func.func @_vanilla_rnn_kernel(%arg0: i32, %arg1: memref<1x2048x8xf32, #tpu.memory_space<vmem>>, %arg2: memref<8x128xf32, #tpu.memory_space<vmem>>, %arg3: memref<128x128xf32, #tpu.memory_space<vmem>>, %arg4: memref<1x128xf32, #tpu.memory_space<vmem>>, %arg5: memref<128x128xf32, #tpu.memory_space<vmem>>, %arg6: memref<128x128xf32, #tpu.memory_space<vmem>>, %arg7: memref<1x128xf32, #tpu.memory_space<vmem>>, %arg8: memref<8x128xf32, #tpu.memory_space<vmem>>, %arg9: memref<1x1xf32, #tpu.memory_space<vmem>>, %arg10: memref<1x1x256xf32, #tpu.memory_space<vmem>>, %arg11: memref<2048x128xf32, #tpu.memory_space<vmem>>, %arg12: memref<2048x128xf32, #tpu.memory_space<vmem>>) attributes {dimension_semantics = [#tpu.dimension_semantics<parallel>], iteration_bounds = array<i64: 1>, scalar_prefetch = 0 : i64, scratch_operands = 2 : i64, tpu.core_type = #tpu.core_type<tc>, window_params = [{transform_indices = @transform_0, window_bounds = array<i64: 1, 2048, 8>}, {pipeline_mode = #tpu.pipeline_mode<synchronous>, transform_indices = @transform_1, window_bounds = array<i64: 8, 128>}, {pipeline_mode = #tpu.pipeline_mode<synchronous>, transform_indices = @transform_2, window_bounds = array<i64: 128, 128>}, {pipeline_mode = #tpu.pipeline_mode<synchronous>, transform_indices = @transform_3, window_bounds = array<i64: 1, 128>}, {pipeline_mode = #tpu.pipeline_mode<synchronous>, transform_indices = @transform_4, window_bounds = array<i64: 128, 128>}, {pipeline_mode = #tpu.pipeline_mode<synchronous>, transform_indices = @transform_5, window_bounds = array<i64: 128, 128>}, {pipeline_mode = #tpu.pipeline_mode<synchronous>, transform_indices = @transform_6, window_bounds = array<i64: 1, 128>}, {pipeline_mode = #tpu.pipeline_mode<synchronous>, transform_indices = @transform_7, window_bounds = array<i64: 8, 128>}, {pipeline_mode = #tpu.pipeline_mode<synchronous>, transform_indices = @transform_8, window_bounds = array<i64: 1, 1>}, {transform_indices = @transform_9, window_bounds = array<i64: 1, 1, 256>}]} {
    %c0 = arith.constant 0 : index
    %c0_0 = arith.constant 0 : index
    %0 = vector.load %arg2[%c0, %c0_0] : memref<8x128xf32, #tpu.memory_space<vmem>>, vector<8x128xf32>
    %c0_1 = arith.constant 0 : index
    %c0_2 = arith.constant 0 : index
    %1 = vector.load %arg3[%c0_1, %c0_2] : memref<128x128xf32, #tpu.memory_space<vmem>>, vector<128x128xf32>
    %c0_3 = arith.constant 0 : index
    %c0_4 = arith.constant 0 : index
    %2 = vector.load %arg4[%c0_3, %c0_4] : memref<1x128xf32, #tpu.memory_space<vmem>>, vector<1x128xf32>
    %c0_5 = arith.constant 0 : index
    %c0_6 = arith.constant 0 : index
    %c0_7 = arith.constant 0 : index
    %3 = vector.load %arg1[%c0_5, %c0_6, %c0_7] : memref<1x2048x8xf32, #tpu.memory_space<vmem>>, vector<1x2048x8xf32>
    %4 = vector.shape_cast %3 : vector<1x2048x8xf32> to vector<2048x8xf32>
    %cst = arith.constant dense<0.000000e+00> : vector<2048x128xf32>
    %5 = tpu.matmul %4, %0, %cst {dimension_numbers = #tpu.dot_dimension_numbers<[1], [0], [0], [1], [0, 0, 1, 1], [], []>} : vector<2048x8xf32>, vector<8x128xf32>, vector<2048x128xf32> -> vector<2048x128xf32>
    %6 = vector.broadcast %2 : vector<1x128xf32> to vector<2048x128xf32>
    %7 = arith.addf %5, %6 : vector<2048x128xf32>
    %c0_8 = arith.constant 0 : index
    %c0_9 = arith.constant 0 : index
    %8 = vector.load %arg11[%c0_8, %c0_9] : memref<2048x128xf32, #tpu.memory_space<vmem>>, vector<2048x128xf32>
    tpu.vector_store %arg11[%c0_8, %c0_9], %7 {strides = array<i32>} : memref<2048x128xf32, #tpu.memory_space<vmem>>, vector<2048x128xf32>,
    %cst_10 = arith.constant 0.000000e+00 : f32
    %9 = vector.broadcast %cst_10 : f32 to vector<128x128xf32>
    %c0_i32 = arith.constant 0 : i32
    %c256_i32 = arith.constant 256 : i32
    %10 = arith.muli %c0_i32, %c256_i32 : i32
    %11 = tpu.assume_multiple %10, 256 : i32
    %c0_i32_11 = arith.constant 0 : i32
    %12 = arith.addi %11, %c0_i32_11 : i32
    %13 = arith.index_cast %12 : i32 to index
    %c0_12 = arith.constant 0 : index
    %14 = vector.load %arg11[%13, %c0_12] : memref<2048x128xf32, #tpu.memory_space<vmem>>, vector<128x128xf32>
    %cst_13 = arith.constant dense<0.000000e+00> : vector<128x128xf32>
    %15 = tpu.matmul %9, %1, %cst_13 {dimension_numbers = #tpu.dot_dimension_numbers<[1], [0], [0], [1], [0, 0, 1, 1], [], []>} : vector<128x128xf32>, vector<128x128xf32>, vector<128x128xf32> -> vector<128x128xf32>
    %16 = arith.addf %14, %15 : vector<128x128xf32>
    %17 = math.tanh %16 : vector<128x128xf32>
    %18 = arith.index_cast %12 : i32 to index
    %c0_14 = arith.constant 0 : index
    %19 = vector.load %arg11[%18, %c0_14] : memref<2048x128xf32, #tpu.memory_space<vmem>>, vector<128x128xf32>
    tpu.vector_store %arg11[%18, %c0_14], %17 {strides = array<i32>} : memref<2048x128xf32, #tpu.memory_space<vmem>>, vector<128x128xf32>,
    %c128_i32 = arith.constant 128 : i32
    %20 = arith.addi %11, %c128_i32 : i32
    %21 = arith.index_cast %20 : i32 to index
    %c0_15 = arith.constant 0 : index
    %22 = vector.load %arg11[%21, %c0_15] : memref<2048x128xf32, #tpu.memory_space<vmem>>, vector<128x128xf32>
    %cst_16 = arith.constant dense<0.000000e+00> : vector<128x128xf32>
    %23 = tpu.matmul %9, %1, %cst_16 {dimension_numbers = #tpu.dot_dimension_numbers<[1], [0], [0], [1], [0, 0, 1, 1], [], []>} : vector<128x128xf32>, vector<128x128xf32>, vector<128x128xf32> -> vector<128x128xf32>
    %24 = arith.addf %22, %23 : vector<128x128xf32>
    %25 = math.tanh %24 : vector<128x128xf32>
    %26 = arith.index_cast %20 : i32 to index
    %c0_17 = arith.constant 0 : index
    %27 = vector.load %arg11[%26, %c0_17] : memref<2048x128xf32, #tpu.memory_space<vmem>>, vector<128x128xf32>
    tpu.vector_store %arg11[%26, %c0_17], %25 {strides = array<i32>} : memref<2048x128xf32, #tpu.memory_space<vmem>>, vector<128x128xf32>,
    %c1_i32 = arith.constant 1 : i32
    %c256_i32_18 = arith.constant 256 : i32
    %28 = arith.muli %c1_i32, %c256_i32_18 : i32
    %29 = tpu.assume_multiple %28, 256 : i32
    %c0_i32_19 = arith.constant 0 : i32
    %30 = arith.addi %29, %c0_i32_19 : i32
    %31 = arith.index_cast %30 : i32 to index
    %c0_20 = arith.constant 0 : index
    %32 = vector.load %arg11[%31, %c0_20] : memref<2048x128xf32, #tpu.memory_space<vmem>>, vector<128x128xf32>
    %cst_21 = arith.constant dense<0.000000e+00> : vector<128x128xf32>
    %33 = tpu.matmul %17, %1, %cst_21 {dimension_numbers = #tpu.dot_dimension_numbers<[1], [0], [0], [1], [0, 0, 1, 1], [], []>} : vector<128x128xf32>, vector<128x128xf32>, vector<128x128xf32> -> vector<128x128xf32>
    %34 = arith.addf %32, %33 : vector<128x128xf32>
    %35 = math.tanh %34 : vector<128x128xf32>
    %36 = arith.index_cast %30 : i32 to index
    %c0_22 = arith.constant 0 : index
    %37 = vector.load %arg11[%36, %c0_22] : memref<2048x128xf32, #tpu.memory_space<vmem>>, vector<128x128xf32>
    tpu.vector_store %arg11[%36, %c0_22], %35 {strides = array<i32>} : memref<2048x128xf32, #tpu.memory_space<vmem>>, vector<128x128xf32>,
    %c128_i32_23 = arith.constant 128 : i32
    %38 = arith.addi %29, %c128_i32_23 : i32
    %39 = arith.index_cast %38 : i32 to index
    %c0_24 = arith.constant 0 : index
    %40 = vector.load %arg11[%39, %c0_24] : memref<2048x128xf32, #tpu.memory_space<vmem>>, vector<128x128xf32>
    %cst_25 = arith.constant dense<0.000000e+00> : vector<128x128xf32>
    %41 = tpu.matmul %25, %1, %cst_25 {dimension_numbers = #tpu.dot_dimension_numbers<[1], [0], [0], [1], [0, 0, 1, 1], [], []>} : vector<128x128xf32>, vector<128x128xf32>, vector<128x128xf32> -> vector<128x128xf32>
    %42 = arith.addf %40, %41 : vector<128x128xf32>
    %43 = math.tanh %42 : vector<128x128xf32>
    %44 = arith.index_cast %38 : i32 to index
    %c0_26 = arith.constant 0 : index
    %45 = vector.load %arg11[%44, %c0_26] : memref<2048x128xf32, #tpu.memory_space<vmem>>, vector<128x128xf32>
    tpu.vector_store %arg11[%44, %c0_26], %43 {strides = array<i32>} : memref<2048x128xf32, #tpu.memory_space<vmem>>, vector<128x128xf32>,
    %c2_i32 = arith.constant 2 : i32
    %c256_i32_27 = arith.constant 256 : i32
    %46 = arith.muli %c2_i32, %c256_i32_27 : i32
    %47 = tpu.assume_multiple %46, 256 : i32
    %c0_i32_28 = arith.constant 0 : i32
    %48 = arith.addi %47, %c0_i32_28 : i32
    %49 = arith.index_cast %48 : i32 to index
    %c0_29 = arith.constant 0 : index
    %50 = vector.load %arg11[%49, %c0_29] : memref<2048x128xf32, #tpu.memory_space<vmem>>, vector<128x128xf32>
    %cst_30 = arith.constant dense<0.000000e+00> : vector<128x128xf32>
    %51 = tpu.matmul %35, %1, %cst_30 {dimension_numbers = #tpu.dot_dimension_numbers<[1], [0], [0], [1], [0, 0, 1, 1], [], []>} : vector<128x128xf32>, vector<128x128xf32>, vector<128x128xf32> -> vector<128x128xf32>
    %52 = arith.addf %50, %51 : vector<128x128xf32>
    %53 = math.tanh %52 : vector<128x128xf32>
    %54 = arith.index_cast %48 : i32 to index
    %c0_31 = arith.constant 0 : index
    %55 = vector.load %arg11[%54, %c0_31] : memref<2048x128xf32, #tpu.memory_space<vmem>>, vector<128x128xf32>
    tpu.vector_store %arg11[%54, %c0_31], %53 {strides = array<i32>} : memref<2048x128xf32, #tpu.memory_space<vmem>>, vector<128x128xf32>,
    %c128_i32_32 = arith.constant 128 : i32
    %56 = arith.addi %47, %c128_i32_32 : i32
    %57 = arith.index_cast %56 : i32 to index
    %c0_33 = arith.constant 0 : index
    %58 = vector.load %arg11[%57, %c0_33] : memref<2048x128xf32, #tpu.memory_space<vmem>>, vector<128x128xf32>
    %cst_34 = arith.constant dense<0.000000e+00> : vector<128x128xf32>
    %59 = tpu.matmul %43, %1, %cst_34 {dimension_numbers = #tpu.dot_dimension_numbers<[1], [0], [0], [1], [0, 0, 1, 1], [], []>} : vector<128x128xf32>, vector<128x128xf32>, vector<128x128xf32> -> vector<128x128xf32>
    %60 = arith.addf %58, %59 : vector<128x128xf32>
    %61 = math.tanh %60 : vector<128x128xf32>
    %62 = arith.index_cast %56 : i32 to index
    %c0_35 = arith.constant 0 : index
    %63 = vector.load %arg11[%62, %c0_35] : memref<2048x128xf32, #tpu.memory_space<vmem>>, vector<128x128xf32>
    tpu.vector_store %arg11[%62, %c0_35], %61 {strides = array<i32>} : memref<2048x128xf32, #tpu.memory_space<vmem>>, vector<128x128xf32>,
    %c3_i32 = arith.constant 3 : i32
    %c256_i32_36 = arith.constant 256 : i32
    %64 = arith.muli %c3_i32, %c256_i32_36 : i32
    %65 = tpu.assume_multiple %64, 256 : i32
    %c0_i32_37 = arith.constant 0 : i32
    %66 = arith.addi %65, %c0_i32_37 : i32
    %67 = arith.index_cast %66 : i32 to index
    %c0_38 = arith.constant 0 : index
    %68 = vector.load %arg11[%67, %c0_38] : memref<2048x128xf32, #tpu.memory_space<vmem>>, vector<128x128xf32>
    %cst_39 = arith.constant dense<0.000000e+00> : vector<128x128xf32>
    %69 = tpu.matmul %53, %1, %cst_39 {dimension_numbers = #tpu.dot_dimension_numbers<[1], [0], [0], [1], [0, 0, 1, 1], [], []>} : vector<128x128xf32>, vector<128x128xf32>, vector<128x128xf32> -> vector<128x128xf32>
    %70 = arith.addf %68, %69 : vector<128x128xf32>
    %71 = math.tanh %70 : vector<128x128xf32>
    %72 = arith.index_cast %66 : i32 to index
    %c0_40 = arith.constant 0 : index
    %73 = vector.load %arg11[%72, %c0_40] : memref<2048x128xf32, #tpu.memory_space<vmem>>, vector<128x128xf32>
    tpu.vector_store %arg11[%72, %c0_40], %71 {strides = array<i32>} : memref<2048x128xf32, #tpu.memory_space<vmem>>, vector<128x128xf32>,
    %c128_i32_41 = arith.constant 128 : i32
    %74 = arith.addi %65, %c128_i32_41 : i32
    %75 = arith.index_cast %74 : i32 to index
    %c0_42 = arith.constant 0 : index
    %76 = vector.load %arg11[%75, %c0_42] : memref<2048x128xf32, #tpu.memory_space<vmem>>, vector<128x128xf32>
    %cst_43 = arith.constant dense<0.000000e+00> : vector<128x128xf32>
    %77 = tpu.matmul %61, %1, %cst_43 {dimension_numbers = #tpu.dot_dimension_numbers<[1], [0], [0], [1], [0, 0, 1, 1], [], []>} : vector<128x128xf32>, vector<128x128xf32>, vector<128x128xf32> -> vector<128x128xf32>
    %78 = arith.addf %76, %77 : vector<128x128xf32>
    %79 = math.tanh %78 : vector<128x128xf32>
    %80 = arith.index_cast %74 : i32 to index
    %c0_44 = arith.constant 0 : index
    %81 = vector.load %arg11[%80, %c0_44] : memref<2048x128xf32, #tpu.memory_space<vmem>>, vector<128x128xf32>
    tpu.vector_store %arg11[%80, %c0_44], %79 {strides = array<i32>} : memref<2048x128xf32, #tpu.memory_space<vmem>>, vector<128x128xf32>,
    %c4_i32 = arith.constant 4 : i32
    %c256_i32_45 = arith.constant 256 : i32
    %82 = arith.muli %c4_i32, %c256_i32_45 : i32
    %83 = tpu.assume_multiple %82, 256 : i32
    %c0_i32_46 = arith.constant 0 : i32
    %84 = arith.addi %83, %c0_i32_46 : i32
    %85 = arith.index_cast %84 : i32 to index
    %c0_47 = arith.constant 0 : index
    %86 = vector.load %arg11[%85, %c0_47] : memref<2048x128xf32, #tpu.memory_space<vmem>>, vector<128x128xf32>
    %cst_48 = arith.constant dense<0.000000e+00> : vector<128x128xf32>
    %87 = tpu.matmul %71, %1, %cst_48 {dimension_numbers = #tpu.dot_dimension_numbers<[1], [0], [0], [1], [0, 0, 1, 1], [], []>} : vector<128x128xf32>, vector<128x128xf32>, vector<128x128xf32> -> vector<128x128xf32>
    %88 = arith.addf %86, %87 : vector<128x128xf32>
    %89 = math.tanh %88 : vector<128x128xf32>
    %90 = arith.index_cast %84 : i32 to index
    %c0_49 = arith.constant 0 : index
    %91 = vector.load %arg11[%90, %c0_49] : memref<2048x128xf32, #tpu.memory_space<vmem>>, vector<128x128xf32>
    tpu.vector_store %arg11[%90, %c0_49], %89 {strides = array<i32>} : memref<2048x128xf32, #tpu.memory_space<vmem>>, vector<128x128xf32>,
    %c128_i32_50 = arith.constant 128 : i32
    %92 = arith.addi %83, %c128_i32_50 : i32
    %93 = arith.index_cast %92 : i32 to index
    %c0_51 = arith.constant 0 : index
    %94 = vector.load %arg11[%93, %c0_51] : memref<2048x128xf32, #tpu.memory_space<vmem>>, vector<128x128xf32>
    %cst_52 = arith.constant dense<0.000000e+00> : vector<128x128xf32>
    %95 = tpu.matmul %79, %1, %cst_52 {dimension_numbers = #tpu.dot_dimension_numbers<[1], [0], [0], [1], [0, 0, 1, 1], [], []>} : vector<128x128xf32>, vector<128x128xf32>, vector<128x128xf32> -> vector<128x128xf32>
    %96 = arith.addf %94, %95 : vector<128x128xf32>
    %97 = math.tanh %96 : vector<128x128xf32>
    %98 = arith.index_cast %92 : i32 to index
    %c0_53 = arith.constant 0 : index
    %99 = vector.load %arg11[%98, %c0_53] : memref<2048x128xf32, #tpu.memory_space<vmem>>, vector<128x128xf32>
    tpu.vector_store %arg11[%98, %c0_53], %97 {strides = array<i32>} : memref<2048x128xf32, #tpu.memory_space<vmem>>, vector<128x128xf32>,
    %c5_i32 = arith.constant 5 : i32
    %c256_i32_54 = arith.constant 256 : i32
    %100 = arith.muli %c5_i32, %c256_i32_54 : i32
    %101 = tpu.assume_multiple %100, 256 : i32
    %c0_i32_55 = arith.constant 0 : i32
    %102 = arith.addi %101, %c0_i32_55 : i32
    %103 = arith.index_cast %102 : i32 to index
    %c0_56 = arith.constant 0 : index
    %104 = vector.load %arg11[%103, %c0_56] : memref<2048x128xf32, #tpu.memory_space<vmem>>, vector<128x128xf32>
    %cst_57 = arith.constant dense<0.000000e+00> : vector<128x128xf32>
    %105 = tpu.matmul %89, %1, %cst_57 {dimension_numbers = #tpu.dot_dimension_numbers<[1], [0], [0], [1], [0, 0, 1, 1], [], []>} : vector<128x128xf32>, vector<128x128xf32>, vector<128x128xf32> -> vector<128x128xf32>
    %106 = arith.addf %104, %105 : vector<128x128xf32>
    %107 = math.tanh %106 : vector<128x128xf32>
    %108 = arith.index_cast %102 : i32 to index
    %c0_58 = arith.constant 0 : index
    %109 = vector.load %arg11[%108, %c0_58] : memref<2048x128xf32, #tpu.memory_space<vmem>>, vector<128x128xf32>
    tpu.vector_store %arg11[%108, %c0_58], %107 {strides = array<i32>} : memref<2048x128xf32, #tpu.memory_space<vmem>>, vector<128x128xf32>,
    %c128_i32_59 = arith.constant 128 : i32
    %110 = arith.addi %101, %c128_i32_59 : i32
    %111 = arith.index_cast %110 : i32 to index
    %c0_60 = arith.constant 0 : index
    %112 = vector.load %arg11[%111, %c0_60] : memref<2048x128xf32, #tpu.memory_space<vmem>>, vector<128x128xf32>
    %cst_61 = arith.constant dense<0.000000e+00> : vector<128x128xf32>
    %113 = tpu.matmul %97, %1, %cst_61 {dimension_numbers = #tpu.dot_dimension_numbers<[1], [0], [0], [1], [0, 0, 1, 1], [], []>} : vector<128x128xf32>, vector<128x128xf32>, vector<128x128xf32> -> vector<128x128xf32>
    %114 = arith.addf %112, %113 : vector<128x128xf32>
    %115 = math.tanh %114 : vector<128x128xf32>
    %116 = arith.index_cast %110 : i32 to index
    %c0_62 = arith.constant 0 : index
    %117 = vector.load %arg11[%116, %c0_62] : memref<2048x128xf32, #tpu.memory_space<vmem>>, vector<128x128xf32>
    tpu.vector_store %arg11[%116, %c0_62], %115 {strides = array<i32>} : memref<2048x128xf32, #tpu.memory_space<vmem>>, vector<128x128xf32>,
    %c6_i32 = arith.constant 6 : i32
    %c256_i32_63 = arith.constant 256 : i32
    %118 = arith.muli %c6_i32, %c256_i32_63 : i32
    %119 = tpu.assume_multiple %118, 256 : i32
    %c0_i32_64 = arith.constant 0 : i32
    %120 = arith.addi %119, %c0_i32_64 : i32
    %121 = arith.index_cast %120 : i32 to index
    %c0_65 = arith.constant 0 : index
    %122 = vector.load %arg11[%121, %c0_65] : memref<2048x128xf32, #tpu.memory_space<vmem>>, vector<128x128xf32>
    %cst_66 = arith.constant dense<0.000000e+00> : vector<128x128xf32>
    %123 = tpu.matmul %107, %1, %cst_66 {dimension_numbers = #tpu.dot_dimension_numbers<[1], [0], [0], [1], [0, 0, 1, 1], [], []>} : vector<128x128xf32>, vector<128x128xf32>, vector<128x128xf32> -> vector<128x128xf32>
    %124 = arith.addf %122, %123 : vector<128x128xf32>
    %125 = math.tanh %124 : vector<128x128xf32>
    %126 = arith.index_cast %120 : i32 to index
    %c0_67 = arith.constant 0 : index
    %127 = vector.load %arg11[%126, %c0_67] : memref<2048x128xf32, #tpu.memory_space<vmem>>, vector<128x128xf32>
    tpu.vector_store %arg11[%126, %c0_67], %125 {strides = array<i32>} : memref<2048x128xf32, #tpu.memory_space<vmem>>, vector<128x128xf32>,
    %c128_i32_68 = arith.constant 128 : i32
    %128 = arith.addi %119, %c128_i32_68 : i32
    %129 = arith.index_cast %128 : i32 to index
    %c0_69 = arith.constant 0 : index
    %130 = vector.load %arg11[%129, %c0_69] : memref<2048x128xf32, #tpu.memory_space<vmem>>, vector<128x128xf32>
    %cst_70 = arith.constant dense<0.000000e+00> : vector<128x128xf32>
    %131 = tpu.matmul %115, %1, %cst_70 {dimension_numbers = #tpu.dot_dimension_numbers<[1], [0], [0], [1], [0, 0, 1, 1], [], []>} : vector<128x128xf32>, vector<128x128xf32>, vector<128x128xf32> -> vector<128x128xf32>
    %132 = arith.addf %130, %131 : vector<128x128xf32>
    %133 = math.tanh %132 : vector<128x128xf32>
    %134 = arith.index_cast %128 : i32 to index
    %c0_71 = arith.constant 0 : index
    %135 = vector.load %arg11[%134, %c0_71] : memref<2048x128xf32, #tpu.memory_space<vmem>>, vector<128x128xf32>
    tpu.vector_store %arg11[%134, %c0_71], %133 {strides = array<i32>} : memref<2048x128xf32, #tpu.memory_space<vmem>>, vector<128x128xf32>,
    %c7_i32 = arith.constant 7 : i32
    %c256_i32_72 = arith.constant 256 : i32
    %136 = arith.muli %c7_i32, %c256_i32_72 : i32
    %137 = tpu.assume_multiple %136, 256 : i32
    %c0_i32_73 = arith.constant 0 : i32
    %138 = arith.addi %137, %c0_i32_73 : i32
    %139 = arith.index_cast %138 : i32 to index
    %c0_74 = arith.constant 0 : index
    %140 = vector.load %arg11[%139, %c0_74] : memref<2048x128xf32, #tpu.memory_space<vmem>>, vector<128x128xf32>
    %cst_75 = arith.constant dense<0.000000e+00> : vector<128x128xf32>
    %141 = tpu.matmul %125, %1, %cst_75 {dimension_numbers = #tpu.dot_dimension_numbers<[1], [0], [0], [1], [0, 0, 1, 1], [], []>} : vector<128x128xf32>, vector<128x128xf32>, vector<128x128xf32> -> vector<128x128xf32>
    %142 = arith.addf %140, %141 : vector<128x128xf32>
    %143 = math.tanh %142 : vector<128x128xf32>
    %144 = arith.index_cast %138 : i32 to index
    %c0_76 = arith.constant 0 : index
    %145 = vector.load %arg11[%144, %c0_76] : memref<2048x128xf32, #tpu.memory_space<vmem>>, vector<128x128xf32>
    tpu.vector_store %arg11[%144, %c0_76], %143 {strides = array<i32>} : memref<2048x128xf32, #tpu.memory_space<vmem>>, vector<128x128xf32>,
    %c128_i32_77 = arith.constant 128 : i32
    %146 = arith.addi %137, %c128_i32_77 : i32
    %147 = arith.index_cast %146 : i32 to index
    %c0_78 = arith.constant 0 : index
    %148 = vector.load %arg11[%147, %c0_78] : memref<2048x128xf32, #tpu.memory_space<vmem>>, vector<128x128xf32>
    %cst_79 = arith.constant dense<0.000000e+00> : vector<128x128xf32>
    %149 = tpu.matmul %133, %1, %cst_79 {dimension_numbers = #tpu.dot_dimension_numbers<[1], [0], [0], [1], [0, 0, 1, 1], [], []>} : vector<128x128xf32>, vector<128x128xf32>, vector<128x128xf32> -> vector<128x128xf32>
    %150 = arith.addf %148, %149 : vector<128x128xf32>
    %151 = math.tanh %150 : vector<128x128xf32>
    %152 = arith.index_cast %146 : i32 to index
    %c0_80 = arith.constant 0 : index
    %153 = vector.load %arg11[%152, %c0_80] : memref<2048x128xf32, #tpu.memory_space<vmem>>, vector<128x128xf32>
    tpu.vector_store %arg11[%152, %c0_80], %151 {strides = array<i32>} : memref<2048x128xf32, #tpu.memory_space<vmem>>, vector<128x128xf32>,
    %c8_i32 = arith.constant 8 : i32
    %c0_81 = arith.constant 0 : index
    %c0_82 = arith.constant 0 : index
    %154 = vector.load %arg5[%c0_81, %c0_82] : memref<128x128xf32, #tpu.memory_space<vmem>>, vector<128x128xf32>
    %c0_83 = arith.constant 0 : index
    %c0_84 = arith.constant 0 : index
    %155 = vector.load %arg6[%c0_83, %c0_84] : memref<128x128xf32, #tpu.memory_space<vmem>>, vector<128x128xf32>
    %c0_85 = arith.constant 0 : index
    %c0_86 = arith.constant 0 : index
    %156 = vector.load %arg7[%c0_85, %c0_86] : memref<1x128xf32, #tpu.memory_space<vmem>>, vector<1x128xf32>
    %c0_87 = arith.constant 0 : index
    %c0_88 = arith.constant 0 : index
    %157 = vector.load %arg11[%c0_87, %c0_88] : memref<2048x128xf32, #tpu.memory_space<vmem>>, vector<2048x128xf32>
    %cst_89 = arith.constant dense<0.000000e+00> : vector<2048x128xf32>
    %158 = tpu.matmul %157, %154, %cst_89 {dimension_numbers = #tpu.dot_dimension_numbers<[1], [0], [0], [1], [0, 0, 1, 1], [], []>} : vector<2048x128xf32>, vector<128x128xf32>, vector<2048x128xf32> -> vector<2048x128xf32>
    %159 = vector.broadcast %156 : vector<1x128xf32> to vector<2048x128xf32>
    %160 = arith.addf %158, %159 : vector<2048x128xf32>
    %c0_90 = arith.constant 0 : index
    %c0_91 = arith.constant 0 : index
    %161 = vector.load %arg12[%c0_90, %c0_91] : memref<2048x128xf32, #tpu.memory_space<vmem>>, vector<2048x128xf32>
    tpu.vector_store %arg12[%c0_90, %c0_91], %160 {strides = array<i32>} : memref<2048x128xf32, #tpu.memory_space<vmem>>, vector<2048x128xf32>,
    %cst_92 = arith.constant 0.000000e+00 : f32
    %162 = vector.broadcast %cst_92 : f32 to vector<128x128xf32>
    %cst_93 = arith.constant 0.000000e+00 : f32
    %163 = vector.broadcast %cst_93 : f32 to vector<128x128xf32>
    %c0_i32_94 = arith.constant 0 : i32
    %c256_i32_95 = arith.constant 256 : i32
    %164 = arith.muli %c0_i32_94, %c256_i32_95 : i32
    %165 = tpu.assume_multiple %164, 256 : i32
    %166 = arith.index_cast %c0_i32_94 : i32 to index
    %c0_96 = arith.constant 0 : index
    %167 = vector.load %arg8[%166, %c0_96] : memref<8x128xf32, #tpu.memory_space<vmem>>, vector<1x128xf32>
    %c0_i32_97 = arith.constant 0 : i32
    %168 = arith.addi %165, %c0_i32_97 : i32
    %169 = arith.index_cast %168 : i32 to index
    %c0_98 = arith.constant 0 : index
    %170 = vector.load %arg12[%169, %c0_98] : memref<2048x128xf32, #tpu.memory_space<vmem>>, vector<128x128xf32>
    %cst_99 = arith.constant dense<0.000000e+00> : vector<128x128xf32>
    %171 = tpu.matmul %162, %155, %cst_99 {dimension_numbers = #tpu.dot_dimension_numbers<[1], [0], [0], [1], [0, 0, 1, 1], [], []>} : vector<128x128xf32>, vector<128x128xf32>, vector<128x128xf32> -> vector<128x128xf32>
    %172 = arith.addf %170, %171 : vector<128x128xf32>
    %173 = math.tanh %172 : vector<128x128xf32>
    %174 = vector.broadcast %167 : vector<1x128xf32> to vector<128x128xf32>
    %175 = arith.mulf %173, %174 : vector<128x128xf32>
    %176 = arith.addf %163, %175 : vector<128x128xf32>
    %c128_i32_100 = arith.constant 128 : i32
    %177 = arith.addi %165, %c128_i32_100 : i32
    %178 = arith.index_cast %177 : i32 to index
    %c0_101 = arith.constant 0 : index
    %179 = vector.load %arg12[%178, %c0_101] : memref<2048x128xf32, #tpu.memory_space<vmem>>, vector<128x128xf32>
    %cst_102 = arith.constant dense<0.000000e+00> : vector<128x128xf32>
    %180 = tpu.matmul %162, %155, %cst_102 {dimension_numbers = #tpu.dot_dimension_numbers<[1], [0], [0], [1], [0, 0, 1, 1], [], []>} : vector<128x128xf32>, vector<128x128xf32>, vector<128x128xf32> -> vector<128x128xf32>
    %181 = arith.addf %179, %180 : vector<128x128xf32>
    %182 = math.tanh %181 : vector<128x128xf32>
    %183 = vector.broadcast %167 : vector<1x128xf32> to vector<128x128xf32>
    %184 = arith.mulf %182, %183 : vector<128x128xf32>
    %185 = arith.addf %163, %184 : vector<128x128xf32>
    %c1_i32_103 = arith.constant 1 : i32
    %c256_i32_104 = arith.constant 256 : i32
    %186 = arith.muli %c1_i32_103, %c256_i32_104 : i32
    %187 = tpu.assume_multiple %186, 256 : i32
    %188 = arith.index_cast %c1_i32_103 : i32 to index
    %c0_105 = arith.constant 0 : index
    %189 = vector.load %arg8[%188, %c0_105] : memref<8x128xf32, #tpu.memory_space<vmem>>, vector<1x128xf32>
    %c0_i32_106 = arith.constant 0 : i32
    %190 = arith.addi %187, %c0_i32_106 : i32
    %191 = arith.index_cast %190 : i32 to index
    %c0_107 = arith.constant 0 : index
    %192 = vector.load %arg12[%191, %c0_107] : memref<2048x128xf32, #tpu.memory_space<vmem>>, vector<128x128xf32>
    %cst_108 = arith.constant dense<0.000000e+00> : vector<128x128xf32>
    %193 = tpu.matmul %173, %155, %cst_108 {dimension_numbers = #tpu.dot_dimension_numbers<[1], [0], [0], [1], [0, 0, 1, 1], [], []>} : vector<128x128xf32>, vector<128x128xf32>, vector<128x128xf32> -> vector<128x128xf32>
    %194 = arith.addf %192, %193 : vector<128x128xf32>
    %195 = math.tanh %194 : vector<128x128xf32>
    %196 = vector.broadcast %189 : vector<1x128xf32> to vector<128x128xf32>
    %197 = arith.mulf %195, %196 : vector<128x128xf32>
    %198 = arith.addf %176, %197 : vector<128x128xf32>
    %c128_i32_109 = arith.constant 128 : i32
    %199 = arith.addi %187, %c128_i32_109 : i32
    %200 = arith.index_cast %199 : i32 to index
    %c0_110 = arith.constant 0 : index
    %201 = vector.load %arg12[%200, %c0_110] : memref<2048x128xf32, #tpu.memory_space<vmem>>, vector<128x128xf32>
    %cst_111 = arith.constant dense<0.000000e+00> : vector<128x128xf32>
    %202 = tpu.matmul %182, %155, %cst_111 {dimension_numbers = #tpu.dot_dimension_numbers<[1], [0], [0], [1], [0, 0, 1, 1], [], []>} : vector<128x128xf32>, vector<128x128xf32>, vector<128x128xf32> -> vector<128x128xf32>
    %203 = arith.addf %201, %202 : vector<128x128xf32>
    %204 = math.tanh %203 : vector<128x128xf32>
    %205 = vector.broadcast %189 : vector<1x128xf32> to vector<128x128xf32>
    %206 = arith.mulf %204, %205 : vector<128x128xf32>
    %207 = arith.addf %185, %206 : vector<128x128xf32>
    %c2_i32_112 = arith.constant 2 : i32
    %c256_i32_113 = arith.constant 256 : i32
    %208 = arith.muli %c2_i32_112, %c256_i32_113 : i32
    %209 = tpu.assume_multiple %208, 256 : i32
    %210 = arith.index_cast %c2_i32_112 : i32 to index
    %c0_114 = arith.constant 0 : index
    %211 = vector.load %arg8[%210, %c0_114] : memref<8x128xf32, #tpu.memory_space<vmem>>, vector<1x128xf32>
    %c0_i32_115 = arith.constant 0 : i32
    %212 = arith.addi %209, %c0_i32_115 : i32
    %213 = arith.index_cast %212 : i32 to index
    %c0_116 = arith.constant 0 : index
    %214 = vector.load %arg12[%213, %c0_116] : memref<2048x128xf32, #tpu.memory_space<vmem>>, vector<128x128xf32>
    %cst_117 = arith.constant dense<0.000000e+00> : vector<128x128xf32>
    %215 = tpu.matmul %195, %155, %cst_117 {dimension_numbers = #tpu.dot_dimension_numbers<[1], [0], [0], [1], [0, 0, 1, 1], [], []>} : vector<128x128xf32>, vector<128x128xf32>, vector<128x128xf32> -> vector<128x128xf32>
    %216 = arith.addf %214, %215 : vector<128x128xf32>
    %217 = math.tanh %216 : vector<128x128xf32>
    %218 = vector.broadcast %211 : vector<1x128xf32> to vector<128x128xf32>
    %219 = arith.mulf %217, %218 : vector<128x128xf32>
    %220 = arith.addf %198, %219 : vector<128x128xf32>
    %c128_i32_118 = arith.constant 128 : i32
    %221 = arith.addi %209, %c128_i32_118 : i32
    %222 = arith.index_cast %221 : i32 to index
    %c0_119 = arith.constant 0 : index
    %223 = vector.load %arg12[%222, %c0_119] : memref<2048x128xf32, #tpu.memory_space<vmem>>, vector<128x128xf32>
    %cst_120 = arith.constant dense<0.000000e+00> : vector<128x128xf32>
    %224 = tpu.matmul %204, %155, %cst_120 {dimension_numbers = #tpu.dot_dimension_numbers<[1], [0], [0], [1], [0, 0, 1, 1], [], []>} : vector<128x128xf32>, vector<128x128xf32>, vector<128x128xf32> -> vector<128x128xf32>
    %225 = arith.addf %223, %224 : vector<128x128xf32>
    %226 = math.tanh %225 : vector<128x128xf32>
    %227 = vector.broadcast %211 : vector<1x128xf32> to vector<128x128xf32>
    %228 = arith.mulf %226, %227 : vector<128x128xf32>
    %229 = arith.addf %207, %228 : vector<128x128xf32>
    %c3_i32_121 = arith.constant 3 : i32
    %c256_i32_122 = arith.constant 256 : i32
    %230 = arith.muli %c3_i32_121, %c256_i32_122 : i32
    %231 = tpu.assume_multiple %230, 256 : i32
    %232 = arith.index_cast %c3_i32_121 : i32 to index
    %c0_123 = arith.constant 0 : index
    %233 = vector.load %arg8[%232, %c0_123] : memref<8x128xf32, #tpu.memory_space<vmem>>, vector<1x128xf32>
    %c0_i32_124 = arith.constant 0 : i32
    %234 = arith.addi %231, %c0_i32_124 : i32
    %235 = arith.index_cast %234 : i32 to index
    %c0_125 = arith.constant 0 : index
    %236 = vector.load %arg12[%235, %c0_125] : memref<2048x128xf32, #tpu.memory_space<vmem>>, vector<128x128xf32>
    %cst_126 = arith.constant dense<0.000000e+00> : vector<128x128xf32>
    %237 = tpu.matmul %217, %155, %cst_126 {dimension_numbers = #tpu.dot_dimension_numbers<[1], [0], [0], [1], [0, 0, 1, 1], [], []>} : vector<128x128xf32>, vector<128x128xf32>, vector<128x128xf32> -> vector<128x128xf32>
    %238 = arith.addf %236, %237 : vector<128x128xf32>
    %239 = math.tanh %238 : vector<128x128xf32>
    %240 = vector.broadcast %233 : vector<1x128xf32> to vector<128x128xf32>
    %241 = arith.mulf %239, %240 : vector<128x128xf32>
    %242 = arith.addf %220, %241 : vector<128x128xf32>
    %c128_i32_127 = arith.constant 128 : i32
    %243 = arith.addi %231, %c128_i32_127 : i32
    %244 = arith.index_cast %243 : i32 to index
    %c0_128 = arith.constant 0 : index
    %245 = vector.load %arg12[%244, %c0_128] : memref<2048x128xf32, #tpu.memory_space<vmem>>, vector<128x128xf32>
    %cst_129 = arith.constant dense<0.000000e+00> : vector<128x128xf32>
    %246 = tpu.matmul %226, %155, %cst_129 {dimension_numbers = #tpu.dot_dimension_numbers<[1], [0], [0], [1], [0, 0, 1, 1], [], []>} : vector<128x128xf32>, vector<128x128xf32>, vector<128x128xf32> -> vector<128x128xf32>
    %247 = arith.addf %245, %246 : vector<128x128xf32>
    %248 = math.tanh %247 : vector<128x128xf32>
    %249 = vector.broadcast %233 : vector<1x128xf32> to vector<128x128xf32>
    %250 = arith.mulf %248, %249 : vector<128x128xf32>
    %251 = arith.addf %229, %250 : vector<128x128xf32>
    %c4_i32_130 = arith.constant 4 : i32
    %c256_i32_131 = arith.constant 256 : i32
    %252 = arith.muli %c4_i32_130, %c256_i32_131 : i32
    %253 = tpu.assume_multiple %252, 256 : i32
    %254 = arith.index_cast %c4_i32_130 : i32 to index
    %c0_132 = arith.constant 0 : index
    %255 = vector.load %arg8[%254, %c0_132] : memref<8x128xf32, #tpu.memory_space<vmem>>, vector<1x128xf32>
    %c0_i32_133 = arith.constant 0 : i32
    %256 = arith.addi %253, %c0_i32_133 : i32
    %257 = arith.index_cast %256 : i32 to index
    %c0_134 = arith.constant 0 : index
    %258 = vector.load %arg12[%257, %c0_134] : memref<2048x128xf32, #tpu.memory_space<vmem>>, vector<128x128xf32>
    %cst_135 = arith.constant dense<0.000000e+00> : vector<128x128xf32>
    %259 = tpu.matmul %239, %155, %cst_135 {dimension_numbers = #tpu.dot_dimension_numbers<[1], [0], [0], [1], [0, 0, 1, 1], [], []>} : vector<128x128xf32>, vector<128x128xf32>, vector<128x128xf32> -> vector<128x128xf32>
    %260 = arith.addf %258, %259 : vector<128x128xf32>
    %261 = math.tanh %260 : vector<128x128xf32>
    %262 = vector.broadcast %255 : vector<1x128xf32> to vector<128x128xf32>
    %263 = arith.mulf %261, %262 : vector<128x128xf32>
    %264 = arith.addf %242, %263 : vector<128x128xf32>
    %c128_i32_136 = arith.constant 128 : i32
    %265 = arith.addi %253, %c128_i32_136 : i32
    %266 = arith.index_cast %265 : i32 to index
    %c0_137 = arith.constant 0 : index
    %267 = vector.load %arg12[%266, %c0_137] : memref<2048x128xf32, #tpu.memory_space<vmem>>, vector<128x128xf32>
    %cst_138 = arith.constant dense<0.000000e+00> : vector<128x128xf32>
    %268 = tpu.matmul %248, %155, %cst_138 {dimension_numbers = #tpu.dot_dimension_numbers<[1], [0], [0], [1], [0, 0, 1, 1], [], []>} : vector<128x128xf32>, vector<128x128xf32>, vector<128x128xf32> -> vector<128x128xf32>
    %269 = arith.addf %267, %268 : vector<128x128xf32>
    %270 = math.tanh %269 : vector<128x128xf32>
    %271 = vector.broadcast %255 : vector<1x128xf32> to vector<128x128xf32>
    %272 = arith.mulf %270, %271 : vector<128x128xf32>
    %273 = arith.addf %251, %272 : vector<128x128xf32>
    %c5_i32_139 = arith.constant 5 : i32
    %c256_i32_140 = arith.constant 256 : i32
    %274 = arith.muli %c5_i32_139, %c256_i32_140 : i32
    %275 = tpu.assume_multiple %274, 256 : i32
    %276 = arith.index_cast %c5_i32_139 : i32 to index
    %c0_141 = arith.constant 0 : index
    %277 = vector.load %arg8[%276, %c0_141] : memref<8x128xf32, #tpu.memory_space<vmem>>, vector<1x128xf32>
    %c0_i32_142 = arith.constant 0 : i32
    %278 = arith.addi %275, %c0_i32_142 : i32
    %279 = arith.index_cast %278 : i32 to index
    %c0_143 = arith.constant 0 : index
    %280 = vector.load %arg12[%279, %c0_143] : memref<2048x128xf32, #tpu.memory_space<vmem>>, vector<128x128xf32>
    %cst_144 = arith.constant dense<0.000000e+00> : vector<128x128xf32>
    %281 = tpu.matmul %261, %155, %cst_144 {dimension_numbers = #tpu.dot_dimension_numbers<[1], [0], [0], [1], [0, 0, 1, 1], [], []>} : vector<128x128xf32>, vector<128x128xf32>, vector<128x128xf32> -> vector<128x128xf32>
    %282 = arith.addf %280, %281 : vector<128x128xf32>
    %283 = math.tanh %282 : vector<128x128xf32>
    %284 = vector.broadcast %277 : vector<1x128xf32> to vector<128x128xf32>
    %285 = arith.mulf %283, %284 : vector<128x128xf32>
    %286 = arith.addf %264, %285 : vector<128x128xf32>
    %c128_i32_145 = arith.constant 128 : i32
    %287 = arith.addi %275, %c128_i32_145 : i32
    %288 = arith.index_cast %287 : i32 to index
    %c0_146 = arith.constant 0 : index
    %289 = vector.load %arg12[%288, %c0_146] : memref<2048x128xf32, #tpu.memory_space<vmem>>, vector<128x128xf32>
    %cst_147 = arith.constant dense<0.000000e+00> : vector<128x128xf32>
    %290 = tpu.matmul %270, %155, %cst_147 {dimension_numbers = #tpu.dot_dimension_numbers<[1], [0], [0], [1], [0, 0, 1, 1], [], []>} : vector<128x128xf32>, vector<128x128xf32>, vector<128x128xf32> -> vector<128x128xf32>
    %291 = arith.addf %289, %290 : vector<128x128xf32>
    %292 = math.tanh %291 : vector<128x128xf32>
    %293 = vector.broadcast %277 : vector<1x128xf32> to vector<128x128xf32>
    %294 = arith.mulf %292, %293 : vector<128x128xf32>
    %295 = arith.addf %273, %294 : vector<128x128xf32>
    %c6_i32_148 = arith.constant 6 : i32
    %c256_i32_149 = arith.constant 256 : i32
    %296 = arith.muli %c6_i32_148, %c256_i32_149 : i32
    %297 = tpu.assume_multiple %296, 256 : i32
    %298 = arith.index_cast %c6_i32_148 : i32 to index
    %c0_150 = arith.constant 0 : index
    %299 = vector.load %arg8[%298, %c0_150] : memref<8x128xf32, #tpu.memory_space<vmem>>, vector<1x128xf32>
    %c0_i32_151 = arith.constant 0 : i32
    %300 = arith.addi %297, %c0_i32_151 : i32
    %301 = arith.index_cast %300 : i32 to index
    %c0_152 = arith.constant 0 : index
    %302 = vector.load %arg12[%301, %c0_152] : memref<2048x128xf32, #tpu.memory_space<vmem>>, vector<128x128xf32>
    %cst_153 = arith.constant dense<0.000000e+00> : vector<128x128xf32>
    %303 = tpu.matmul %283, %155, %cst_153 {dimension_numbers = #tpu.dot_dimension_numbers<[1], [0], [0], [1], [0, 0, 1, 1], [], []>} : vector<128x128xf32>, vector<128x128xf32>, vector<128x128xf32> -> vector<128x128xf32>
    %304 = arith.addf %302, %303 : vector<128x128xf32>
    %305 = math.tanh %304 : vector<128x128xf32>
    %306 = vector.broadcast %299 : vector<1x128xf32> to vector<128x128xf32>
    %307 = arith.mulf %305, %306 : vector<128x128xf32>
    %308 = arith.addf %286, %307 : vector<128x128xf32>
    %c128_i32_154 = arith.constant 128 : i32
    %309 = arith.addi %297, %c128_i32_154 : i32
    %310 = arith.index_cast %309 : i32 to index
    %c0_155 = arith.constant 0 : index
    %311 = vector.load %arg12[%310, %c0_155] : memref<2048x128xf32, #tpu.memory_space<vmem>>, vector<128x128xf32>
    %cst_156 = arith.constant dense<0.000000e+00> : vector<128x128xf32>
    %312 = tpu.matmul %292, %155, %cst_156 {dimension_numbers = #tpu.dot_dimension_numbers<[1], [0], [0], [1], [0, 0, 1, 1], [], []>} : vector<128x128xf32>, vector<128x128xf32>, vector<128x128xf32> -> vector<128x128xf32>
    %313 = arith.addf %311, %312 : vector<128x128xf32>
    %314 = math.tanh %313 : vector<128x128xf32>
    %315 = vector.broadcast %299 : vector<1x128xf32> to vector<128x128xf32>
    %316 = arith.mulf %314, %315 : vector<128x128xf32>
    %317 = arith.addf %295, %316 : vector<128x128xf32>
    %c7_i32_157 = arith.constant 7 : i32
    %c256_i32_158 = arith.constant 256 : i32
    %318 = arith.muli %c7_i32_157, %c256_i32_158 : i32
    %319 = tpu.assume_multiple %318, 256 : i32
    %320 = arith.index_cast %c7_i32_157 : i32 to index
    %c0_159 = arith.constant 0 : index
    %321 = vector.load %arg8[%320, %c0_159] : memref<8x128xf32, #tpu.memory_space<vmem>>, vector<1x128xf32>
    %c0_i32_160 = arith.constant 0 : i32
    %322 = arith.addi %319, %c0_i32_160 : i32
    %323 = arith.index_cast %322 : i32 to index
    %c0_161 = arith.constant 0 : index
    %324 = vector.load %arg12[%323, %c0_161] : memref<2048x128xf32, #tpu.memory_space<vmem>>, vector<128x128xf32>
    %cst_162 = arith.constant dense<0.000000e+00> : vector<128x128xf32>
    %325 = tpu.matmul %305, %155, %cst_162 {dimension_numbers = #tpu.dot_dimension_numbers<[1], [0], [0], [1], [0, 0, 1, 1], [], []>} : vector<128x128xf32>, vector<128x128xf32>, vector<128x128xf32> -> vector<128x128xf32>
    %326 = arith.addf %324, %325 : vector<128x128xf32>
    %327 = math.tanh %326 : vector<128x128xf32>
    %328 = vector.broadcast %321 : vector<1x128xf32> to vector<128x128xf32>
    %329 = arith.mulf %327, %328 : vector<128x128xf32>
    %330 = arith.addf %308, %329 : vector<128x128xf32>
    %c128_i32_163 = arith.constant 128 : i32
    %331 = arith.addi %319, %c128_i32_163 : i32
    %332 = arith.index_cast %331 : i32 to index
    %c0_164 = arith.constant 0 : index
    %333 = vector.load %arg12[%332, %c0_164] : memref<2048x128xf32, #tpu.memory_space<vmem>>, vector<128x128xf32>
    %cst_165 = arith.constant dense<0.000000e+00> : vector<128x128xf32>
    %334 = tpu.matmul %314, %155, %cst_165 {dimension_numbers = #tpu.dot_dimension_numbers<[1], [0], [0], [1], [0, 0, 1, 1], [], []>} : vector<128x128xf32>, vector<128x128xf32>, vector<128x128xf32> -> vector<128x128xf32>
    %335 = arith.addf %333, %334 : vector<128x128xf32>
    %336 = math.tanh %335 : vector<128x128xf32>
    %337 = vector.broadcast %321 : vector<1x128xf32> to vector<128x128xf32>
    %338 = arith.mulf %336, %337 : vector<128x128xf32>
    %339 = arith.addf %317, %338 : vector<128x128xf32>
    %c8_i32_166 = arith.constant 8 : i32
    %c0_167 = arith.constant 0 : index
    %c0_168 = arith.constant 0 : index
    %340 = vector.load %arg9[%c0_167, %c0_168] : memref<1x1xf32, #tpu.memory_space<vmem>>, vector<1x1xf32>
    %341 = tpu.transpose %330, [1, 0] : vector<128x128xf32> -> vector<128x128xf32>
    %cst_169 = arith.constant dense<0.000000e+00> : vector<128xf32>
    %342 = vector.multi_reduction <add>, %341, %cst_169 [0] : vector<128x128xf32> to vector<128xf32>
    %343 = vector.shape_cast %342 : vector<128xf32> to vector<1x128xf32>
    %344 = vector.broadcast %340 : vector<1x1xf32> to vector<1x128xf32>
    %345 = arith.addf %343, %344 : vector<1x128xf32>
    %346 = arith.negf %345 : vector<1x128xf32>
    %347 = math.exp %346 : vector<1x128xf32>
    %cst_170 = arith.constant 1.000000e+00 : f32
    %348 = vector.broadcast %cst_170 : f32 to vector<1x128xf32>
    %349 = arith.addf %348, %347 : vector<1x128xf32>
    %350 = arith.divf %348, %349 : vector<1x128xf32>
    %351 = vector.shape_cast %350 : vector<1x128xf32> to vector<1x1x128xf32>
    %c0_171 = arith.constant 0 : index
    %c0_172 = arith.constant 0 : index
    %c0_173 = arith.constant 0 : index
    %352 = vector.load %arg10[%c0_171, %c0_172, %c0_173] : memref<1x1x256xf32, #tpu.memory_space<vmem>>, vector<1x1x128xf32>
    tpu.vector_store %arg10[%c0_171, %c0_172, %c0_173], %351 {strides = array<i32>} : memref<1x1x256xf32, #tpu.memory_space<vmem>>, vector<1x1x128xf32>,
    %353 = tpu.transpose %339, [1, 0] : vector<128x128xf32> -> vector<128x128xf32>
    %cst_174 = arith.constant dense<0.000000e+00> : vector<128xf32>
    %354 = vector.multi_reduction <add>, %353, %cst_174 [0] : vector<128x128xf32> to vector<128xf32>
    %355 = vector.shape_cast %354 : vector<128xf32> to vector<1x128xf32>
    %356 = vector.broadcast %340 : vector<1x1xf32> to vector<1x128xf32>
    %357 = arith.addf %355, %356 : vector<1x128xf32>
    %358 = arith.negf %357 : vector<1x128xf32>
    %359 = math.exp %358 : vector<1x128xf32>
    %cst_175 = arith.constant 1.000000e+00 : f32
    %360 = vector.broadcast %cst_175 : f32 to vector<1x128xf32>
    %361 = arith.addf %360, %359 : vector<1x128xf32>
    %362 = arith.divf %360, %361 : vector<1x128xf32>
    %363 = vector.shape_cast %362 : vector<1x128xf32> to vector<1x1x128xf32>
    %c0_176 = arith.constant 0 : index
    %c0_177 = arith.constant 0 : index
    %c128 = arith.constant 128 : index
    %364 = vector.load %arg10[%c0_176, %c0_177, %c128] : memref<1x1x256xf32, #tpu.memory_space<vmem>>, vector<1x1x128xf32>
    tpu.vector_store %arg10[%c0_176, %c0_177, %c128], %363 {strides = array<i32>} : memref<1x1x256xf32, #tpu.memory_space<vmem>>, vector<1x1x128xf32>,
    return
  }
  func.func @transform_0(%arg0: i32) -> (i32, i32, i32) {
    %c0_i32 = arith.constant 0 : i32
    %c0_i32_0 = arith.constant 0 : i32
    %c0_i32_1 = arith.constant 0 : i32
    return %arg0, %c0_i32, %c0_i32_0 : i32, i32, i32
  }
  func.func @transform_1(%arg0: i32) -> (i32, i32) {
    %c0_i32 = arith.constant 0 : i32
    %c0_i32_0 = arith.constant 0 : i32
    %c0_i32_1 = arith.constant 0 : i32
    return %c0_i32, %c0_i32_0 : i32, i32
  }
  func.func @transform_2(%arg0: i32) -> (i32, i32) {
    %c0_i32 = arith.constant 0 : i32
    %c0_i32_0 = arith.constant 0 : i32
    %c0_i32_1 = arith.constant 0 : i32
    return %c0_i32, %c0_i32_0 : i32, i32
  }
  func.func @transform_3(%arg0: i32) -> (i32, i32) {
    %c0_i32 = arith.constant 0 : i32
    %c0_i32_0 = arith.constant 0 : i32
    %c0_i32_1 = arith.constant 0 : i32
    return %c0_i32, %c0_i32_0 : i32, i32
  }
  func.func @transform_4(%arg0: i32) -> (i32, i32) {
    %c0_i32 = arith.constant 0 : i32
    %c0_i32_0 = arith.constant 0 : i32
    %c0_i32_1 = arith.constant 0 : i32
    return %c0_i32, %c0_i32_0 : i32, i32
  }
  func.func @transform_5(%arg0: i32) -> (i32, i32) {
    %c0_i32 = arith.constant 0 : i32
    %c0_i32_0 = arith.constant 0 : i32
    %c0_i32_1 = arith.constant 0 : i32
    return %c0_i32, %c0_i32_0 : i32, i32
  }
  func.func @transform_6(%arg0: i32) -> (i32, i32) {
    %c0_i32 = arith.constant 0 : i32
    %c0_i32_0 = arith.constant 0 : i32
    %c0_i32_1 = arith.constant 0 : i32
    return %c0_i32, %c0_i32_0 : i32, i32
  }
  func.func @transform_7(%arg0: i32) -> (i32, i32) {
    %c0_i32 = arith.constant 0 : i32
    %c0_i32_0 = arith.constant 0 : i32
    %c0_i32_1 = arith.constant 0 : i32
    return %c0_i32, %c0_i32_0 : i32, i32
  }
  func.func @transform_8(%arg0: i32) -> (i32, i32) {
    %c0_i32 = arith.constant 0 : i32
    %c0_i32_0 = arith.constant 0 : i32
    %c0_i32_1 = arith.constant 0 : i32
    return %c0_i32, %c0_i32_0 : i32, i32
  }
  func.func @transform_9(%arg0: i32) -> (i32, i32, i32) {
    %c0_i32 = arith.constant 0 : i32
    %c0_i32_0 = arith.constant 0 : i32
    %c0_i32_1 = arith.constant 0 : i32
    return %arg0, %c0_i32, %c0_i32_0 : i32, i32, i32
  }
}

</mosaic_0001>

<bundles_post_ra>
// kernel: tpu_custom_call.1
= control target key start
LH: loop header
LB: loop body
LE: loop exit
PB: predicated region body
PF: predicated region fallthrough
CT: control target
= control target key end

     0   :  { %s15089_s0 = inlined_call_operand.vmem [shape: f32[1,2048,8], index: 0, kind: input, shape index: {}]   ;;  %s15090_s1 = inlined_call_operand.vmem [shape: f32[8,128], index: 1, kind: input, shape index: {}]   ;;  %s15091_s2 = inlined_call_operand.vmem [shape: f32[128,128], index: 2, kind: input, shape index: {}]   ;;  %s15092_s3 = inlined_call_operand.vmem [shape: f32[1,128], index: 3, kind: input, shape index: {}]   ;;  %s15093_s4 = inlined_call_operand.vmem [shape: f32[128,128], index: 4, kind: input, shape index: {}]   ;;  %s15094_s5 = inlined_call_operand.vmem [shape: f32[128,128], index: 5, kind: input, shape index: {}]   ;;  %s15095_s6 = inlined_call_operand.vmem [shape: f32[1,128], index: 6, kind: input, shape index: {}]   ;;  %s15096_s7 = inlined_call_operand.vmem [shape: f32[8,128], index: 7, kind: input, shape index: {}]   ;;  %s15097_s8 = inlined_call_operand.<no memory space> [shape: f32[1,1], index: 8, kind: input, shape index: {}]   ;;  %s15098_s9 = inlined_call_operand.hbm [shape: f32[1,1,256], index: 9, kind: output, shape index: {}]  }
   0x1   :  { %v14_v0 = vstv %s15097_s8 }
   0x2   :  { %15 = vst [vmem:[#allocation4] sm:$0x1] %v14_v0 }
   0x3   :  { %v35_v1 = vld [vmem:[%s15090_s1] sm:$0xff]  ;;  %v9472_v2 = vld [vmem:[%s15091_s2 + $0x78] sm:$0xff]  ;;  %vm312_vm0 = vcmask 64512   ;;  %v9481_v4 = vld [vmem:[%s15091_s2 + $0x70] sm:$0xff] }
   0x4   :  { %v53_v3 = vld [vmem:[%s15089_s0] sm:$0xff]  ;;  %1096 = vmatpush.msra.mxu0 %v35_v1  ;;  %2138 = vmatpush.msra.mxu1 %v9472_v2  ;;  %v9487_v5 = vld [vmem:[%s15091_s2 + $0x68] sm:$0xff]  ;;  %v9502_v7 = vld [vmem:[%s15091_s2 + $0x58] sm:$0xff] }
   0x5   :  { %7954 = vmatmul.msk.f32.vlgmr.msra.gmra.mxu0 %vm312_vm0, %v53_v3  ;;  %8212 = vmatpush.msra.mxu2 %v35_v1  ;;  %v9494_v6 = vld [vmem:[%s15091_s2 + $0x60] sm:$0xff]  ;;  %v54_v8 = vld [vmem:[%s15089_s0 + $0x8] sm:$0xff]  ;;  %v9512_v9 = vld [vmem:[%s15091_s2 + $0x50] sm:$0xff] }
   0x6   :  { %2139 = vmatpush.msra.mxu1 %v9481_v4  ;;  %2465 = vmatpush.msra.mxu3 %v9472_v2  ;;  %v9518_v10 = vld [vmem:[%s15091_s2 + $0x48] sm:$0xff] }
   0x7   :  { %2334 = vmatpush.msrb.mxu2 %v9472_v2 }
   0x8   :  { %2140 = vmatpush.msra.mxu1 %v9487_v5  ;;  %2466 = vmatpush.msra.mxu3 %v9481_v4 }
   0x9   :  { %2335 = vmatpush.msrb.mxu2 %v9481_v4 }
   0xa   :  { %2141 = vmatpush.msra.mxu1 %v9494_v6  ;;  %2467 = vmatpush.msra.mxu3 %v9487_v5 }
   0xb   :  { %2336 = vmatpush.msrb.mxu2 %v9487_v5 }
   0xc   :  { %2142 = vmatpush.msra.mxu1 %v9502_v7  ;;  %2468 = vmatpush.msra.mxu3 %v9494_v6 }
   0xd   :  { %2337 = vmatpush.msrb.mxu2 %v9494_v6  ;;  %7955 = vmatmul.msk.f32.gmra.mxu0 %vm312_vm0, %v54_v8 }
   0xe   :  { %2143 = vmatpush.msra.mxu1 %v9512_v9 }
   0xf   :  { %2338 = vmatpush.msrb.mxu2 %v9502_v7 }
  0x10   :  { %16 = vsyncpa [#allocation6], 0  ;;  %v9530_v11 = vld [vmem:[%s15091_s2 + $0x40] sm:$0xff]  ;;  %2469 = vmatpush.msra.mxu3 %v9502_v7  ;;  %2144 = vmatpush.msra.mxu1 %v9518_v10  ;;  %v9538_v12 = vld [vmem:[%s15091_s2 + $0x38] sm:$0xff]  ;;  %v15099_v23 = vmov 0.0  }
  0x11   :  { %2339 = vmatpush.msrb.mxu2 %v9512_v9  ;;  %v55_v13 = vld [vmem:[%s15089_s0 + $0x10] sm:$0xff]  ;;  %v9558_v15 = vld [vmem:[%s15091_s2 + $0x28] sm:$0xff]  ;;  %v9566_v16 = vld [vmem:[%s15091_s2 + $0x20] sm:$0xff] }
  0x12   :  { %2470 = vmatpush.msra.mxu3 %v9512_v9  ;;  %2145 = vmatpush.msra.mxu1 %v9530_v11  ;;  %v9549_v14 = vld [vmem:[%s15091_s2 + $0x30] sm:$0xff]  ;;  %v9574_v17 = vld [vmem:[%s15091_s2 + $0x18] sm:$0xff]  ;;  %v9594_v20 = vld [vmem:[%s15091_s2 + $0x8] sm:$0xff] }
  0x13   :  { %2340 = vmatpush.msrb.mxu2 %v9518_v10  ;;  %v56_v18 = vld [vmem:[%s15089_s0 + $0x18] sm:$0xff]  ;;  %v9585_v19 = vld [vmem:[%s15091_s2 + $0x10] sm:$0xff]  ;;  %v9602_v21 = vld [vmem:[%s15091_s2] sm:$0xff] }
  0x14   :  { %2471 = vmatpush.msra.mxu3 %v9518_v10  ;;  %2146 = vmatpush.msra.mxu1 %v9538_v12  ;;  %v57_v22 = vld [vmem:[%s15089_s0 + $0x20] sm:$0xff]  ;;  %v58_v24 = vld [vmem:[%s15089_s0 + $0x28] sm:$0xff]  ;;  %v59_v25 = vld [vmem:[%s15089_s0 + $0x30] sm:$0xff] }
  0x15   :  { %2341 = vmatpush.msrb.mxu2 %v9530_v11  ;;  %7956 = vmatmul.msk.f32.gmra.mxu0 %vm312_vm0, %v55_v13  ;;  %v60_v26 = vld [vmem:[%s15089_s0 + $0x38] sm:$0xff]  ;;  %v61_v27 = vld [vmem:[%s15089_s0 + $0x40] sm:$0xff]  ;;  %v62_v28 = vld [vmem:[%s15089_s0 + $0x48] sm:$0xff] }
  0x16   :  { %2472 = vmatpush.msra.mxu3 %v9530_v11  ;;  %2147 = vmatpush.msra.mxu1 %v9549_v14  ;;  %v63_v29 = vld [vmem:[%s15089_s0 + $0x50] sm:$0xff]  ;;  %v64_v31 = vld [vmem:[%s15089_s0 + $0x58] sm:$0xff]  ;;  %v65_v33 = vld [vmem:[%s15089_s0 + $0x60] sm:$0xff] }
  0x17   :  { %2342 = vmatpush.msrb.mxu2 %v9538_v12  ;;  %v303_v30 = vld [vmem:[%s15089_s0 + $0x7d0] sm:$0xff]  ;;  %v304_v32 = vld [vmem:[%s15089_s0 + $0x7d8] sm:$0xff]  ;;  %v305_v34 = vld [vmem:[%s15089_s0 + $0x7e0] sm:$0xff] }
  0x18   :  { %2473 = vmatpush.msra.mxu3 %v9538_v12  ;;  %2148 = vmatpush.msra.mxu1 %v9558_v15  ;;  %v66_v35 = vld [vmem:[%s15089_s0 + $0x68] sm:$0xff]  ;;  %v67_v37 = vld [vmem:[%s15089_s0 + $0x70] sm:$0xff]  ;;  %v68_v39 = vld [vmem:[%s15089_s0 + $0x78] sm:$0xff] }
  0x19   :  { %2343 = vmatpush.msrb.mxu2 %v9549_v14  ;;  %v306_v36 = vld [vmem:[%s15089_s0 + $0x7e8] sm:$0xff]  ;;  %v307_v38 = vld [vmem:[%s15089_s0 + $0x7f0] sm:$0xff]  ;;  %v308_v40 = vld [vmem:[%s15089_s0 + $0x7f8] sm:$0xff] }
  0x1a   :  { %2474 = vmatpush.msra.mxu3 %v9549_v14  ;;  %2149 = vmatpush.msra.mxu1 %v9566_v16  ;;  %v69_v42 = vld [vmem:[%s15089_s0 + $0x80] sm:$0xff]  ;;  %v70_v44 = vld [vmem:[%s15089_s0 + $0x88] sm:$0xff]  ;;  %v71_v46 = vld [vmem:[%s15089_s0 + $0x90] sm:$0xff] }
  0x1b   :  { %2344 = vmatpush.msrb.mxu2 %v9558_v15  ;;  %v72_v48 = vld [vmem:[%s15089_s0 + $0x98] sm:$0xff]  ;;  %v9782_v49 = vld [vmem:[%s15092_s3] ss:$0 sm:$0xff]  ;;  %v74_v60 = vld [vmem:[%s15089_s0 + $0xa8] sm:$0xff] }
  0x1c   :  { %2475 = vmatpush.msra.mxu3 %v9558_v15  ;;  %2150 = vmatpush.msra.mxu1 %v9574_v17  ;;  %v73_v54 = vld [vmem:[%s15089_s0 + $0xa0] sm:$0xff]  ;;  %v75_v3 = vld [vmem:[%s15089_s0 + $0xb0] sm:$0xff] }
  0x1d   :  { %2345 = vmatpush.msrb.mxu2 %v9566_v16  ;;  %7957 = vmatmul.msk.f32.gmra.mxu0 %vm312_vm0, %v56_v18 }
  0x1e   :  { %2476 = vmatpush.msra.mxu3 %v9566_v16  ;;  %2151 = vmatpush.msra.mxu1 %v9585_v19 }
  0x1f   :  { %2346 = vmatpush.msrb.mxu2 %v9574_v17 }
  0x20   :  { %2477 = vmatpush.msra.mxu3 %v9574_v17  ;;  %2152 = vmatpush.msra.mxu1 %v9594_v20 }
  0x21   :  { %2347 = vmatpush.msrb.mxu2 %v9585_v19 }
  0x22   :  { %2478 = vmatpush.msra.mxu3 %v9585_v19  ;;  %2153 = vmatpush.msra.mxu1 %v9602_v21 }
  0x23   :  { %2348 = vmatpush.msrb.mxu2 %v9594_v20  ;;  %2154 = vmatmul.f32.vlgmr.msra.gmra.mxu1 %v15099_v23 }
  0x24   :  { %2479 = vmatpush.msra.mxu3 %v9594_v20  ;;  %2595 = vmatpush.msrb.mxu1 %v9472_v2 }
  0x25   :  { %2349 = vmatpush.msrb.mxu2 %v9602_v21  ;;  %7958 = vmatmul.msk.f32.gmra.mxu0 %vm312_vm0, %v57_v22 }
  0x26   :  { %2480 = vmatpush.msra.mxu3 %v9602_v21  ;;  %2596 = vmatpush.msrb.mxu1 %v9481_v4 }
  0x27   :  { %8204 = vmatmul.msk.f32.vlgmr.msra.gmra.mxu2 %vm312_vm0, %v303_v30 }
  0x28   :  { %2856 = vmatpush.msrb.mxu3 %v9472_v2  ;;  %2597 = vmatpush.msrb.mxu1 %v9487_v5 }
  0x29   :  { %2726 = vmatpush.msra.mxu2 %v9472_v2 }
  0x2a   :  { %2857 = vmatpush.msrb.mxu3 %v9481_v4  ;;  %2598 = vmatpush.msrb.mxu1 %v9494_v6 }
  0x2b   :  { %2157 = vmatmul.f32.gmra.mxu1 %v15099_v23  ;;  %2727 = vmatpush.msra.mxu2 %v9481_v4 }
  0x2c   :  { %2858 = vmatpush.msrb.mxu3 %v9487_v5  ;;  %2599 = vmatpush.msrb.mxu1 %v9502_v7 }
  0x2d   :  { %7959 = vmatmul.msk.f32.gmra.mxu0 %vm312_vm0, %v58_v24  ;;  %2728 = vmatpush.msra.mxu2 %v9487_v5 }
  0x2e   :  { %2859 = vmatpush.msrb.mxu3 %v9494_v6  ;;  %2600 = vmatpush.msrb.mxu1 %v9512_v9 }
  0x2f   :  { %2729 = vmatpush.msra.mxu2 %v9494_v6 }
  0x30   :  { %2860 = vmatpush.msrb.mxu3 %v9502_v7  ;;  %2601 = vmatpush.msrb.mxu1 %v9518_v10 }
  0x31   :  { %2730 = vmatpush.msra.mxu2 %v9502_v7 }
  0x32   :  { %2861 = vmatpush.msrb.mxu3 %v9512_v9  ;;  %2602 = vmatpush.msrb.mxu1 %v9530_v11 }
  0x33   :  { %2160 = vmatmul.f32.gmra.mxu1 %v15099_v23  ;;  %2731 = vmatpush.msra.mxu2 %v9512_v9 }
  0x34   :  { %2862 = vmatpush.msrb.mxu3 %v9518_v10  ;;  %2603 = vmatpush.msrb.mxu1 %v9538_v12 }
  0x35   :  { %7960 = vmatmul.msk.f32.gmra.mxu0 %vm312_vm0, %v59_v25  ;;  %8205 = vmatmul.msk.f32.gmra.mxu2 %vm312_vm0, %v304_v32  ;;  %v76_v25 = vld [vmem:[%s15089_s0 + $0xb8] sm:$0xff] }
  0x36   :  { %2863 = vmatpush.msrb.mxu3 %v9530_v11  ;;  %2604 = vmatpush.msrb.mxu1 %v9549_v14 }
  0x37   :  { %2732 = vmatpush.msra.mxu2 %v9518_v10 }
  0x38   :  { %2864 = vmatpush.msrb.mxu3 %v9538_v12  ;;  %2605 = vmatpush.msrb.mxu1 %v9558_v15 }
  0x39   :  { %2733 = vmatpush.msra.mxu2 %v9530_v11 }
  0x3a   :  { %2865 = vmatpush.msrb.mxu3 %v9549_v14  ;;  %2606 = vmatpush.msrb.mxu1 %v9566_v16 }
  0x3b   :  { %2163 = vmatmul.f32.gmra.mxu1 %v15099_v23  ;;  %2734 = vmatpush.msra.mxu2 %v9538_v12 }
  0x3c   :  { %2866 = vmatpush.msrb.mxu3 %v9558_v15  ;;  %2607 = vmatpush.msrb.mxu1 %v9574_v17 }
  0x3d   :  { %7961 = vmatmul.msk.f32.gmra.mxu0 %vm312_vm0, %v60_v26  ;;  %2735 = vmatpush.msra.mxu2 %v9549_v14 }
  0x3e   :  { %2867 = vmatpush.msrb.mxu3 %v9566_v16  ;;  %2608 = vmatpush.msrb.mxu1 %v9585_v19 }
  0x3f   :  { %8206 = vmatmul.msk.f32.gmra.mxu2 %vm312_vm0, %v305_v34 }
  0x40   :  { %2868 = vmatpush.msrb.mxu3 %v9574_v17  ;;  %2609 = vmatpush.msrb.mxu1 %v9594_v20 }
  0x41   :  { %2736 = vmatpush.msra.mxu2 %v9558_v15 }
  0x42   :  { %2869 = vmatpush.msrb.mxu3 %v9585_v19  ;;  %2610 = vmatpush.msrb.mxu1 %v9602_v21 }
  0x43   :  { %2166 = vmatmul.f32.gmra.mxu1 %v15099_v23  ;;  %2737 = vmatpush.msra.mxu2 %v9566_v16 }
  0x44   :  { %2870 = vmatpush.msrb.mxu3 %v9594_v20  ;;  %2987 = vmatpush.msra.mxu1 %v9472_v2 }
  0x45   :  { %7962 = vmatmul.msk.f32.gmra.mxu0 %vm312_vm0, %v61_v27  ;;  %2738 = vmatpush.msra.mxu2 %v9574_v17 }
  0x46   :  { %2871 = vmatpush.msrb.mxu3 %v9602_v21  ;;  %2988 = vmatpush.msra.mxu1 %v9481_v4 }
  0x47   :  { %2739 = vmatpush.msra.mxu2 %v9585_v19 }
  0x48   :  { %2989 = vmatpush.msra.mxu1 %v9487_v5  ;;  %8207 = vmatmul.msk.f32.gmra.mxu2 %vm312_vm0, %v306_v36 }
  0x49   :  { %2740 = vmatpush.msra.mxu2 %v9594_v20 }
  0x4a   :  { %2990 = vmatpush.msra.mxu1 %v9494_v6 }
  0x4b   :  { %2169 = vmatmul.f32.gmra.mxu1 %v15099_v23  ;;  %2741 = vmatpush.msra.mxu2 %v9602_v21 }
  0x4c   :  { %2991 = vmatpush.msra.mxu1 %v9502_v7 }
  0x4d   :  { %7963 = vmatmul.msk.f32.gmra.mxu0 %vm312_vm0, %v62_v28 }
  0x4e   :  { %2992 = vmatpush.msra.mxu1 %v9512_v9 }
  0x50   :  { %2993 = vmatpush.msra.mxu1 %v9518_v10  ;;  %8208 = vmatmul.msk.f32.gmra.mxu2 %vm312_vm0, %v307_v38 }
  0x52   :  { %2994 = vmatpush.msra.mxu1 %v9530_v11 }
  0x53   :  { %2172 = vmatmul.f32.gmra.mxu1 %v15099_v23 }
  0x54   :  { %2995 = vmatpush.msra.mxu1 %v9538_v12 }
  0x55   :  { %7964 = vmatmul.msk.f32.gmra.mxu0 %vm312_vm0, %v63_v29 }
  0x56   :  { %2996 = vmatpush.msra.mxu1 %v9549_v14 }
  0x58   :  { %2997 = vmatpush.msra.mxu1 %v9558_v15  ;;  %8209 = vmatmul.msk.f32.gmra.mxu2 %vm312_vm0, %v308_v40 }
  0x5a   :  { %2998 = vmatpush.msra.mxu1 %v9566_v16 }
  0x5b   :  { %2175 = vmatmul.f32.gmra.mxu1 %v15099_v23 }
  0x5c   :  { %2999 = vmatpush.msra.mxu1 %v9574_v17 }
  0x5d   :  { %7965 = vmatmul.msk.f32.gmra.mxu0 %vm312_vm0, %v64_v31  ;;  %v77_v31 = vld [vmem:[%s15089_s0 + $0xc0] sm:$0xff] }
  0x5e   :  { %3000 = vmatpush.msra.mxu1 %v9585_v19 }
  0x60   :  { %3001 = vmatpush.msra.mxu1 %v9594_v20 }
  0x62   :  { %3002 = vmatpush.msra.mxu1 %v9602_v21 }
  0x63   :  { %2178 = vmatmul.f32.gmra.mxu1 %v15099_v23 }
  0x65   :  { %7966 = vmatmul.msk.f32.gmra.mxu0 %vm312_vm0, %v65_v33 }
  0x6b   :  { %2181 = vmatmul.f32.gmra.mxu1 %v15099_v23 }
  0x6d   :  { %7967 = vmatmul.msk.f32.gmra.mxu0 %vm312_vm0, %v66_v35 }
  0x73   :  { %2184 = vmatmul.f32.gmra.mxu1 %v15099_v23 }
  0x75   :  { %7968 = vmatmul.msk.f32.gmra.mxu0 %vm312_vm0, %v67_v37  ;;  %v78_v37 = vld [vmem:[%s15089_s0 + $0xc8] sm:$0xff] }
  0x7b   :  { %2187 = vmatmul.f32.gmra.mxu1 %v15099_v23 }
  0x7d   :  { %7969 = vmatmul.msk.f32.gmra.mxu0 %vm312_vm0, %v68_v39 }
  0x82   :  { %v1098_v41 = vpop.f32.mrf.mxu0 }
  0x83   :  { %2190 = vmatmul.f32.gmra.mxu1 %v15099_v23  ;;  %v1099_v50 = vadd.f32 %v9782_v49, %v1098_v41 }
  0x85   :  { %7970 = vmatmul.msk.f32.gmra.mxu0 %vm312_vm0, %v69_v42 }
  0x8a   :  { %v1101_v43 = vpop.f32.mrf.mxu0 }
  0x8b   :  { %2193 = vmatmul.f32.gmra.mxu1 %v15099_v23  ;;  %v1102_v55 = vadd.f32 %v9782_v49, %v1101_v43  ;;  %v79_v43 = vld [vmem:[%s15089_s0 + $0xd0] sm:$0xff] }
  0x8d   :  { %7971 = vmatmul.msk.f32.gmra.mxu0 %vm312_vm0, %v70_v44 }
  0x92   :  { %v1104_v45 = vpop.f32.mrf.mxu0 }
  0x93   :  { %2196 = vmatmul.f32.gmra.mxu1 %v15099_v23  ;;  %v1105_v61 = vadd.f32 %v9782_v49, %v1104_v45 }
  0x95   :  { %7972 = vmatmul.msk.f32.gmra.mxu0 %vm312_vm0, %v71_v46 }
  0x9a   :  { %v1107_v47 = vpop.f32.mrf.mxu0 }
  0x9b   :  { %2199 = vmatmul.f32.gmra.mxu1 %v15099_v23  ;;  %v1108_v8 = vadd.f32 %v9782_v49, %v1107_v47  ;;  %v10207_v23 = vld [vmem:[%s15091_s2 + $0x40] sm:$0xff] }
  0x9d   :  { %7973 = vmatmul.msk.f32.gmra.mxu0 %vm312_vm0, %v72_v48 }
  0xa0   :  { %v9787_v51 = vpop.f32.mrf.mxu1 }
  0xa1   :  { %v2203_v52 = vadd.f32 %v9787_v51, %v1099_v50  ;;  %v80_v50 = vld [vmem:[%s15089_s0 + $0xd8] sm:$0xff] }
  0xa2   :  { %v1110_v53 = vpop.f32.mrf.mxu0 }
  0xa3   :  { %8260 = vtanh.f32 %v2203_v52  ;;  %v1111_v26 = vadd.f32 %v9782_v49, %v1110_v53 }
  0xa5   :  { %7974 = vmatmul.msk.f32.gmra.mxu0 %vm312_vm0, %v73_v54 }
  0xa8   :  { %v9795_v56 = vpop.f32.mrf.mxu1 }
  0xa9   :  { %v9797_v57 = vpop.eup %8260  ;;  %v2204_v58 = vadd.f32 %v9795_v56, %v1102_v55 }
  0xaa   :  { %v1113_v59 = vpop.f32.mrf.mxu0  ;;  %2350 = vmatmul.f32.vlgmr.msrb.gmra.mxu2 %v9797_v57 }
  0xab   :  { %8262 = vtanh.f32 %v2204_v58  ;;  %3117 = vmatpush.msrb.mxu2 %v9472_v2  ;;  %v1114_v32 = vadd.f32 %v9782_v49, %v1113_v59  ;;  %v81_v59 = vld [vmem:[%s15089_s0 + $0xe0] sm:$0xff] }
  0xad   :  { %7975 = vmatmul.msk.f32.gmra.mxu0 %vm312_vm0, %v74_v60  ;;  %3118 = vmatpush.msrb.mxu2 %v9481_v4 }
  0xaf   :  { %3119 = vmatpush.msrb.mxu2 %v9487_v5 }
  0xb0   :  { %v9809_v62 = vpop.f32.mrf.mxu1 }
  0xb1   :  { %v9811_v63 = vpop.eup %8262  ;;  %v2205_v0 = vadd.f32 %v9809_v62, %v1105_v61  ;;  %3120 = vmatpush.msrb.mxu2 %v9494_v6 }
  0xb2   :  { %v1116_v1 = vpop.f32.mrf.mxu0  ;;  %2353 = vmatmul.f32.gmra.mxu2 %v9811_v63 }
  0xb3   :  { %8264 = vtanh.f32 %v2205_v0  ;;  %3121 = vmatpush.msrb.mxu2 %v9502_v7  ;;  %v1117_v38 = vadd.f32 %v9782_v49, %v1116_v1 }
  0xb5   :  { %7976 = vmatmul.msk.f32.gmra.mxu0 %vm312_vm0, %v75_v3  ;;  %3122 = vmatpush.msrb.mxu2 %v9512_v9 }
  0xb7   :  { %3123 = vmatpush.msrb.mxu2 %v9518_v10 }
  0xb8   :  { %v9824_v13 = vpop.f32.mrf.mxu1 }
  0xb9   :  { %v9826_v18 = vpop.eup %8264  ;;  %v2206_v22 = vadd.f32 %v9824_v13, %v1108_v8  ;;  %3124 = vmatpush.msrb.mxu2 %v9530_v11  ;;  %v82_v8 = vld [vmem:[%s15089_s0 + $0xe8] sm:$0xff] }
  0xba   :  { %v1119_v24 = vpop.f32.mrf.mxu0  ;;  %2356 = vmatmul.f32.gmra.mxu2 %v9826_v18 }
  0xbb   :  { %8266 = vtanh.f32 %v2206_v22  ;;  %3125 = vmatpush.msrb.mxu2 %v9538_v12  ;;  %v1120_v44 = vadd.f32 %v9782_v49, %v1119_v24 }
  0xbd   :  { %7977 = vmatmul.msk.f32.gmra.mxu0 %vm312_vm0, %v76_v25  ;;  %3126 = vmatpush.msrb.mxu2 %v9549_v14 }
  0xbf   :  { %3127 = vmatpush.msrb.mxu2 %v9558_v15 }
  0xc0   :  { %v9839_v27 = vpop.f32.mrf.mxu1 }
  0xc1   :  { %v9841_v28 = vpop.eup %8266  ;;  %v2207_v29 = vadd.f32 %v9839_v27, %v1111_v26  ;;  %3128 = vmatpush.msrb.mxu2 %v9566_v16 }
  0xc2   :  { %v1122_v30 = vpop.f32.mrf.mxu0  ;;  %2359 = vmatmul.f32.gmra.mxu2 %v9841_v28 }
  0xc3   :  { %8268 = vtanh.f32 %v2207_v29  ;;  %3129 = vmatpush.msrb.mxu2 %v9574_v17  ;;  %v1123_v52 = vadd.f32 %v9782_v49, %v1122_v30  ;;  %v83_v30 = vld [vmem:[%s15089_s0 + $0xf0] sm:$0xff] }
  0xc5   :  { %7978 = vmatmul.msk.f32.gmra.mxu0 %vm312_vm0, %v77_v31  ;;  %3130 = vmatpush.msrb.mxu2 %v9585_v19 }
  0xc7   :  { %3131 = vmatpush.msrb.mxu2 %v9594_v20 }
  0xc8   :  { %v9854_v33 = vpop.f32.mrf.mxu1 }
  0xc9   :  { %v9856_v34 = vpop.eup %8268  ;;  %v2208_v35 = vadd.f32 %v9854_v33, %v1114_v32  ;;  %3132 = vmatpush.msrb.mxu2 %v9602_v21 }
  0xca   :  { %v1125_v36 = vpop.f32.mrf.mxu0  ;;  %2362 = vmatmul.f32.gmra.mxu2 %v9856_v34 }
  0xcb   :  { %8270 = vtanh.f32 %v2208_v35  ;;  %v1126_v60 = vadd.f32 %v9782_v49, %v1125_v36 }
  0xcd   :  { %7979 = vmatmul.msk.f32.gmra.mxu0 %vm312_vm0, %v78_v37 }
  0xd0   :  { %v9866_v39 = vpop.f32.mrf.mxu1 }
  0xd1   :  { %v9868_v40 = vpop.eup %8270  ;;  %v2209_v41 = vadd.f32 %v9866_v39, %v1117_v38  ;;  %v84_v38 = vld [vmem:[%s15089_s0 + $0xf8] sm:$0xff] }
  0xd2   :  { %v1128_v42 = vpop.f32.mrf.mxu0  ;;  %2365 = vmatmul.f32.gmra.mxu2 %v9868_v40 }
  0xd3   :  { %8272 = vtanh.f32 %v2209_v41  ;;  %v1129_v22 = vadd.f32 %v9782_v49, %v1128_v42 }
  0xd5   :  { %7980 = vmatmul.msk.f32.gmra.mxu0 %vm312_vm0, %v79_v43 }
  0xd8   :  { %v9877_v45 = vpop.f32.mrf.mxu1 }
  0xd9   :  { %v9879_v46 = vpop.eup %8272  ;;  %v2210_v47 = vadd.f32 %v9877_v45, %v1120_v44 }
  0xda   :  { %v1131_v48 = vpop.f32.mrf.mxu0  ;;  %2368 = vmatmul.f32.gmra.mxu2 %v9879_v46 }
  0xdb   :  { %8274 = vtanh.f32 %v2210_v47  ;;  %v1132_v31 = vadd.f32 %v9782_v49, %v1131_v48  ;;  %v85_v48 = vld [vmem:[%s15089_s0 + $0x100] sm:$0xff] }
  0xdd   :  { %7981 = vmatmul.msk.f32.gmra.mxu0 %vm312_vm0, %v80_v50 }
  0xe0   :  { %v9888_v53 = vpop.f32.mrf.mxu1 }
  0xe1   :  { %v9890_v54 = vpop.eup %8274  ;;  %v2211_v55 = vadd.f32 %v9888_v53, %v1123_v52 }
  0xe2   :  { %v1134_v58 = vpop.f32.mrf.mxu0  ;;  %2371 = vmatmul.f32.gmra.mxu2 %v9890_v54 }
  0xe3   :  { %8276 = vtanh.f32 %v2211_v55  ;;  %v1135_v41 = vadd.f32 %v9782_v49, %v1134_v58 }
  0xe5   :  { %7982 = vmatmul.msk.f32.gmra.mxu0 %vm312_vm0, %v81_v59 }
  0xe8   :  { %v9899_v61 = vpop.f32.mrf.mxu1 }
  0xe9   :  { %v9901_v0 = vpop.eup %8276  ;;  %v2212_v1 = vadd.f32 %v9899_v61, %v1126_v60 }
  0xea   :  { %v1137_v3 = vpop.f32.mrf.mxu0  ;;  %2374 = vmatmul.f32.gmra.mxu2 %v9901_v0 }
  0xeb   :  { %8278 = vtanh.f32 %v2212_v1  ;;  %v1138_v55 = vadd.f32 %v9782_v49, %v1137_v3 }
  0xed   :  { %7983 = vmatmul.msk.f32.gmra.mxu0 %vm312_vm0, %v82_v8  ;;  %v86_v8 = vld [vmem:[%s15089_s0 + $0x108] sm:$0xff] }
  0xf0   :  { %v9910_v24 = vpop.f32.mrf.mxu1 }
  0xf1   :  { %v9912_v25 = vpop.eup %8278  ;;  %v2213_v26 = vadd.f32 %v9910_v24, %v1129_v22 }
  0xf2   :  { %v1140_v29 = vpop.f32.mrf.mxu0  ;;  %2377 = vmatmul.f32.gmra.mxu2 %v9912_v25 }
  0xf3   :  { %8280 = vtanh.f32 %v2213_v26  ;;  %v1141_v26 = vadd.f32 %v9782_v49, %v1140_v29 }
  0xf5   :  { %7984 = vmatmul.msk.f32.gmra.mxu0 %vm312_vm0, %v83_v30 }
  0xf8   :  { %v9921_v32 = vpop.f32.mrf.mxu1 }
  0xf9   :  { %v9923_v35 = vpop.eup %8280  ;;  %v2214_v36 = vadd.f32 %v9921_v32, %v1132_v31 }
  0xfa   :  { %v1143_v37 = vpop.f32.mrf.mxu0  ;;  %2380 = vmatmul.f32.gmra.mxu2 %v9923_v35 }
  0xfb   :  { %8282 = vtanh.f32 %v2214_v36 }
  0xfd   :  { %7985 = vmatmul.msk.f32.gmra.mxu0 %vm312_vm0, %v84_v38 }
 0x100   :  { %v9932_v42 = vpop.f32.mrf.mxu1 }
 0x101   :  { %v9934_v43 = vpop.eup %8282  ;;  %v2215_v44 = vadd.f32 %v9932_v42, %v1135_v41 }
 0x102   :  { %v1146_v47 = vpop.f32.mrf.mxu0  ;;  %2383 = vmatmul.f32.gmra.mxu2 %v9934_v43 }
 0x103   :  { %8284 = vtanh.f32 %v2215_v44  ;;  %v1147_v50 = vadd.f32 %v9782_v49, %v1146_v47 }
 0x105   :  { %v2269_v52 = vadd.f32 %v9787_v51, %v1147_v50  ;;  %7986 = vmatmul.msk.f32.gmra.mxu0 %vm312_vm0, %v85_v48 }
 0x107   :  { %8286 = vtanh.f32 %v2269_v52 }
 0x108   :  { %v9945_v58 = vpop.f32.mrf.mxu1 }
 0x109   :  { %v9947_v59 = vpop.eup %8284  ;;  %v2216_v60 = vadd.f32 %v9945_v58, %v1138_v55 }
 0x10a   :  { %v1149_v1 = vpop.f32.mrf.mxu0  ;;  %2386 = vmatmul.f32.gmra.mxu2 %v9947_v59 }
 0x10b   :  { %8288 = vtanh.f32 %v2216_v60  ;;  %v1150_v51 = vadd.f32 %v9782_v49, %v1149_v1  ;;  %v90_v60 = vld [vmem:[%s15089_s0 + $0x128] sm:$0xff] }
 0x10d   :  { %v9955_v22 = vpop.eup %8286  ;;  %v2270_v3 = vadd.f32 %v9795_v56, %v1150_v51  ;;  %7987 = vmatmul.msk.f32.gmra.mxu0 %vm312_vm0, %v86_v8  ;;  %v87_v56 = vld [vmem:[%s15089_s0 + $0x110] sm:$0xff] }
 0x10e   :  { %2481 = vmatmul.f32.vlgmr.msra.gmra.mxu3 %v9955_v22 }
 0x10f   :  { %8290 = vtanh.f32 %v2270_v3  ;;  %3248 = vmatpush.msra.mxu3 %v9472_v2  ;;  %v91_v3 = vld [vmem:[%s15089_s0 + $0x130] sm:$0xff] }
 0x110   :  { %v9962_v30 = vpop.f32.mrf.mxu1 }
 0x111   :  { %v9964_v31 = vpop.eup %8288  ;;  %v2217_v36 = vadd.f32 %v9962_v30, %v1141_v26  ;;  %3249 = vmatpush.msra.mxu3 %v9481_v4  ;;  %v1144_v4 = vadd.f32 %v9782_v49, %v1143_v37 }
 0x112   :  { %v1152_v38 = vpop.f32.mrf.mxu0  ;;  %2389 = vmatmul.f32.gmra.mxu2 %v9964_v31 }
 0x113   :  { %8292 = vtanh.f32 %v2217_v36  ;;  %v1153_v29 = vadd.f32 %v9782_v49, %v1152_v38  ;;  %3250 = vmatpush.msra.mxu3 %v9487_v5 }
 0x115   :  { %v9974_v2 = vpop.eup %8290  ;;  %v2271_v41 = vadd.f32 %v9809_v62, %v1153_v29  ;;  %7988 = vmatmul.msk.f32.gmra.mxu0 %vm312_vm0, %v87_v56  ;;  %3251 = vmatpush.msra.mxu3 %v9494_v6  ;;  %v88_v6 = vld [vmem:[%s15089_s0 + $0x118] sm:$0xff] }
 0x116   :  { %2484 = vmatmul.f32.gmra.mxu3 %v9974_v2  ;;  %v92_v29 = vld [vmem:[%s15089_s0 + $0x138] sm:$0xff] }
 0x117   :  { %8294 = vtanh.f32 %v2271_v41  ;;  %3252 = vmatpush.msra.mxu3 %v9502_v7 }
 0x118   :  { %v9982_v44 = vpop.f32.mrf.mxu1 }
 0x119   :  { %v9984_v47 = vpop.eup %8292  ;;  %v2218_v5 = vadd.f32 %v9982_v44, %v1144_v4  ;;  %3253 = vmatpush.msra.mxu3 %v9512_v9 }
 0x11a   :  { %v1155_v62 = vpop.f32.mrf.mxu0  ;;  %2392 = vmatmul.f32.gmra.mxu2 %v9984_v47 }
 0x11b   :  { %8296 = vtanh.f32 %v2218_v5  ;;  %v1156_v37 = vadd.f32 %v9782_v49, %v1155_v62  ;;  %3254 = vmatpush.msra.mxu3 %v9518_v10  ;;  %v89_v10 = vld [vmem:[%s15089_s0 + $0x120] sm:$0xff] }
 0x11d   :  { %v9994_v7 = vpop.eup %8294  ;;  %v2272_v48 = vadd.f32 %v9824_v13, %v1156_v37  ;;  %7989 = vmatmul.msk.f32.gmra.mxu0 %vm312_vm0, %v88_v6  ;;  %3255 = vmatpush.msra.mxu3 %v9530_v11  ;;  %v93_v6 = vld [vmem:[%s15089_s0 + $0x140] sm:$0xff] }
 0x11e   :  { %2487 = vmatmul.f32.gmra.mxu3 %v9994_v7 }
 0x11f   :  { %8298 = vtanh.f32 %v2272_v48  ;;  %3256 = vmatpush.msra.mxu3 %v9538_v12  ;;  %v10018_v12 = vpop.f32.mrf.mxu2 }
 0x120   :  { %15268 = vst [vmem:[#allocation8_spill] sm:$0xff] %v10018_v12 }
 0x121   :  { %v10001_v9 = vpop.eup %8296  ;;  %3257 = vmatpush.msra.mxu3 %v9549_v14 }
 0x122   :  { %v1158_v50 = vpop.f32.mrf.mxu0  ;;  %2395 = vmatmul.f32.gmra.mxu2 %v10001_v9 }
 0x123   :  { %v1159_v13 = vadd.f32 %v9782_v49, %v1158_v50  ;;  %3258 = vmatpush.msra.mxu3 %v9558_v15 }
 0x125   :  { %v10010_v11 = vpop.eup %8298  ;;  %v2273_v52 = vadd.f32 %v9839_v27, %v1159_v13  ;;  %7990 = vmatmul.msk.f32.gmra.mxu0 %vm312_vm0, %v89_v10  ;;  %3259 = vmatpush.msra.mxu3 %v9566_v16  ;;  %v94_v13 = vld [vmem:[%s15089_s0 + $0x148] sm:$0xff] }
 0x126   :  { %2490 = vmatmul.f32.gmra.mxu3 %v10010_v11 }
 0x127   :  { %8300 = vtanh.f32 %v2273_v52  ;;  %3260 = vmatpush.msra.mxu3 %v9574_v17  ;;  %v10035_v36 = vpop.f32.mrf.mxu2 }
 0x128   :  { %15269 = vst [vmem:[#allocation9_spill] sm:$0xff] %v10035_v36 }
 0x129   :  { %3261 = vmatpush.msra.mxu3 %v9585_v19 }
 0x12a   :  { %v1161_v55 = vpop.f32.mrf.mxu0 }
 0x12b   :  { %v1162_v27 = vadd.f32 %v9782_v49, %v1161_v55  ;;  %3262 = vmatpush.msra.mxu3 %v9594_v20 }
 0x12d   :  { %v10025_v1 = vpop.eup %8300  ;;  %v2274_v8 = vadd.f32 %v9854_v33, %v1162_v27  ;;  %7991 = vmatmul.msk.f32.gmra.mxu0 %vm312_vm0, %v90_v60  ;;  %3263 = vmatpush.msra.mxu3 %v9602_v21 }
 0x12e   :  { %2493 = vmatmul.f32.gmra.mxu3 %v10025_v1 }
 0x12f   :  { %8302 = vtanh.f32 %v2274_v8  ;;  %v10050_v62 = vpop.f32.mrf.mxu2  ;;  %v95_v8 = vld [vmem:[%s15089_s0 + $0x150] sm:$0xff] }
 0x130   :  { %15270 = vst [vmem:[#allocation10_spill] sm:$0xff] %v10050_v62 }
 0x132   :  { %v1164_v51 = vpop.f32.mrf.mxu0 }
 0x133   :  { %v1165_v26 = vadd.f32 %v9782_v49, %v1164_v51 }
 0x135   :  { %v10037_v38 = vpop.eup %8302  ;;  %v2275_v33 = vadd.f32 %v9866_v39, %v1165_v26  ;;  %7992 = vmatmul.msk.f32.gmra.mxu0 %vm312_vm0, %v91_v3 }
 0x136   :  { %2496 = vmatmul.f32.gmra.mxu3 %v10037_v38 }
 0x137   :  { %8304 = vtanh.f32 %v2275_v33  ;;  %v96_v33 = vld [vmem:[%s15089_s0 + $0x158] sm:$0xff] }
 0x13a   :  { %v1167_v56 = vpop.f32.mrf.mxu0 }
 0x13b   :  { %v1168_v41 = vadd.f32 %v9782_v49, %v1167_v56 }
 0x13d   :  { %v10046_v4 = vpop.eup %8304  ;;  %v2276_v5 = vadd.f32 %v9877_v45, %v1168_v41  ;;  %7993 = vmatmul.msk.f32.gmra.mxu0 %vm312_vm0, %v92_v29  ;;  %v10062_v45 = vpop.f32.mrf.mxu2 }
 0x13e   :  { %2499 = vmatmul.f32.gmra.mxu3 %v10046_v4  ;;  %15271 = vst [vmem:[#allocation11_spill] sm:$0xff] %v10062_v45 }
 0x13f   :  { %8306 = vtanh.f32 %v2276_v5 }
 0x142   :  { %v1170_v39 = vpop.f32.mrf.mxu0 }
 0x143   :  { %v1171_v37 = vadd.f32 %v9782_v49, %v1170_v39  ;;  %v97_v39 = vld [vmem:[%s15089_s0 + $0x160] sm:$0xff] }
 0x145   :  { %v10057_v48 = vpop.eup %8306  ;;  %v2277_v50 = vadd.f32 %v9888_v53, %v1171_v37  ;;  %7994 = vmatmul.msk.f32.gmra.mxu0 %vm312_vm0, %v93_v6  ;;  %v10073_v53 = vpop.f32.mrf.mxu2 }
 0x146   :  { %2502 = vmatmul.f32.gmra.mxu3 %v10057_v48  ;;  %15272 = vst [vmem:[#allocation12_spill] sm:$0xff] %v10073_v53 }
 0x147   :  { %8308 = vtanh.f32 %v2277_v50 }
 0x14a   :  { %v1173_v10 = vpop.f32.mrf.mxu0 }
 0x14b   :  { %v1174_v52 = vadd.f32 %v9782_v49, %v1173_v10 }
 0x14d   :  { %v10068_v55 = vpop.eup %8308  ;;  %v2278_v60 = vadd.f32 %v9899_v61, %v1174_v52  ;;  %7995 = vmatmul.msk.f32.gmra.mxu0 %vm312_vm0, %v94_v13  ;;  %v10088_v29 = vpop.f32.mrf.mxu2  ;;  %v98_v13 = vld [vmem:[%s15089_s0 + $0x168] sm:$0xff] }
 0x14e   :  { %2505 = vmatmul.f32.gmra.mxu3 %v10068_v55  ;;  %15273 = vst [vmem:[#allocation13_spill] sm:$0xff] %v10088_v29 }
 0x14f   :  { %8310 = vtanh.f32 %v2278_v60 }
 0x152   :  { %v1176_v27 = vpop.f32.mrf.mxu0 }
 0x153   :  { %v1177_v51 = vadd.f32 %v9782_v49, %v1176_v27 }
 0x155   :  { %v10079_v3 = vpop.eup %8310  ;;  %v2279_v26 = vadd.f32 %v9910_v24, %v1177_v51  ;;  %7996 = vmatmul.msk.f32.gmra.mxu0 %vm312_vm0, %v95_v8  ;;  %v2351_v10 = vpop.f32.mrf.mxu2  ;;  %v99_v51 = vld [vmem:[%s15089_s0 + $0x170] sm:$0xff] }
 0x156   :  { %2508 = vmatmul.f32.gmra.mxu3 %v10079_v3 }
 0x157   :  { %8312 = vtanh.f32 %v2279_v26 }
 0x15a   :  { %v1179_v61 = vpop.f32.mrf.mxu0 }
 0x15b   :  { %v1180_v56 = vadd.f32 %v9782_v49, %v1179_v61 }
 0x15d   :  { %v10090_v41 = vpop.eup %8312  ;;  %v2280_v5 = vadd.f32 %v9921_v32, %v1180_v56  ;;  %7997 = vmatmul.msk.f32.gmra.mxu0 %vm312_vm0, %v96_v33 }
 0x15e   :  { %2511 = vmatmul.f32.gmra.mxu3 %v10090_v41 }
 0x15f   :  { %8314 = vtanh.f32 %v2280_v5  ;;  %v100_v5 = vld [vmem:[%s15089_s0 + $0x178] sm:$0xff] }
 0x162   :  { %v1182_v24 = vpop.f32.mrf.mxu0 }
 0x163   :  { %v1183_v6 = vadd.f32 %v9782_v49, %v1182_v24 }
 0x165   :  { %v10099_v37 = vpop.eup %8314  ;;  %v2281_v50 = vadd.f32 %v9932_v42, %v1183_v6  ;;  %7998 = vmatmul.msk.f32.gmra.mxu0 %vm312_vm0, %v97_v39  ;;  %v2354_v42 = vpop.f32.mrf.mxu2 }
 0x166   :  { %2514 = vmatmul.f32.gmra.mxu3 %v10099_v37 }
 0x167   :  { %8316 = vtanh.f32 %v2281_v50  ;;  %v101_v50 = vld [vmem:[%s15089_s0 + $0x180] sm:$0xff] }
 0x16a   :  { %v1185_v32 = vpop.f32.mrf.mxu0 }
 0x16b   :  { %v1186_v52 = vadd.f32 %v9782_v49, %v1185_v32 }
 0x16d   :  { %v10108_v60 = vpop.eup %8316  ;;  %v2282_v27 = vadd.f32 %v9945_v58, %v1186_v52  ;;  %7999 = vmatmul.msk.f32.gmra.mxu0 %vm312_vm0, %v98_v13  ;;  %v2357_v58 = vpop.f32.mrf.mxu2 }
 0x16e   :  { %2517 = vmatmul.f32.gmra.mxu3 %v10108_v60 }
 0x16f   :  { %8318 = vtanh.f32 %v2282_v27 }
 0x172   :  { %v1188_v8 = vpop.f32.mrf.mxu0 }
 0x173   :  { %v1189_v26 = vadd.f32 %v9782_v49, %v1188_v8  ;;  %v102_v8 = vld [vmem:[%s15089_s0 + $0x188] sm:$0xff] }
 0x175   :  { %v10117_v61 = vpop.eup %8318  ;;  %v2283_v33 = vadd.f32 %v9962_v30, %v1189_v26  ;;  %8000 = vmatmul.msk.f32.gmra.mxu0 %vm312_vm0, %v99_v51  ;;  %v2360_v13 = vpop.f32.mrf.mxu2 }
 0x176   :  { %2520 = vmatmul.f32.gmra.mxu3 %v10117_v61 }
 0x177   :  { %8320 = vtanh.f32 %v2283_v33 }
 0x17a   :  { %v1191_v56 = vpop.f32.mrf.mxu0 }
 0x17b   :  { %v1192_v24 = vadd.f32 %v9782_v49, %v1191_v56 }
 0x17d   :  { %v10126_v39 = vpop.eup %8320  ;;  %v2284_v6 = vadd.f32 %v9982_v44, %v1192_v24  ;;  %8001 = vmatmul.msk.f32.gmra.mxu0 %vm312_vm0, %v100_v5  ;;  %v2363_v56 = vpop.f32.mrf.mxu2  ;;  %v10156_v5 = vld [vmem:[%s15091_s2 + $0x70] sm:$0xff] }
 0x17e   :  { %2523 = vmatmul.f32.gmra.mxu3 %v10126_v39  ;;  %v103_v24 = vld [vmem:[%s15089_s0 + $0x190] sm:$0xff] }
 0x17f   :  { %8322 = vtanh.f32 %v2284_v6 }
 0x182   :  { %v1194_v30 = vpop.f32.mrf.mxu0 }
 0x183   :  { %v1195_v32 = vadd.f32 %v9782_v49, %v1194_v30  ;;  %v10166_v30 = vld [vmem:[%s15091_s2 + $0x68] sm:$0xff] }
 0x185   :  { %v10135_v52 = vpop.eup %8322  ;;  %v2399_v27 = vadd.f32 %v2351_v10, %v1195_v32  ;;  %8002 = vmatmul.msk.f32.gmra.mxu0 %vm312_vm0, %v101_v50  ;;  %v10150_v10 = vld [vmem:[%s15091_s2 + $0x78] sm:$0xff] }
 0x186   :  { %2526 = vmatmul.f32.gmra.mxu3 %v10135_v52 }
 0x187   :  { %8324 = vtanh.f32 %v2399_v27  ;;  %v10175_v27 = vld [vmem:[%s15091_s2 + $0x60] sm:$0xff] }
 0x18a   :  { %v1197_v44 = vpop.f32.mrf.mxu0 }
 0x18b   :  { %v1198_v51 = vadd.f32 %v9782_v49, %v1197_v44  ;;  %v10182_v44 = vld [vmem:[%s15091_s2 + $0x58] sm:$0xff] }
 0x18d   :  { %v10143_v26 = vpop.eup %8324  ;;  %v2400_v33 = vadd.f32 %v2354_v42, %v1198_v51  ;;  %8003 = vmatmul.msk.f32.gmra.mxu0 %vm312_vm0, %v102_v8  ;;  %v10188_v8 = vld [vmem:[%s15091_s2 + $0x50] sm:$0xff] }
 0x18e   :  { %2611 = vmatmul.f32.vlgmr.msrb.gmra.mxu1 %v10143_v26 }
 0x18f   :  { %8326 = vtanh.f32 %v2400_v33  ;;  %3378 = vmatpush.msrb.mxu1 %v10150_v10  ;;  %v104_v33 = vld [vmem:[%s15089_s0 + $0x198] sm:$0xff] }
 0x191   :  { %3379 = vmatpush.msrb.mxu1 %v10156_v5 }
 0x192   :  { %v1200_v42 = vpop.f32.mrf.mxu0 }
 0x193   :  { %v1201_v6 = vadd.f32 %v9782_v49, %v1200_v42  ;;  %3380 = vmatpush.msrb.mxu1 %v10166_v30 }
 0x195   :  { %v10169_v50 = vpop.eup %8326  ;;  %v2401_v32 = vadd.f32 %v2357_v58, %v1201_v6  ;;  %8004 = vmatmul.msk.f32.gmra.mxu0 %vm312_vm0, %v103_v24  ;;  %3381 = vmatpush.msrb.mxu1 %v10175_v27  ;;  %v2366_v58 = vpop.f32.mrf.mxu2  ;;  %v10198_v24 = vld [vmem:[%s15091_s2 + $0x48] sm:$0xff] }
 0x196   :  { %15274 = vst [vmem:[#allocation14_spill] sm:$0xff] %v10169_v50  ;;  %2614 = vmatmul.f32.gmra.mxu1 %v10169_v50 }
 0x197   :  { %8328 = vtanh.f32 %v2401_v32  ;;  %3382 = vmatpush.msrb.mxu1 %v10182_v44 }
 0x199   :  { %3383 = vmatpush.msrb.mxu1 %v10188_v8 }
 0x19a   :  { %v1203_v51 = vpop.f32.mrf.mxu0 }
 0x19b   :  { %v1204_v42 = vadd.f32 %v9782_v49, %v1203_v51  ;;  %3384 = vmatpush.msrb.mxu1 %v10198_v24  ;;  %v10214_v51 = vld [vmem:[%s15091_s2 + $0x38] sm:$0xff] }
 0x19d   :  { %v10201_v6 = vpop.eup %8328  ;;  %v2402_v32 = vadd.f32 %v2360_v13, %v1204_v42  ;;  %8005 = vmatmul.msk.f32.gmra.mxu0 %vm312_vm0, %v104_v33  ;;  %3385 = vmatpush.msrb.mxu1 %v10207_v23  ;;  %v2369_v13 = vpop.f32.mrf.mxu2  ;;  %v105_v42 = vld [vmem:[%s15089_s0 + $0x1a0] sm:$0xff] }
 0x19e   :  { %15275 = vst [vmem:[#allocation15_spill] sm:$0xff] %v10201_v6  ;;  %2617 = vmatmul.f32.gmra.mxu1 %v10201_v6 }
 0x19f   :  { %8330 = vtanh.f32 %v2402_v32  ;;  %3386 = vmatpush.msrb.mxu1 %v10214_v51 }
 0x1a1   :  { %3387 = vmatpush.msrb.mxu1 %v9549_v14 }
 0x1a2   :  { %v1206_v33 = vpop.f32.mrf.mxu0 }
 0x1a3   :  { %v1207_v29 = vadd.f32 %v9782_v49, %v1206_v33  ;;  %3388 = vmatpush.msrb.mxu1 %v9558_v15  ;;  %v106_v33 = vld [vmem:[%s15089_s0 + $0x1a8] sm:$0xff] }
 0x1a5   :  { %v10223_v32 = vpop.eup %8330  ;;  %v2403_v53 = vadd.f32 %v2363_v56, %v1207_v29  ;;  %8006 = vmatmul.msk.f32.gmra.mxu0 %vm312_vm0, %v105_v42  ;;  %3389 = vmatpush.msrb.mxu1 %v9566_v16  ;;  %v2372_v29 = vpop.f32.mrf.mxu2 }
 0x1a6   :  { %15276 = vst [vmem:[#allocation16_spill] sm:$0xff] %v10223_v32  ;;  %2620 = vmatmul.f32.gmra.mxu1 %v10223_v32 }
 0x1a7   :  { %8332 = vtanh.f32 %v2403_v53  ;;  %3390 = vmatpush.msrb.mxu1 %v9574_v17 }
 0x1a9   :  { %3391 = vmatpush.msrb.mxu1 %v9585_v19  ;;  %v107_v19 = vld [vmem:[%s15089_s0 + $0x1b0] sm:$0xff] }
 0x1aa   :  { %v1209_v14 = vpop.f32.mrf.mxu0 }
 0x1ab   :  { %v1210_v15 = vadd.f32 %v9782_v49, %v1209_v14  ;;  %3392 = vmatpush.msrb.mxu1 %v9594_v20  ;;  %v108_v14 = vld [vmem:[%s15089_s0 + $0x1b8] sm:$0xff] }
 0x1ad   :  { %v10235_v56 = vpop.eup %8332  ;;  %v2404_v16 = vadd.f32 %v2366_v58, %v1210_v15  ;;  %8007 = vmatmul.msk.f32.gmra.mxu0 %vm312_vm0, %v106_v33  ;;  %3393 = vmatpush.msrb.mxu1 %v9602_v21  ;;  %v2375_v58 = vpop.f32.mrf.mxu2 }
 0x1ae   :  { %15277 = vst [vmem:[#allocation17_spill] sm:$0xff] %v10235_v56  ;;  %2623 = vmatmul.f32.gmra.mxu1 %v10235_v56 }
 0x1af   :  { %8334 = vtanh.f32 %v2404_v16 }
 0x1b2   :  { %v1212_v17 = vpop.f32.mrf.mxu0 }
 0x1b3   :  { %v1213_v53 = vadd.f32 %v9782_v49, %v1212_v17 }
 0x1b5   :  { %v10244_v42 = vpop.eup %8334  ;;  %v2405_v20 = vadd.f32 %v2369_v13, %v1213_v53  ;;  %8008 = vmatmul.msk.f32.gmra.mxu0 %vm312_vm0, %v107_v19  ;;  %v2378_v13 = vpop.f32.mrf.mxu2  ;;  %v109_v19 = vld [vmem:[%s15089_s0 + $0x1c0] sm:$0xff] }
 0x1b6   :  { %15278 = vst [vmem:[#allocation18_spill] sm:$0xff] %v10244_v42  ;;  %2626 = vmatmul.f32.gmra.mxu1 %v10244_v42 }
 0x1b7   :  { %8336 = vtanh.f32 %v2405_v20 }
 0x1ba   :  { %v1215_v21 = vpop.f32.mrf.mxu0 }
 0x1bb   :  { %v1216_v33 = vadd.f32 %v9782_v49, %v1215_v21 }
 0x1bd   :  { %v10252_v15 = vpop.eup %8336  ;;  %v2406_v16 = vadd.f32 %v2372_v29, %v1216_v33  ;;  %8009 = vmatmul.msk.f32.gmra.mxu0 %vm312_vm0, %v108_v14  ;;  %v2381_v29 = vpop.f32.mrf.mxu2  ;;  %v110_v14 = vld [vmem:[%s15089_s0 + $0x1c8] sm:$0xff] }
 0x1be   :  { %15279 = vst [vmem:[#allocation19_spill] sm:$0xff] %v10252_v15  ;;  %2629 = vmatmul.f32.gmra.mxu1 %v10252_v15  ;;  %v123_v15 = vld [vmem:[%s15089_s0 + $0x230] sm:$0xff] }
 0x1bf   :  { %8338 = vtanh.f32 %v2406_v16 }
 0x1c2   :  { %v1218_v17 = vpop.f32.mrf.mxu0 }
 0x1c3   :  { %v1219_v53 = vadd.f32 %v9782_v49, %v1218_v17 }
 0x1c5   :  { %v10260_v20 = vpop.eup %8338  ;;  %v2407_v45 = vadd.f32 %v2375_v58, %v1219_v53  ;;  %8010 = vmatmul.msk.f32.gmra.mxu0 %vm312_vm0, %v109_v19  ;;  %v2384_v19 = vpop.f32.mrf.mxu2 }
 0x1c6   :  { %15280 = vst [vmem:[#allocation20_spill] sm:$0xff] %v10260_v20  ;;  %2632 = vmatmul.f32.gmra.mxu1 %v10260_v20  ;;  %v10420_v20 = vld [vmem:[%s15091_s2] sm:$0xff] }
 0x1c7   :  { %8340 = vtanh.f32 %v2407_v45  ;;  %v111_v45 = vld [vmem:[%s15089_s0 + $0x1d0] sm:$0xff] }
 0x1ca   :  { %v1221_v21 = vpop.f32.mrf.mxu0 }
 0x1cb   :  { %v1222_v33 = vadd.f32 %v9782_v49, %v1221_v21 }
 0x1cd   :  { %v10268_v16 = vpop.eup %8340  ;;  %v2408_v62 = vadd.f32 %v2378_v13, %v1222_v33  ;;  %8011 = vmatmul.msk.f32.gmra.mxu0 %vm312_vm0, %v110_v14 }
 0x1ce   :  { %15281 = vst [vmem:[#allocation21_spill] sm:$0xff] %v10268_v16  ;;  %2635 = vmatmul.f32.gmra.mxu1 %v10268_v16 }
 0x1cf   :  { %8342 = vtanh.f32 %v2408_v62  ;;  %v112_v62 = vld [vmem:[%s15089_s0 + $0x1d8] sm:$0xff] }
 0x1d2   :  { %v1224_v58 = vpop.f32.mrf.mxu0 }
 0x1d3   :  { %v1225_v17 = vadd.f32 %v9782_v49, %v1224_v58  ;;  %v2387_v58 = vpop.f32.mrf.mxu2 }
 0x1d5   :  { %v10276_v53 = vpop.eup %8342  ;;  %v2409_v36 = vadd.f32 %v2381_v29, %v1225_v17  ;;  %8012 = vmatmul.msk.f32.gmra.mxu0 %vm312_vm0, %v111_v45 }
 0x1d6   :  { %15282 = vst [vmem:[#allocation22_spill] sm:$0xff] %v10276_v53  ;;  %2638 = vmatmul.f32.gmra.mxu1 %v10276_v53 }
 0x1d7   :  { %8344 = vtanh.f32 %v2409_v36  ;;  %v113_v36 = vld [vmem:[%s15089_s0 + $0x1e0] sm:$0xff] }
 0x1da   :  { %v1227_v13 = vpop.f32.mrf.mxu0 }
 0x1db   :  { %v1228_v21 = vadd.f32 %v9782_v49, %v1227_v13  ;;  %v2482_v13 = vpop.f32.mrf.mxu3 }
 0x1dd   :  { %v10284_v14 = vpop.eup %8344  ;;  %v2410_v33 = vadd.f32 %v2384_v19, %v1228_v21  ;;  %8013 = vmatmul.msk.f32.gmra.mxu0 %vm312_vm0, %v112_v62  ;;  %v2390_v19 = vpop.f32.mrf.mxu2  ;;  %v114_v21 = vld [vmem:[%s15089_s0 + $0x1e8] sm:$0xff] }
 0x1de   :  { %15283 = vst [vmem:[#allocation23_spill] sm:$0xff] %v10284_v14  ;;  %2641 = vmatmul.f32.gmra.mxu1 %v10284_v14 }
 0x1df   :  { %8346 = vtanh.f32 %v2410_v33 }
 0x1e2   :  { %v1230_v29 = vpop.f32.mrf.mxu0 }
 0x1e3   :  { %v1231_v45 = vadd.f32 %v9782_v49, %v1230_v29 }
 0x1e5   :  { %v10292_v17 = vpop.eup %8346  ;;  %v2411_v12 = vadd.f32 %v2387_v58, %v1231_v45  ;;  %8014 = vmatmul.msk.f32.gmra.mxu0 %vm312_vm0, %v113_v36  ;;  %v2485_v58 = vpop.f32.mrf.mxu3 }
 0x1e6   :  { %15284 = vst [vmem:[#allocation24_spill] sm:$0xff] %v10292_v17  ;;  %2644 = vmatmul.f32.gmra.mxu1 %v10292_v17  ;;  %v2393_v36 = vpop.f32.mrf.mxu2 }
 0x1e7   :  { %8348 = vtanh.f32 %v2411_v12  ;;  %v115_v12 = vld [vmem:[%s15089_s0 + $0x1f0] sm:$0xff] }
 0x1ea   :  { %v1233_v62 = vpop.f32.mrf.mxu0 }
 0x1eb   :  { %v1234_v33 = vadd.f32 %v9782_v49, %v1233_v62 }
 0x1ed   :  { %v10300_v14 = vpop.eup %8348  ;;  %v2412_v29 = vadd.f32 %v2390_v19, %v1234_v33  ;;  %8015 = vmatmul.msk.f32.gmra.mxu0 %vm312_vm0, %v114_v21  ;;  %v2488_v19 = vpop.f32.mrf.mxu3  ;;  %v116_v33 = vld [vmem:[%s15089_s0 + $0x1f8] sm:$0xff] }
 0x1ee   :  { %15285 = vst [vmem:[#allocation25_spill] sm:$0xff] %v10300_v14  ;;  %2647 = vmatmul.f32.gmra.mxu1 %v10300_v14  ;;  %v2396_v14 = vpop.f32.mrf.mxu2 }
 0x1ef   :  { %8350 = vtanh.f32 %v2412_v29 }
 0x1f2   :  { %v1236_v45 = vpop.f32.mrf.mxu0 }
 0x1f3   :  { %v1237_v17 = vadd.f32 %v9782_v49, %v1236_v45 }
 0x1f5   :  { %v10308_v53 = vpop.eup %8350  ;;  %v2413_v62 = vadd.f32 %v2393_v36, %v1237_v17  ;;  %8016 = vmatmul.msk.f32.gmra.mxu0 %vm312_vm0, %v115_v12  ;;  %v117_v36 = vld [vmem:[%s15089_s0 + $0x200] sm:$0xff] }
 0x1f6   :  { %15286 = vst [vmem:[#allocation26_spill] sm:$0xff] %v10308_v53  ;;  %2650 = vmatmul.f32.gmra.mxu1 %v10308_v53 }
 0x1f7   :  { %8352 = vtanh.f32 %v2413_v62  ;;  %v2491_v62 = vpop.f32.mrf.mxu3 }
 0x1fa   :  { %v1239_v21 = vpop.f32.mrf.mxu0 }
 0x1fb   :  { %v1240_v29 = vadd.f32 %v9782_v49, %v1239_v21 }
 0x1fd   :  { %v10316_v16 = vpop.eup %8352  ;;  %v2414_v45 = vadd.f32 %v2396_v14, %v1240_v29  ;;  %8017 = vmatmul.msk.f32.gmra.mxu0 %vm312_vm0, %v116_v33  ;;  %v118_v33 = vld [vmem:[%s15089_s0 + $0x208] sm:$0xff] }
 0x1fe   :  { %15287 = vst [vmem:[#allocation27_spill] sm:$0xff] %v10316_v16  ;;  %2653 = vmatmul.f32.gmra.mxu1 %v10316_v16 }
 0x1ff   :  { %8354 = vtanh.f32 %v2414_v45 }
 0x202   :  { %v1242_v17 = vpop.f32.mrf.mxu0 }
 0x203   :  { %v1243_v12 = vadd.f32 %v9782_v49, %v1242_v17  ;;  %v2494_v17 = vpop.f32.mrf.mxu3 }
 0x205   :  { %v10324_v53 = vpop.eup %8354  ;;  %v2530_v21 = vadd.f32 %v2482_v13, %v1243_v12  ;;  %8018 = vmatmul.msk.f32.gmra.mxu0 %vm312_vm0, %v117_v36  ;;  %v119_v36 = vld [vmem:[%s15089_s0 + $0x210] sm:$0xff] }
 0x206   :  { %15288 = vst [vmem:[#allocation28_spill] sm:$0xff] %v10324_v53  ;;  %2656 = vmatmul.f32.gmra.mxu1 %v10324_v53 }
 0x207   :  { %8356 = vtanh.f32 %v2530_v21 }
 0x20a   :  { %v1245_v14 = vpop.f32.mrf.mxu0 }
 0x20b   :  { %v1246_v29 = vadd.f32 %v9782_v49, %v1245_v14 }
 0x20d   :  { %v10332_v45 = vpop.eup %8356  ;;  %v2531_v16 = vadd.f32 %v2485_v58, %v1246_v29  ;;  %8019 = vmatmul.msk.f32.gmra.mxu0 %vm312_vm0, %v118_v33  ;;  %v120_v33 = vld [vmem:[%s15089_s0 + $0x218] sm:$0xff] }
 0x20e   :  { %15289 = vst [vmem:[#allocation29_spill] sm:$0xff] %v10332_v45  ;;  %2742 = vmatmul.f32.vlgmr.msra.gmra.mxu2 %v10332_v45 }
 0x20f   :  { %8358 = vtanh.f32 %v2531_v16  ;;  %3509 = vmatpush.msra.mxu2 %v10150_v10  ;;  %v2497_v16 = vpop.f32.mrf.mxu3 }
 0x211   :  { %3510 = vmatpush.msra.mxu2 %v10156_v5 }
 0x212   :  { %v1248_v13 = vpop.f32.mrf.mxu0 }
 0x213   :  { %v1249_v12 = vadd.f32 %v9782_v49, %v1248_v13  ;;  %3511 = vmatpush.msra.mxu2 %v10166_v30 }
 0x215   :  { %v10343_v58 = vpop.eup %8358  ;;  %v2532_v21 = vadd.f32 %v2488_v19, %v1249_v12  ;;  %8020 = vmatmul.msk.f32.gmra.mxu0 %vm312_vm0, %v119_v36  ;;  %3512 = vmatpush.msra.mxu2 %v10175_v27  ;;  %v10364_v36 = vld [vmem:[%s15091_s2 + $0x30] sm:$0xff] }
 0x216   :  { %15290 = vst [vmem:[#allocation30_spill] sm:$0xff] %v10343_v58  ;;  %2745 = vmatmul.f32.gmra.mxu2 %v10343_v58 }
 0x217   :  { %8360 = vtanh.f32 %v2532_v21  ;;  %3513 = vmatpush.msra.mxu2 %v10182_v44  ;;  %v2500_v12 = vpop.f32.mrf.mxu3 }
 0x219   :  { %3514 = vmatpush.msra.mxu2 %v10188_v8 }
 0x21a   :  { %v1251_v14 = vpop.f32.mrf.mxu0 }
 0x21b   :  { %v1252_v29 = vadd.f32 %v9782_v49, %v1251_v14  ;;  %3515 = vmatpush.msra.mxu2 %v10198_v24 }
 0x21d   :  { %v10355_v19 = vpop.eup %8360  ;;  %v2533_v13 = vadd.f32 %v2491_v62, %v1252_v29  ;;  %8021 = vmatmul.msk.f32.gmra.mxu0 %vm312_vm0, %v120_v33  ;;  %3516 = vmatpush.msra.mxu2 %v10207_v23  ;;  %v121_v62 = vld [vmem:[%s15089_s0 + $0x220] sm:$0xff]  ;;  %v10374_v33 = vld [vmem:[%s15091_s2 + $0x28] sm:$0xff] }
 0x21e   :  { %15291 = vst [vmem:[#allocation31_spill] sm:$0xff] %v10355_v19  ;;  %2748 = vmatmul.f32.gmra.mxu2 %v10355_v19  ;;  %v10383_v19 = vld [vmem:[%s15091_s2 + $0x20] sm:$0xff] }
 0x21f   :  { %8362 = vtanh.f32 %v2533_v13  ;;  %3517 = vmatpush.msra.mxu2 %v10214_v51  ;;  %v2503_v58 = vpop.f32.mrf.mxu3 }
 0x221   :  { %3518 = vmatpush.msra.mxu2 %v10364_v36 }
 0x222   :  { %v1254_v21 = vpop.f32.mrf.mxu0 }
 0x223   :  { %v1255_v14 = vadd.f32 %v9782_v49, %v1254_v21  ;;  %3519 = vmatpush.msra.mxu2 %v10374_v33  ;;  %v10390_v49 = vld [vmem:[%s15091_s2 + $0x18] sm:$0xff] }
 0x225   :  { %v10377_v29 = vpop.eup %8362  ;;  %v2534_v13 = vadd.f32 %v2494_v17, %v1255_v14  ;;  %8022 = vmatmul.msk.f32.gmra.mxu0 %vm312_vm0, %v121_v62  ;;  %3520 = vmatpush.msra.mxu2 %v10383_v19  ;;  %v10396_v17 = vld [vmem:[%s15091_s2 + $0x10] sm:$0xff]  ;;  %v122_v62 = vld [vmem:[%s15089_s0 + $0x228] sm:$0xff]  ;;  %v10405_v14 = vld [vmem:[%s15092_s3] ss:$0 sm:$0xff] }
 0x226   :  { %15292 = vst [vmem:[#allocation32_spill] sm:$0xff] %v10377_v29  ;;  %2751 = vmatmul.f32.gmra.mxu2 %v10377_v29  ;;  %v10411_v29 = vld [vmem:[%s15091_s2 + $0x8] sm:$0xff] }
 0x227   :  { %8364 = vtanh.f32 %v2534_v13  ;;  %3521 = vmatpush.msra.mxu2 %v10390_v49 }
 0x229   :  { %3522 = vmatpush.msra.mxu2 %v10396_v17 }
 0x22a   :  { %v1257_v21 = vpop.f32.mrf.mxu0 }
 0x22b   :  { %v1258_v13 = vadd.f32 %v10405_v14, %v1257_v21  ;;  %3523 = vmatpush.msra.mxu2 %v10411_v29 }
 0x22d   :  { %v10414_v45 = vpop.eup %8364  ;;  %v2535_v53 = vadd.f32 %v2497_v16, %v1258_v13  ;;  %8023 = vmatmul.msk.f32.gmra.mxu0 %vm312_vm0, %v122_v62  ;;  %3524 = vmatpush.msra.mxu2 %v10420_v20  ;;  %v2506_v13 = vpop.f32.mrf.mxu3 }
 0x22e   :  { %15293 = vst [vmem:[#allocation33_spill] sm:$0xff] %v10414_v45  ;;  %2754 = vmatmul.f32.gmra.mxu2 %v10414_v45 }
 0x22f   :  { %8366 = vtanh.f32 %v2535_v53  ;;  %v124_v53 = vld [vmem:[%s15089_s0 + $0x238] sm:$0xff] }
 0x232   :  { %v1260_v21 = vpop.f32.mrf.mxu0 }
 0x233   :  { %v1261_v42 = vadd.f32 %v10405_v14, %v1260_v21 }
 0x235   :  { %v10428_v16 = vpop.eup %8366  ;;  %v2536_v62 = vadd.f32 %v2500_v12, %v1261_v42  ;;  %8024 = vmatmul.msk.f32.gmra.mxu0 %vm312_vm0, %v123_v15  ;;  %v2509_v42 = vpop.f32.mrf.mxu3  ;;  %v125_v12 = vld [vmem:[%s15089_s0 + $0x240] sm:$0xff] }
 0x236   :  { %15294 = vst [vmem:[#allocation34_spill] sm:$0xff] %v10428_v16  ;;  %2757 = vmatmul.f32.gmra.mxu2 %v10428_v16 }
 0x237   :  { %8368 = vtanh.f32 %v2536_v62 }
 0x23a   :  { %v1263_v56 = vpop.f32.mrf.mxu0 }
 0x23b   :  { %v1264_v45 = vadd.f32 %v10405_v14, %v1263_v56 }
 0x23d   :  { %v10436_v32 = vpop.eup %8368  ;;  %v2537_v6 = vadd.f32 %v2503_v58, %v1264_v45  ;;  %8025 = vmatmul.msk.f32.gmra.mxu0 %vm312_vm0, %v124_v53  ;;  %v2512_v56 = vpop.f32.mrf.mxu3 }
 0x23e   :  { %15295 = vst [vmem:[#allocation35_spill] sm:$0xff] %v10436_v32  ;;  %2760 = vmatmul.f32.gmra.mxu2 %v10436_v32 }
 0x23f   :  { %8370 = vtanh.f32 %v2537_v6  ;;  %v126_v6 = vld [vmem:[%s15089_s0 + $0x248] sm:$0xff] }
 0x242   :  { %v1266_v15 = vpop.f32.mrf.mxu0 }
 0x243   :  { %v1267_v21 = vadd.f32 %v10405_v14, %v1266_v15 }
 0x245   :  { %v10444_v62 = vpop.eup %8370  ;;  %v2538_v16 = vadd.f32 %v2506_v13, %v1267_v21  ;;  %8026 = vmatmul.msk.f32.gmra.mxu0 %vm312_vm0, %v125_v12  ;;  %v2515_v12 = vpop.f32.mrf.mxu3 }
 0x246   :  { %15296 = vst [vmem:[#allocation36_spill] sm:$0xff] %v10444_v62  ;;  %2763 = vmatmul.f32.gmra.mxu2 %v10444_v62 }
 0x247   :  { %8372 = vtanh.f32 %v2538_v16  ;;  %v127_v16 = vld [vmem:[%s15089_s0 + $0x250] sm:$0xff] }
 0x24a   :  { %v1269_v45 = vpop.f32.mrf.mxu0 }
 0x24b   :  { %v1270_v58 = vadd.f32 %v10405_v14, %v1269_v45 }
 0x24d   :  { %v10452_v53 = vpop.eup %8372  ;;  %v2539_v32 = vadd.f32 %v2509_v42, %v1270_v58  ;;  %8027 = vmatmul.msk.f32.gmra.mxu0 %vm312_vm0, %v126_v6 }
 0x24e   :  { %15297 = vst [vmem:[#allocation37_spill] sm:$0xff] %v10452_v53  ;;  %2766 = vmatmul.f32.gmra.mxu2 %v10452_v53 }
 0x24f   :  { %8374 = vtanh.f32 %v2539_v32  ;;  %v128_v32 = vld [vmem:[%s15089_s0 + $0x258] sm:$0xff] }
 0x252   :  { %v1272_v13 = vpop.f32.mrf.mxu0 }
 0x253   :  { %v1273_v15 = vadd.f32 %v10405_v14, %v1272_v13  ;;  %v2518_v13 = vpop.f32.mrf.mxu3 }
 0x255   :  { %v10460_v21 = vpop.eup %8374  ;;  %v2540_v62 = vadd.f32 %v2512_v56, %v1273_v15  ;;  %8028 = vmatmul.msk.f32.gmra.mxu0 %vm312_vm0, %v127_v16 }
 0x256   :  { %15298 = vst [vmem:[#allocation38_spill] sm:$0xff] %v10460_v21  ;;  %2769 = vmatmul.f32.gmra.mxu2 %v10460_v21 }
 0x257   :  { %8376 = vtanh.f32 %v2540_v62  ;;  %v129_v62 = vld [vmem:[%s15089_s0 + $0x260] sm:$0xff] }
 0x25a   :  { %v1275_v42 = vpop.f32.mrf.mxu0 }
 0x25b   :  { %v1276_v45 = vadd.f32 %v10405_v14, %v1275_v42  ;;  %v2612_v42 = vpop.f32.mrf.mxu1 }
 0x25d   :  { %v10468_v6 = vpop.eup %8376  ;;  %v2541_v58 = vadd.f32 %v2515_v12, %v1276_v45  ;;  %8029 = vmatmul.msk.f32.gmra.mxu0 %vm312_vm0, %v128_v32  ;;  %v2521_v12 = vpop.f32.mrf.mxu3  ;;  %v130_v45 = vld [vmem:[%s15089_s0 + $0x268] sm:$0xff] }
 0x25e   :  { %15299 = vst [vmem:[#allocation39_spill] sm:$0xff] %v10468_v6  ;;  %2772 = vmatmul.f32.gmra.mxu2 %v10468_v6 }
 0x25f   :  { %8378 = vtanh.f32 %v2541_v58 }
 0x262   :  { %v1278_v56 = vpop.f32.mrf.mxu0 }
 0x263   :  { %v1279_v16 = vadd.f32 %v10405_v14, %v1278_v56 }
 0x265   :  { %v10476_v15 = vpop.eup %8378  ;;  %v2542_v21 = vadd.f32 %v2518_v13, %v1279_v16  ;;  %8030 = vmatmul.msk.f32.gmra.mxu0 %vm312_vm0, %v129_v62  ;;  %v2615_v13 = vpop.f32.mrf.mxu1 }
 0x266   :  { %15300 = vst [vmem:[#allocation40_spill] sm:$0xff] %v10476_v15  ;;  %2775 = vmatmul.f32.gmra.mxu2 %v10476_v15  ;;  %v2524_v62 = vpop.f32.mrf.mxu3 }
 0x267   :  { %8380 = vtanh.f32 %v2542_v21  ;;  %v131_v21 = vld [vmem:[%s15089_s0 + $0x270] sm:$0xff] }
 0x26a   :  { %v1281_v32 = vpop.f32.mrf.mxu0 }
 0x26b   :  { %v1282_v58 = vadd.f32 %v10405_v14, %v1281_v32 }
 0x26d   :  { %v10484_v6 = vpop.eup %8380  ;;  %v2543_v56 = vadd.f32 %v2521_v12, %v1282_v58  ;;  %8031 = vmatmul.msk.f32.gmra.mxu0 %vm312_vm0, %v130_v45  ;;  %v2618_v12 = vpop.f32.mrf.mxu1  ;;  %v132_v58 = vld [vmem:[%s15089_s0 + $0x278] sm:$0xff] }
 0x26e   :  { %15301 = vst [vmem:[#allocation41_spill] sm:$0xff] %v10484_v6  ;;  %2778 = vmatmul.f32.gmra.mxu2 %v10484_v6  ;;  %v2527_v6 = vpop.f32.mrf.mxu3 }
 0x26f   :  { %8382 = vtanh.f32 %v2543_v56 }
 0x272   :  { %v1284_v16 = vpop.f32.mrf.mxu0 }
 0x273   :  { %v1285_v15 = vadd.f32 %v10405_v14, %v1284_v16 }
 0x275   :  { %v10492_v53 = vpop.eup %8382  ;;  %v2544_v32 = vadd.f32 %v2524_v62, %v1285_v15  ;;  %8032 = vmatmul.msk.f32.gmra.mxu0 %vm312_vm0, %v131_v21  ;;  %v133_v62 = vld [vmem:[%s15089_s0 + $0x280] sm:$0xff] }
 0x276   :  { %15302 = vst [vmem:[#allocation42_spill] sm:$0xff] %v10492_v53  ;;  %2781 = vmatmul.f32.gmra.mxu2 %v10492_v53 }
 0x277   :  { %8384 = vtanh.f32 %v2544_v32  ;;  %v2621_v32 = vpop.f32.mrf.mxu1 }
 0x27a   :  { %v1287_v45 = vpop.f32.mrf.mxu0 }
 0x27b   :  { %v1288_v56 = vadd.f32 %v10405_v14, %v1287_v45 }
 0x27d   :  { %v10500_v50 = vpop.eup %8384  ;;  %v2545_v16 = vadd.f32 %v2527_v6, %v1288_v56  ;;  %8033 = vmatmul.msk.f32.gmra.mxu0 %vm312_vm0, %v132_v58  ;;  %v134_v58 = vld [vmem:[%s15089_s0 + $0x288] sm:$0xff] }
 0x27e   :  { %15303 = vst [vmem:[#allocation43_spill] sm:$0xff] %v10500_v50  ;;  %2784 = vmatmul.f32.gmra.mxu2 %v10500_v50 }
 0x27f   :  { %8386 = vtanh.f32 %v2545_v16 }
 0x282   :  { %v1290_v15 = vpop.f32.mrf.mxu0 }
 0x283   :  { %v1291_v21 = vadd.f32 %v10405_v14, %v1290_v15  ;;  %v2624_v15 = vpop.f32.mrf.mxu1 }
 0x285   :  { %v10508_v53 = vpop.eup %8386  ;;  %v2660_v45 = vadd.f32 %v2612_v42, %v1291_v21  ;;  %8034 = vmatmul.msk.f32.gmra.mxu0 %vm312_vm0, %v133_v62  ;;  %v135_v62 = vld [vmem:[%s15089_s0 + $0x290] sm:$0xff] }
 0x286   :  { %15304 = vst [vmem:[#allocation44_spill] sm:$0xff] %v10508_v53  ;;  %2787 = vmatmul.f32.gmra.mxu2 %v10508_v53 }
 0x287   :  { %8388 = vtanh.f32 %v2660_v45 }
 0x28a   :  { %v1293_v6 = vpop.f32.mrf.mxu0 }
 0x28b   :  { %v1294_v56 = vadd.f32 %v10405_v14, %v1293_v6 }
 0x28d   :  { %v10516_v16 = vpop.eup %8388  ;;  %v2661_v50 = vadd.f32 %v2615_v13, %v1294_v56  ;;  %8035 = vmatmul.msk.f32.gmra.mxu0 %vm312_vm0, %v134_v58  ;;  %v136_v58 = vld [vmem:[%s15089_s0 + $0x298] sm:$0xff] }
 0x28e   :  { %15305 = vst [vmem:[#allocation45_spill] sm:$0xff] %v10516_v16  ;;  %2872 = vmatmul.f32.vlgmr.msrb.gmra.mxu3 %v10516_v16 }
 0x28f   :  { %8390 = vtanh.f32 %v2661_v50  ;;  %3639 = vmatpush.msrb.mxu3 %v10150_v10  ;;  %v2627_v50 = vpop.f32.mrf.mxu1 }
 0x291   :  { %3640 = vmatpush.msrb.mxu3 %v10156_v5 }
 0x292   :  { %v1296_v42 = vpop.f32.mrf.mxu0 }
 0x293   :  { %v1297_v21 = vadd.f32 %v10405_v14, %v1296_v42  ;;  %3641 = vmatpush.msrb.mxu3 %v10166_v30 }
 0x295   :  { %v10527_v13 = vpop.eup %8390  ;;  %v2662_v45 = vadd.f32 %v2618_v12, %v1297_v21  ;;  %8036 = vmatmul.msk.f32.gmra.mxu0 %vm312_vm0, %v135_v62  ;;  %3642 = vmatpush.msrb.mxu3 %v10175_v27 }
 0x296   :  { %15306 = vst [vmem:[#allocation46_spill] sm:$0xff] %v10527_v13  ;;  %2875 = vmatmul.f32.gmra.mxu3 %v10527_v13 }
 0x297   :  { %8392 = vtanh.f32 %v2662_v45  ;;  %3643 = vmatpush.msrb.mxu3 %v10182_v44  ;;  %v2630_v62 = vpop.f32.mrf.mxu1  ;;  %v137_v45 = vld [vmem:[%s15089_s0 + $0x2a0] sm:$0xff] }
 0x299   :  { %3644 = vmatpush.msrb.mxu3 %v10188_v8 }
 0x29a   :  { %v1299_v6 = vpop.f32.mrf.mxu0 }
 0x29b   :  { %v1300_v56 = vadd.f32 %v10405_v14, %v1299_v6  ;;  %3645 = vmatpush.msrb.mxu3 %v10198_v24 }
 0x29d   :  { %v10539_v12 = vpop.eup %8392  ;;  %v2663_v42 = vadd.f32 %v2621_v32, %v1300_v56  ;;  %8037 = vmatmul.msk.f32.gmra.mxu0 %vm312_vm0, %v136_v58  ;;  %3646 = vmatpush.msrb.mxu3 %v10207_v23 }
 0x29e   :  { %15307 = vst [vmem:[#allocation47_spill] sm:$0xff] %v10539_v12  ;;  %2878 = vmatmul.f32.gmra.mxu3 %v10539_v12 }
 0x29f   :  { %8394 = vtanh.f32 %v2663_v42  ;;  %3647 = vmatpush.msrb.mxu3 %v10214_v51  ;;  %v138_v42 = vld [vmem:[%s15089_s0 + $0x2a8] sm:$0xff] }
 0x2a1   :  { %3648 = vmatpush.msrb.mxu3 %v10364_v36 }
 0x2a2   :  { %v1302_v21 = vpop.f32.mrf.mxu0 }
 0x2a3   :  { %v1303_v6 = vadd.f32 %v10405_v14, %v1302_v21  ;;  %3649 = vmatpush.msrb.mxu3 %v10374_v33 }
 0x2a5   :  { %v10551_v32 = vpop.eup %8394  ;;  %v2664_v58 = vadd.f32 %v2624_v15, %v1303_v6  ;;  %8038 = vmatmul.msk.f32.gmra.mxu0 %vm312_vm0, %v137_v45  ;;  %3650 = vmatpush.msrb.mxu3 %v10383_v19  ;;  %v2633_v15 = vpop.f32.mrf.mxu1 }
 0x2a6   :  { %15308 = vst [vmem:[#allocation48_spill] sm:$0xff] %v10551_v32  ;;  %2881 = vmatmul.f32.gmra.mxu3 %v10551_v32  ;;  %v139_v32 = vld [vmem:[%s15089_s0 + $0x2b0] sm:$0xff] }
 0x2a7   :  { %8396 = vtanh.f32 %v2664_v58  ;;  %3651 = vmatpush.msrb.mxu3 %v10390_v49 }
 0x2a9   :  { %3652 = vmatpush.msrb.mxu3 %v10396_v17 }
 0x2aa   :  { %v1305_v56 = vpop.f32.mrf.mxu0 }
 0x2ab   :  { %v1306_v21 = vadd.f32 %v10405_v14, %v1305_v56  ;;  %3653 = vmatpush.msrb.mxu3 %v10411_v29 }
 0x2ad   :  { %v10563_v45 = vpop.eup %8396  ;;  %v2665_v6 = vadd.f32 %v2627_v50, %v1306_v21  ;;  %8039 = vmatmul.msk.f32.gmra.mxu0 %vm312_vm0, %v138_v42  ;;  %3654 = vmatpush.msrb.mxu3 %v10420_v20  ;;  %v2636_v50 = vpop.f32.mrf.mxu1  ;;  %v140_v21 = vld [vmem:[%s15089_s0 + $0x2b8] sm:$0xff] }
 0x2ae   :  { %15309 = vst [vmem:[#allocation49_spill] sm:$0xff] %v10563_v45  ;;  %2884 = vmatmul.f32.gmra.mxu3 %v10563_v45 }
 0x2af   :  { %8398 = vtanh.f32 %v2665_v6 }
 0x2b2   :  { %v1308_v58 = vpop.f32.mrf.mxu0 }
 0x2b3   :  { %v1309_v56 = vadd.f32 %v10405_v14, %v1308_v58 }
 0x2b5   :  { %v10572_v12 = vpop.eup %8398  ;;  %v2666_v13 = vadd.f32 %v2630_v62, %v1309_v56  ;;  %8040 = vmatmul.msk.f32.gmra.mxu0 %vm312_vm0, %v139_v32  ;;  %v2639_v62 = vpop.f32.mrf.mxu1 }
 0x2b6   :  { %15310 = vst [vmem:[#allocation50_spill] sm:$0xff] %v10572_v12  ;;  %2887 = vmatmul.f32.gmra.mxu3 %v10572_v12 }
 0x2b7   :  { %8400 = vtanh.f32 %v2666_v13  ;;  %v141_v13 = vld [vmem:[%s15089_s0 + $0x2c0] sm:$0xff] }
 0x2ba   :  { %v1311_v42 = vpop.f32.mrf.mxu0 }
 0x2bb   :  { %v1312_v6 = vadd.f32 %v10405_v14, %v1311_v42 }
 0x2bd   :  { %v10580_v45 = vpop.eup %8400  ;;  %v2667_v16 = vadd.f32 %v2633_v15, %v1312_v6  ;;  %8041 = vmatmul.msk.f32.gmra.mxu0 %vm312_vm0, %v140_v21  ;;  %v2642_v15 = vpop.f32.mrf.mxu1 }
 0x2be   :  { %15311 = vst [vmem:[#allocation51_spill] sm:$0xff] %v10580_v45  ;;  %2890 = vmatmul.f32.gmra.mxu3 %v10580_v45 }
 0x2bf   :  { %8402 = vtanh.f32 %v2667_v16  ;;  %v142_v16 = vld [vmem:[%s15089_s0 + $0x2c8] sm:$0xff] }
 0x2c2   :  { %v1314_v32 = vpop.f32.mrf.mxu0 }
 0x2c3   :  { %v1315_v58 = vadd.f32 %v10405_v14, %v1314_v32 }
 0x2c5   :  { %v10588_v56 = vpop.eup %8402  ;;  %v2668_v12 = vadd.f32 %v2636_v50, %v1315_v58  ;;  %8042 = vmatmul.msk.f32.gmra.mxu0 %vm312_vm0, %v141_v13  ;;  %v2645_v13 = vpop.f32.mrf.mxu1 }
 0x2c6   :  { %15312 = vst [vmem:[#allocation52_spill] sm:$0xff] %v10588_v56  ;;  %2893 = vmatmul.f32.gmra.mxu3 %v10588_v56 }
 0x2c7   :  { %8404 = vtanh.f32 %v2668_v12  ;;  %v143_v12 = vld [vmem:[%s15089_s0 + $0x2d0] sm:$0xff] }
 0x2ca   :  { %v1317_v42 = vpop.f32.mrf.mxu0 }
 0x2cb   :  { %v1318_v21 = vadd.f32 %v10405_v14, %v1317_v42 }
 0x2cd   :  { %v10596_v6 = vpop.eup %8404  ;;  %v2669_v45 = vadd.f32 %v2639_v62, %v1318_v21  ;;  %8043 = vmatmul.msk.f32.gmra.mxu0 %vm312_vm0, %v142_v16 }
 0x2ce   :  { %15313 = vst [vmem:[#allocation53_spill] sm:$0xff] %v10596_v6  ;;  %2896 = vmatmul.f32.gmra.mxu3 %v10596_v6 }
 0x2cf   :  { %8406 = vtanh.f32 %v2669_v45  ;;  %v144_v45 = vld [vmem:[%s15089_s0 + $0x2d8] sm:$0xff] }
 0x2d2   :  { %v1320_v50 = vpop.f32.mrf.mxu0 }
 0x2d3   :  { %v1321_v32 = vadd.f32 %v10405_v14, %v1320_v50  ;;  %v2648_v50 = vpop.f32.mrf.mxu1 }
 0x2d5   :  { %v10604_v58 = vpop.eup %8406  ;;  %v2670_v56 = vadd.f32 %v2642_v15, %v1321_v32  ;;  %8044 = vmatmul.msk.f32.gmra.mxu0 %vm312_vm0, %v143_v12 }
 0x2d6   :  { %15314 = vst [vmem:[#allocation54_spill] sm:$0xff] %v10604_v58  ;;  %2899 = vmatmul.f32.gmra.mxu3 %v10604_v58 }
 0x2d7   :  { %8408 = vtanh.f32 %v2670_v56  ;;  %v145_v56 = vld [vmem:[%s15089_s0 + $0x2e0] sm:$0xff] }
 0x2da   :  { %v1323_v62 = vpop.f32.mrf.mxu0 }
 0x2db   :  { %v1324_v42 = vadd.f32 %v10405_v14, %v1323_v62  ;;  %v2743_v62 = vpop.f32.mrf.mxu2 }
 0x2dd   :  { %v10612_v16 = vpop.eup %8408  ;;  %v2671_v21 = vadd.f32 %v2645_v13, %v1324_v42  ;;  %8045 = vmatmul.msk.f32.gmra.mxu0 %vm312_vm0, %v144_v45  ;;  %v2651_v13 = vpop.f32.mrf.mxu1  ;;  %v146_v42 = vld [vmem:[%s15089_s0 + $0x2e8] sm:$0xff] }
 0x2de   :  { %15315 = vst [vmem:[#allocation55_spill] sm:$0xff] %v10612_v16  ;;  %2902 = vmatmul.f32.gmra.mxu3 %v10612_v16 }
 0x2df   :  { %8410 = vtanh.f32 %v2671_v21 }
 0x2e2   :  { %v1326_v15 = vpop.f32.mrf.mxu0 }
 0x2e3   :  { %v1327_v12 = vadd.f32 %v10405_v14, %v1326_v15 }
 0x2e5   :  { %v10620_v32 = vpop.eup %8410  ;;  %v2672_v58 = vadd.f32 %v2648_v50, %v1327_v12  ;;  %8046 = vmatmul.msk.f32.gmra.mxu0 %vm312_vm0, %v145_v56  ;;  %v2746_v50 = vpop.f32.mrf.mxu2 }
 0x2e6   :  { %15316 = vst [vmem:[#allocation56_spill] sm:$0xff] %v10620_v32  ;;  %2905 = vmatmul.f32.gmra.mxu3 %v10620_v32  ;;  %v2654_v56 = vpop.f32.mrf.mxu1 }
 0x2e7   :  { %8412 = vtanh.f32 %v2672_v58  ;;  %v147_v58 = vld [vmem:[%s15089_s0 + $0x2f0] sm:$0xff] }
 0x2ea   :  { %v1329_v45 = vpop.f32.mrf.mxu0 }
 0x2eb   :  { %v1330_v21 = vadd.f32 %v10405_v14, %v1329_v45 }
 0x2ed   :  { %v10628_v16 = vpop.eup %8412  ;;  %v2673_v15 = vadd.f32 %v2651_v13, %v1330_v21  ;;  %8047 = vmatmul.msk.f32.gmra.mxu0 %vm312_vm0, %v146_v42  ;;  %v2749_v13 = vpop.f32.mrf.mxu2  ;;  %v148_v21 = vld [vmem:[%s15089_s0 + $0x2f8] sm:$0xff] }
 0x2ee   :  { %15317 = vst [vmem:[#allocation57_spill] sm:$0xff] %v10628_v16  ;;  %2908 = vmatmul.f32.gmra.mxu3 %v10628_v16  ;;  %v2657_v16 = vpop.f32.mrf.mxu1 }
 0x2ef   :  { %8414 = vtanh.f32 %v2673_v15 }
 0x2f2   :  { %v1332_v12 = vpop.f32.mrf.mxu0 }
 0x2f3   :  { %v1333_v32 = vadd.f32 %v10405_v14, %v1332_v12 }
 0x2f5   :  { %v10636_v6 = vpop.eup %8414  ;;  %v2674_v45 = vadd.f32 %v2654_v56, %v1333_v32  ;;  %8048 = vmatmul.msk.f32.gmra.mxu0 %vm312_vm0, %v147_v58  ;;  %v149_v56 = vld [vmem:[%s15089_s0 + $0x300] sm:$0xff] }
 0x2f6   :  { %15318 = vst [vmem:[#allocation58_spill] sm:$0xff] %v10636_v6  ;;  %2911 = vmatmul.f32.gmra.mxu3 %v10636_v6 }
 0x2f7   :  { %8416 = vtanh.f32 %v2674_v45  ;;  %v2752_v45 = vpop.f32.mrf.mxu2 }
 0x2fa   :  { %v1335_v42 = vpop.f32.mrf.mxu0 }
 0x2fb   :  { %v1336_v15 = vadd.f32 %v10405_v14, %v1335_v42 }
 0x2fd   :  { %v10644_v53 = vpop.eup %8416  ;;  %v2675_v12 = vadd.f32 %v2657_v16, %v1336_v15  ;;  %8049 = vmatmul.msk.f32.gmra.mxu0 %vm312_vm0, %v148_v21  ;;  %v150_v21 = vld [vmem:[%s15089_s0 + $0x308] sm:$0xff] }
 0x2fe   :  { %15319 = vst [vmem:[#allocation59_spill] sm:$0xff] %v10644_v53  ;;  %2914 = vmatmul.f32.gmra.mxu3 %v10644_v53 }
 0x2ff   :  { %8418 = vtanh.f32 %v2675_v12 }
 0x302   :  { %v1338_v32 = vpop.f32.mrf.mxu0 }
 0x303   :  { %v1339_v58 = vadd.f32 %v10405_v14, %v1338_v32  ;;  %v2755_v32 = vpop.f32.mrf.mxu2 }
 0x305   :  { %v10652_v6 = vpop.eup %8418  ;;  %v2791_v42 = vadd.f32 %v2743_v62, %v1339_v58  ;;  %8050 = vmatmul.msk.f32.gmra.mxu0 %vm312_vm0, %v149_v56  ;;  %v151_v56 = vld [vmem:[%s15089_s0 + $0x310] sm:$0xff] }
 0x306   :  { %15320 = vst [vmem:[#allocation60_spill] sm:$0xff] %v10652_v6  ;;  %2917 = vmatmul.f32.gmra.mxu3 %v10652_v6 }
 0x307   :  { %8420 = vtanh.f32 %v2791_v42 }
 0x30a   :  { %v1341_v16 = vpop.f32.mrf.mxu0 }
 0x30b   :  { %v1342_v15 = vadd.f32 %v10405_v14, %v1341_v16 }
 0x30d   :  { %v10660_v12 = vpop.eup %8420  ;;  %v2792_v53 = vadd.f32 %v2746_v50, %v1342_v15  ;;  %8051 = vmatmul.msk.f32.gmra.mxu0 %vm312_vm0, %v150_v21  ;;  %v154_v21 = vld [vmem:[%s15089_s0 + $0x328] sm:$0xff] }
 0x30e   :  { %15321 = vst [vmem:[#allocation61_spill] sm:$0xff] %v10660_v12  ;;  %3003 = vmatmul.f32.vlgmr.msra.gmra.mxu1 %v10660_v12 }
 0x30f   :  { %8422 = vtanh.f32 %v2792_v53  ;;  %3770 = vmatpush.msra.mxu1 %v10150_v10  ;;  %v2758_v10 = vpop.f32.mrf.mxu2 }
 0x311   :  { %3771 = vmatpush.msra.mxu1 %v10156_v5 }
 0x312   :  { %v1344_v62 = vpop.f32.mrf.mxu0 }
 0x313   :  { %v1345_v58 = vadd.f32 %v10405_v14, %v1344_v62  ;;  %3772 = vmatpush.msra.mxu1 %v10166_v30  ;;  %v152_v30 = vld [vmem:[%s15089_s0 + $0x318] sm:$0xff] }
 0x315   :  { %v10671_v50 = vpop.eup %8422  ;;  %v2793_v42 = vadd.f32 %v2749_v13, %v1345_v58  ;;  %8052 = vmatmul.msk.f32.gmra.mxu0 %vm312_vm0, %v151_v56  ;;  %3773 = vmatpush.msra.mxu1 %v10175_v27 }
 0x316   :  { %15322 = vst [vmem:[#allocation62_spill] sm:$0xff] %v10671_v50  ;;  %3006 = vmatmul.f32.gmra.mxu1 %v10671_v50 }
 0x317   :  { %8424 = vtanh.f32 %v2793_v42  ;;  %3774 = vmatpush.msra.mxu1 %v10182_v44  ;;  %v2761_v44 = vpop.f32.mrf.mxu2  ;;  %v155_v42 = vld [vmem:[%s15089_s0 + $0x330] sm:$0xff] }
 0x319   :  { %3775 = vmatpush.msra.mxu1 %v10188_v8 }
 0x31a   :  { %v1347_v5 = vpop.f32.mrf.mxu0 }
 0x31b   :  { %v1348_v53 = vadd.f32 %v10405_v14, %v1347_v5  ;;  %3776 = vmatpush.msra.mxu1 %v10198_v24  ;;  %v153_v24 = vld [vmem:[%s15089_s0 + $0x320] sm:$0xff] }
 0x31d   :  { %v10683_v13 = vpop.eup %8424  ;;  %v2794_v27 = vadd.f32 %v2752_v45, %v1348_v53  ;;  %8053 = vmatmul.msk.f32.gmra.mxu0 %vm312_vm0, %v152_v30  ;;  %3777 = vmatpush.msra.mxu1 %v10207_v23 }
 0x31e   :  { %15323 = vst [vmem:[#allocation63_spill] sm:$0xff] %v10683_v13  ;;  %3009 = vmatmul.f32.gmra.mxu1 %v10683_v13 }
 0x31f   :  { %8426 = vtanh.f32 %v2794_v27  ;;  %3778 = vmatpush.msra.mxu1 %v10214_v51 }
 0x321   :  { %3779 = vmatpush.msra.mxu1 %v10364_v36 }
 0x322   :  { %v1350_v8 = vpop.f32.mrf.mxu0 }
 0x323   :  { %v1351_v16 = vadd.f32 %v10405_v14, %v1350_v8  ;;  %3780 = vmatpush.msra.mxu1 %v10374_v33  ;;  %v156_v8 = vld [vmem:[%s15089_s0 + $0x338] sm:$0xff] }
 0x325   :  { %v10695_v45 = vpop.eup %8426  ;;  %v2795_v23 = vadd.f32 %v2755_v32, %v1351_v16  ;;  %8054 = vmatmul.msk.f32.gmra.mxu0 %vm312_vm0, %v153_v24  ;;  %3781 = vmatpush.msra.mxu1 %v10383_v19  ;;  %v2764_v32 = vpop.f32.mrf.mxu2 }
 0x326   :  { %15324 = vst [vmem:[#allocation64_spill] sm:$0xff] %v10695_v45  ;;  %3012 = vmatmul.f32.gmra.mxu1 %v10695_v45 }
 0x327   :  { %8428 = vtanh.f32 %v2795_v23  ;;  %3782 = vmatpush.msra.mxu1 %v10390_v49 }
 0x329   :  { %3783 = vmatpush.msra.mxu1 %v10396_v17 }
 0x32a   :  { %v1353_v51 = vpop.f32.mrf.mxu0 }
 0x32b   :  { %v1354_v15 = vadd.f32 %v10405_v14, %v1353_v51  ;;  %3784 = vmatpush.msra.mxu1 %v10411_v29 }
 0x32d   :  { %v10707_v62 = vpop.eup %8428  ;;  %v2796_v56 = vadd.f32 %v2758_v10, %v1354_v15  ;;  %8055 = vmatmul.msk.f32.gmra.mxu0 %vm312_vm0, %v154_v21  ;;  %3785 = vmatpush.msra.mxu1 %v10420_v20  ;;  %v2767_v10 = vpop.f32.mrf.mxu2  ;;  %v157_v21 = vld [vmem:[%s15089_s0 + $0x340] sm:$0xff] }
 0x32e   :  { %15325 = vst [vmem:[#allocation65_spill] sm:$0xff] %v10707_v62  ;;  %3015 = vmatmul.f32.gmra.mxu1 %v10707_v62 }
 0x32f   :  { %8430 = vtanh.f32 %v2796_v56 }
 0x332   :  { %v1356_v58 = vpop.f32.mrf.mxu0 }
 0x333   :  { %v1357_v5 = vadd.f32 %v10405_v14, %v1356_v58 }
 0x335   :  { %v10716_v30 = vpop.eup %8430  ;;  %v2797_v53 = vadd.f32 %v2761_v44, %v1357_v5  ;;  %8056 = vmatmul.msk.f32.gmra.mxu0 %vm312_vm0, %v155_v42  ;;  %v2770_v44 = vpop.f32.mrf.mxu2  ;;  %v158_v5 = vld [vmem:[%s15089_s0 + $0x348] sm:$0xff] }
 0x336   :  { %15326 = vst [vmem:[#allocation66_spill] sm:$0xff] %v10716_v30  ;;  %3018 = vmatmul.f32.gmra.mxu1 %v10716_v30 }
 0x337   :  { %8432 = vtanh.f32 %v2797_v53 }
 0x33a   :  { %v1359_v27 = vpop.f32.mrf.mxu0 }
 0x33b   :  { %v1360_v24 = vadd.f32 %v10405_v14, %v1359_v27 }
 0x33d   :  { %v10724_v16 = vpop.eup %8432  ;;  %v2798_v23 = vadd.f32 %v2764_v32, %v1360_v24  ;;  %8057 = vmatmul.msk.f32.gmra.mxu0 %vm312_vm0, %v156_v8  ;;  %v2773_v32 = vpop.f32.mrf.mxu2  ;;  %v159_v24 = vld [vmem:[%s15089_s0 + $0x350] sm:$0xff] }
 0x33e   :  { %15327 = vst [vmem:[#allocation67_spill] sm:$0xff] %v10724_v16  ;;  %3021 = vmatmul.f32.gmra.mxu1 %v10724_v16  ;;  %v10868_v16 = vld [vmem:[%s15091_s2 + $0x40] sm:$0xff] }
 0x33f   :  { %8434 = vtanh.f32 %v2798_v23 }
 0x342   :  { %v1362_v51 = vpop.f32.mrf.mxu0 }
 0x343   :  { %v1363_v15 = vadd.f32 %v10405_v14, %v1362_v51 }
 0x345   :  { %v10732_v56 = vpop.eup %8434  ;;  %v2799_v58 = vadd.f32 %v2767_v10, %v1363_v15  ;;  %8058 = vmatmul.msk.f32.gmra.mxu0 %vm312_vm0, %v157_v21  ;;  %v2776_v51 = vpop.f32.mrf.mxu2 }
 0x346   :  { %15328 = vst [vmem:[#allocation68_spill] sm:$0xff] %v10732_v56  ;;  %3024 = vmatmul.f32.gmra.mxu1 %v10732_v56 }
 0x347   :  { %8436 = vtanh.f32 %v2799_v58  ;;  %v160_v58 = vld [vmem:[%s15089_s0 + $0x358] sm:$0xff] }
 0x34a   :  { %v1365_v42 = vpop.f32.mrf.mxu0 }
 0x34b   :  { %v1366_v53 = vadd.f32 %v10405_v14, %v1365_v42 }
 0x34d   :  { %v10740_v27 = vpop.eup %8436  ;;  %v2800_v8 = vadd.f32 %v2770_v44, %v1366_v53  ;;  %8059 = vmatmul.msk.f32.gmra.mxu0 %vm312_vm0, %v158_v5 }
 0x34e   :  { %15329 = vst [vmem:[#allocation69_spill] sm:$0xff] %v10740_v27  ;;  %3027 = vmatmul.f32.gmra.mxu1 %v10740_v27 }
 0x34f   :  { %8438 = vtanh.f32 %v2800_v8  ;;  %v2779_v8 = vpop.f32.mrf.mxu2 }
 0x352   :  { %v1368_v10 = vpop.f32.mrf.mxu0 }
 0x353   :  { %v1369_v23 = vadd.f32 %v10405_v14, %v1368_v10  ;;  %v161_v10 = vld [vmem:[%s15089_s0 + $0x360] sm:$0xff] }
 0x355   :  { %v10748_v21 = vpop.eup %8438  ;;  %v2801_v15 = vadd.f32 %v2773_v32, %v1369_v23  ;;  %8060 = vmatmul.msk.f32.gmra.mxu0 %vm312_vm0, %v159_v24 }
 0x356   :  { %15330 = vst [vmem:[#allocation70_spill] sm:$0xff] %v10748_v21  ;;  %3030 = vmatmul.f32.gmra.mxu1 %v10748_v21 }
 0x357   :  { %8440 = vtanh.f32 %v2801_v15 }
 0x35a   :  { %v1371_v44 = vpop.f32.mrf.mxu0 }
 0x35b   :  { %v1372_v42 = vadd.f32 %v10405_v14, %v1371_v44  ;;  %v2873_v44 = vpop.f32.mrf.mxu3 }
 0x35d   :  { %v10756_v5 = vpop.eup %8440  ;;  %v2802_v53 = vadd.f32 %v2776_v51, %v1372_v42  ;;  %8061 = vmatmul.msk.f32.gmra.mxu0 %vm312_vm0, %v160_v58  ;;  %v2782_v51 = vpop.f32.mrf.mxu2  ;;  %v162_v42 = vld [vmem:[%s15089_s0 + $0x368] sm:$0xff] }
 0x35e   :  { %15331 = vst [vmem:[#allocation71_spill] sm:$0xff] %v10756_v5  ;;  %3033 = vmatmul.f32.gmra.mxu1 %v10756_v5 }
 0x35f   :  { %8442 = vtanh.f32 %v2802_v53 }
 0x362   :  { %v1374_v32 = vpop.f32.mrf.mxu0 }
 0x363   :  { %v1375_v24 = vadd.f32 %v10405_v14, %v1374_v32 }
 0x365   :  { %v10764_v23 = vpop.eup %8442  ;;  %v2803_v15 = vadd.f32 %v2779_v8, %v1375_v24  ;;  %8062 = vmatmul.msk.f32.gmra.mxu0 %vm312_vm0, %v161_v10  ;;  %v2876_v8 = vpop.f32.mrf.mxu3 }
 0x366   :  { %15332 = vst [vmem:[#allocation72_spill] sm:$0xff] %v10764_v23  ;;  %3036 = vmatmul.f32.gmra.mxu1 %v10764_v23  ;;  %v2785_v10 = vpop.f32.mrf.mxu2 }
 0x367   :  { %8444 = vtanh.f32 %v2803_v15  ;;  %v163_v15 = vld [vmem:[%s15089_s0 + $0x370] sm:$0xff] }
 0x36a   :  { %v1377_v58 = vpop.f32.mrf.mxu0 }
 0x36b   :  { %v1378_v53 = vadd.f32 %v10405_v14, %v1377_v58 }
 0x36d   :  { %v10772_v5 = vpop.eup %8444  ;;  %v2804_v32 = vadd.f32 %v2782_v51, %v1378_v53  ;;  %8063 = vmatmul.msk.f32.gmra.mxu0 %vm312_vm0, %v162_v42  ;;  %v2879_v51 = vpop.f32.mrf.mxu3  ;;  %v164_v53 = vld [vmem:[%s15089_s0 + $0x378] sm:$0xff] }
 0x36e   :  { %15333 = vst [vmem:[#allocation73_spill] sm:$0xff] %v10772_v5  ;;  %3039 = vmatmul.f32.gmra.mxu1 %v10772_v5  ;;  %v2788_v5 = vpop.f32.mrf.mxu2 }
 0x36f   :  { %8446 = vtanh.f32 %v2804_v32 }
 0x372   :  { %v1380_v24 = vpop.f32.mrf.mxu0 }
 0x373   :  { %v1381_v23 = vadd.f32 %v10405_v14, %v1380_v24 }
 0x375   :  { %v10780_v21 = vpop.eup %8446  ;;  %v2805_v58 = vadd.f32 %v2785_v10, %v1381_v23  ;;  %8064 = vmatmul.msk.f32.gmra.mxu0 %vm312_vm0, %v163_v15  ;;  %v165_v10 = vld [vmem:[%s15089_s0 + $0x380] sm:$0xff] }
 0x376   :  { %15334 = vst [vmem:[#allocation74_spill] sm:$0xff] %v10780_v21  ;;  %3042 = vmatmul.f32.gmra.mxu1 %v10780_v21 }
 0x377   :  { %8448 = vtanh.f32 %v2805_v58  ;;  %v2882_v58 = vpop.f32.mrf.mxu3 }
 0x37a   :  { %v1383_v42 = vpop.f32.mrf.mxu0 }
 0x37b   :  { %v1384_v32 = vadd.f32 %v10405_v14, %v1383_v42 }
 0x37d   :  { %v10788_v27 = vpop.eup %8448  ;;  %v2806_v24 = vadd.f32 %v2788_v5, %v1384_v32  ;;  %8065 = vmatmul.msk.f32.gmra.mxu0 %vm312_vm0, %v164_v53  ;;  %v166_v53 = vld [vmem:[%s15089_s0 + $0x388] sm:$0xff] }
 0x37e   :  { %15335 = vst [vmem:[#allocation75_spill] sm:$0xff] %v10788_v27  ;;  %3045 = vmatmul.f32.gmra.mxu1 %v10788_v27 }
 0x37f   :  { %8450 = vtanh.f32 %v2806_v24 }
 0x382   :  { %v1386_v23 = vpop.f32.mrf.mxu0 }
 0x383   :  { %v1387_v15 = vadd.f32 %v10405_v14, %v1386_v23  ;;  %v2885_v23 = vpop.f32.mrf.mxu3 }
 0x385   :  { %v10796_v21 = vpop.eup %8450  ;;  %v2921_v42 = vadd.f32 %v2873_v44, %v1387_v15  ;;  %8066 = vmatmul.msk.f32.gmra.mxu0 %vm312_vm0, %v165_v10  ;;  %v10811_v44 = vld [vmem:[%s15091_s2 + $0x78] sm:$0xff]  ;;  %v10817_v10 = vld [vmem:[%s15091_s2 + $0x70] sm:$0xff] }
 0x386   :  { %15336 = vst [vmem:[#allocation76_spill] sm:$0xff] %v10796_v21  ;;  %3048 = vmatmul.f32.gmra.mxu1 %v10796_v21  ;;  %v167_v15 = vld [vmem:[%s15089_s0 + $0x390] sm:$0xff] }
 0x387   :  { %8452 = vtanh.f32 %v2921_v42  ;;  %v10827_v42 = vld [vmem:[%s15091_s2 + $0x68] sm:$0xff] }
 0x38a   :  { %v1389_v5 = vpop.f32.mrf.mxu0 }
 0x38b   :  { %v1390_v32 = vadd.f32 %v10405_v14, %v1389_v5 }
 0x38d   :  { %v10804_v24 = vpop.eup %8452  ;;  %v2922_v27 = vadd.f32 %v2876_v8, %v1390_v32  ;;  %8067 = vmatmul.msk.f32.gmra.mxu0 %vm312_vm0, %v166_v53  ;;  %v10836_v32 = vld [vmem:[%s15091_s2 + $0x60] sm:$0xff] }
 0x38e   :  { %15337 = vst [vmem:[#allocation77_spill] sm:$0xff] %v10804_v24  ;;  %3133 = vmatmul.f32.vlgmr.msrb.gmra.mxu2 %v10804_v24  ;;  %v10859_v24 = vld [vmem:[%s15091_s2 + $0x48] sm:$0xff] }
 0x38f   :  { %8454 = vtanh.f32 %v2922_v27  ;;  %3900 = vmatpush.msrb.mxu2 %v10811_v44 }
 0x391   :  { %3901 = vmatpush.msrb.mxu2 %v10817_v10 }
 0x392   :  { %v1392_v8 = vpop.f32.mrf.mxu0 }
 0x393   :  { %v1393_v27 = vadd.f32 %v10405_v14, %v1392_v8  ;;  %3902 = vmatpush.msrb.mxu2 %v10827_v42  ;;  %v10843_v8 = vld [vmem:[%s15091_s2 + $0x58] sm:$0xff] }
 0x395   :  { %v10830_v5 = vpop.eup %8454  ;;  %v2923_v53 = vadd.f32 %v2879_v51, %v1393_v27  ;;  %8068 = vmatmul.msk.f32.gmra.mxu0 %vm312_vm0, %v167_v15  ;;  %3903 = vmatpush.msrb.mxu2 %v10836_v32  ;;  %v2888_v51 = vpop.f32.mrf.mxu3  ;;  %v10849_v15 = vld [vmem:[%s15091_s2 + $0x50] sm:$0xff] }
 0x396   :  { %15338 = vst [vmem:[#allocation78_spill] sm:$0xff] %v10830_v5  ;;  %3136 = vmatmul.f32.gmra.mxu2 %v10830_v5 }
 0x397   :  { %8456 = vtanh.f32 %v2923_v53  ;;  %3904 = vmatpush.msrb.mxu2 %v10843_v8  ;;  %v168_v53 = vld [vmem:[%s15089_s0 + $0x398] sm:$0xff] }
 0x399   :  { %3905 = vmatpush.msrb.mxu2 %v10849_v15 }
 0x39a   :  { %v1395_v27 = vpop.f32.mrf.mxu0 }
 0x39b   :  { %v1396_v5 = vadd.f32 %v10405_v14, %v1395_v27  ;;  %3906 = vmatpush.msrb.mxu2 %v10859_v24  ;;  %v10875_v27 = vld [vmem:[%s15091_s2 + $0x38] sm:$0xff] }
 0x39d   :  { %v10862_v21 = vpop.eup %8456  ;;  %v2924_v56 = vadd.f32 %v2882_v58, %v1396_v5  ;;  %8069 = vmatmul.msk.f32.gmra.mxu0 %vm312_vm0, %v168_v53  ;;  %3907 = vmatpush.msrb.mxu2 %v10868_v16  ;;  %v2891_v58 = vpop.f32.mrf.mxu3  ;;  %v169_v53 = vld [vmem:[%s15089_s0 + $0x3a0] sm:$0xff] }
 0x39e   :  { %15339 = vst [vmem:[#allocation79_spill] sm:$0xff] %v10862_v21  ;;  %3139 = vmatmul.f32.gmra.mxu2 %v10862_v21 }
 0x39f   :  { %8458 = vtanh.f32 %v2924_v56  ;;  %3908 = vmatpush.msrb.mxu2 %v10875_v27 }
 0x3a1   :  { %3909 = vmatpush.msrb.mxu2 %v10364_v36 }
 0x3a2   :  { %v1398_v5 = vpop.f32.mrf.mxu0 }
 0x3a3   :  { %v1399_v30 = vadd.f32 %v10405_v14, %v1398_v5  ;;  %3910 = vmatpush.msrb.mxu2 %v10374_v33  ;;  %v170_v5 = vld [vmem:[%s15089_s0 + $0x3a8] sm:$0xff] }
 0x3a5   :  { %v10884_v56 = vpop.eup %8458  ;;  %v2925_v21 = vadd.f32 %v2885_v23, %v1399_v30  ;;  %8070 = vmatmul.msk.f32.gmra.mxu0 %vm312_vm0, %v169_v53  ;;  %3911 = vmatpush.msrb.mxu2 %v10383_v19  ;;  %v2894_v30 = vpop.f32.mrf.mxu3 }
 0x3a6   :  { %15340 = vst [vmem:[#allocation80_spill] sm:$0xff] %v10884_v56  ;;  %3142 = vmatmul.f32.gmra.mxu2 %v10884_v56 }
 0x3a7   :  { %8460 = vtanh.f32 %v2925_v21  ;;  %3912 = vmatpush.msrb.mxu2 %v10390_v49 }
 0x3a9   :  { %3913 = vmatpush.msrb.mxu2 %v10396_v17  ;;  %v171_v17 = vld [vmem:[%s15089_s0 + $0x3b0] sm:$0xff] }
 0x3aa   :  { %v1401_v36 = vpop.f32.mrf.mxu0 }
 0x3ab   :  { %v1402_v33 = vadd.f32 %v10405_v14, %v1401_v36  ;;  %3914 = vmatpush.msrb.mxu2 %v10411_v29  ;;  %v172_v36 = vld [vmem:[%s15089_s0 + $0x3b8] sm:$0xff] }
 0x3ad   :  { %v10896_v23 = vpop.eup %8460  ;;  %v2926_v19 = vadd.f32 %v2888_v51, %v1402_v33  ;;  %8071 = vmatmul.msk.f32.gmra.mxu0 %vm312_vm0, %v170_v5  ;;  %3915 = vmatpush.msrb.mxu2 %v10420_v20  ;;  %v2897_v51 = vpop.f32.mrf.mxu3 }
 0x3ae   :  { %15341 = vst [vmem:[#allocation81_spill] sm:$0xff] %v10896_v23  ;;  %3145 = vmatmul.f32.gmra.mxu2 %v10896_v23 }
 0x3af   :  { %8462 = vtanh.f32 %v2926_v19 }
 0x3b2   :  { %v1404_v49 = vpop.f32.mrf.mxu0 }
 0x3b3   :  { %v1405_v21 = vadd.f32 %v10405_v14, %v1404_v49 }
 0x3b5   :  { %v10905_v53 = vpop.eup %8462  ;;  %v2927_v29 = vadd.f32 %v2891_v58, %v1405_v21  ;;  %8072 = vmatmul.msk.f32.gmra.mxu0 %vm312_vm0, %v171_v17  ;;  %v2900_v58 = vpop.f32.mrf.mxu3  ;;  %v173_v17 = vld [vmem:[%s15089_s0 + $0x3c0] sm:$0xff] }
 0x3b6   :  { %15342 = vst [vmem:[#allocation82_spill] sm:$0xff] %v10905_v53  ;;  %3148 = vmatmul.f32.gmra.mxu2 %v10905_v53 }
 0x3b7   :  { %8464 = vtanh.f32 %v2927_v29 }
 0x3ba   :  { %v1407_v20 = vpop.f32.mrf.mxu0 }
 0x3bb   :  { %v1408_v5 = vadd.f32 %v10405_v14, %v1407_v20 }
 0x3bd   :  { %v10913_v33 = vpop.eup %8464  ;;  %v2928_v19 = vadd.f32 %v2894_v30, %v1408_v5  ;;  %8073 = vmatmul.msk.f32.gmra.mxu0 %vm312_vm0, %v172_v36  ;;  %v2903_v30 = vpop.f32.mrf.mxu3  ;;  %v174_v36 = vld [vmem:[%s15089_s0 + $0x3c8] sm:$0xff]  ;;  %v10931_v5 = vld [vmem:[%s15092_s3] ss:$0 sm:$0xff] }
 0x3be   :  { %15343 = vst [vmem:[#allocation83_spill] sm:$0xff] %v10913_v33  ;;  %3151 = vmatmul.f32.gmra.mxu2 %v10913_v33 }
 0x3bf   :  { %8466 = vtanh.f32 %v2928_v19 }
 0x3c2   :  { %v1410_v49 = vpop.f32.mrf.mxu0 }
 0x3c3   :  { %v1411_v21 = vadd.f32 %v10405_v14, %v1410_v49  ;;  %v175_v49 = vld [vmem:[%s15089_s0 + $0x3d0] sm:$0xff] }
 0x3c5   :  { %v10921_v29 = vpop.eup %8466  ;;  %v2929_v53 = vadd.f32 %v2897_v51, %v1411_v21  ;;  %8074 = vmatmul.msk.f32.gmra.mxu0 %vm312_vm0, %v173_v17  ;;  %v2906_v21 = vpop.f32.mrf.mxu3 }
 0x3c6   :  { %15344 = vst [vmem:[#allocation84_spill] sm:$0xff] %v10921_v29  ;;  %3154 = vmatmul.f32.gmra.mxu2 %v10921_v29 }
 0x3c7   :  { %8468 = vtanh.f32 %v2929_v53 }
 0x3ca   :  { %v1413_v20 = vpop.f32.mrf.mxu0 }
 0x3cb   :  { %v1414_v14 = vadd.f32 %v10931_v5, %v1413_v20  ;;  %v176_v20 = vld [vmem:[%s15089_s0 + $0x3d8] sm:$0xff] }
 0x3cd   :  { %v10934_v19 = vpop.eup %8468  ;;  %v2930_v51 = vadd.f32 %v2900_v58, %v1414_v14  ;;  %8075 = vmatmul.msk.f32.gmra.mxu0 %vm312_vm0, %v174_v36 }
 0x3ce   :  { %15345 = vst [vmem:[#allocation85_spill] sm:$0xff] %v10934_v19  ;;  %3157 = vmatmul.f32.gmra.mxu2 %v10934_v19 }
 0x3cf   :  { %8470 = vtanh.f32 %v2930_v51 }
 0x3d2   :  { %v1416_v53 = vpop.f32.mrf.mxu0 }
 0x3d3   :  { %v1417_v17 = vadd.f32 %v10931_v5, %v1416_v53  ;;  %v2909_v53 = vpop.f32.mrf.mxu3 }
 0x3d5   :  { %v10942_v29 = vpop.eup %8470  ;;  %v2931_v33 = vadd.f32 %v2903_v30, %v1417_v17  ;;  %8076 = vmatmul.msk.f32.gmra.mxu0 %vm312_vm0, %v175_v49 }
 0x3d6   :  { %15346 = vst [vmem:[#allocation86_spill] sm:$0xff] %v10942_v29  ;;  %3160 = vmatmul.f32.gmra.mxu2 %v10942_v29 }
 0x3d7   :  { %8472 = vtanh.f32 %v2931_v33  ;;  %v177_v33 = vld [vmem:[%s15089_s0 + $0x3e0] sm:$0xff] }
 0x3da   :  { %v1419_v58 = vpop.f32.mrf.mxu0 }
 0x3db   :  { %v1420_v36 = vadd.f32 %v10931_v5, %v1419_v58  ;;  %v3004_v58 = vpop.f32.mrf.mxu1 }
 0x3dd   :  { %v10950_v14 = vpop.eup %8472  ;;  %v2932_v51 = vadd.f32 %v2906_v21, %v1420_v36  ;;  %8077 = vmatmul.msk.f32.gmra.mxu0 %vm312_vm0, %v176_v20  ;;  %v2912_v21 = vpop.f32.mrf.mxu3  ;;  %v178_v36 = vld [vmem:[%s15089_s0 + $0x3e8] sm:$0xff] }
 0x3de   :  { %15347 = vst [vmem:[#allocation87_spill] sm:$0xff] %v10950_v14  ;;  %3163 = vmatmul.f32.gmra.mxu2 %v10950_v14 }
 0x3df   :  { %8474 = vtanh.f32 %v2932_v51 }
 0x3e2   :  { %v1422_v30 = vpop.f32.mrf.mxu0 }
 0x3e3   :  { %v1423_v49 = vadd.f32 %v10931_v5, %v1422_v30 }
 0x3e5   :  { %v10958_v17 = vpop.eup %8474  ;;  %v2933_v29 = vadd.f32 %v2909_v53, %v1423_v49  ;;  %8078 = vmatmul.msk.f32.gmra.mxu0 %vm312_vm0, %v177_v33  ;;  %v3007_v53 = vpop.f32.mrf.mxu1 }
 0x3e6   :  { %15348 = vst [vmem:[#allocation88_spill] sm:$0xff] %v10958_v17  ;;  %3166 = vmatmul.f32.gmra.mxu2 %v10958_v17  ;;  %v2915_v33 = vpop.f32.mrf.mxu3 }
 0x3e7   :  { %8476 = vtanh.f32 %v2933_v29  ;;  %v179_v29 = vld [vmem:[%s15089_s0 + $0x3f0] sm:$0xff] }
 0x3ea   :  { %v1425_v20 = vpop.f32.mrf.mxu0 }
 0x3eb   :  { %v1426_v51 = vadd.f32 %v10931_v5, %v1425_v20 }
 0x3ed   :  { %v10966_v14 = vpop.eup %8476  ;;  %v2934_v30 = vadd.f32 %v2912_v21, %v1426_v51  ;;  %8079 = vmatmul.msk.f32.gmra.mxu0 %vm312_vm0, %v178_v36  ;;  %v3010_v21 = vpop.f32.mrf.mxu1  ;;  %v180_v51 = vld [vmem:[%s15089_s0 + $0x3f8] sm:$0xff] }
 0x3ee   :  { %15349 = vst [vmem:[#allocation89_spill] sm:$0xff] %v10966_v14  ;;  %3169 = vmatmul.f32.gmra.mxu2 %v10966_v14  ;;  %v2918_v14 = vpop.f32.mrf.mxu3 }
 0x3ef   :  { %8478 = vtanh.f32 %v2934_v30 }
 0x3f2   :  { %v1428_v49 = vpop.f32.mrf.mxu0 }
 0x3f3   :  { %v1429_v17 = vadd.f32 %v10931_v5, %v1428_v49 }
 0x3f5   :  { %v10974_v19 = vpop.eup %8478  ;;  %v2935_v20 = vadd.f32 %v2915_v33, %v1429_v17  ;;  %8080 = vmatmul.msk.f32.gmra.mxu0 %vm312_vm0, %v179_v29  ;;  %v181_v33 = vld [vmem:[%s15089_s0 + $0x400] sm:$0xff] }
 0x3f6   :  { %15350 = vst [vmem:[#allocation90_spill] sm:$0xff] %v10974_v19  ;;  %3172 = vmatmul.f32.gmra.mxu2 %v10974_v19 }
 0x3f7   :  { %8480 = vtanh.f32 %v2935_v20  ;;  %v3013_v20 = vpop.f32.mrf.mxu1 }
 0x3fa   :  { %v1431_v36 = vpop.f32.mrf.mxu0 }
 0x3fb   :  { %v1432_v30 = vadd.f32 %v10931_v5, %v1431_v36 }
 0x3fd   :  { %v10982_v23 = vpop.eup %8480  ;;  %v2936_v49 = vadd.f32 %v2918_v14, %v1432_v30  ;;  %8081 = vmatmul.msk.f32.gmra.mxu0 %vm312_vm0, %v180_v51  ;;  %v182_v51 = vld [vmem:[%s15089_s0 + $0x408] sm:$0xff] }
 0x3fe   :  { %15351 = vst [vmem:[#allocation91_spill] sm:$0xff] %v10982_v23  ;;  %3175 = vmatmul.f32.gmra.mxu2 %v10982_v23 }
 0x3ff   :  { %8482 = vtanh.f32 %v2936_v49 }
 0x402   :  { %v1434_v17 = vpop.f32.mrf.mxu0 }
 0x403   :  { %v1435_v29 = vadd.f32 %v10931_v5, %v1434_v17  ;;  %v3016_v17 = vpop.f32.mrf.mxu1 }
 0x405   :  { %v10990_v19 = vpop.eup %8482  ;;  %v3052_v36 = vadd.f32 %v3004_v58, %v1435_v29  ;;  %8082 = vmatmul.msk.f32.gmra.mxu0 %vm312_vm0, %v181_v33  ;;  %v183_v33 = vld [vmem:[%s15089_s0 + $0x410] sm:$0xff] }
 0x406   :  { %15352 = vst [vmem:[#allocation92_spill] sm:$0xff] %v10990_v19  ;;  %3178 = vmatmul.f32.gmra.mxu2 %v10990_v19 }
 0x407   :  { %8484 = vtanh.f32 %v3052_v36 }
 0x40a   :  { %v1437_v14 = vpop.f32.mrf.mxu0 }
 0x40b   :  { %v1438_v30 = vadd.f32 %v10931_v5, %v1437_v14 }
 0x40d   :  { %v10998_v49 = vpop.eup %8484  ;;  %v3053_v23 = vadd.f32 %v3007_v53, %v1438_v30  ;;  %8083 = vmatmul.msk.f32.gmra.mxu0 %vm312_vm0, %v182_v51  ;;  %v9321_v30 = vld [vmem:[%s15091_s2 + $0x20] sm:$0xff] }
 0x40e   :  { %15353 = vst [vmem:[#allocation93_spill] sm:$0xff] %v10998_v49  ;;  %3264 = vmatmul.f32.vlgmr.msra.gmra.mxu3 %v10998_v49 }
 0x40f   :  { %8486 = vtanh.f32 %v3053_v23  ;;  %4031 = vmatpush.msra.mxu3 %v10811_v44  ;;  %v3019_v44 = vpop.f32.mrf.mxu1 }
 0x411   :  { %4032 = vmatpush.msra.mxu3 %v10817_v10 }
 0x412   :  { %v1440_v58 = vpop.f32.mrf.mxu0 }
 0x413   :  { %v1441_v29 = vadd.f32 %v10931_v5, %v1440_v58  ;;  %4033 = vmatpush.msra.mxu3 %v10827_v42  ;;  %v184_v42 = vld [vmem:[%s15089_s0 + $0x418] sm:$0xff] }
 0x414   :  { %v9322_v58 = vld [vmem:[%s15091_s2 + $0x18] sm:$0xff] }
 0x415   :  { %v11009_v53 = vpop.eup %8486  ;;  %v3054_v36 = vadd.f32 %v3010_v21, %v1441_v29  ;;  %8084 = vmatmul.msk.f32.gmra.mxu0 %vm312_vm0, %v183_v33  ;;  %4034 = vmatpush.msra.mxu3 %v10836_v32  ;;  %v9323_v33 = vld [vmem:[%s15091_s2 + $0x10] sm:$0xff]  ;;  %v186_v29 = vld [vmem:[%s15089_s0 + $0x428] sm:$0xff] }
 0x416   :  { %15354 = vst [vmem:[#allocation94_spill] sm:$0xff] %v11009_v53  ;;  %3267 = vmatmul.f32.gmra.mxu3 %v11009_v53 }
 0x417   :  { %8488 = vtanh.f32 %v3054_v36  ;;  %4035 = vmatpush.msra.mxu3 %v10843_v8  ;;  %v9319_v8 = vld [vmem:[%s15091_s2 + $0x30] sm:$0xff] }
 0x419   :  { %4036 = vmatpush.msra.mxu3 %v10849_v15  ;;  %v3022_v15 = vpop.f32.mrf.mxu1 }
 0x41a   :  { %v1443_v10 = vpop.f32.mrf.mxu0 }
 0x41b   :  { %v1444_v23 = vadd.f32 %v10931_v5, %v1443_v10  ;;  %4037 = vmatpush.msra.mxu3 %v10859_v24  ;;  %v185_v24 = vld [vmem:[%s15089_s0 + $0x420] sm:$0xff]  ;;  %v9324_v10 = vld [vmem:[%s15091_s2 + $0x8] sm:$0xff] }
 0x41d   :  { %v11021_v21 = vpop.eup %8488  ;;  %v3055_v32 = vadd.f32 %v3013_v20, %v1444_v23  ;;  %8085 = vmatmul.msk.f32.gmra.mxu0 %vm312_vm0, %v184_v42  ;;  %4038 = vmatpush.msra.mxu3 %v10868_v16  ;;  %v9320_v16 = vld [vmem:[%s15091_s2 + $0x28] sm:$0xff] }
 0x41e   :  { %15355 = vst [vmem:[#allocation95_spill] sm:$0xff] %v11021_v21  ;;  %3270 = vmatmul.f32.gmra.mxu3 %v11021_v21 }
 0x41f   :  { %8490 = vtanh.f32 %v3055_v32  ;;  %4039 = vmatpush.msra.mxu3 %v10875_v27 }
 0x421   :  { %4040 = vmatpush.msra.mxu3 %v9319_v8  ;;  %v3025_v42 = vpop.f32.mrf.mxu1  ;;  %v9325_v8 = vld [vmem:[%s15091_s2] sm:$0xff]  ;;  %s7929_s2 = sshll.u32 %s15098_s9, 4  ;;  %s7930_s2 = int_to_ptr.hbm [resolvable:$true] %s7929_s2 }
 0x422   :  { %v1446_v14 = vpop.f32.mrf.mxu0 }
 0x423   :  { %v1447_v20 = vadd.f32 %v10931_v5, %v1446_v14  ;;  %4041 = vmatpush.msra.mxu3 %v9320_v16 }
 0x425   :  { %v11037_v51 = vpop.eup %8490  ;;  %v3056_v27 = vadd.f32 %v3016_v17, %v1447_v20  ;;  %8086 = vmatmul.msk.f32.gmra.mxu0 %vm312_vm0, %v185_v24  ;;  %4042 = vmatpush.msra.mxu3 %v9321_v30  ;;  %v187_v24 = vld [vmem:[%s15089_s0 + $0x430] sm:$0xff] }
 0x426   :  { %15356 = vst [vmem:[#allocation96_spill] sm:$0xff] %v11037_v51  ;;  %3273 = vmatmul.f32.gmra.mxu3 %v11037_v51 }
 0x427   :  { %8492 = vtanh.f32 %v3056_v27  ;;  %4043 = vmatpush.msra.mxu3 %v9322_v58  ;;  %v188_v58 = vld [vmem:[%s15089_s0 + $0x438] sm:$0xff] }
 0x429   :  { %4044 = vmatpush.msra.mxu3 %v9323_v33  ;;  %v3028_v27 = vpop.f32.mrf.mxu1 }
 0x42a   :  { %v1449_v17 = vpop.f32.mrf.mxu0 }
 0x42b   :  { %v1450_v36 = vadd.f32 %v10931_v5, %v1449_v17  ;;  %4045 = vmatpush.msra.mxu3 %v9324_v10  ;;  %v189_v10 = vld [vmem:[%s15089_s0 + $0x440] sm:$0xff] }
 0x42d   :  { %v11057_v23 = vpop.eup %8492  ;;  %v3057_v32 = vadd.f32 %v3019_v44, %v1450_v36  ;;  %8087 = vmatmul.msk.f32.gmra.mxu0 %vm312_vm0, %v186_v29  ;;  %4046 = vmatpush.msra.mxu3 %v9325_v8 }
 0x42e   :  { %15357 = vst [vmem:[#allocation97_spill] sm:$0xff] %v11057_v23  ;;  %3276 = vmatmul.f32.gmra.mxu3 %v11057_v23 }
 0x42f   :  { %8494 = vtanh.f32 %v3057_v32 }
 0x432   :  { %v1452_v14 = vpop.f32.mrf.mxu0 }
 0x433   :  { %v1453_v20 = vadd.f32 %v10931_v5, %v1452_v14 }
 0x435   :  { %v11068_v16 = vpop.eup %8494  ;;  %v3058_v44 = vadd.f32 %v3022_v15, %v1453_v20  ;;  %8088 = vmatmul.msk.f32.gmra.mxu0 %vm312_vm0, %v187_v24  ;;  %v3031_v15 = vpop.f32.mrf.mxu1  ;;  %v190_v20 = vld [vmem:[%s15089_s0 + $0x448] sm:$0xff] }
 0x436   :  { %15358 = vst [vmem:[#allocation98_spill] sm:$0xff] %v11068_v16  ;;  %3279 = vmatmul.f32.gmra.mxu3 %v11068_v16 }
 0x437   :  { %8496 = vtanh.f32 %v3058_v44 }
 0x43a   :  { %v1455_v30 = vpop.f32.mrf.mxu0 }
 0x43b   :  { %v1456_v33 = vadd.f32 %v10931_v5, %v1455_v30 }
 0x43d   :  { %v11076_v17 = vpop.eup %8496  ;;  %v3059_v29 = vadd.f32 %v3025_v42, %v1456_v33  ;;  %8089 = vmatmul.msk.f32.gmra.mxu0 %vm312_vm0, %v188_v58  ;;  %v3034_v42 = vpop.f32.mrf.mxu1  ;;  %v191_v33 = vld [vmem:[%s15089_s0 + $0x450] sm:$0xff] }
 0x43e   :  { %15359 = vst [vmem:[#allocation99_spill] sm:$0xff] %v11076_v17  ;;  %3282 = vmatmul.f32.gmra.mxu3 %v11076_v17 }
 0x43f   :  { %8498 = vtanh.f32 %v3059_v29 }
 0x442   :  { %v1458_v36 = vpop.f32.mrf.mxu0 }
 0x443   :  { %v1459_v32 = vadd.f32 %v10931_v5, %v1458_v36 }
 0x445   :  { %v11084_v8 = vpop.eup %8498  ;;  %v3060_v14 = vadd.f32 %v3028_v27, %v1459_v32  ;;  %8090 = vmatmul.msk.f32.gmra.mxu0 %vm312_vm0, %v189_v10  ;;  %v3037_v36 = vpop.f32.mrf.mxu1 }
 0x446   :  { %15360 = vst [vmem:[#allocation100_spill] sm:$0xff] %v11084_v8  ;;  %3285 = vmatmul.f32.gmra.mxu3 %v11084_v8 }
 0x447   :  { %8500 = vtanh.f32 %v3060_v14  ;;  %v192_v14 = vld [vmem:[%s15089_s0 + $0x458] sm:$0xff] }
 0x44a   :  { %v1461_v24 = vpop.f32.mrf.mxu0 }
 0x44b   :  { %v1462_v44 = vadd.f32 %v10931_v5, %v1461_v24 }
 0x44d   :  { %v11092_v30 = vpop.eup %8500  ;;  %v3061_v58 = vadd.f32 %v3031_v15, %v1462_v44  ;;  %8091 = vmatmul.msk.f32.gmra.mxu0 %vm312_vm0, %v190_v20 }
 0x44e   :  { %15361 = vst [vmem:[#allocation101_spill] sm:$0xff] %v11092_v30  ;;  %3288 = vmatmul.f32.gmra.mxu3 %v11092_v30 }
 0x44f   :  { %8502 = vtanh.f32 %v3061_v58  ;;  %v3040_v58 = vpop.f32.mrf.mxu1 }
 0x452   :  { %v1464_v27 = vpop.f32.mrf.mxu0 }
 0x453   :  { %v1465_v29 = vadd.f32 %v10931_v5, %v1464_v27  ;;  %v193_v27 = vld [vmem:[%s15089_s0 + $0x460] sm:$0xff] }
 0x455   :  { %v11100_v10 = vpop.eup %8502  ;;  %v3062_v32 = vadd.f32 %v3034_v42, %v1465_v29  ;;  %8092 = vmatmul.msk.f32.gmra.mxu0 %vm312_vm0, %v191_v33 }
 0x456   :  { %15362 = vst [vmem:[#allocation102_spill] sm:$0xff] %v11100_v10  ;;  %3291 = vmatmul.f32.gmra.mxu3 %v11100_v10 }
 0x457   :  { %8504 = vtanh.f32 %v3062_v32 }
 0x45a   :  { %v1467_v15 = vpop.f32.mrf.mxu0 }
 0x45b   :  { %v1468_v24 = vadd.f32 %v10931_v5, %v1467_v15  ;;  %v3134_v15 = vpop.f32.mrf.mxu2 }
 0x45d   :  { %v11108_v20 = vpop.eup %8504  ;;  %v3063_v44 = vadd.f32 %v3037_v36, %v1468_v24  ;;  %8093 = vmatmul.msk.f32.gmra.mxu0 %vm312_vm0, %v192_v14  ;;  %v3043_v36 = vpop.f32.mrf.mxu1  ;;  %v194_v24 = vld [vmem:[%s15089_s0 + $0x468] sm:$0xff] }
 0x45e   :  { %15363 = vst [vmem:[#allocation103_spill] sm:$0xff] %v11108_v20  ;;  %3294 = vmatmul.f32.gmra.mxu3 %v11108_v20 }
 0x45f   :  { %8506 = vtanh.f32 %v3063_v44 }
 0x462   :  { %v1470_v42 = vpop.f32.mrf.mxu0 }
 0x463   :  { %v1471_v33 = vadd.f32 %v10931_v5, %v1470_v42 }
 0x465   :  { %v11116_v29 = vpop.eup %8506  ;;  %v3064_v32 = vadd.f32 %v3040_v58, %v1471_v33  ;;  %8094 = vmatmul.msk.f32.gmra.mxu0 %vm312_vm0, %v193_v27  ;;  %v3137_v58 = vpop.f32.mrf.mxu2 }
 0x466   :  { %15364 = vst [vmem:[#allocation104_spill] sm:$0xff] %v11116_v29  ;;  %3297 = vmatmul.f32.gmra.mxu3 %v11116_v29  ;;  %v3046_v27 = vpop.f32.mrf.mxu1 }
 0x467   :  { %8508 = vtanh.f32 %v3064_v32  ;;  %v195_v32 = vld [vmem:[%s15089_s0 + $0x470] sm:$0xff] }
 0x46a   :  { %v1473_v14 = vpop.f32.mrf.mxu0 }
 0x46b   :  { %v1474_v44 = vadd.f32 %v10931_v5, %v1473_v14 }
 0x46d   :  { %v11124_v20 = vpop.eup %8508  ;;  %v3065_v42 = vadd.f32 %v3043_v36, %v1474_v44  ;;  %8095 = vmatmul.msk.f32.gmra.mxu0 %vm312_vm0, %v194_v24  ;;  %v3140_v36 = vpop.f32.mrf.mxu2  ;;  %v196_v44 = vld [vmem:[%s15089_s0 + $0x478] sm:$0xff] }
 0x46e   :  { %15365 = vst [vmem:[#allocation105_spill] sm:$0xff] %v11124_v20  ;;  %3300 = vmatmul.f32.gmra.mxu3 %v11124_v20  ;;  %v3049_v20 = vpop.f32.mrf.mxu1 }
 0x46f   :  { %8510 = vtanh.f32 %v3065_v42 }
 0x472   :  { %v1476_v33 = vpop.f32.mrf.mxu0 }
 0x473   :  { %v1477_v29 = vadd.f32 %v10931_v5, %v1476_v33 }
 0x475   :  { %v11132_v10 = vpop.eup %8510  ;;  %v3066_v14 = vadd.f32 %v3046_v27, %v1477_v29  ;;  %8096 = vmatmul.msk.f32.gmra.mxu0 %vm312_vm0, %v195_v32  ;;  %v197_v27 = vld [vmem:[%s15089_s0 + $0x480] sm:$0xff] }
 0x476   :  { %15366 = vst [vmem:[#allocation106_spill] sm:$0xff] %v11132_v10  ;;  %3303 = vmatmul.f32.gmra.mxu3 %v11132_v10 }
 0x477   :  { %8512 = vtanh.f32 %v3066_v14  ;;  %v3143_v14 = vpop.f32.mrf.mxu2 }
 0x47a   :  { %v1479_v24 = vpop.f32.mrf.mxu0 }
 0x47b   :  { %v1480_v42 = vadd.f32 %v10931_v5, %v1479_v24 }
 0x47d   :  { %v11140_v30 = vpop.eup %8512  ;;  %v3067_v33 = vadd.f32 %v3049_v20, %v1480_v42  ;;  %8097 = vmatmul.msk.f32.gmra.mxu0 %vm312_vm0, %v196_v44  ;;  %v198_v44 = vld [vmem:[%s15089_s0 + $0x488] sm:$0xff] }
 0x47e   :  { %15367 = vst [vmem:[#allocation107_spill] sm:$0xff] %v11140_v30  ;;  %3306 = vmatmul.f32.gmra.mxu3 %v11140_v30 }
 0x47f   :  { %8514 = vtanh.f32 %v3067_v33 }
 0x482   :  { %v1482_v29 = vpop.f32.mrf.mxu0 }
 0x483   :  { %v1483_v32 = vadd.f32 %v10931_v5, %v1482_v29  ;;  %v3146_v29 = vpop.f32.mrf.mxu2 }
 0x485   :  { %v11148_v10 = vpop.eup %8514  ;;  %v3182_v24 = vadd.f32 %v3134_v15, %v1483_v32  ;;  %8098 = vmatmul.msk.f32.gmra.mxu0 %vm312_vm0, %v197_v27  ;;  %v199_v27 = vld [vmem:[%s15089_s0 + $0x490] sm:$0xff] }
 0x486   :  { %15368 = vst [vmem:[#allocation108_spill] sm:$0xff] %v11148_v10  ;;  %3309 = vmatmul.f32.gmra.mxu3 %v11148_v10 }
 0x487   :  { %8516 = vtanh.f32 %v3182_v24 }
 0x48a   :  { %v1485_v20 = vpop.f32.mrf.mxu0 }
 0x48b   :  { %v1486_v42 = vadd.f32 %v10931_v5, %v1485_v20 }
 0x48d   :  { %v11156_v33 = vpop.eup %8516  ;;  %v3183_v30 = vadd.f32 %v3137_v58, %v1486_v42  ;;  %8099 = vmatmul.msk.f32.gmra.mxu0 %vm312_vm0, %v198_v44  ;;  %v3149_v58 = vpop.f32.mrf.mxu2 }
 0x48e   :  { %15369 = vst [vmem:[#allocation109_spill] sm:$0xff] %v11156_v33  ;;  %3394 = vmatmul.f32.vlgmr.msrb.gmra.mxu1 %v11156_v33 }
 0x48f   :  { %8518 = vtanh.f32 %v3183_v30  ;;  %v200_v30 = vld [vmem:[%s15089_s0 + $0x498] sm:$0xff] }
 0x492   :  { %v1488_v15 = vpop.f32.mrf.mxu0 }
 0x493   :  { %v1489_v32 = vadd.f32 %v10931_v5, %v1488_v15 }
 0x495   :  { %v11164_v24 = vpop.eup %8518  ;;  %v3184_v10 = vadd.f32 %v3140_v36, %v1489_v32  ;;  %8100 = vmatmul.msk.f32.gmra.mxu0 %vm312_vm0, %v199_v27  ;;  %v3152_v36 = vpop.f32.mrf.mxu2 }
 0x496   :  { %15370 = vst [vmem:[#allocation110_spill] sm:$0xff] %v11164_v24  ;;  %3397 = vmatmul.f32.gmra.mxu1 %v11164_v24 }
 0x497   :  { %8520 = vtanh.f32 %v3184_v10  ;;  %v201_v10 = vld [vmem:[%s15089_s0 + $0x4a0] sm:$0xff] }
 0x49a   :  { %v1491_v20 = vpop.f32.mrf.mxu0 }
 0x49b   :  { %v1492_v44 = vadd.f32 %v10931_v5, %v1491_v20 }
 0x49d   :  { %v11172_v42 = vpop.eup %8520  ;;  %v3185_v33 = vadd.f32 %v3143_v14, %v1492_v44  ;;  %8101 = vmatmul.msk.f32.gmra.mxu0 %vm312_vm0, %v200_v30  ;;  %v3155_v30 = vpop.f32.mrf.mxu2 }
 0x49e   :  { %15371 = vst [vmem:[#allocation111_spill] sm:$0xff] %v11172_v42  ;;  %3400 = vmatmul.f32.gmra.mxu1 %v11172_v42 }
 0x49f   :  { %8522 = vtanh.f32 %v3185_v33  ;;  %v202_v33 = vld [vmem:[%s15089_s0 + $0x4a8] sm:$0xff] }
 0x4a2   :  { %v1494_v15 = vpop.f32.mrf.mxu0 }
 0x4a3   :  { %v1495_v27 = vadd.f32 %v10931_v5, %v1494_v15 }
 0x4a5   :  { %v11180_v32 = vpop.eup %8522  ;;  %v3186_v24 = vadd.f32 %v3146_v29, %v1495_v27  ;;  %8102 = vmatmul.msk.f32.gmra.mxu0 %vm312_vm0, %v201_v10 }
 0x4a6   :  { %15372 = vst [vmem:[#allocation112_spill] sm:$0xff] %v11180_v32  ;;  %3403 = vmatmul.f32.gmra.mxu1 %v11180_v32 }
 0x4a7   :  { %8524 = vtanh.f32 %v3186_v24  ;;  %v203_v24 = vld [vmem:[%s15089_s0 + $0x4b0] sm:$0xff] }
 0x4aa   :  { %v1497_v14 = vpop.f32.mrf.mxu0 }
 0x4ab   :  { %v1498_v20 = vadd.f32 %v10931_v5, %v1497_v14  ;;  %v3158_v14 = vpop.f32.mrf.mxu2 }
 0x4ad   :  { %v11188_v44 = vpop.eup %8524  ;;  %v3187_v42 = vadd.f32 %v3149_v58, %v1498_v20  ;;  %8103 = vmatmul.msk.f32.gmra.mxu0 %vm312_vm0, %v202_v33 }
 0x4ae   :  { %15373 = vst [vmem:[#allocation113_spill] sm:$0xff] %v11188_v44  ;;  %3406 = vmatmul.f32.gmra.mxu1 %v11188_v44 }
 0x4af   :  { %8526 = vtanh.f32 %v3187_v42  ;;  %v204_v42 = vld [vmem:[%s15089_s0 + $0x4b8] sm:$0xff] }
 0x4b2   :  { %v1500_v29 = vpop.f32.mrf.mxu0 }
 0x4b3   :  { %v1501_v15 = vadd.f32 %v10931_v5, %v1500_v29 }
 0x4b5   :  { %v11196_v10 = vpop.eup %8526  ;;  %v3188_v27 = vadd.f32 %v3152_v36, %v1501_v15  ;;  %8104 = vmatmul.msk.f32.gmra.mxu0 %vm312_vm0, %v203_v24  ;;  %v3161_v36 = vpop.f32.mrf.mxu2  ;;  %v205_v24 = vld [vmem:[%s15089_s0 + $0x4c0] sm:$0xff] }
 0x4b6   :  { %15374 = vst [vmem:[#allocation114_spill] sm:$0xff] %v11196_v10  ;;  %3409 = vmatmul.f32.gmra.mxu1 %v11196_v10 }
 0x4b7   :  { %8528 = vtanh.f32 %v3188_v27 }
 0x4ba   :  { %v1503_v58 = vpop.f32.mrf.mxu0 }
 0x4bb   :  { %v1504_v33 = vadd.f32 %v10931_v5, %v1503_v58 }
 0x4bd   :  { %v11204_v20 = vpop.eup %8528  ;;  %v3189_v44 = vadd.f32 %v3155_v30, %v1504_v33  ;;  %8105 = vmatmul.msk.f32.gmra.mxu0 %vm312_vm0, %v204_v42  ;;  %v3164_v30 = vpop.f32.mrf.mxu2 }
 0x4be   :  { %15375 = vst [vmem:[#allocation115_spill] sm:$0xff] %v11204_v20  ;;  %3412 = vmatmul.f32.gmra.mxu1 %v11204_v20 }
 0x4bf   :  { %8530 = vtanh.f32 %v3189_v44  ;;  %v206_v44 = vld [vmem:[%s15089_s0 + $0x4c8] sm:$0xff] }
 0x4c2   :  { %v1506_v29 = vpop.f32.mrf.mxu0 }
 0x4c3   :  { %v1507_v15 = vadd.f32 %v10931_v5, %v1506_v29 }
 0x4c5   :  { %v11212_v27 = vpop.eup %8530  ;;  %v3190_v10 = vadd.f32 %v3158_v14, %v1507_v15  ;;  %8106 = vmatmul.msk.f32.gmra.mxu0 %vm312_vm0, %v205_v24  ;;  %v3167_v24 = vpop.f32.mrf.mxu2 }
 0x4c6   :  { %15376 = vst [vmem:[#allocation116_spill] sm:$0xff] %v11212_v27  ;;  %3415 = vmatmul.f32.gmra.mxu1 %v11212_v27 }
 0x4c7   :  { %8532 = vtanh.f32 %v3190_v10  ;;  %v207_v10 = vld [vmem:[%s15089_s0 + $0x4d0] sm:$0xff] }
 0x4ca   :  { %v1509_v58 = vpop.f32.mrf.mxu0 }
 0x4cb   :  { %v1510_v42 = vadd.f32 %v10931_v5, %v1509_v58 }
 0x4cd   :  { %v11220_v33 = vpop.eup %8532  ;;  %v3191_v20 = vadd.f32 %v3161_v36, %v1510_v42  ;;  %8107 = vmatmul.msk.f32.gmra.mxu0 %vm312_vm0, %v206_v44 }
 0x4ce   :  { %15377 = vst [vmem:[#allocation117_spill] sm:$0xff] %v11220_v33  ;;  %3418 = vmatmul.f32.gmra.mxu1 %v11220_v33 }
 0x4cf   :  { %8534 = vtanh.f32 %v3191_v20  ;;  %v208_v20 = vld [vmem:[%s15089_s0 + $0x4d8] sm:$0xff] }
 0x4d2   :  { %v1512_v14 = vpop.f32.mrf.mxu0 }
 0x4d3   :  { %v1513_v29 = vadd.f32 %v10931_v5, %v1512_v14  ;;  %v3170_v14 = vpop.f32.mrf.mxu2 }
 0x4d5   :  { %v11228_v15 = vpop.eup %8534  ;;  %v3192_v27 = vadd.f32 %v3164_v30, %v1513_v29  ;;  %8108 = vmatmul.msk.f32.gmra.mxu0 %vm312_vm0, %v207_v10 }
 0x4d6   :  { %15378 = vst [vmem:[#allocation118_spill] sm:$0xff] %v11228_v15  ;;  %3421 = vmatmul.f32.gmra.mxu1 %v11228_v15 }
 0x4d7   :  { %8536 = vtanh.f32 %v3192_v27  ;;  %v209_v27 = vld [vmem:[%s15089_s0 + $0x4e0] sm:$0xff] }
 0x4da   :  { %v1515_v36 = vpop.f32.mrf.mxu0 }
 0x4db   :  { %v1516_v58 = vadd.f32 %v10931_v5, %v1515_v36  ;;  %v3265_v36 = vpop.f32.mrf.mxu3 }
 0x4dd   :  { %v11236_v44 = vpop.eup %8536  ;;  %v3193_v42 = vadd.f32 %v3167_v24, %v1516_v58  ;;  %8109 = vmatmul.msk.f32.gmra.mxu0 %vm312_vm0, %v208_v20  ;;  %v3173_v24 = vpop.f32.mrf.mxu2  ;;  %v210_v58 = vld [vmem:[%s15089_s0 + $0x4e8] sm:$0xff] }
 0x4de   :  { %15379 = vst [vmem:[#allocation119_spill] sm:$0xff] %v11236_v44  ;;  %3424 = vmatmul.f32.gmra.mxu1 %v11236_v44 }
 0x4df   :  { %8538 = vtanh.f32 %v3193_v42 }
 0x4e2   :  { %v1518_v30 = vpop.f32.mrf.mxu0 }
 0x4e3   :  { %v1519_v10 = vadd.f32 %v10931_v5, %v1518_v30 }
 0x4e5   :  { %v11244_v29 = vpop.eup %8538  ;;  %v3194_v15 = vadd.f32 %v3170_v14, %v1519_v10  ;;  %8110 = vmatmul.msk.f32.gmra.mxu0 %vm312_vm0, %v209_v27  ;;  %v3268_v14 = vpop.f32.mrf.mxu3 }
 0x4e6   :  { %15380 = vst [vmem:[#allocation120_spill] sm:$0xff] %v11244_v29  ;;  %3427 = vmatmul.f32.gmra.mxu1 %v11244_v29  ;;  %v3176_v27 = vpop.f32.mrf.mxu2 }
 0x4e7   :  { %8540 = vtanh.f32 %v3194_v15  ;;  %v211_v15 = vld [vmem:[%s15089_s0 + $0x4f0] sm:$0xff] }
 0x4ea   :  { %v1521_v20 = vpop.f32.mrf.mxu0 }
 0x4eb   :  { %v1522_v42 = vadd.f32 %v10931_v5, %v1521_v20 }
 0x4ed   :  { %v11252_v44 = vpop.eup %8540  ;;  %v3195_v30 = vadd.f32 %v3173_v24, %v1522_v42  ;;  %8111 = vmatmul.msk.f32.gmra.mxu0 %vm312_vm0, %v210_v58  ;;  %v3271_v24 = vpop.f32.mrf.mxu3  ;;  %v212_v42 = vld [vmem:[%s15089_s0 + $0x4f8] sm:$0xff] }
 0x4ee   :  { %15381 = vst [vmem:[#allocation121_spill] sm:$0xff] %v11252_v44  ;;  %3430 = vmatmul.f32.gmra.mxu1 %v11252_v44  ;;  %v3179_v44 = vpop.f32.mrf.mxu2 }
 0x4ef   :  { %8542 = vtanh.f32 %v3195_v30 }
 0x4f2   :  { %v1524_v10 = vpop.f32.mrf.mxu0 }
 0x4f3   :  { %v1525_v29 = vadd.f32 %v10931_v5, %v1524_v10 }
 0x4f5   :  { %v11260_v33 = vpop.eup %8542  ;;  %v3196_v20 = vadd.f32 %v3176_v27, %v1525_v29  ;;  %8112 = vmatmul.msk.f32.gmra.mxu0 %vm312_vm0, %v211_v15  ;;  %v213_v27 = vld [vmem:[%s15089_s0 + $0x500] sm:$0xff] }
 0x4f6   :  { %15382 = vst [vmem:[#allocation122_spill] sm:$0xff] %v11260_v33  ;;  %3433 = vmatmul.f32.gmra.mxu1 %v11260_v33 }
 0x4f7   :  { %8544 = vtanh.f32 %v3196_v20  ;;  %v3274_v20 = vpop.f32.mrf.mxu3 }
 0x4fa   :  { %v1527_v58 = vpop.f32.mrf.mxu0 }
 0x4fb   :  { %v1528_v30 = vadd.f32 %v10931_v5, %v1527_v58 }
 0x4fd   :  { %v11268_v32 = vpop.eup %8544  ;;  %v3197_v10 = vadd.f32 %v3179_v44, %v1528_v30  ;;  %8113 = vmatmul.msk.f32.gmra.mxu0 %vm312_vm0, %v212_v42  ;;  %v214_v42 = vld [vmem:[%s15089_s0 + $0x508] sm:$0xff] }
 0x4fe   :  { %15383 = vst [vmem:[#allocation123_spill] sm:$0xff] %v11268_v32  ;;  %3436 = vmatmul.f32.gmra.mxu1 %v11268_v32 }
 0x4ff   :  { %8546 = vtanh.f32 %v3197_v10 }
 0x502   :  { %v1530_v29 = vpop.f32.mrf.mxu0 }
 0x503   :  { %v1531_v15 = vadd.f32 %v10931_v5, %v1530_v29  ;;  %v3277_v29 = vpop.f32.mrf.mxu3 }
 0x505   :  { %v11276_v33 = vpop.eup %8546  ;;  %v3313_v58 = vadd.f32 %v3265_v36, %v1531_v15  ;;  %8114 = vmatmul.msk.f32.gmra.mxu0 %vm312_vm0, %v213_v27  ;;  %v215_v27 = vld [vmem:[%s15089_s0 + $0x510] sm:$0xff] }
 0x506   :  { %15384 = vst [vmem:[#allocation124_spill] sm:$0xff] %v11276_v33  ;;  %3439 = vmatmul.f32.gmra.mxu1 %v11276_v33 }
 0x507   :  { %8548 = vtanh.f32 %v3313_v58 }
 0x50a   :  { %v1533_v44 = vpop.f32.mrf.mxu0 }
 0x50b   :  { %v1534_v30 = vadd.f32 %v10931_v5, %v1533_v44 }
 0x50d   :  { %v11284_v10 = vpop.eup %8548  ;;  %v3314_v32 = vadd.f32 %v3268_v14, %v1534_v30  ;;  %8115 = vmatmul.msk.f32.gmra.mxu0 %vm312_vm0, %v214_v42  ;;  %v3280_v14 = vpop.f32.mrf.mxu3 }
 0x50e   :  { %15385 = vst [vmem:[#allocation125_spill] sm:$0xff] %v11284_v10  ;;  %3525 = vmatmul.f32.vlgmr.msra.gmra.mxu2 %v11284_v10 }
 0x50f   :  { %8550 = vtanh.f32 %v3314_v32  ;;  %v216_v32 = vld [vmem:[%s15089_s0 + $0x518] sm:$0xff] }
 0x512   :  { %v1536_v36 = vpop.f32.mrf.mxu0 }
 0x513   :  { %v1537_v15 = vadd.f32 %v10931_v5, %v1536_v36 }
 0x515   :  { %v11292_v58 = vpop.eup %8550  ;;  %v3315_v33 = vadd.f32 %v3271_v24, %v1537_v15  ;;  %8116 = vmatmul.msk.f32.gmra.mxu0 %vm312_vm0, %v215_v27  ;;  %v3283_v24 = vpop.f32.mrf.mxu3 }
 0x516   :  { %15386 = vst [vmem:[#allocation126_spill] sm:$0xff] %v11292_v58  ;;  %3528 = vmatmul.f32.gmra.mxu2 %v11292_v58 }
 0x517   :  { %8552 = vtanh.f32 %v3315_v33  ;;  %v217_v33 = vld [vmem:[%s15089_s0 + $0x520] sm:$0xff] }
 0x51a   :  { %v1539_v44 = vpop.f32.mrf.mxu0 }
 0x51b   :  { %v1540_v42 = vadd.f32 %v10931_v5, %v1539_v44 }
 0x51d   :  { %v11300_v30 = vpop.eup %8552  ;;  %v3316_v10 = vadd.f32 %v3274_v20, %v1540_v42  ;;  %8117 = vmatmul.msk.f32.gmra.mxu0 %vm312_vm0, %v216_v32  ;;  %v3286_v32 = vpop.f32.mrf.mxu3 }
 0x51e   :  { %15387 = vst [vmem:[#allocation127_spill] sm:$0xff] %v11300_v30  ;;  %3531 = vmatmul.f32.gmra.mxu2 %v11300_v30 }
 0x51f   :  { %8554 = vtanh.f32 %v3316_v10  ;;  %v218_v10 = vld [vmem:[%s15089_s0 + $0x528] sm:$0xff] }
 0x522   :  { %v1542_v36 = vpop.f32.mrf.mxu0 }
 0x523   :  { %v1543_v27 = vadd.f32 %v10931_v5, %v1542_v36 }
 0x525   :  { %v11308_v15 = vpop.eup %8554  ;;  %v3317_v58 = vadd.f32 %v3277_v29, %v1543_v27  ;;  %8118 = vmatmul.msk.f32.gmra.mxu0 %vm312_vm0, %v217_v33 }
 0x526   :  { %15388 = vst [vmem:[#allocation128_spill] sm:$0xff] %v11308_v15  ;;  %3534 = vmatmul.f32.gmra.mxu2 %v11308_v15 }
 0x527   :  { %8556 = vtanh.f32 %v3317_v58  ;;  %v219_v58 = vld [vmem:[%s15089_s0 + $0x530] sm:$0xff] }
 0x52a   :  { %v1545_v20 = vpop.f32.mrf.mxu0 }
 0x52b   :  { %v1546_v44 = vadd.f32 %v10931_v5, %v1545_v20  ;;  %v3289_v20 = vpop.f32.mrf.mxu3 }
 0x52d   :  { %v11316_v42 = vpop.eup %8556  ;;  %v3318_v30 = vadd.f32 %v3280_v14, %v1546_v44  ;;  %8119 = vmatmul.msk.f32.gmra.mxu0 %vm312_vm0, %v218_v10 }
 0x52e   :  { %15389 = vst [vmem:[#allocation129_spill] sm:$0xff] %v11316_v42  ;;  %3537 = vmatmul.f32.gmra.mxu2 %v11316_v42 }
 0x52f   :  { %8558 = vtanh.f32 %v3318_v30  ;;  %v220_v30 = vld [vmem:[%s15089_s0 + $0x538] sm:$0xff] }
 0x532   :  { %v1548_v29 = vpop.f32.mrf.mxu0 }
 0x533   :  { %v1549_v36 = vadd.f32 %v10931_v5, %v1548_v29 }
 0x535   :  { %v11324_v33 = vpop.eup %8558  ;;  %v3319_v27 = vadd.f32 %v3283_v24, %v1549_v36  ;;  %8120 = vmatmul.msk.f32.gmra.mxu0 %vm312_vm0, %v219_v58  ;;  %v3292_v24 = vpop.f32.mrf.mxu3  ;;  %v221_v58 = vld [vmem:[%s15089_s0 + $0x540] sm:$0xff] }
 0x536   :  { %15390 = vst [vmem:[#allocation130_spill] sm:$0xff] %v11324_v33  ;;  %3540 = vmatmul.f32.gmra.mxu2 %v11324_v33 }
 0x537   :  { %8560 = vtanh.f32 %v3319_v27 }
 0x53a   :  { %v1551_v14 = vpop.f32.mrf.mxu0 }
 0x53b   :  { %v1552_v10 = vadd.f32 %v10931_v5, %v1551_v14 }
 0x53d   :  { %v11332_v44 = vpop.eup %8560  ;;  %v3320_v42 = vadd.f32 %v3286_v32, %v1552_v10  ;;  %8121 = vmatmul.msk.f32.gmra.mxu0 %vm312_vm0, %v220_v30  ;;  %v3295_v32 = vpop.f32.mrf.mxu3 }
 0x53e   :  { %15391 = vst [vmem:[#allocation131_spill] sm:$0xff] %v11332_v44  ;;  %3543 = vmatmul.f32.gmra.mxu2 %v11332_v44 }
 0x53f   :  { %8562 = vtanh.f32 %v3320_v42  ;;  %v222_v42 = vld [vmem:[%s15089_s0 + $0x548] sm:$0xff] }
 0x542   :  { %v1554_v29 = vpop.f32.mrf.mxu0 }
 0x543   :  { %v1555_v36 = vadd.f32 %v10931_v5, %v1554_v29 }
 0x545   :  { %v11340_v27 = vpop.eup %8562  ;;  %v3321_v33 = vadd.f32 %v3289_v20, %v1555_v36  ;;  %8122 = vmatmul.msk.f32.gmra.mxu0 %vm312_vm0, %v221_v58  ;;  %v3298_v58 = vpop.f32.mrf.mxu3 }
 0x546   :  { %15392 = vst [vmem:[#allocation132_spill] sm:$0xff] %v11340_v27  ;;  %3546 = vmatmul.f32.gmra.mxu2 %v11340_v27 }
 0x547   :  { %8564 = vtanh.f32 %v3321_v33  ;;  %v223_v33 = vld [vmem:[%s15089_s0 + $0x550] sm:$0xff] }
 0x54a   :  { %v1557_v14 = vpop.f32.mrf.mxu0 }
 0x54b   :  { %v1558_v30 = vadd.f32 %v10931_v5, %v1557_v14 }
 0x54d   :  { %v11348_v10 = vpop.eup %8564  ;;  %v3322_v44 = vadd.f32 %v3292_v24, %v1558_v30  ;;  %8123 = vmatmul.msk.f32.gmra.mxu0 %vm312_vm0, %v222_v42 }
 0x54e   :  { %15393 = vst [vmem:[#allocation133_spill] sm:$0xff] %v11348_v10  ;;  %3549 = vmatmul.f32.gmra.mxu2 %v11348_v10 }
 0x54f   :  { %8566 = vtanh.f32 %v3322_v44  ;;  %v224_v44 = vld [vmem:[%s15089_s0 + $0x558] sm:$0xff] }
 0x552   :  { %v1560_v20 = vpop.f32.mrf.mxu0 }
 0x553   :  { %v1561_v29 = vadd.f32 %v10931_v5, %v1560_v20  ;;  %v3301_v20 = vpop.f32.mrf.mxu3 }
 0x555   :  { %v11356_v36 = vpop.eup %8566  ;;  %v3323_v27 = vadd.f32 %v3295_v32, %v1561_v29  ;;  %8124 = vmatmul.msk.f32.gmra.mxu0 %vm312_vm0, %v223_v33 }
 0x556   :  { %15394 = vst [vmem:[#allocation134_spill] sm:$0xff] %v11356_v36  ;;  %3552 = vmatmul.f32.gmra.mxu2 %v11356_v36 }
 0x557   :  { %8568 = vtanh.f32 %v3323_v27  ;;  %v225_v27 = vld [vmem:[%s15089_s0 + $0x560] sm:$0xff] }
 0x55a   :  { %v1563_v24 = vpop.f32.mrf.mxu0 }
 0x55b   :  { %v1564_v14 = vadd.f32 %v10931_v5, %v1563_v24  ;;  %v3395_v24 = vpop.f32.mrf.mxu1 }
 0x55d   :  { %v11364_v42 = vpop.eup %8568  ;;  %v3324_v30 = vadd.f32 %v3298_v58, %v1564_v14  ;;  %8125 = vmatmul.msk.f32.gmra.mxu0 %vm312_vm0, %v224_v44  ;;  %v3304_v58 = vpop.f32.mrf.mxu3  ;;  %v226_v14 = vld [vmem:[%s15089_s0 + $0x568] sm:$0xff] }
 0x55e   :  { %15395 = vst [vmem:[#allocation135_spill] sm:$0xff] %v11364_v42  ;;  %3555 = vmatmul.f32.gmra.mxu2 %v11364_v42 }
 0x55f   :  { %8570 = vtanh.f32 %v3324_v30 }
 0x562   :  { %v1566_v32 = vpop.f32.mrf.mxu0 }
 0x563   :  { %v1567_v33 = vadd.f32 %v10931_v5, %v1566_v32 }
 0x565   :  { %v11372_v29 = vpop.eup %8570  ;;  %v3325_v36 = vadd.f32 %v3301_v20, %v1567_v33  ;;  %8126 = vmatmul.msk.f32.gmra.mxu0 %vm312_vm0, %v225_v27  ;;  %v3398_v20 = vpop.f32.mrf.mxu1 }
 0x566   :  { %15396 = vst [vmem:[#allocation136_spill] sm:$0xff] %v11372_v29  ;;  %3558 = vmatmul.f32.gmra.mxu2 %v11372_v29  ;;  %v3307_v27 = vpop.f32.mrf.mxu3 }
 0x567   :  { %8572 = vtanh.f32 %v3325_v36  ;;  %v227_v36 = vld [vmem:[%s15089_s0 + $0x570] sm:$0xff] }
 0x56a   :  { %v1569_v44 = vpop.f32.mrf.mxu0 }
 0x56b   :  { %v1570_v30 = vadd.f32 %v10931_v5, %v1569_v44 }
 0x56d   :  { %v11380_v42 = vpop.eup %8572  ;;  %v3326_v32 = vadd.f32 %v3304_v58, %v1570_v30  ;;  %8127 = vmatmul.msk.f32.gmra.mxu0 %vm312_vm0, %v226_v14  ;;  %v3401_v58 = vpop.f32.mrf.mxu1  ;;  %v228_v30 = vld [vmem:[%s15089_s0 + $0x578] sm:$0xff] }
 0x56e   :  { %15397 = vst [vmem:[#allocation137_spill] sm:$0xff] %v11380_v42  ;;  %3561 = vmatmul.f32.gmra.mxu2 %v11380_v42  ;;  %v3310_v42 = vpop.f32.mrf.mxu3 }
 0x56f   :  { %8574 = vtanh.f32 %v3326_v32 }
 0x572   :  { %v1572_v33 = vpop.f32.mrf.mxu0 }
 0x573   :  { %v1573_v29 = vadd.f32 %v10931_v5, %v1572_v33 }
 0x575   :  { %v11388_v10 = vpop.eup %8574  ;;  %v3327_v44 = vadd.f32 %v3307_v27, %v1573_v29  ;;  %8128 = vmatmul.msk.f32.gmra.mxu0 %vm312_vm0, %v227_v36  ;;  %v229_v27 = vld [vmem:[%s15089_s0 + $0x580] sm:$0xff] }
 0x576   :  { %15398 = vst [vmem:[#allocation138_spill] sm:$0xff] %v11388_v10  ;;  %3564 = vmatmul.f32.gmra.mxu2 %v11388_v10  ;;  %v11406_v36 = vld [vmem:[%s15092_s3] ss:$0 sm:$0xff] }
 0x577   :  { %8576 = vtanh.f32 %v3327_v44  ;;  %v3404_v44 = vpop.f32.mrf.mxu1 }
 0x57a   :  { %v1575_v14 = vpop.f32.mrf.mxu0 }
 0x57b   :  { %v1576_v32 = vadd.f32 %v10931_v5, %v1575_v14 }
 0x57d   :  { %v11396_v15 = vpop.eup %8576  ;;  %v3328_v33 = vadd.f32 %v3310_v42, %v1576_v32  ;;  %8129 = vmatmul.msk.f32.gmra.mxu0 %vm312_vm0, %v228_v30  ;;  %v230_v32 = vld [vmem:[%s15089_s0 + $0x588] sm:$0xff] }
 0x57e   :  { %15399 = vst [vmem:[#allocation139_spill] sm:$0xff] %v11396_v15  ;;  %3567 = vmatmul.f32.gmra.mxu2 %v11396_v15 }
 0x57f   :  { %8578 = vtanh.f32 %v3328_v33 }
 0x582   :  { %v1578_v29 = vpop.f32.mrf.mxu0 }
 0x583   :  { %v1579_v5 = vadd.f32 %v11406_v36, %v1578_v29  ;;  %v3407_v29 = vpop.f32.mrf.mxu1 }
 0x585   :  { %v11409_v14 = vpop.eup %8578  ;;  %v3443_v42 = vadd.f32 %v3395_v24, %v1579_v5  ;;  %8130 = vmatmul.msk.f32.gmra.mxu0 %vm312_vm0, %v229_v27  ;;  %v231_v27 = vld [vmem:[%s15089_s0 + $0x590] sm:$0xff] }
 0x586   :  { %15400 = vst [vmem:[#allocation140_spill] sm:$0xff] %v11409_v14  ;;  %3570 = vmatmul.f32.gmra.mxu2 %v11409_v14 }
 0x587   :  { %8580 = vtanh.f32 %v3443_v42 }
 0x58a   :  { %v1581_v30 = vpop.f32.mrf.mxu0 }
 0x58b   :  { %v1582_v33 = vadd.f32 %v11406_v36, %v1581_v30 }
 0x58d   :  { %v11417_v15 = vpop.eup %8580  ;;  %v3444_v10 = vadd.f32 %v3398_v20, %v1582_v33  ;;  %8131 = vmatmul.msk.f32.gmra.mxu0 %vm312_vm0, %v230_v32  ;;  %v3410_v20 = vpop.f32.mrf.mxu1 }
 0x58e   :  { %15401 = vst [vmem:[#allocation141_spill] sm:$0xff] %v11417_v15  ;;  %3655 = vmatmul.f32.vlgmr.msrb.gmra.mxu3 %v11417_v15 }
 0x58f   :  { %8582 = vtanh.f32 %v3444_v10  ;;  %v232_v10 = vld [vmem:[%s15089_s0 + $0x598] sm:$0xff] }
 0x592   :  { %v1584_v24 = vpop.f32.mrf.mxu0 }
 0x593   :  { %v1585_v5 = vadd.f32 %v11406_v36, %v1584_v24 }
 0x595   :  { %v11425_v42 = vpop.eup %8582  ;;  %v3445_v14 = vadd.f32 %v3401_v58, %v1585_v5  ;;  %8132 = vmatmul.msk.f32.gmra.mxu0 %vm312_vm0, %v231_v27  ;;  %v3413_v58 = vpop.f32.mrf.mxu1 }
 0x596   :  { %15402 = vst [vmem:[#allocation142_spill] sm:$0xff] %v11425_v42  ;;  %3658 = vmatmul.f32.gmra.mxu3 %v11425_v42 }
 0x597   :  { %8584 = vtanh.f32 %v3445_v14  ;;  %v233_v14 = vld [vmem:[%s15089_s0 + $0x5a0] sm:$0xff] }
 0x59a   :  { %v1587_v30 = vpop.f32.mrf.mxu0 }
 0x59b   :  { %v1588_v32 = vadd.f32 %v11406_v36, %v1587_v30 }
 0x59d   :  { %v11433_v33 = vpop.eup %8584  ;;  %v3446_v15 = vadd.f32 %v3404_v44, %v1588_v32  ;;  %8133 = vmatmul.msk.f32.gmra.mxu0 %vm312_vm0, %v232_v10  ;;  %v3416_v10 = vpop.f32.mrf.mxu1 }
 0x59e   :  { %15403 = vst [vmem:[#allocation143_spill] sm:$0xff] %v11433_v33  ;;  %3661 = vmatmul.f32.gmra.mxu3 %v11433_v33 }
 0x59f   :  { %8586 = vtanh.f32 %v3446_v15  ;;  %v234_v15 = vld [vmem:[%s15089_s0 + $0x5a8] sm:$0xff] }
 0x5a2   :  { %v1590_v24 = vpop.f32.mrf.mxu0 }
 0x5a3   :  { %v1591_v27 = vadd.f32 %v11406_v36, %v1590_v24 }
 0x5a5   :  { %v11441_v5 = vpop.eup %8586  ;;  %v3447_v42 = vadd.f32 %v3407_v29, %v1591_v27  ;;  %8134 = vmatmul.msk.f32.gmra.mxu0 %vm312_vm0, %v233_v14 }
 0x5a6   :  { %15404 = vst [vmem:[#allocation144_spill] sm:$0xff] %v11441_v5  ;;  %3664 = vmatmul.f32.gmra.mxu3 %v11441_v5 }
 0x5a7   :  { %8588 = vtanh.f32 %v3447_v42  ;;  %v235_v42 = vld [vmem:[%s15089_s0 + $0x5b0] sm:$0xff] }
 0x5aa   :  { %v1593_v44 = vpop.f32.mrf.mxu0 }
 0x5ab   :  { %v1594_v30 = vadd.f32 %v11406_v36, %v1593_v44  ;;  %v3419_v44 = vpop.f32.mrf.mxu1 }
 0x5ad   :  { %v11449_v32 = vpop.eup %8588  ;;  %v3448_v33 = vadd.f32 %v3410_v20, %v1594_v30  ;;  %8135 = vmatmul.msk.f32.gmra.mxu0 %vm312_vm0, %v234_v15 }
 0x5ae   :  { %15405 = vst [vmem:[#allocation145_spill] sm:$0xff] %v11449_v32  ;;  %3667 = vmatmul.f32.gmra.mxu3 %v11449_v32 }
 0x5af   :  { %8590 = vtanh.f32 %v3448_v33  ;;  %v236_v33 = vld [vmem:[%s15089_s0 + $0x5b8] sm:$0xff] }
 0x5b2   :  { %v1596_v29 = vpop.f32.mrf.mxu0 }
 0x5b3   :  { %v1597_v24 = vadd.f32 %v11406_v36, %v1596_v29 }
 0x5b5   :  { %v11457_v14 = vpop.eup %8590  ;;  %v3449_v27 = vadd.f32 %v3413_v58, %v1597_v24  ;;  %8136 = vmatmul.msk.f32.gmra.mxu0 %vm312_vm0, %v235_v42  ;;  %v3422_v58 = vpop.f32.mrf.mxu1  ;;  %v237_v42 = vld [vmem:[%s15089_s0 + $0x5c0] sm:$0xff] }
 0x5b6   :  { %15406 = vst [vmem:[#allocation146_spill] sm:$0xff] %v11457_v14  ;;  %3670 = vmatmul.f32.gmra.mxu3 %v11457_v14 }
 0x5b7   :  { %8592 = vtanh.f32 %v3449_v27 }
 0x5ba   :  { %v1599_v20 = vpop.f32.mrf.mxu0 }
 0x5bb   :  { %v1600_v15 = vadd.f32 %v11406_v36, %v1599_v20 }
 0x5bd   :  { %v11465_v30 = vpop.eup %8592  ;;  %v3450_v32 = vadd.f32 %v3416_v10, %v1600_v15  ;;  %8137 = vmatmul.msk.f32.gmra.mxu0 %vm312_vm0, %v236_v33  ;;  %v3425_v10 = vpop.f32.mrf.mxu1 }
 0x5be   :  { %15407 = vst [vmem:[#allocation147_spill] sm:$0xff] %v11465_v30  ;;  %3673 = vmatmul.f32.gmra.mxu3 %v11465_v30 }
 0x5bf   :  { %8594 = vtanh.f32 %v3450_v32  ;;  %v238_v32 = vld [vmem:[%s15089_s0 + $0x5c8] sm:$0xff] }
 0x5c2   :  { %v1602_v29 = vpop.f32.mrf.mxu0 }
 0x5c3   :  { %v1603_v24 = vadd.f32 %v11406_v36, %v1602_v29 }
 0x5c5   :  { %v11473_v27 = vpop.eup %8594  ;;  %v3451_v14 = vadd.f32 %v3419_v44, %v1603_v24  ;;  %8138 = vmatmul.msk.f32.gmra.mxu0 %vm312_vm0, %v237_v42  ;;  %v3428_v42 = vpop.f32.mrf.mxu1 }
 0x5c6   :  { %3676 = vmatmul.f32.gmra.mxu3 %v11473_v27 }
 0x5c7   :  { %8596 = vtanh.f32 %v3451_v14  ;;  %v239_v14 = vld [vmem:[%s15089_s0 + $0x5d0] sm:$0xff] }
 0x5ca   :  { %v1605_v20 = vpop.f32.mrf.mxu0 }
 0x5cb   :  { %v1606_v33 = vadd.f32 %v11406_v36, %v1605_v20 }
 0x5cd   :  { %v11481_v15 = vpop.eup %8596  ;;  %v3452_v30 = vadd.f32 %v3422_v58, %v1606_v33  ;;  %8139 = vmatmul.msk.f32.gmra.mxu0 %vm312_vm0, %v238_v32 }
 0x5ce   :  { %3679 = vmatmul.f32.gmra.mxu3 %v11481_v15 }
 0x5cf   :  { %8598 = vtanh.f32 %v3452_v30  ;;  %v240_v30 = vld [vmem:[%s15089_s0 + $0x5d8] sm:$0xff] }
 0x5d2   :  { %v1608_v44 = vpop.f32.mrf.mxu0 }
 0x5d3   :  { %v1609_v29 = vadd.f32 %v11406_v36, %v1608_v44  ;;  %v3431_v44 = vpop.f32.mrf.mxu1 }
 0x5d5   :  { %v11489_v24 = vpop.eup %8598  ;;  %v3453_v5 = vadd.f32 %v3425_v10, %v1609_v29  ;;  %8140 = vmatmul.msk.f32.gmra.mxu0 %vm312_vm0, %v239_v14 }
 0x5d6   :  { %3682 = vmatmul.f32.gmra.mxu3 %v11489_v24 }
 0x5d7   :  { %8600 = vtanh.f32 %v3453_v5  ;;  %v241_v5 = vld [vmem:[%s15089_s0 + $0x5e0] sm:$0xff] }
 0x5da   :  { %v1611_v58 = vpop.f32.mrf.mxu0 }
 0x5db   :  { %v1612_v20 = vadd.f32 %v11406_v36, %v1611_v58  ;;  %v3526_v58 = vpop.f32.mrf.mxu2 }
 0x5dd   :  { %v11497_v32 = vpop.eup %8600  ;;  %v3454_v33 = vadd.f32 %v3428_v42, %v1612_v20  ;;  %8141 = vmatmul.msk.f32.gmra.mxu0 %vm312_vm0, %v240_v30  ;;  %v3434_v42 = vpop.f32.mrf.mxu1  ;;  %v242_v20 = vld [vmem:[%s15089_s0 + $0x5e8] sm:$0xff] }
 0x5de   :  { %3685 = vmatmul.f32.gmra.mxu3 %v11497_v32 }
 0x5df   :  { %8602 = vtanh.f32 %v3454_v33 }
 0x5e2   :  { %v1614_v10 = vpop.f32.mrf.mxu0 }
 0x5e3   :  { %v1615_v14 = vadd.f32 %v11406_v36, %v1614_v10 }
 0x5e5   :  { %v11505_v29 = vpop.eup %8602  ;;  %v3455_v8 = vadd.f32 %v3431_v44, %v1615_v14  ;;  %8142 = vmatmul.msk.f32.gmra.mxu0 %vm312_vm0, %v241_v5  ;;  %v3529_v44 = vpop.f32.mrf.mxu2 }
 0x5e6   :  { %3688 = vmatmul.f32.gmra.mxu3 %v11505_v29  ;;  %v3437_v5 = vpop.f32.mrf.mxu1 }
 0x5e7   :  { %8604 = vtanh.f32 %v3455_v8  ;;  %v4159_v8 = vld [vmem:[%s15093_s4 + $0x78] sm:$0xff] }
 0x5e8   :  { %4436 = vmatpush.msrb.mxu1 %v4159_v8  ;;  %8213 = vmatpush.msra.mxu2 %v4159_v8 }
 0x5e9   :  { %8214 = vmatpush.msrb.mxu3 %v4159_v8 }
 0x5ea   :  { %v1617_v30 = vpop.f32.mrf.mxu0 }
 0x5eb   :  { %v1618_v33 = vadd.f32 %v11406_v36, %v1617_v30  ;;  %v243_v30 = vld [vmem:[%s15089_s0 + $0x5f0] sm:$0xff] }
 0x5ed   :  { %v11513_v17 = vpop.eup %8604  ;;  %v3456_v10 = vadd.f32 %v3434_v42, %v1618_v33  ;;  %8143 = vmatmul.msk.f32.gmra.mxu0 %vm312_vm0, %v242_v20  ;;  %v3532_v8 = vpop.f32.mrf.mxu2 }
 0x5ee   :  { %3691 = vmatmul.f32.gmra.mxu3 %v11513_v17 }
 0x5ef   :  { %8606 = vtanh.f32 %v3456_v10  ;;  %v4158_v10 = vld [vmem:[%s15093_s4 + $0x70] sm:$0xff] }
 0x5f0   :  { %4437 = vmatpush.msrb.mxu1 %v4158_v10  ;;  %8215 = vmatpush.msra.mxu2 %v4158_v10 }
 0x5f1   :  { %8216 = vmatpush.msrb.mxu3 %v4158_v10 }
 0x5f2   :  { %v1620_v14 = vpop.f32.mrf.mxu0 }
 0x5f3   :  { %v1621_v42 = vadd.f32 %v11406_v36, %v1620_v14  ;;  %v244_v14 = vld [vmem:[%s15089_s0 + $0x5f8] sm:$0xff] }
 0x5f5   :  { %v11524_v20 = vpop.eup %8606  ;;  %v3457_v33 = vadd.f32 %v3437_v5, %v1621_v42  ;;  %8144 = vmatmul.msk.f32.gmra.mxu0 %vm312_vm0, %v243_v30  ;;  %v3440_v42 = vpop.f32.mrf.mxu1 }
 0x5f6   :  { %3694 = vmatmul.f32.gmra.mxu3 %v11524_v20 }
 0x5f7   :  { %8608 = vtanh.f32 %v3457_v33  ;;  %v4157_v33 = vld [vmem:[%s15093_s4 + $0x68] sm:$0xff] }
 0x5f8   :  { %4438 = vmatpush.msrb.mxu1 %v4157_v33  ;;  %8217 = vmatpush.msra.mxu2 %v4157_v33 }
 0x5f9   :  { %8218 = vmatpush.msrb.mxu3 %v4157_v33 }
 0x5fa   :  { %v1623_v16 = vpop.f32.mrf.mxu0 }
 0x5fb   :  { %v1624_v5 = vadd.f32 %v11406_v36, %v1623_v16  ;;  %v245_v16 = vld [vmem:[%s15089_s0 + $0x600] sm:$0xff] }
 0x5fd   :  { %v11535_v30 = vpop.eup %8608  ;;  %v3458_v23 = vadd.f32 %v3440_v42, %v1624_v5  ;;  %8145 = vmatmul.msk.f32.gmra.mxu0 %vm312_vm0, %v244_v14  ;;  %v3535_v5 = vpop.f32.mrf.mxu2 }
 0x5fe   :  { %3697 = vmatmul.f32.gmra.mxu3 %v11535_v30 }
 0x5ff   :  { %8610 = vtanh.f32 %v3458_v23  ;;  %v4156_v23 = vld [vmem:[%s15093_s4 + $0x60] sm:$0xff] }
 0x600   :  { %4439 = vmatpush.msrb.mxu1 %v4156_v23  ;;  %8219 = vmatpush.msra.mxu2 %v4156_v23 }
 0x601   :  { %8220 = vmatpush.msrb.mxu3 %v4156_v23 }
 0x602   :  { %v1626_v10 = vpop.f32.mrf.mxu0 }
 0x603   :  { %v1627_v51 = vadd.f32 %v11406_v36, %v1626_v10  ;;  %v246_v10 = vld [vmem:[%s15089_s0 + $0x608] sm:$0xff] }
 0x605   :  { %v11546_v42 = vpop.eup %8610  ;;  %v3574_v14 = vadd.f32 %v3526_v58, %v1627_v51  ;;  %8146 = vmatmul.msk.f32.gmra.mxu0 %vm312_vm0, %v245_v16  ;;  %v3538_v16 = vpop.f32.mrf.mxu2 }
 0x606   :  { %3700 = vmatmul.f32.gmra.mxu3 %v11546_v42 }
 0x607   :  { %8612 = vtanh.f32 %v3574_v14  ;;  %v4155_v14 = vld [vmem:[%s15093_s4 + $0x58] sm:$0xff] }
 0x608   :  { %4440 = vmatpush.msrb.mxu1 %v4155_v14  ;;  %8221 = vmatpush.msra.mxu2 %v4155_v14 }
 0x609   :  { %8222 = vmatpush.msrb.mxu3 %v4155_v14 }
 0x60a   :  { %v1629_v33 = vpop.f32.mrf.mxu0 }
 0x60b   :  { %v1630_v21 = vadd.f32 %v11406_v36, %v1629_v33  ;;  %v247_v33 = vld [vmem:[%s15089_s0 + $0x610] sm:$0xff] }
 0x60d   :  { %v11557_v51 = vpop.eup %8612  ;;  %v3575_v58 = vadd.f32 %v3529_v44, %v1630_v21  ;;  %8147 = vmatmul.msk.f32.gmra.mxu0 %vm312_vm0, %v246_v10  ;;  %v3541_v14 = vpop.f32.mrf.mxu2 }
 0x60e   :  { %3786 = vmatmul.f32.vlgmr.msra.gmra.mxu1 %v11557_v51 }
 0x60f   :  { %8614 = vtanh.f32 %v3575_v58  ;;  %v4154_v58 = vld [vmem:[%s15093_s4 + $0x50] sm:$0xff] }
 0x610   :  { %4441 = vmatpush.msrb.mxu1 %v4154_v58  ;;  %8223 = vmatpush.msra.mxu2 %v4154_v58 }
 0x611   :  { %8224 = vmatpush.msrb.mxu3 %v4154_v58 }
 0x612   :  { %v1632_v23 = vpop.f32.mrf.mxu0 }
 0x613   :  { %v1633_v21 = vadd.f32 %v11406_v36, %v1632_v23  ;;  %v248_v23 = vld [vmem:[%s15089_s0 + $0x618] sm:$0xff] }
 0x615   :  { %v11568_v44 = vpop.eup %8614  ;;  %v3576_v10 = vadd.f32 %v3532_v8, %v1633_v21  ;;  %8148 = vmatmul.msk.f32.gmra.mxu0 %vm312_vm0, %v247_v33  ;;  %v3544_v58 = vpop.f32.mrf.mxu2 }
 0x616   :  { %3789 = vmatmul.f32.gmra.mxu1 %v11568_v44 }
 0x617   :  { %8616 = vtanh.f32 %v3576_v10  ;;  %v4153_v10 = vld [vmem:[%s15093_s4 + $0x48] sm:$0xff] }
 0x618   :  { %4442 = vmatpush.msrb.mxu1 %v4153_v10  ;;  %8225 = vmatpush.msra.mxu2 %v4153_v10 }
 0x619   :  { %8226 = vmatpush.msrb.mxu3 %v4153_v10 }
 0x61a   :  { %v1635_v53 = vpop.f32.mrf.mxu0 }
 0x61b   :  { %v1636_v8 = vadd.f32 %v11406_v36, %v1635_v53  ;;  %v249_v53 = vld [vmem:[%s15089_s0 + $0x620] sm:$0xff] }
 0x61d   :  { %v11579_v21 = vpop.eup %8616  ;;  %v3577_v33 = vadd.f32 %v3535_v5, %v1636_v8  ;;  %8149 = vmatmul.msk.f32.gmra.mxu0 %vm312_vm0, %v248_v23 }
 0x61e   :  { %3792 = vmatmul.f32.gmra.mxu1 %v11579_v21 }
 0x61f   :  { %8618 = vtanh.f32 %v3577_v33  ;;  %v4152_v33 = vld [vmem:[%s15093_s4 + $0x40] sm:$0xff] }
 0x620   :  { %4443 = vmatpush.msrb.mxu1 %v4152_v33  ;;  %8227 = vmatpush.msra.mxu2 %v4152_v33 }
 0x621   :  { %8228 = vmatpush.msrb.mxu3 %v4152_v33 }
 0x622   :  { %v1638_v49 = vpop.f32.mrf.mxu0 }
 0x623   :  { %v1639_v5 = vadd.f32 %v11406_v36, %v1638_v49  ;;  %v250_v49 = vld [vmem:[%s15089_s0 + $0x628] sm:$0xff] }
 0x625   :  { %v11590_v8 = vpop.eup %8618  ;;  %v3578_v23 = vadd.f32 %v3538_v16, %v1639_v5  ;;  %8150 = vmatmul.msk.f32.gmra.mxu0 %vm312_vm0, %v249_v53  ;;  %v3547_v16 = vpop.f32.mrf.mxu2 }
 0x626   :  { %3795 = vmatmul.f32.gmra.mxu1 %v11590_v8 }
 0x627   :  { %8620 = vtanh.f32 %v3578_v23  ;;  %v4151_v23 = vld [vmem:[%s15093_s4 + $0x38] sm:$0xff] }
 0x628   :  { %4444 = vmatpush.msrb.mxu1 %v4151_v23  ;;  %8229 = vmatpush.msra.mxu2 %v4151_v23 }
 0x629   :  { %8230 = vmatpush.msrb.mxu3 %v4151_v23 }
 0x62a   :  { %v1641_v10 = vpop.f32.mrf.mxu0 }
 0x62b   :  { %v1642_v19 = vadd.f32 %v11406_v36, %v1641_v10  ;;  %v251_v10 = vld [vmem:[%s15089_s0 + $0x630] sm:$0xff] }
 0x62d   :  { %v11601_v5 = vpop.eup %8620  ;;  %v3579_v53 = vadd.f32 %v3541_v14, %v1642_v19  ;;  %8151 = vmatmul.msk.f32.gmra.mxu0 %vm312_vm0, %v250_v49  ;;  %v3550_v49 = vpop.f32.mrf.mxu2 }
 0x62e   :  { %3798 = vmatmul.f32.gmra.mxu1 %v11601_v5 }
 0x62f   :  { %8622 = vtanh.f32 %v3579_v53  ;;  %v4150_v53 = vld [vmem:[%s15093_s4 + $0x30] sm:$0xff] }
 0x630   :  { %4445 = vmatpush.msrb.mxu1 %v4150_v53  ;;  %8231 = vmatpush.msra.mxu2 %v4150_v53 }
 0x631   :  { %8232 = vmatpush.msrb.mxu3 %v4150_v53 }
 0x632   :  { %v1644_v33 = vpop.f32.mrf.mxu0 }
 0x633   :  { %v1645_v56 = vadd.f32 %v11406_v36, %v1644_v33  ;;  %v252_v33 = vld [vmem:[%s15089_s0 + $0x638] sm:$0xff] }
 0x635   :  { %v11612_v19 = vpop.eup %8622  ;;  %v3580_v14 = vadd.f32 %v3544_v58, %v1645_v56  ;;  %8152 = vmatmul.msk.f32.gmra.mxu0 %vm312_vm0, %v251_v10  ;;  %v3553_v53 = vpop.f32.mrf.mxu2 }
 0x636   :  { %3801 = vmatmul.f32.gmra.mxu1 %v11612_v19 }
 0x637   :  { %8624 = vtanh.f32 %v3580_v14  ;;  %v4149_v14 = vld [vmem:[%s15093_s4 + $0x28] sm:$0xff] }
 0x638   :  { %4446 = vmatpush.msrb.mxu1 %v4149_v14  ;;  %8233 = vmatpush.msra.mxu2 %v4149_v14 }
 0x639   :  { %8234 = vmatpush.msrb.mxu3 %v4149_v14 }
 0x63a   :  { %v1647_v23 = vpop.f32.mrf.mxu0 }
 0x63b   :  { %v1648_v56 = vadd.f32 %v11406_v36, %v1647_v23  ;;  %v253_v23 = vld [vmem:[%s15089_s0 + $0x640] sm:$0xff] }
 0x63d   :  { %v11623_v58 = vpop.eup %8624  ;;  %v3581_v10 = vadd.f32 %v3547_v16, %v1648_v56  ;;  %8153 = vmatmul.msk.f32.gmra.mxu0 %vm312_vm0, %v252_v33  ;;  %v3556_v14 = vpop.f32.mrf.mxu2 }
 0x63e   :  { %3804 = vmatmul.f32.gmra.mxu1 %v11623_v58 }
 0x63f   :  { %8626 = vtanh.f32 %v3581_v10  ;;  %v4148_v10 = vld [vmem:[%s15093_s4 + $0x20] sm:$0xff] }
 0x640   :  { %4447 = vmatpush.msrb.mxu1 %v4148_v10  ;;  %8235 = vmatpush.msra.mxu2 %v4148_v10 }
 0x641   :  { %8236 = vmatpush.msrb.mxu3 %v4148_v10 }
 0x642   :  { %v1650_v62 = vpop.f32.mrf.mxu0 }
 0x643   :  { %v1651_v16 = vadd.f32 %v11406_v36, %v1650_v62  ;;  %v254_v62 = vld [vmem:[%s15089_s0 + $0x648] sm:$0xff] }
 0x645   :  { %v11634_v56 = vpop.eup %8626  ;;  %v3582_v33 = vadd.f32 %v3550_v49, %v1651_v16  ;;  %8154 = vmatmul.msk.f32.gmra.mxu0 %vm312_vm0, %v253_v23 }
 0x646   :  { %15408 = vst [vmem:[#allocation148_spill] sm:$0xff] %v11634_v56  ;;  %3807 = vmatmul.f32.gmra.mxu1 %v11634_v56 }
 0x647   :  { %8628 = vtanh.f32 %v3582_v33  ;;  %v4147_v33 = vld [vmem:[%s15093_s4 + $0x18] sm:$0xff] }
 0x648   :  { %4448 = vmatpush.msrb.mxu1 %v4147_v33  ;;  %8237 = vmatpush.msra.mxu2 %v4147_v33 }
 0x649   :  { %8238 = vmatpush.msrb.mxu3 %v4147_v33 }
 0x64a   :  { %v1653_v45 = vpop.f32.mrf.mxu0 }
 0x64b   :  { %v1654_v49 = vadd.f32 %v11406_v36, %v1653_v45  ;;  %v255_v45 = vld [vmem:[%s15089_s0 + $0x650] sm:$0xff] }
 0x64d   :  { %v11645_v16 = vpop.eup %8628  ;;  %v3583_v23 = vadd.f32 %v3553_v53, %v1654_v49  ;;  %8155 = vmatmul.msk.f32.gmra.mxu0 %vm312_vm0, %v254_v62  ;;  %v3559_v53 = vpop.f32.mrf.mxu2 }
 0x64e   :  { %15409 = vst [vmem:[#allocation149_spill] sm:$0xff] %v11645_v16  ;;  %3810 = vmatmul.f32.gmra.mxu1 %v11645_v16 }
 0x64f   :  { %8630 = vtanh.f32 %v3583_v23  ;;  %v4146_v23 = vld [vmem:[%s15093_s4 + $0x10] sm:$0xff] }
 0x650   :  { %4449 = vmatpush.msrb.mxu1 %v4146_v23  ;;  %8239 = vmatpush.msra.mxu2 %v4146_v23 }
 0x651   :  { %8240 = vmatpush.msrb.mxu3 %v4146_v23 }
 0x652   :  { %v1656_v10 = vpop.f32.mrf.mxu0 }
 0x653   :  { %v1657_v13 = vadd.f32 %v11406_v36, %v1656_v10  ;;  %v256_v10 = vld [vmem:[%s15089_s0 + $0x658] sm:$0xff] }
 0x655   :  { %v11656_v49 = vpop.eup %8630  ;;  %v3584_v62 = vadd.f32 %v3556_v14, %v1657_v13  ;;  %8156 = vmatmul.msk.f32.gmra.mxu0 %vm312_vm0, %v255_v45  ;;  %v3562_v45 = vpop.f32.mrf.mxu2 }
 0x656   :  { %15410 = vst [vmem:[#allocation150_spill] sm:$0xff] %v11656_v49  ;;  %3813 = vmatmul.f32.gmra.mxu1 %v11656_v49 }
 0x657   :  { %8632 = vtanh.f32 %v3584_v62  ;;  %v4145_v62 = vld [vmem:[%s15093_s4 + $0x8] sm:$0xff] }
 0x658   :  { %4450 = vmatpush.msrb.mxu1 %v4145_v62  ;;  %8241 = vmatpush.msra.mxu2 %v4145_v62 }
 0x659   :  { %8242 = vmatpush.msrb.mxu3 %v4145_v62  ;;  %v4144_v62 = vld [vmem:[%s15093_s4] sm:$0xff] }
 0x65a   :  { %v1659_v33 = vpop.f32.mrf.mxu0  ;;  %4451 = vmatpush.msrb.mxu1 %v4144_v62  ;;  %8243 = vmatpush.msra.mxu2 %v4144_v62 }
 0x65b   :  { %v1660_v50 = vadd.f32 %v11406_v36, %v1659_v33  ;;  %v257_v33 = vld [vmem:[%s15089_s0 + $0x660] sm:$0xff]  ;;  %8244 = vmatpush.msrb.mxu3 %v4144_v62  ;;  %v259_v62 = vld [vmem:[%s15089_s0 + $0x670] sm:$0xff] }
 0x65d   :  { %v11667_v13 = vpop.eup %8632  ;;  %v3585_v14 = vadd.f32 %v3559_v53, %v1660_v50  ;;  %8157 = vmatmul.msk.f32.gmra.mxu0 %vm312_vm0, %v256_v10  ;;  %v3565_v12 = vpop.f32.mrf.mxu2 }
 0x65e   :  { %15411 = vst [vmem:[#allocation151_spill] sm:$0xff] %v11667_v13  ;;  %3816 = vmatmul.f32.gmra.mxu1 %v11667_v13 }
 0x65f   :  { %8634 = vtanh.f32 %v3585_v14  ;;  %v3656_v14 = vpop.f32.mrf.mxu3 }
 0x662   :  { %v1662_v23 = vpop.f32.mrf.mxu0 }
 0x663   :  { %v1663_v50 = vadd.f32 %v11406_v36, %v1662_v23  ;;  %v258_v23 = vld [vmem:[%s15089_s0 + $0x668] sm:$0xff] }
 0x665   :  { %v11678_v53 = vpop.eup %8634  ;;  %v3586_v10 = vadd.f32 %v3562_v45, %v1663_v50  ;;  %8158 = vmatmul.msk.f32.gmra.mxu0 %vm312_vm0, %v257_v33 }
 0x666   :  { %15412 = vst [vmem:[#allocation152_spill] sm:$0xff] %v11678_v53  ;;  %3819 = vmatmul.f32.gmra.mxu1 %v11678_v53  ;;  %v3568_v53 = vpop.f32.mrf.mxu2 }
 0x667   :  { %8636 = vtanh.f32 %v3586_v10  ;;  %v3659_v10 = vpop.f32.mrf.mxu3 }
 0x66a   :  { %v1665_v6 = vpop.f32.mrf.mxu0 }
 0x66b   :  { %v1666_v45 = vadd.f32 %v11406_v36, %v1665_v6 }
 0x66d   :  { %v11689_v33 = vpop.eup %8636  ;;  %v3587_v50 = vadd.f32 %v3565_v12, %v1666_v45  ;;  %8159 = vmatmul.msk.f32.gmra.mxu0 %vm312_vm0, %v258_v23  ;;  %v260_v45 = vld [vmem:[%s15089_s0 + $0x678] sm:$0xff] }
 0x66e   :  { %15413 = vst [vmem:[#allocation153_spill] sm:$0xff] %v11689_v33  ;;  %3822 = vmatmul.f32.gmra.mxu1 %v11689_v33  ;;  %v3571_v33 = vpop.f32.mrf.mxu2 }
 0x66f   :  { %8638 = vtanh.f32 %v3587_v50  ;;  %v3662_v12 = vpop.f32.mrf.mxu3 }
 0x672   :  { %v1668_v13 = vpop.f32.mrf.mxu0 }
 0x673   :  { %v1669_v49 = vadd.f32 %v11406_v36, %v1668_v13 }
 0x675   :  { %v11697_v16 = vpop.eup %8638  ;;  %v3588_v6 = vadd.f32 %v3568_v53, %v1669_v49  ;;  %8160 = vmatmul.msk.f32.gmra.mxu0 %vm312_vm0, %v259_v62  ;;  %v261_v53 = vld [vmem:[%s15089_s0 + $0x680] sm:$0xff] }
 0x676   :  { %15414 = vst [vmem:[#allocation154_spill] sm:$0xff] %v11697_v16  ;;  %3825 = vmatmul.f32.gmra.mxu1 %v11697_v16 }
 0x677   :  { %8640 = vtanh.f32 %v3588_v6  ;;  %v3665_v6 = vpop.f32.mrf.mxu3 }
 0x67a   :  { %v1671_v23 = vpop.f32.mrf.mxu0 }
 0x67b   :  { %v1672_v50 = vadd.f32 %v11406_v36, %v1671_v23 }
 0x67d   :  { %v11705_v56 = vpop.eup %8640  ;;  %v3589_v13 = vadd.f32 %v3571_v33, %v1672_v50  ;;  %8161 = vmatmul.msk.f32.gmra.mxu0 %vm312_vm0, %v260_v45  ;;  %v262_v45 = vld [vmem:[%s15089_s0 + $0x688] sm:$0xff] }
 0x67e   :  { %15415 = vst [vmem:[#allocation155_spill] sm:$0xff] %v11705_v56  ;;  %3828 = vmatmul.f32.gmra.mxu1 %v11705_v56 }
 0x67f   :  { %8642 = vtanh.f32 %v3589_v13 }
 0x682   :  { %v1674_v49 = vpop.f32.mrf.mxu0 }
 0x683   :  { %v1675_v62 = vadd.f32 %v11406_v36, %v1674_v49 }
 0x685   :  { %v11713_v16 = vpop.eup %8642  ;;  %v3704_v23 = vadd.f32 %v3656_v14, %v1675_v62  ;;  %8162 = vmatmul.msk.f32.gmra.mxu0 %vm312_vm0, %v261_v53  ;;  %v3668_v14 = vpop.f32.mrf.mxu3  ;;  %v263_v62 = vld [vmem:[%s15089_s0 + $0x690] sm:$0xff] }
 0x686   :  { %15416 = vst [vmem:[#allocation156_spill] sm:$0xff] %v11713_v16  ;;  %3831 = vmatmul.f32.gmra.mxu1 %v11713_v16 }
 0x687   :  { %8644 = vtanh.f32 %v3704_v23 }
 0x68a   :  { %v1677_v33 = vpop.f32.mrf.mxu0 }
 0x68b   :  { %v1678_v50 = vadd.f32 %v11406_v36, %v1677_v33  ;;  %v11721_v13 = vpop.f32.mrf.mxu1 }
 0x68d   :  { %v11723_v56 = vpop.eup %8644  ;;  %v3705_v49 = vadd.f32 %v3659_v10, %v1678_v50  ;;  %8163 = vmatmul.msk.f32.gmra.mxu0 %vm312_vm0, %v262_v45  ;;  %v264_v50 = vld [vmem:[%s15089_s0 + $0x698] sm:$0xff] }
 0x68e   :  { %15417 = vst [vmem:[#allocation157_spill] sm:$0xff] %v11723_v56  ;;  %3916 = vmatmul.f32.vlgmr.msrb.gmra.mxu2 %v11723_v56  ;;  %4452 = vmatmul.f32.vlgmr.msrb.gmra.mxu1 %v9797_v57  ;;  %v3671_v57 = vpop.f32.mrf.mxu3 }
 0x68f   :  { %8646 = vtanh.f32 %v3705_v49 }
 0x692   :  { %v1680_v53 = vpop.f32.mrf.mxu0 }
 0x693   :  { %v1681_v23 = vadd.f32 %v11406_v36, %v1680_v53  ;;  %v11732_v33 = vpop.f32.mrf.mxu1 }
 0x695   :  { %v11734_v16 = vpop.eup %8646  ;;  %v3706_v10 = vadd.f32 %v3662_v12, %v1681_v23  ;;  %8164 = vmatmul.msk.f32.gmra.mxu0 %vm312_vm0, %v263_v62  ;;  %v265_v23 = vld [vmem:[%s15089_s0 + $0x6a0] sm:$0xff] }
 0x696   :  { %15418 = vst [vmem:[#allocation158_spill] sm:$0xff] %v11734_v16  ;;  %3919 = vmatmul.f32.gmra.mxu2 %v11734_v16  ;;  %4455 = vmatmul.f32.gmra.mxu1 %v9811_v63  ;;  %v3674_v63 = vpop.f32.mrf.mxu3 }
 0x697   :  { %8648 = vtanh.f32 %v3706_v10 }
 0x69a   :  { %v1683_v45 = vpop.f32.mrf.mxu0 }
 0x69b   :  { %v1684_v49 = vadd.f32 %v11406_v36, %v1683_v45  ;;  %v11743_v53 = vpop.f32.mrf.mxu1 }
 0x69d   :  { %v11745_v56 = vpop.eup %8648  ;;  %v3707_v12 = vadd.f32 %v3665_v6, %v1684_v49  ;;  %8165 = vmatmul.msk.f32.gmra.mxu0 %vm312_vm0, %v264_v50  ;;  %v266_v50 = vld [vmem:[%s15089_s0 + $0x6a8] sm:$0xff] }
 0x69e   :  { %15419 = vst [vmem:[#allocation159_spill] sm:$0xff] %v11745_v56  ;;  %3922 = vmatmul.f32.gmra.mxu2 %v11745_v56  ;;  %4458 = vmatmul.f32.gmra.mxu1 %v9826_v18 }
 0x69f   :  { %8650 = vtanh.f32 %v3707_v12 }
 0x6a2   :  { %v1686_v62 = vpop.f32.mrf.mxu0 }
 0x6a3   :  { %v1687_v10 = vadd.f32 %v11406_v36, %v1686_v62  ;;  %v11754_v45 = vpop.f32.mrf.mxu1  ;;  %v3677_v62 = vpop.f32.mrf.mxu3 }
 0x6a5   :  { %v11756_v16 = vpop.eup %8650  ;;  %v3708_v6 = vadd.f32 %v3668_v14, %v1687_v10  ;;  %8166 = vmatmul.msk.f32.gmra.mxu0 %vm312_vm0, %v265_v23  ;;  %v267_v23 = vld [vmem:[%s15089_s0 + $0x6b0] sm:$0xff] }
 0x6a6   :  { %15420 = vst [vmem:[#allocation160_spill] sm:$0xff] %v11756_v16  ;;  %3925 = vmatmul.f32.gmra.mxu2 %v11756_v16  ;;  %4461 = vmatmul.f32.gmra.mxu1 %v9841_v28 }
 0x6a7   :  { %8652 = vtanh.f32 %v3708_v6 }
 0x6aa   :  { %v1689_v18 = vpop.f32.mrf.mxu0 }
 0x6ab   :  { %v1690_v49 = vadd.f32 %v11406_v36, %v1689_v18  ;;  %v11765_v12 = vpop.f32.mrf.mxu1 }
 0x6ad   :  { %v11767_v56 = vpop.eup %8652  ;;  %v3709_v14 = vadd.f32 %v3671_v57, %v1690_v49  ;;  %8167 = vmatmul.msk.f32.gmra.mxu0 %vm312_vm0, %v266_v50  ;;  %v3680_v57 = vpop.f32.mrf.mxu3  ;;  %v268_v50 = vld [vmem:[%s15089_s0 + $0x6b8] sm:$0xff] }
 0x6ae   :  { %15421 = vst [vmem:[#allocation161_spill] sm:$0xff] %v11767_v56  ;;  %3928 = vmatmul.f32.gmra.mxu2 %v11767_v56  ;;  %4464 = vmatmul.f32.gmra.mxu1 %v9856_v34 }
 0x6af   :  { %8654 = vtanh.f32 %v3709_v14 }
 0x6b2   :  { %v1692_v28 = vpop.f32.mrf.mxu0 }
 0x6b3   :  { %v1693_v10 = vadd.f32 %v11406_v36, %v1692_v28  ;;  %v11776_v6 = vpop.f32.mrf.mxu1 }
 0x6b5   :  { %v11778_v18 = vpop.eup %8654  ;;  %v3710_v16 = vadd.f32 %v3674_v63, %v1693_v10  ;;  %8168 = vmatmul.msk.f32.gmra.mxu0 %vm312_vm0, %v267_v23  ;;  %v269_v23 = vld [vmem:[%s15089_s0 + $0x6c0] sm:$0xff] }
 0x6b6   :  { %15422 = vst [vmem:[#allocation162_spill] sm:$0xff] %v11778_v18  ;;  %3931 = vmatmul.f32.gmra.mxu2 %v11778_v18  ;;  %4467 = vmatmul.f32.gmra.mxu1 %v9868_v40  ;;  %v3683_v40 = vpop.f32.mrf.mxu3 }
 0x6b7   :  { %8656 = vtanh.f32 %v3710_v16 }
 0x6ba   :  { %v1695_v34 = vpop.f32.mrf.mxu0 }
 0x6bb   :  { %v1696_v49 = vadd.f32 %v11406_v36, %v1695_v34  ;;  %v11787_v14 = vpop.f32.mrf.mxu1 }
 0x6bd   :  { %v11789_v28 = vpop.eup %8656  ;;  %v3711_v63 = vadd.f32 %v3677_v62, %v1696_v49  ;;  %8169 = vmatmul.msk.f32.gmra.mxu0 %vm312_vm0, %v268_v50  ;;  %v270_v49 = vld [vmem:[%s15089_s0 + $0x6c8] sm:$0xff] }
 0x6be   :  { %15423 = vst [vmem:[#allocation163_spill] sm:$0xff] %v11789_v28  ;;  %3934 = vmatmul.f32.gmra.mxu2 %v11789_v28  ;;  %4470 = vmatmul.f32.gmra.mxu1 %v9879_v46  ;;  %v3686_v46 = vpop.f32.mrf.mxu3 }
 0x6bf   :  { %8658 = vtanh.f32 %v3711_v63 }
 0x6c2   :  { %v1698_v16 = vpop.f32.mrf.mxu0 }
 0x6c3   :  { %v1699_v10 = vadd.f32 %v11406_v36, %v1698_v16  ;;  %v11798_v34 = vpop.f32.mrf.mxu1 }
 0x6c5   :  { %v11800_v18 = vpop.eup %8658  ;;  %v3712_v62 = vadd.f32 %v3680_v57, %v1699_v10  ;;  %8170 = vmatmul.msk.f32.gmra.mxu0 %vm312_vm0, %v269_v23  ;;  %v271_v23 = vld [vmem:[%s15089_s0 + $0x6d0] sm:$0xff] }
 0x6c6   :  { %15424 = vst [vmem:[#allocation164_spill] sm:$0xff] %v11800_v18  ;;  %3937 = vmatmul.f32.gmra.mxu2 %v11800_v18  ;;  %4473 = vmatmul.f32.gmra.mxu1 %v9890_v54 }
 0x6c7   :  { %8660 = vtanh.f32 %v3712_v62 }
 0x6ca   :  { %v1701_v50 = vpop.f32.mrf.mxu0 }
 0x6cb   :  { %v1702_v63 = vadd.f32 %v11406_v36, %v1701_v50  ;;  %v11809_v16 = vpop.f32.mrf.mxu1  ;;  %v3689_v50 = vpop.f32.mrf.mxu3 }
 0x6cd   :  { %v11811_v28 = vpop.eup %8660  ;;  %v3713_v57 = vadd.f32 %v3683_v40, %v1702_v63  ;;  %8171 = vmatmul.msk.f32.gmra.mxu0 %vm312_vm0, %v270_v49  ;;  %v272_v49 = vld [vmem:[%s15089_s0 + $0x6d8] sm:$0xff] }
 0x6ce   :  { %15425 = vst [vmem:[#allocation165_spill] sm:$0xff] %v11811_v28  ;;  %3940 = vmatmul.f32.gmra.mxu2 %v11811_v28  ;;  %4476 = vmatmul.f32.gmra.mxu1 %v9901_v0 }
 0x6cf   :  { %8662 = vtanh.f32 %v3713_v57 }
 0x6d2   :  { %v1704_v54 = vpop.f32.mrf.mxu0 }
 0x6d3   :  { %v1705_v10 = vadd.f32 %v11406_v36, %v1704_v54  ;;  %v11820_v62 = vpop.f32.mrf.mxu1 }
 0x6d5   :  { %v11822_v18 = vpop.eup %8662  ;;  %v3714_v40 = vadd.f32 %v3686_v46, %v1705_v10  ;;  %8172 = vmatmul.msk.f32.gmra.mxu0 %vm312_vm0, %v271_v23  ;;  %v3692_v46 = vpop.f32.mrf.mxu3  ;;  %v273_v23 = vld [vmem:[%s15089_s0 + $0x6e0] sm:$0xff] }
 0x6d6   :  { %3943 = vmatmul.f32.gmra.mxu2 %v11822_v18  ;;  %4479 = vmatmul.f32.gmra.mxu1 %v9912_v25 }
 0x6d7   :  { %8664 = vtanh.f32 %v3714_v40 }
 0x6da   :  { %v1707_v0 = vpop.f32.mrf.mxu0 }
 0x6db   :  { %v1708_v63 = vadd.f32 %v11406_v36, %v1707_v0  ;;  %v11831_v57 = vpop.f32.mrf.mxu1 }
 0x6dd   :  { %v11833_v54 = vpop.eup %8664  ;;  %v3715_v28 = vadd.f32 %v3689_v50, %v1708_v63  ;;  %8173 = vmatmul.msk.f32.gmra.mxu0 %vm312_vm0, %v272_v49  ;;  %v274_v49 = vld [vmem:[%s15089_s0 + $0x6e8] sm:$0xff] }
 0x6de   :  { %3946 = vmatmul.f32.gmra.mxu2 %v11833_v54  ;;  %4482 = vmatmul.f32.gmra.mxu1 %v9923_v35  ;;  %v3695_v35 = vpop.f32.mrf.mxu3 }
 0x6df   :  { %8666 = vtanh.f32 %v3715_v28 }
 0x6e2   :  { %v1710_v25 = vpop.f32.mrf.mxu0 }
 0x6e3   :  { %v1711_v10 = vadd.f32 %v11406_v36, %v1710_v25  ;;  %v11842_v40 = vpop.f32.mrf.mxu1 }
 0x6e5   :  { %v11844_v0 = vpop.eup %8666  ;;  %v3716_v50 = vadd.f32 %v3692_v46, %v1711_v10  ;;  %8174 = vmatmul.msk.f32.gmra.mxu0 %vm312_vm0, %v273_v23  ;;  %v275_v10 = vld [vmem:[%s15089_s0 + $0x6f0] sm:$0xff] }
 0x6e6   :  { %15426 = vst [vmem:[#allocation166_spill] sm:$0xff] %v11844_v0  ;;  %3949 = vmatmul.f32.gmra.mxu2 %v11844_v0  ;;  %4485 = vmatmul.f32.gmra.mxu1 %v9934_v43  ;;  %v3698_v43 = vpop.f32.mrf.mxu3 }
 0x6e7   :  { %8668 = vtanh.f32 %v3716_v50 }
 0x6ea   :  { %v1713_v28 = vpop.f32.mrf.mxu0 }
 0x6eb   :  { %v1714_v63 = vadd.f32 %v11406_v36, %v1713_v28  ;;  %v11853_v25 = vpop.f32.mrf.mxu1 }
 0x6ed   :  { %v11855_v56 = vpop.eup %8668  ;;  %v3717_v46 = vadd.f32 %v3695_v35, %v1714_v63  ;;  %8175 = vmatmul.msk.f32.gmra.mxu0 %vm312_vm0, %v274_v49  ;;  %v276_v49 = vld [vmem:[%s15089_s0 + $0x6f8] sm:$0xff] }
 0x6ee   :  { %3952 = vmatmul.f32.gmra.mxu2 %v11855_v56  ;;  %4488 = vmatmul.f32.gmra.mxu1 %v9947_v59 }
 0x6ef   :  { %8670 = vtanh.f32 %v3717_v46 }
 0x6f2   :  { %v1716_v23 = vpop.f32.mrf.mxu0 }
 0x6f3   :  { %v1717_v50 = vadd.f32 %v11406_v36, %v1716_v23  ;;  %v11864_v28 = vpop.f32.mrf.mxu1  ;;  %v11877_v36 = vld [vmem:[%s15092_s3] ss:$0 sm:$0xff] }
 0x6f5   :  { %v11866_v0 = vpop.eup %8670  ;;  %v3718_v35 = vadd.f32 %v3698_v43, %v1717_v50  ;;  %8176 = vmatmul.msk.f32.gmra.mxu0 %vm312_vm0, %v275_v10  ;;  %v3701_v43 = vpop.f32.mrf.mxu3  ;;  %v277_v50 = vld [vmem:[%s15089_s0 + $0x700] sm:$0xff] }
 0x6f6   :  { %15427 = vst [vmem:[#allocation167_spill] sm:$0xff] %v11866_v0  ;;  %3955 = vmatmul.f32.gmra.mxu2 %v11866_v0  ;;  %4491 = vmatmul.f32.gmra.mxu1 %v9964_v31 }
 0x6f7   :  { %8672 = vtanh.f32 %v3718_v35 }
 0x6fa   :  { %v1719_v59 = vpop.f32.mrf.mxu0 }
 0x6fb   :  { %v1720_v63 = vadd.f32 %v11877_v36, %v1719_v59  ;;  %v11880_v46 = vpop.f32.mrf.mxu1 }
 0x6fd   :  { %v11882_v23 = vpop.eup %8672  ;;  %v3719_v10 = vadd.f32 %v3701_v43, %v1720_v63  ;;  %8177 = vmatmul.msk.f32.gmra.mxu0 %vm312_vm0, %v276_v49  ;;  %v278_v49 = vld [vmem:[%s15089_s0 + $0x708] sm:$0xff] }
 0x6fe   :  { %3958 = vmatmul.f32.gmra.mxu2 %v11882_v23  ;;  %4494 = vmatmul.f32.gmra.mxu1 %v9984_v47 }
 0x6ff   :  { %8674 = vtanh.f32 %v3719_v10 }
 0x702   :  { %v1722_v31 = vpop.f32.mrf.mxu0 }
 0x703   :  { %v1723_v35 = vadd.f32 %v11877_v36, %v1722_v31  ;;  %v11891_v59 = vpop.f32.mrf.mxu1 }
 0x705   :  { %v11893_v0 = vpop.eup %8674  ;;  %v3835_v63 = vadd.f32 %v11721_v13, %v1723_v35  ;;  %8178 = vmatmul.msk.f32.gmra.mxu0 %vm312_vm0, %v277_v50  ;;  %v279_v35 = vld [vmem:[%s15089_s0 + $0x710] sm:$0xff] }
 0x706   :  { %3961 = vmatmul.f32.gmra.mxu2 %v11893_v0  ;;  %4497 = vmatmul.f32.gmra.mxu1 %v10001_v9 }
 0x707   :  { %8676 = vtanh.f32 %v3835_v63 }
 0x70a   :  { %v1725_v47 = vpop.f32.mrf.mxu0 }
 0x70b   :  { %v1726_v43 = vadd.f32 %v11877_v36, %v1725_v47  ;;  %v11903_v10 = vpop.f32.mrf.mxu1 }
 0x70c   :  { %15428 = vst [vmem:[#allocation168_spill] sm:$0xff] %v11903_v10  ;;  %v15486_v10 = vld [vmem:[#allocation159_spill] sm:$0xff] }
 0x70d   :  { %v11905_v31 = vpop.eup %8676  ;;  %v3836_v13 = vadd.f32 %v11732_v33, %v1726_v43  ;;  %8179 = vmatmul.msk.f32.gmra.mxu0 %vm312_vm0, %v278_v49  ;;  %v280_v43 = vld [vmem:[%s15089_s0 + $0x718] sm:$0xff] }
 0x70e   :  { %4047 = vmatmul.f32.vlgmr.msra.gmra.mxu3 %v11905_v31  ;;  %4500 = vmatmul.f32.gmra.mxu1 %v9955_v22 }
 0x70f   :  { %8678 = vtanh.f32 %v3836_v13  ;;  %4953 = vmatmul.f32.vlgmr.msra.gmra.mxu2 %v11473_v27 }
 0x711   :  { %v11912_v9 = vpop.f32.mrf.mxu2 }
 0x712   :  { %v1728_v50 = vpop.f32.mrf.mxu0 }
 0x713   :  { %v1729_v63 = vadd.f32 %v11877_v36, %v1728_v50  ;;  %v11918_v47 = vpop.f32.mrf.mxu1 }
 0x714   :  { %15429 = vst [vmem:[#allocation169_spill] sm:$0xff] %v11918_v47 }
 0x715   :  { %v11920_v33 = vpop.eup %8678  ;;  %v3837_v49 = vadd.f32 %v11743_v53, %v1729_v63  ;;  %8180 = vmatmul.msk.f32.gmra.mxu0 %vm312_vm0, %v279_v35  ;;  %v281_v63 = vld [vmem:[%s15089_s0 + $0x720] sm:$0xff] }
 0x716   :  { %4050 = vmatmul.f32.gmra.mxu3 %v11920_v33  ;;  %4503 = vmatmul.f32.gmra.mxu1 %v9974_v2 }
 0x717   :  { %8680 = vtanh.f32 %v3837_v49  ;;  %4956 = vmatmul.f32.gmra.mxu2 %v11481_v15 }
 0x719   :  { %v11927_v22 = vpop.f32.mrf.mxu2 }
 0x71a   :  { %v1731_v27 = vpop.f32.mrf.mxu0 }
 0x71b   :  { %v1732_v13 = vadd.f32 %v11877_v36, %v1731_v27  ;;  %v11933_v50 = vpop.f32.mrf.mxu1 }
 0x71c   :  { %15430 = vst [vmem:[#allocation170_spill] sm:$0xff] %v11933_v50  ;;  %v15476_v50 = vld [vmem:[#allocation157_spill] sm:$0xff] }
 0x71d   :  { %v11935_v53 = vpop.eup %8680  ;;  %v3838_v35 = vadd.f32 %v11754_v45, %v1732_v13  ;;  %8181 = vmatmul.msk.f32.gmra.mxu0 %vm312_vm0, %v280_v43  ;;  %v282_v13 = vld [vmem:[%s15089_s0 + $0x728] sm:$0xff] }
 0x71e   :  { %4053 = vmatmul.f32.gmra.mxu3 %v11935_v53  ;;  %4506 = vmatmul.f32.gmra.mxu1 %v9994_v7 }
 0x71f   :  { %8682 = vtanh.f32 %v3838_v35  ;;  %4959 = vmatmul.f32.gmra.mxu2 %v11489_v24 }
 0x721   :  { %v11942_v2 = vpop.f32.mrf.mxu2 }
 0x722   :  { %v1734_v15 = vpop.f32.mrf.mxu0 }
 0x723   :  { %v1735_v49 = vadd.f32 %v11877_v36, %v1734_v15  ;;  %v11948_v27 = vpop.f32.mrf.mxu1 }
 0x724   :  { %15431 = vst [vmem:[#allocation171_spill] sm:$0xff] %v11948_v27  ;;  %v15475_v27 = vld [vmem:[#allocation22_spill] sm:$0xff] }
 0x725   :  { %v11950_v45 = vpop.eup %8682  ;;  %v3839_v43 = vadd.f32 %v11765_v12, %v1735_v49  ;;  %8182 = vmatmul.msk.f32.gmra.mxu0 %vm312_vm0, %v281_v63  ;;  %v283_v49 = vld [vmem:[%s15089_s0 + $0x730] sm:$0xff] }
 0x726   :  { %4056 = vmatmul.f32.gmra.mxu3 %v11950_v45  ;;  %4509 = vmatmul.f32.gmra.mxu1 %v10010_v11 }
 0x727   :  { %8684 = vtanh.f32 %v3839_v43  ;;  %4962 = vmatmul.f32.gmra.mxu2 %v11497_v32 }
 0x729   :  { %v11957_v7 = vpop.f32.mrf.mxu2 }
 0x72a   :  { %v1737_v24 = vpop.f32.mrf.mxu0 }
 0x72b   :  { %v1738_v35 = vadd.f32 %v11877_v36, %v1737_v24  ;;  %v11963_v15 = vpop.f32.mrf.mxu1 }
 0x72c   :  { %15432 = vst [vmem:[#allocation172_spill] sm:$0xff] %v11963_v15 }
 0x72d   :  { %v11965_v12 = vpop.eup %8684  ;;  %v3840_v63 = vadd.f32 %v11776_v6, %v1738_v35  ;;  %8183 = vmatmul.msk.f32.gmra.mxu0 %vm312_vm0, %v282_v13  ;;  %v284_v35 = vld [vmem:[%s15089_s0 + $0x738] sm:$0xff] }
 0x72e   :  { %4059 = vmatmul.f32.gmra.mxu3 %v11965_v12  ;;  %4512 = vmatmul.f32.gmra.mxu1 %v10025_v1 }
 0x72f   :  { %8686 = vtanh.f32 %v3840_v63  ;;  %4965 = vmatmul.f32.gmra.mxu2 %v11505_v29 }
 0x731   :  { %v11972_v11 = vpop.f32.mrf.mxu2 }
 0x732   :  { %v1740_v32 = vpop.f32.mrf.mxu0 }
 0x733   :  { %v1741_v43 = vadd.f32 %v11877_v36, %v1740_v32  ;;  %v11978_v24 = vpop.f32.mrf.mxu1 }
 0x734   :  { %15433 = vst [vmem:[#allocation173_spill] sm:$0xff] %v11978_v24 }
 0x735   :  { %v11980_v6 = vpop.eup %8686  ;;  %v3841_v13 = vadd.f32 %v11787_v14, %v1741_v43  ;;  %8184 = vmatmul.msk.f32.gmra.mxu0 %vm312_vm0, %v283_v49  ;;  %v285_v43 = vld [vmem:[%s15089_s0 + $0x740] sm:$0xff] }
 0x736   :  { %4062 = vmatmul.f32.gmra.mxu3 %v11980_v6  ;;  %4515 = vmatmul.f32.gmra.mxu1 %v10037_v38 }
 0x737   :  { %8688 = vtanh.f32 %v3841_v13  ;;  %4968 = vmatmul.f32.gmra.mxu2 %v11513_v17 }
 0x739   :  { %v11987_v1 = vpop.f32.mrf.mxu2 }
 0x73a   :  { %v1743_v29 = vpop.f32.mrf.mxu0 }
 0x73b   :  { %v1744_v63 = vadd.f32 %v11877_v36, %v1743_v29  ;;  %v11993_v32 = vpop.f32.mrf.mxu1 }
 0x73c   :  { %15434 = vst [vmem:[#allocation174_spill] sm:$0xff] %v11993_v32  ;;  %v15472_v32 = vld [vmem:[#allocation156_spill] sm:$0xff] }
 0x73d   :  { %v11995_v14 = vpop.eup %8688  ;;  %v3842_v49 = vadd.f32 %v11798_v34, %v1744_v63  ;;  %8185 = vmatmul.msk.f32.gmra.mxu0 %vm312_vm0, %v284_v35  ;;  %v286_v63 = vld [vmem:[%s15089_s0 + $0x748] sm:$0xff] }
 0x73e   :  { %4065 = vmatmul.f32.gmra.mxu3 %v11995_v14  ;;  %4518 = vmatmul.f32.gmra.mxu1 %v10046_v4 }
 0x73f   :  { %8690 = vtanh.f32 %v3842_v49  ;;  %4971 = vmatmul.f32.gmra.mxu2 %v11524_v20 }
 0x741   :  { %v12002_v38 = vpop.f32.mrf.mxu2 }
 0x742   :  { %v1746_v17 = vpop.f32.mrf.mxu0 }
 0x743   :  { %v1747_v13 = vadd.f32 %v11877_v36, %v1746_v17  ;;  %v12008_v29 = vpop.f32.mrf.mxu1 }
 0x744   :  { %15435 = vst [vmem:[#allocation175_spill] sm:$0xff] %v12008_v29 }
 0x745   :  { %v12010_v34 = vpop.eup %8690  ;;  %v3843_v35 = vadd.f32 %v11809_v16, %v1747_v13  ;;  %8186 = vmatmul.msk.f32.gmra.mxu0 %vm312_vm0, %v285_v43  ;;  %v287_v13 = vld [vmem:[%s15089_s0 + $0x750] sm:$0xff] }
 0x746   :  { %4068 = vmatmul.f32.gmra.mxu3 %v12010_v34  ;;  %4521 = vmatmul.f32.gmra.mxu1 %v10057_v48 }
 0x747   :  { %8692 = vtanh.f32 %v3843_v35  ;;  %4974 = vmatmul.f32.gmra.mxu2 %v11535_v30 }
 0x749   :  { %v12017_v4 = vpop.f32.mrf.mxu2 }
 0x74a   :  { %v1749_v20 = vpop.f32.mrf.mxu0 }
 0x74b   :  { %v1750_v49 = vadd.f32 %v11877_v36, %v1749_v20  ;;  %v12023_v17 = vpop.f32.mrf.mxu1 }
 0x74c   :  { %15436 = vst [vmem:[#allocation176_spill] sm:$0xff] %v12023_v17  ;;  %v15463_v17 = vld [vmem:[#allocation19_spill] sm:$0xff] }
 0x74d   :  { %v12025_v16 = vpop.eup %8692  ;;  %v3844_v43 = vadd.f32 %v11820_v62, %v1750_v49  ;;  %8187 = vmatmul.msk.f32.gmra.mxu0 %vm312_vm0, %v286_v63  ;;  %v288_v49 = vld [vmem:[%s15089_s0 + $0x758] sm:$0xff] }
 0x74e   :  { %4071 = vmatmul.f32.gmra.mxu3 %v12025_v16  ;;  %4524 = vmatmul.f32.gmra.mxu1 %v10068_v55 }
 0x74f   :  { %8694 = vtanh.f32 %v3844_v43  ;;  %4977 = vmatmul.f32.gmra.mxu2 %v11546_v42 }
 0x751   :  { %v12032_v48 = vpop.f32.mrf.mxu2 }
 0x752   :  { %v1752_v30 = vpop.f32.mrf.mxu0 }
 0x753   :  { %v1753_v35 = vadd.f32 %v11877_v36, %v1752_v30  ;;  %v12038_v20 = vpop.f32.mrf.mxu1 }
 0x754   :  { %15437 = vst [vmem:[#allocation177_spill] sm:$0xff] %v12038_v20  ;;  %v15460_v20 = vld [vmem:[#allocation18_spill] sm:$0xff] }
 0x755   :  { %v12040_v62 = vpop.eup %8694  ;;  %v3845_v63 = vadd.f32 %v11831_v57, %v1753_v35  ;;  %8188 = vmatmul.msk.f32.gmra.mxu0 %vm312_vm0, %v287_v13  ;;  %v289_v35 = vld [vmem:[%s15089_s0 + $0x760] sm:$0xff] }
 0x756   :  { %4074 = vmatmul.f32.gmra.mxu3 %v12040_v62  ;;  %4527 = vmatmul.f32.gmra.mxu1 %v10079_v3 }
 0x757   :  { %8696 = vtanh.f32 %v3845_v63  ;;  %4980 = vmatmul.f32.gmra.mxu2 %v11557_v51 }
 0x759   :  { %v12047_v55 = vpop.f32.mrf.mxu2 }
 0x75a   :  { %v1755_v42 = vpop.f32.mrf.mxu0 }
 0x75b   :  { %v1756_v43 = vadd.f32 %v11877_v36, %v1755_v42  ;;  %v12053_v30 = vpop.f32.mrf.mxu1 }
 0x75c   :  { %15438 = vst [vmem:[#allocation178_spill] sm:$0xff] %v12053_v30 }
 0x75d   :  { %v12055_v57 = vpop.eup %8696  ;;  %v3846_v13 = vadd.f32 %v11842_v40, %v1756_v43  ;;  %8189 = vmatmul.msk.f32.gmra.mxu0 %vm312_vm0, %v288_v49  ;;  %v290_v43 = vld [vmem:[%s15089_s0 + $0x768] sm:$0xff] }
 0x75e   :  { %4077 = vmatmul.f32.gmra.mxu3 %v12055_v57  ;;  %4530 = vmatmul.f32.gmra.mxu1 %v10090_v41 }
 0x75f   :  { %8698 = vtanh.f32 %v3846_v13  ;;  %4983 = vmatmul.f32.gmra.mxu2 %v11568_v44 }
 0x761   :  { %v12062_v3 = vpop.f32.mrf.mxu2 }
 0x762   :  { %v1758_v51 = vpop.f32.mrf.mxu0 }
 0x763   :  { %v1759_v63 = vadd.f32 %v11877_v36, %v1758_v51  ;;  %v12068_v42 = vpop.f32.mrf.mxu1 }
 0x764   :  { %15439 = vst [vmem:[#allocation179_spill] sm:$0xff] %v12068_v42 }
 0x765   :  { %v12070_v40 = vpop.eup %8698  ;;  %v3847_v49 = vadd.f32 %v11853_v25, %v1759_v63  ;;  %8190 = vmatmul.msk.f32.gmra.mxu0 %vm312_vm0, %v289_v35  ;;  %v291_v63 = vld [vmem:[%s15089_s0 + $0x770] sm:$0xff] }
 0x766   :  { %4080 = vmatmul.f32.gmra.mxu3 %v12070_v40  ;;  %4533 = vmatmul.f32.gmra.mxu1 %v10099_v37 }
 0x767   :  { %8700 = vtanh.f32 %v3847_v49  ;;  %4986 = vmatmul.f32.gmra.mxu2 %v11579_v21 }
 0x769   :  { %v12077_v41 = vpop.f32.mrf.mxu2 }
 0x76a   :  { %v1761_v44 = vpop.f32.mrf.mxu0 }
 0x76b   :  { %v1762_v13 = vadd.f32 %v11877_v36, %v1761_v44  ;;  %v12083_v51 = vpop.f32.mrf.mxu1 }
 0x76c   :  { %15440 = vst [vmem:[#allocation180_spill] sm:$0xff] %v12083_v51 }
 0x76d   :  { %v12085_v25 = vpop.eup %8700  ;;  %v3848_v35 = vadd.f32 %v11864_v28, %v1762_v13  ;;  %8191 = vmatmul.msk.f32.gmra.mxu0 %vm312_vm0, %v290_v43  ;;  %v292_v13 = vld [vmem:[%s15089_s0 + $0x778] sm:$0xff] }
 0x76e   :  { %4083 = vmatmul.f32.gmra.mxu3 %v12085_v25  ;;  %4536 = vmatmul.f32.gmra.mxu1 %v10108_v60 }
 0x76f   :  { %8702 = vtanh.f32 %v3848_v35  ;;  %4989 = vmatmul.f32.gmra.mxu2 %v11590_v8 }
 0x771   :  { %v12092_v37 = vpop.f32.mrf.mxu2 }
 0x772   :  { %v1764_v21 = vpop.f32.mrf.mxu0 }
 0x773   :  { %v1765_v49 = vadd.f32 %v11877_v36, %v1764_v21  ;;  %v12098_v44 = vpop.f32.mrf.mxu1 }
 0x774   :  { %15441 = vst [vmem:[#allocation181_spill] sm:$0xff] %v12098_v44  ;;  %v15453_v44 = vld [vmem:[#allocation16_spill] sm:$0xff] }
 0x775   :  { %v12100_v28 = vpop.eup %8702  ;;  %v3849_v43 = vadd.f32 %v11880_v46, %v1765_v49  ;;  %8192 = vmatmul.msk.f32.gmra.mxu0 %vm312_vm0, %v291_v63 }
 0x776   :  { %4086 = vmatmul.f32.gmra.mxu3 %v12100_v28  ;;  %4539 = vmatmul.f32.gmra.mxu1 %v10117_v61 }
 0x777   :  { %8704 = vtanh.f32 %v3849_v43  ;;  %4992 = vmatmul.f32.gmra.mxu2 %v11601_v5  ;;  %v293_v5 = vld [vmem:[%s15089_s0 + $0x780] sm:$0xff] }
 0x779   :  { %v12107_v60 = vpop.f32.mrf.mxu2 }
 0x77a   :  { %v1767_v8 = vpop.f32.mrf.mxu0 }
 0x77b   :  { %v1768_v35 = vadd.f32 %v11877_v36, %v1767_v8  ;;  %v12113_v21 = vpop.f32.mrf.mxu1  ;;  %v15444_v8 = vld [vmem:[#allocation148_spill] sm:$0xff] }
 0x77c   :  { %15442 = vst [vmem:[#allocation182_spill] sm:$0xff] %v12113_v21 }
 0x77d   :  { %v12115_v46 = vpop.eup %8704  ;;  %v3850_v63 = vadd.f32 %v11891_v59, %v1768_v35  ;;  %8193 = vmatmul.msk.f32.gmra.mxu0 %vm312_vm0, %v292_v13  ;;  %v15446_v35 = vld [vmem:[#allocation14_spill] sm:$0xff] }
 0x77e   :  { %4089 = vmatmul.f32.gmra.mxu3 %v12115_v46  ;;  %4542 = vmatmul.f32.gmra.mxu1 %v10126_v39 }
 0x77f   :  { %8706 = vtanh.f32 %v3850_v63  ;;  %4995 = vmatmul.f32.gmra.mxu2 %v11612_v19  ;;  %v294_v19 = vld [vmem:[%s15089_s0 + $0x788] sm:$0xff] }
 0x780   :  { %v15447_v63 = vld [vmem:[#allocation149_spill] sm:$0xff] }
 0x781   :  { %v12122_v61 = vpop.f32.mrf.mxu2 }
 0x783   :  { %v12127_v49 = vpop.f32.mrf.mxu1 }
 0x784   :  { %15443 = vst [vmem:[#allocation183_spill] sm:$0xff] %v12127_v49  ;;  %v15449_v49 = vld [vmem:[#allocation15_spill] sm:$0xff] }
 0x785   :  { %v12129_v43 = vpop.eup %8706  ;;  %8194 = vmatmul.msk.f32.gmra.mxu0 %vm312_vm0, %v293_v5 }
 0x786   :  { %4092 = vmatmul.f32.gmra.mxu3 %v12129_v43  ;;  %4545 = vmatmul.f32.gmra.mxu1 %v10135_v52  ;;  %v12149_v52 = vld [vmem:[%s15094_s5 + $0x78] sm:$0xff] }
 0x787   :  { %4998 = vmatmul.f32.gmra.mxu2 %v11623_v58  ;;  %5723 = vmatpush.msra.mxu3 %v12149_v52 }
 0x788   :  { %5494 = vmatpush.msrb.mxu2 %v12149_v52 }
 0x789   :  { %v12135_v39 = vpop.f32.mrf.mxu2 }
 0x78b   :  { %v12140_v59 = vpop.f32.mrf.mxu1 }
 0x78d   :  { %8195 = vmatmul.msk.f32.gmra.mxu0 %vm312_vm0, %v294_v19 }
 0x78e   :  { %4548 = vmatmul.f32.gmra.mxu1 %v10143_v26  ;;  %5055 = vmatmul.f32.vlgmr.msrb.gmra.mxu3 %v11822_v18  ;;  %v295_v26 = vld [vmem:[%s15089_s0 + $0x790] sm:$0xff] }
 0x78f   :  { %5001 = vmatmul.f32.gmra.mxu2 %v15444_v8  ;;  %v296_v8 = vld [vmem:[%s15089_s0 + $0x798] sm:$0xff] }
 0x791   :  { %v12153_v58 = vpop.f32.mrf.mxu3 }
 0x792   :  { %v12155_v13 = vpop.f32.mrf.mxu2 }
 0x793   :  { %15445 = vst [vmem:[#allocation148_spill] sm:$0xff] %v12155_v13  ;;  %v12160_v18 = vpop.f32.mrf.mxu1 }
 0x795   :  { %8196 = vmatmul.msk.f32.gmra.mxu0 %vm312_vm0, %v295_v26  ;;  %v15450_v26 = vld [vmem:[#allocation166_spill] sm:$0xff] }
 0x796   :  { %4551 = vmatmul.f32.gmra.mxu1 %v15446_v35  ;;  %5058 = vmatmul.f32.gmra.mxu3 %v11833_v54  ;;  %v15451_v35 = vld [vmem:[#allocation150_spill] sm:$0xff] }
 0x797   :  { %5004 = vmatmul.f32.gmra.mxu2 %v15447_v63 }
 0x799   :  { %v12166_v5 = vpop.f32.mrf.mxu3 }
 0x79a   :  { %v12168_v19 = vpop.f32.mrf.mxu2 }
 0x79b   :  { %15448 = vst [vmem:[#allocation14_spill] sm:$0xff] %v12168_v19  ;;  %v12173_v13 = vpop.f32.mrf.mxu1  ;;  %v297_v19 = vld [vmem:[%s15089_s0 + $0x7a0] sm:$0xff] }
 0x79d   :  { %8197 = vmatmul.msk.f32.gmra.mxu0 %vm312_vm0, %v296_v8  ;;  %v12195_v8 = vld [vmem:[%s15094_s5 + $0x70] sm:$0xff] }
 0x79e   :  { %4554 = vmatmul.f32.gmra.mxu1 %v15449_v49  ;;  %5061 = vmatmul.f32.gmra.mxu3 %v15450_v26  ;;  %v15454_v49 = vld [vmem:[#allocation151_spill] sm:$0xff] }
 0x79f   :  { %5007 = vmatmul.f32.gmra.mxu2 %v15451_v35  ;;  %5724 = vmatpush.msra.mxu3 %v12195_v8 }
 0x7a0   :  { %5495 = vmatpush.msrb.mxu2 %v12195_v8 }
 0x7a1   :  { %v12179_v54 = vpop.f32.mrf.mxu3 }
 0x7a2   :  { %v12181_v63 = vpop.f32.mrf.mxu2 }
 0x7a3   :  { %15452 = vst [vmem:[#allocation149_spill] sm:$0xff] %v12181_v63  ;;  %v12186_v21 = vpop.f32.mrf.mxu1  ;;  %v15458_v63 = vld [vmem:[#allocation152_spill] sm:$0xff] }
 0x7a5   :  { %8198 = vmatmul.msk.f32.gmra.mxu0 %vm312_vm0, %v297_v19  ;;  %v15456_v19 = vld [vmem:[#allocation17_spill] sm:$0xff] }
 0x7a6   :  { %4557 = vmatmul.f32.gmra.mxu1 %v15453_v44  ;;  %5064 = vmatmul.f32.gmra.mxu3 %v11855_v56  ;;  %v298_v44 = vld [vmem:[%s15089_s0 + $0x7a8] sm:$0xff] }
 0x7a7   :  { %5010 = vmatmul.f32.gmra.mxu2 %v15454_v49  ;;  %v15457_v49 = vld [vmem:[#allocation167_spill] sm:$0xff] }
 0x7a9   :  { %v12199_v26 = vpop.f32.mrf.mxu3 }
 0x7aa   :  { %v12201_v35 = vpop.f32.mrf.mxu2 }
 0x7ab   :  { %15455 = vst [vmem:[#allocation15_spill] sm:$0xff] %v12201_v35  ;;  %v12206_v56 = vpop.f32.mrf.mxu1  ;;  %v299_v35 = vld [vmem:[%s15089_s0 + $0x7b0] sm:$0xff] }
 0x7ad   :  { %8199 = vmatmul.msk.f32.gmra.mxu0 %vm312_vm0, %v298_v44  ;;  %v15461_v44 = vld [vmem:[#allocation153_spill] sm:$0xff] }
 0x7ae   :  { %4560 = vmatmul.f32.gmra.mxu1 %v15456_v19  ;;  %5067 = vmatmul.f32.gmra.mxu3 %v15457_v49  ;;  %v300_v49 = vld [vmem:[%s15089_s0 + $0x7b8] sm:$0xff] }
 0x7af   :  { %5013 = vmatmul.f32.gmra.mxu2 %v15458_v63 }
 0x7b1   :  { %v12212_v51 = vpop.f32.mrf.mxu3 }
 0x7b2   :  { %v12214_v42 = vpop.f32.mrf.mxu2 }
 0x7b3   :  { %15459 = vst [vmem:[#allocation166_spill] sm:$0xff] %v12214_v42  ;;  %v12219_v30 = vpop.f32.mrf.mxu1 }
 0x7b5   :  { %8200 = vmatmul.msk.f32.gmra.mxu0 %vm312_vm0, %v299_v35 }
 0x7b6   :  { %4563 = vmatmul.f32.gmra.mxu1 %v15460_v20  ;;  %5070 = vmatmul.f32.gmra.mxu3 %v11882_v23  ;;  %v15464_v20 = vld [vmem:[#allocation154_spill] sm:$0xff] }
 0x7b7   :  { %5016 = vmatmul.f32.gmra.mxu2 %v15461_v44  ;;  %v301_v44 = vld [vmem:[%s15089_s0 + $0x7c0] sm:$0xff] }
 0x7b9   :  { %v12225_v19 = vpop.f32.mrf.mxu3 }
 0x7ba   :  { %v12227_v63 = vpop.f32.mrf.mxu2 }
 0x7bb   :  { %15462 = vst [vmem:[#allocation150_spill] sm:$0xff] %v12227_v63  ;;  %v12232_v42 = vpop.f32.mrf.mxu1  ;;  %v12245_v63 = vpop.f32.mrf.mxu0 }
 0x7bd   :  { %8201 = vmatmul.msk.f32.gmra.mxu0 %vm312_vm0, %v300_v49  ;;  %v15467_v49 = vld [vmem:[#allocation20_spill] sm:$0xff] }
 0x7be   :  { %4566 = vmatmul.f32.gmra.mxu1 %v15463_v17  ;;  %5073 = vmatmul.f32.gmra.mxu3 %v11893_v0  ;;  %v15468_v0 = vld [vmem:[#allocation155_spill] sm:$0xff]  ;;  %v12256_v17 = vld [vmem:[%s15094_s5 + $0x68] sm:$0xff] }
 0x7bf   :  { %5019 = vmatmul.f32.gmra.mxu2 %v15464_v20  ;;  %5725 = vmatpush.msra.mxu3 %v12256_v17 }
 0x7c0   :  { %5496 = vmatpush.msrb.mxu2 %v12256_v17 }
 0x7c1   :  { %v12238_v23 = vpop.f32.mrf.mxu3 }
 0x7c2   :  { %15465 = vst [vmem:[#allocation16_spill] sm:$0xff] %v12238_v23  ;;  %v12240_v35 = vpop.f32.mrf.mxu2 }
 0x7c3   :  { %15466 = vst [vmem:[#allocation151_spill] sm:$0xff] %v12240_v35  ;;  %v12247_v29 = vpop.f32.mrf.mxu1 }
 0x7c5   :  { %8202 = vmatmul.msk.f32.gmra.mxu0 %vm312_vm0, %v301_v44  ;;  %v302_v44 = vld [vmem:[%s15089_s0 + $0x7c8] sm:$0xff] }
 0x7c6   :  { %4569 = vmatmul.f32.gmra.mxu1 %v15467_v49  ;;  %5076 = vmatmul.f32.gmra.mxu3 %v11905_v31  ;;  %v12269_v49 = vpop.f32.mrf.mxu0 }
 0x7c7   :  { %5022 = vmatmul.f32.gmra.mxu2 %v15468_v0  ;;  %v15471_v0 = vld [vmem:[#allocation21_spill] sm:$0xff] }
 0x7c9   :  { %v12260_v20 = vpop.f32.mrf.mxu3 }
 0x7ca   :  { %15469 = vst [vmem:[#allocation17_spill] sm:$0xff] %v12260_v20  ;;  %v12262_v35 = vpop.f32.mrf.mxu2  ;;  %v12413_v20 = vld [vmem:[%s15094_s5] sm:$0xff] }
 0x7cb   :  { %15470 = vst [vmem:[#allocation167_spill] sm:$0xff] %v12262_v35  ;;  %v12267_v31 = vpop.f32.mrf.mxu1 }
 0x7cd   :  { %8203 = vmatmul.msk.f32.gmra.mxu0 %vm312_vm0, %v302_v44 }
 0x7ce   :  { %4572 = vmatmul.f32.gmra.mxu1 %v15471_v0  ;;  %5079 = vmatmul.f32.gmra.mxu3 %v11920_v33  ;;  %v12293_v33 = vld [vmem:[%s15094_s5 + $0x60] sm:$0xff] }
 0x7cf   :  { %5025 = vmatmul.f32.gmra.mxu2 %v15472_v32  ;;  %5726 = vmatpush.msra.mxu3 %v12293_v33 }
 0x7d0   :  { %5497 = vmatpush.msrb.mxu2 %v12293_v33 }
 0x7d1   :  { %v12275_v24 = vpop.f32.mrf.mxu3 }
 0x7d2   :  { %15473 = vst [vmem:[#allocation152_spill] sm:$0xff] %v12275_v24  ;;  %v12277_v15 = vpop.f32.mrf.mxu2  ;;  %v12385_v24 = vld [vmem:[%s15094_s5 + $0x18] sm:$0xff] }
 0x7d3   :  { %15474 = vst [vmem:[#allocation18_spill] sm:$0xff] %v12277_v15  ;;  %v12279_v35 = vpop.f32.mrf.mxu1 }
 0x7d6   :  { %4575 = vmatmul.f32.gmra.mxu1 %v15475_v27  ;;  %5082 = vmatmul.f32.gmra.mxu3 %v11935_v53  ;;  %v15480_v27 = vld [vmem:[#allocation23_spill] sm:$0xff] }
 0x7d7   :  { %5028 = vmatmul.f32.gmra.mxu2 %v15476_v50  ;;  %v15481_v50 = vld [vmem:[#allocation158_spill] sm:$0xff] }
 0x7d9   :  { %v12284_v47 = vpop.f32.mrf.mxu3 }
 0x7da   :  { %15477 = vst [vmem:[#allocation153_spill] sm:$0xff] %v12284_v47  ;;  %v12286_v44 = vpop.f32.mrf.mxu2 }
 0x7db   :  { %15478 = vst [vmem:[#allocation19_spill] sm:$0xff] %v12286_v44  ;;  %v12288_v0 = vpop.f32.mrf.mxu1  ;;  %v15485_v44 = vld [vmem:[#allocation24_spill] sm:$0xff] }
 0x7dc   :  { %15479 = vst [vmem:[#allocation154_spill] sm:$0xff] %v12288_v0 }
 0x7de   :  { %4578 = vmatmul.f32.gmra.mxu1 %v15480_v27  ;;  %5085 = vmatmul.f32.gmra.mxu3 %v11950_v45  ;;  %v12312_v27 = vld [vmem:[%s15094_s5 + $0x58] sm:$0xff] }
 0x7df   :  { %5031 = vmatmul.f32.gmra.mxu2 %v15481_v50  ;;  %5727 = vmatpush.msra.mxu3 %v12312_v27  ;;  %v12321_v50 = vld [vmem:[%s15094_s5 + $0x50] sm:$0xff] }
 0x7e0   :  { %5498 = vmatpush.msrb.mxu2 %v12312_v27 }
 0x7e1   :  { %v12300_v53 = vpop.f32.mrf.mxu3  ;;  %5728 = vmatpush.msra.mxu3 %v12321_v50 }
 0x7e2   :  { %15482 = vst [vmem:[#allocation20_spill] sm:$0xff] %v12300_v53  ;;  %v12302_v32 = vpop.f32.mrf.mxu2  ;;  %5499 = vmatpush.msrb.mxu2 %v12321_v50  ;;  %v12347_v53 = vld [vmem:[%s15094_s5 + $0x38] sm:$0xff] }
 0x7e3   :  { %15483 = vst [vmem:[#allocation155_spill] sm:$0xff] %v12302_v32  ;;  %v12304_v15 = vpop.f32.mrf.mxu1  ;;  %v12339_v32 = vld [vmem:[%s15094_s5 + $0x40] sm:$0xff] }
 0x7e4   :  { %15484 = vst [vmem:[#allocation21_spill] sm:$0xff] %v12304_v15 }
 0x7e6   :  { %4581 = vmatmul.f32.gmra.mxu1 %v15485_v44  ;;  %5088 = vmatmul.f32.gmra.mxu3 %v11965_v12  ;;  %v12332_v12 = vld [vmem:[%s15094_s5 + $0x48] sm:$0xff] }
 0x7e7   :  { %5034 = vmatmul.f32.gmra.mxu2 %v15486_v10  ;;  %5729 = vmatpush.msra.mxu3 %v12332_v12 }
 0x7e8   :  { %5500 = vmatpush.msrb.mxu2 %v12332_v12 }
 0x7e9   :  { %v12316_v45 = vpop.f32.mrf.mxu3  ;;  %5730 = vmatpush.msra.mxu3 %v12339_v32 }
 0x7ea   :  { %15487 = vst [vmem:[#allocation156_spill] sm:$0xff] %v12316_v45  ;;  %v12323_v44 = vpop.f32.mrf.mxu2  ;;  %v15491_v45 = vld [vmem:[#allocation160_spill] sm:$0xff]  ;;  %5501 = vmatpush.msrb.mxu2 %v12339_v32 }
 0x7eb   :  { %15488 = vst [vmem:[#allocation22_spill] sm:$0xff] %v12323_v44  ;;  %v12327_v10 = vpop.f32.mrf.mxu1  ;;  %v15490_v44 = vld [vmem:[#allocation25_spill] sm:$0xff]  ;;  %5731 = vmatpush.msra.mxu3 %v12347_v53 }
 0x7ec   :  { %15489 = vst [vmem:[#allocation157_spill] sm:$0xff] %v12327_v10  ;;  %v12356_v10 = vld [vmem:[%s15094_s5 + $0x30] sm:$0xff]  ;;  %5502 = vmatpush.msrb.mxu2 %v12347_v53 }
 0x7ed   :  { %5732 = vmatpush.msra.mxu3 %v12356_v10 }
 0x7ee   :  { %4584 = vmatmul.f32.gmra.mxu1 %v15490_v44  ;;  %5091 = vmatmul.f32.gmra.mxu3 %v11980_v6  ;;  %v12369_v44 = vld [vmem:[%s15094_s5 + $0x28] sm:$0xff] }
 0x7ef   :  { %5037 = vmatmul.f32.gmra.mxu2 %v15491_v45  ;;  %5733 = vmatpush.msra.mxu3 %v12369_v44 }
 0x7f0   :  { %5503 = vmatpush.msrb.mxu2 %v12356_v10 }
 0x7f1   :  { %v12351_v47 = vpop.f32.mrf.mxu3 }
 0x7f2   :  { %15492 = vst [vmem:[#allocation23_spill] sm:$0xff] %v12351_v47  ;;  %v12359_v6 = vpop.f32.mrf.mxu2  ;;  %v15495_v47 = vld [vmem:[#allocation26_spill] sm:$0xff]  ;;  %5504 = vmatpush.msrb.mxu2 %v12369_v44 }
 0x7f3   :  { %15493 = vst [vmem:[#allocation158_spill] sm:$0xff] %v12359_v6  ;;  %v12362_v45 = vpop.f32.mrf.mxu1  ;;  %v12377_v6 = vld [vmem:[%s15094_s5 + $0x20] sm:$0xff] }
 0x7f4   :  { %15494 = vst [vmem:[#allocation24_spill] sm:$0xff] %v12362_v45  ;;  %v15496_v45 = vld [vmem:[#allocation161_spill] sm:$0xff]  ;;  %5734 = vmatpush.msra.mxu3 %v12377_v6  ;;  %5505 = vmatpush.msrb.mxu2 %v12377_v6 }
 0x7f6   :  { %4587 = vmatmul.f32.gmra.mxu1 %v15495_v47  ;;  %5094 = vmatmul.f32.gmra.mxu3 %v11995_v14  ;;  %v12396_v14 = vld [vmem:[%s15094_s5 + $0x10] sm:$0xff] }
 0x7f7   :  { %5040 = vmatmul.f32.gmra.mxu2 %v15496_v45  ;;  %5735 = vmatpush.msra.mxu3 %v12385_v24 }
 0x7f8   :  { %5506 = vmatpush.msrb.mxu2 %v12385_v24 }
 0x7f9   :  { %v12387_v15 = vpop.f32.mrf.mxu3  ;;  %5736 = vmatpush.msra.mxu3 %v12396_v14 }
 0x7fa   :  { %15497 = vst [vmem:[#allocation159_spill] sm:$0xff] %v12387_v15  ;;  %v12390_v47 = vpop.f32.mrf.mxu2  ;;  %v12405_v15 = vld [vmem:[%s15094_s5 + $0x8] sm:$0xff]  ;;  %5507 = vmatpush.msrb.mxu2 %v12396_v14 }
 0x7fb   :  { %15498 = vst [vmem:[#allocation25_spill] sm:$0xff] %v12390_v47  ;;  %v12398_v45 = vpop.f32.mrf.mxu1  ;;  %5737 = vmatpush.msra.mxu3 %v12405_v15  ;;  %v15500_v47 = vld [vmem:[#allocation27_spill] sm:$0xff] }
 0x7fc   :  { %15499 = vst [vmem:[#allocation160_spill] sm:$0xff] %v12398_v45  ;;  %v15501_v45 = vld [vmem:[#allocation162_spill] sm:$0xff]  ;;  %5508 = vmatpush.msrb.mxu2 %v12405_v15 }
 0x7fd   :  { %5738 = vmatpush.msra.mxu3 %v12413_v20 }
 0x7fe   :  { %4590 = vmatmul.f32.gmra.mxu1 %v15500_v47  ;;  %5097 = vmatmul.f32.gmra.mxu3 %v12010_v34  ;;  %v15505_v47 = vld [vmem:[#allocation28_spill] sm:$0xff] }
 0x7ff   :  { %5043 = vmatmul.f32.gmra.mxu2 %v15501_v45  ;;  %6017 = vmatpush.msrb.mxu3 %v12149_v52  ;;  %v15506_v45 = vld [vmem:[#allocation163_spill] sm:$0xff] }
 0x800   :  { %5509 = vmatpush.msrb.mxu2 %v12413_v20 }
 0x801   :  { %v12419_v0 = vpop.f32.mrf.mxu3  ;;  %6018 = vmatpush.msrb.mxu3 %v12195_v8 }
 0x802   :  { %15502 = vst [vmem:[#allocation26_spill] sm:$0xff] %v12419_v0  ;;  %v12421_v23 = vpop.f32.mrf.mxu2  ;;  %5870 = vmatpush.msra.mxu2 %v12149_v52 }
 0x803   :  { %15503 = vst [vmem:[#allocation161_spill] sm:$0xff] %v12421_v23  ;;  %v12425_v34 = vpop.f32.mrf.mxu1  ;;  %6019 = vmatpush.msrb.mxu3 %v12256_v17 }
 0x804   :  { %15504 = vst [vmem:[#allocation27_spill] sm:$0xff] %v12425_v34  ;;  %5871 = vmatpush.msra.mxu2 %v12195_v8 }
 0x805   :  { %6020 = vmatpush.msrb.mxu3 %v12293_v33 }
 0x806   :  { %4593 = vmatmul.f32.gmra.mxu1 %v15505_v47  ;;  %5100 = vmatmul.f32.gmra.mxu3 %v12025_v16  ;;  %v15510_v16 = vld [vmem:[#allocation29_spill] sm:$0xff]  ;;  %v15511_v47 = vld [vmem:[#allocation164_spill] sm:$0xff] }
 0x807   :  { %5046 = vmatmul.f32.gmra.mxu2 %v15506_v45  ;;  %6021 = vmatpush.msrb.mxu3 %v12312_v27 }
 0x808   :  { %5872 = vmatpush.msra.mxu2 %v12256_v17 }
 0x809   :  { %v12435_v23 = vpop.f32.mrf.mxu3  ;;  %6022 = vmatpush.msrb.mxu3 %v12321_v50 }
 0x80a   :  { %15507 = vst [vmem:[#allocation162_spill] sm:$0xff] %v12435_v23  ;;  %v12438_v0 = vpop.f32.mrf.mxu2  ;;  %5873 = vmatpush.msra.mxu2 %v12293_v33 }
 0x80b   :  { %15508 = vst [vmem:[#allocation28_spill] sm:$0xff] %v12438_v0  ;;  %v12441_v34 = vpop.f32.mrf.mxu1  ;;  %6023 = vmatpush.msrb.mxu3 %v12332_v12 }
 0x80c   :  { %15509 = vst [vmem:[#allocation163_spill] sm:$0xff] %v12441_v34  ;;  %5874 = vmatpush.msra.mxu2 %v12312_v27 }
 0x80d   :  { %6024 = vmatpush.msrb.mxu3 %v12339_v32 }
 0x80e   :  { %4596 = vmatmul.f32.gmra.mxu1 %v15510_v16  ;;  %5103 = vmatmul.f32.gmra.mxu3 %v12040_v62  ;;  %v12462_v62 = vpop.f32.mrf.mxu0  ;;  %v15515_v16 = vld [vmem:[#allocation30_spill] sm:$0xff] }
 0x80f   :  { %5049 = vmatmul.f32.gmra.mxu2 %v15511_v47  ;;  %6025 = vmatpush.msrb.mxu3 %v12347_v53  ;;  %v15516_v47 = vld [vmem:[#allocation165_spill] sm:$0xff] }
 0x810   :  { %5875 = vmatpush.msra.mxu2 %v12321_v50 }
 0x811   :  { %v12451_v45 = vpop.f32.mrf.mxu3  ;;  %6026 = vmatpush.msrb.mxu3 %v12356_v10 }
 0x812   :  { %15512 = vst [vmem:[#allocation29_spill] sm:$0xff] %v12451_v45  ;;  %v12454_v0 = vpop.f32.mrf.mxu2  ;;  %5876 = vmatpush.msra.mxu2 %v12332_v12 }
 0x813   :  { %15513 = vst [vmem:[#allocation164_spill] sm:$0xff] %v12454_v0  ;;  %v12457_v34 = vpop.f32.mrf.mxu1  ;;  %6027 = vmatpush.msrb.mxu3 %v12369_v44 }
 0x814   :  { %15514 = vst [vmem:[#allocation184_spill] sm:$0xff] %v12457_v34  ;;  %5877 = vmatpush.msra.mxu2 %v12339_v32 }
 0x815   :  { %6028 = vmatpush.msrb.mxu3 %v12377_v6 }
 0x816   :  { %4599 = vmatmul.f32.gmra.mxu1 %v15515_v16  ;;  %5106 = vmatmul.f32.gmra.mxu3 %v12055_v57  ;;  %v15520_v57 = vld [vmem:[#allocation31_spill] sm:$0xff]  ;;  %v15521_v16 = vmov 0.0  }
 0x817   :  { %5052 = vmatmul.f32.gmra.mxu2 %v15516_v47  ;;  %6029 = vmatpush.msrb.mxu3 %v12385_v24  ;;  %v12484_v47 = vpop.f32.mrf.mxu0 }
 0x818   :  { %5878 = vmatpush.msra.mxu2 %v12347_v53 }
 0x819   :  { %v12469_v45 = vpop.f32.mrf.mxu3  ;;  %6030 = vmatpush.msrb.mxu3 %v12396_v14 }
 0x81a   :  { %15517 = vst [vmem:[#allocation30_spill] sm:$0xff] %v12469_v45  ;;  %v12472_v0 = vpop.f32.mrf.mxu2  ;;  %5879 = vmatpush.msra.mxu2 %v12356_v10 }
 0x81b   :  { %15518 = vst [vmem:[#allocation165_spill] sm:$0xff] %v12472_v0  ;;  %v12475_v34 = vpop.f32.mrf.mxu1  ;;  %6031 = vmatpush.msrb.mxu3 %v12405_v15 }
 0x81c   :  { %15519 = vst [vmem:[#allocation185_spill] sm:$0xff] %v12475_v34  ;;  %5880 = vmatpush.msra.mxu2 %v12369_v44 }
 0x81d   :  { %6032 = vmatpush.msrb.mxu3 %v12413_v20 }
 0x81e   :  { %4602 = vmatmul.f32.gmra.mxu1 %v15520_v57  ;;  %5109 = vmatmul.f32.gmra.mxu3 %v12070_v40  ;;  %v15525_v57 = vld [vmem:[#allocation32_spill] sm:$0xff] }
 0x81f   :  { %5510 = vmatmul.f32.vlgmr.msrb.gmra.mxu2 %v15521_v16  ;;  %v12501_v23 = vpop.f32.mrf.mxu0 }
 0x820   :  { %5881 = vmatpush.msra.mxu2 %v12377_v6 }
 0x821   :  { %v12487_v45 = vpop.f32.mrf.mxu3 }
 0x822   :  { %15522 = vst [vmem:[#allocation31_spill] sm:$0xff] %v12487_v45  ;;  %v12489_v0 = vpop.f32.mrf.mxu2  ;;  %5882 = vmatpush.msra.mxu2 %v12385_v24 }
 0x823   :  { %15523 = vst [vmem:[#allocation186_spill] sm:$0xff] %v12489_v0  ;;  %v12492_v34 = vpop.f32.mrf.mxu1 }
 0x824   :  { %15524 = vst [vmem:[#allocation187_spill] sm:$0xff] %v12492_v34  ;;  %5883 = vmatpush.msra.mxu2 %v12396_v14  ;;  %v15533_v34 = vld [vmem:[#allocation34_spill] sm:$0xff] }
 0x826   :  { %4605 = vmatmul.f32.gmra.mxu1 %v15525_v57  ;;  %5112 = vmatmul.f32.gmra.mxu3 %v12085_v25  ;;  %v15529_v57 = vld [vmem:[#allocation33_spill] sm:$0xff] }
 0x827   :  { %5513 = vmatmul.f32.gmra.mxu2 %v15521_v16 }
 0x828   :  { %5884 = vmatpush.msra.mxu2 %v12405_v15 }
 0x829   :  { %v12499_v40 = vpop.f32.mrf.mxu3 }
 0x82a   :  { %15526 = vst [vmem:[#allocation32_spill] sm:$0xff] %v12499_v40  ;;  %v12503_v45 = vpop.f32.mrf.mxu2  ;;  %5885 = vmatpush.msra.mxu2 %v12413_v20 }
 0x82b   :  { %15527 = vst [vmem:[#allocation188_spill] sm:$0xff] %v12503_v45  ;;  %v12506_v0 = vpop.f32.mrf.mxu1 }
 0x82c   :  { %15528 = vst [vmem:[#allocation189_spill] sm:$0xff] %v12506_v0  ;;  %6164 = vmatpush.msrb.mxu2 %v12149_v52  ;;  %v12521_v0 = vpop.f32.mrf.mxu0 }
 0x82e   :  { %4608 = vmatmul.f32.gmra.mxu1 %v15529_v57  ;;  %5115 = vmatmul.f32.gmra.mxu3 %v12100_v28  ;;  %v1771_v28 = vadd.f32 %v11877_v36, %v12245_v63  ;;  %v1774_v63 = vadd.f32 %v11877_v36, %v12269_v49  ;;  %v1777_v49 = vadd.f32 %v11877_v36, %v12462_v62 }
 0x82f   :  { %5516 = vmatmul.f32.gmra.mxu2 %v15521_v16  ;;  %v1780_v62 = vadd.f32 %v11877_v36, %v12484_v47  ;;  %v1783_v47 = vadd.f32 %v11877_v36, %v12501_v23 }
 0x830   :  { %6165 = vmatpush.msrb.mxu2 %v12195_v8 }
 0x831   :  { %v12514_v25 = vpop.f32.mrf.mxu3 }
 0x832   :  { %15530 = vst [vmem:[#allocation33_spill] sm:$0xff] %v12514_v25  ;;  %v12516_v40 = vpop.f32.mrf.mxu2  ;;  %6166 = vmatpush.msrb.mxu2 %v12256_v17 }
 0x833   :  { %15531 = vst [vmem:[#allocation190_spill] sm:$0xff] %v12516_v40  ;;  %v12519_v45 = vpop.f32.mrf.mxu1  ;;  %v3965_v40 = vadd.f32 %v11912_v9, %v1771_v28  ;;  %v3966_v28 = vadd.f32 %v11927_v22, %v1774_v63  ;;  %v3967_v63 = vadd.f32 %v11942_v2, %v1777_v49  ;;  %v3968_v49 = vadd.f32 %v11957_v7, %v1780_v62 }
 0x834   :  { %15532 = vst [vmem:[#allocation191_spill] sm:$0xff] %v12519_v45  ;;  %6167 = vmatpush.msrb.mxu2 %v12293_v33  ;;  %v3969_v7 = vadd.f32 %v11972_v11, %v1783_v47 }
 0x835   :  { %8708 = vtanh.f32 %v3965_v40  ;;  %v15541_v40 = vld [vmem:[#allocation36_spill] sm:$0xff] }
 0x836   :  { %4611 = vmatmul.f32.gmra.mxu1 %v15533_v34  ;;  %5118 = vmatmul.f32.gmra.mxu3 %v12115_v46  ;;  %v12539_v46 = vpop.f32.mrf.mxu0  ;;  %v15537_v34 = vld [vmem:[#allocation35_spill] sm:$0xff]  ;;  %8710 = vtanh.f32 %v3966_v28 }
 0x837   :  { %5519 = vmatmul.f32.gmra.mxu2 %v15521_v16  ;;  %8712 = vtanh.f32 %v3967_v63 }
 0x838   :  { %6168 = vmatpush.msrb.mxu2 %v12312_v27  ;;  %8714 = vtanh.f32 %v3968_v49  ;;  %v1786_v49 = vadd.f32 %v11877_v36, %v12521_v0  ;;  %v12610_v36 = vld [vmem:[%s15092_s3] ss:$0 sm:$0xff] }
 0x839   :  { %v12530_v57 = vpop.f32.mrf.mxu3  ;;  %8716 = vtanh.f32 %v3969_v7  ;;  %v1789_v0 = vadd.f32 %v12610_v36, %v12539_v46 }
 0x83a   :  { %15534 = vst [vmem:[#allocation34_spill] sm:$0xff] %v12530_v57  ;;  %v12532_v25 = vpop.f32.mrf.mxu2  ;;  %6169 = vmatpush.msrb.mxu2 %v12321_v50 }
 0x83b   :  { %15535 = vst [vmem:[#allocation192_spill] sm:$0xff] %v12532_v25  ;;  %v12536_v45 = vpop.f32.mrf.mxu1 }
 0x83c   :  { %15536 = vst [vmem:[#allocation193_spill] sm:$0xff] %v12536_v45  ;;  %6170 = vmatpush.msrb.mxu2 %v12332_v12 }
 0x83e   :  { %4614 = vmatmul.f32.gmra.mxu1 %v15537_v34  ;;  %5121 = vmatmul.f32.gmra.mxu3 %v12129_v43  ;;  %v8709_v43 = vpop.eup %8708  ;;  %v1791_v34 = vpop.f32.mrf.mxu0 }
 0x83f   :  { %5522 = vmatmul.f32.gmra.mxu2 %v15521_v16  ;;  %v8711_v28 = vpop.eup %8710 }
 0x840   :  { %6171 = vmatpush.msrb.mxu2 %v12339_v32  ;;  %v8713_v63 = vpop.eup %8712 }
 0x841   :  { %v12547_v57 = vpop.f32.mrf.mxu3 }
 0x842   :  { %15538 = vst [vmem:[#allocation35_spill] sm:$0xff] %v12547_v57  ;;  %v12549_v9 = vpop.f32.mrf.mxu2  ;;  %6172 = vmatpush.msrb.mxu2 %v12347_v53 }
 0x843   :  { %15539 = vst [vmem:[#allocation194_spill] sm:$0xff] %v12549_v9  ;;  %v12553_v25 = vpop.f32.mrf.mxu1 }
 0x844   :  { %15540 = vst [vmem:[#allocation195_spill] sm:$0xff] %v12553_v25  ;;  %6173 = vmatpush.msrb.mxu2 %v12356_v10 }
 0x846   :  { %4617 = vmatmul.f32.gmra.mxu1 %v15541_v40  ;;  %5124 = vmatmul.f32.gmra.mxu3 %v8709_v43  ;;  %v15545_v43 = vld [vmem:[#allocation37_spill] sm:$0xff] }
 0x847   :  { %5525 = vmatmul.f32.gmra.mxu2 %v15521_v16 }
 0x848   :  { %6174 = vmatpush.msrb.mxu2 %v12369_v44 }
 0x849   :  { %v12561_v57 = vpop.f32.mrf.mxu3 }
 0x84a   :  { %15542 = vst [vmem:[#allocation36_spill] sm:$0xff] %v12561_v57  ;;  %v12563_v22 = vpop.f32.mrf.mxu2  ;;  %6175 = vmatpush.msrb.mxu2 %v12377_v6  ;;  %v1794_v57 = vpop.f32.mrf.mxu0 }
 0x84b   :  { %15543 = vst [vmem:[#allocation196_spill] sm:$0xff] %v12563_v22  ;;  %v12567_v9 = vpop.f32.mrf.mxu1 }
 0x84c   :  { %15544 = vst [vmem:[#allocation197_spill] sm:$0xff] %v12567_v9  ;;  %6176 = vmatpush.msrb.mxu2 %v12385_v24  ;;  %v15553_v9 = vld [vmem:[#allocation39_spill] sm:$0xff] }
 0x84e   :  { %4620 = vmatmul.f32.gmra.mxu1 %v15545_v43  ;;  %5127 = vmatmul.f32.gmra.mxu3 %v8711_v28  ;;  %v15549_v28 = vld [vmem:[#allocation38_spill] sm:$0xff] }
 0x84f   :  { %5528 = vmatmul.f32.gmra.mxu2 %v15521_v16 }
 0x850   :  { %6177 = vmatpush.msrb.mxu2 %v12396_v14 }
 0x851   :  { %v12575_v40 = vpop.f32.mrf.mxu3 }
 0x852   :  { %15546 = vst [vmem:[#allocation37_spill] sm:$0xff] %v12575_v40  ;;  %v12577_v2 = vpop.f32.mrf.mxu2  ;;  %6178 = vmatpush.msrb.mxu2 %v12405_v15 }
 0x853   :  { %15547 = vst [vmem:[#allocation198_spill] sm:$0xff] %v12577_v2  ;;  %v12581_v22 = vpop.f32.mrf.mxu1  ;;  %v1797_v2 = vpop.f32.mrf.mxu0 }
 0x854   :  { %15548 = vst [vmem:[#allocation199_spill] sm:$0xff] %v12581_v22  ;;  %6179 = vmatpush.msrb.mxu2 %v12413_v20  ;;  %v8715_v22 = vpop.eup %8714 }
 0x855   :  { %v8717_v47 = vpop.eup %8716 }
 0x856   :  { %4623 = vmatmul.f32.gmra.mxu1 %v15549_v28  ;;  %5130 = vmatmul.f32.gmra.mxu3 %v8713_v63  ;;  %v3970_v28 = vadd.f32 %v11987_v1, %v1786_v49  ;;  %v15561_v49 = vld [vmem:[#allocation41_spill] sm:$0xff] }
 0x857   :  { %5531 = vmatmul.f32.gmra.mxu2 %v15521_v16 }
 0x858   :  { %8718 = vtanh.f32 %v3970_v28  ;;  %v1792_v28 = vadd.f32 %v12610_v36, %v1791_v34 }
 0x859   :  { %v12588_v43 = vpop.f32.mrf.mxu3 }
 0x85a   :  { %15550 = vst [vmem:[#allocation38_spill] sm:$0xff] %v12588_v43  ;;  %v12590_v40 = vpop.f32.mrf.mxu2 }
 0x85b   :  { %15551 = vst [vmem:[#allocation200_spill] sm:$0xff] %v12590_v40  ;;  %v12593_v62 = vpop.f32.mrf.mxu1  ;;  %v1800_v43 = vpop.f32.mrf.mxu0  ;;  %v15557_v40 = vld [vmem:[#allocation40_spill] sm:$0xff] }
 0x85c   :  { %15552 = vst [vmem:[#allocation201_spill] sm:$0xff] %v12593_v62  ;;  %v15638_v62 = vld [vmem:[#allocation64_spill] sm:$0xff] }
 0x85e   :  { %4626 = vmatmul.f32.gmra.mxu1 %v15553_v9  ;;  %5133 = vmatmul.f32.gmra.mxu3 %v8715_v22  ;;  %v3971_v22 = vadd.f32 %v12002_v38, %v1789_v0  ;;  %v15565_v0 = vld [vmem:[#allocation42_spill] sm:$0xff] }
 0x85f   :  { %5534 = vmatmul.f32.gmra.mxu2 %v15521_v16 }
 0x860   :  { %8720 = vtanh.f32 %v3971_v22  ;;  %v1795_v22 = vadd.f32 %v12610_v36, %v1794_v57 }
 0x861   :  { %v12599_v23 = vpop.f32.mrf.mxu3 }
 0x862   :  { %15554 = vst [vmem:[#allocation39_spill] sm:$0xff] %v12599_v23  ;;  %v12601_v63 = vpop.f32.mrf.mxu2 }
 0x863   :  { %15555 = vst [vmem:[#allocation202_spill] sm:$0xff] %v12601_v63  ;;  %v12604_v11 = vpop.f32.mrf.mxu1  ;;  %v1803_v46 = vpop.f32.mrf.mxu0 }
 0x864   :  { %15556 = vst [vmem:[#allocation203_spill] sm:$0xff] %v12604_v11 }
 0x866   :  { %4629 = vmatmul.f32.gmra.mxu1 %v15557_v40  ;;  %5136 = vmatmul.f32.gmra.mxu3 %v8717_v47  ;;  %v8719_v40 = vpop.eup %8718 }
 0x867   :  { %5537 = vmatmul.f32.gmra.mxu2 %v15521_v16  ;;  %v8721_v38 = vpop.eup %8720 }
 0x869   :  { %v12615_v9 = vpop.f32.mrf.mxu3 }
 0x86a   :  { %15558 = vst [vmem:[#allocation40_spill] sm:$0xff] %v12615_v9  ;;  %v12617_v1 = vpop.f32.mrf.mxu2  ;;  %v3972_v9 = vadd.f32 %v12017_v4, %v1792_v28  ;;  %v15569_v28 = vld [vmem:[#allocation43_spill] sm:$0xff] }
 0x86b   :  { %15559 = vst [vmem:[#allocation204_spill] sm:$0xff] %v12617_v1  ;;  %v12620_v7 = vpop.f32.mrf.mxu1 }
 0x86c   :  { %15560 = vst [vmem:[#allocation205_spill] sm:$0xff] %v12620_v7  ;;  %8722 = vtanh.f32 %v3972_v9  ;;  %v1798_v9 = vadd.f32 %v12610_v36, %v1797_v2 }
 0x86e   :  { %4632 = vmatmul.f32.gmra.mxu1 %v15561_v49  ;;  %5139 = vmatmul.f32.gmra.mxu3 %v8719_v40  ;;  %v1806_v40 = vpop.f32.mrf.mxu0 }
 0x86f   :  { %5540 = vmatmul.f32.gmra.mxu2 %v15521_v16 }
 0x871   :  { %v12625_v47 = vpop.f32.mrf.mxu3 }
 0x872   :  { %15562 = vst [vmem:[#allocation41_spill] sm:$0xff] %v12625_v47  ;;  %v12627_v23 = vpop.f32.mrf.mxu2  ;;  %v3973_v47 = vadd.f32 %v12032_v48, %v1795_v22  ;;  %v8723_v4 = vpop.eup %8722 }
 0x873   :  { %15563 = vst [vmem:[#allocation206_spill] sm:$0xff] %v12627_v23  ;;  %v12630_v1 = vpop.f32.mrf.mxu1 }
 0x874   :  { %15564 = vst [vmem:[#allocation207_spill] sm:$0xff] %v12630_v1  ;;  %8724 = vtanh.f32 %v3973_v47  ;;  %v1801_v47 = vadd.f32 %v12610_v36, %v1800_v43 }
 0x876   :  { %4635 = vmatmul.f32.gmra.mxu1 %v15565_v0  ;;  %5142 = vmatmul.f32.gmra.mxu3 %v8721_v38  ;;  %v3974_v0 = vadd.f32 %v12047_v55, %v1798_v9  ;;  %v1809_v48 = vpop.f32.mrf.mxu0 }
 0x877   :  { %5543 = vmatmul.f32.gmra.mxu2 %v15521_v16 }
 0x878   :  { %8726 = vtanh.f32 %v3974_v0 }
 0x879   :  { %v12635_v34 = vpop.f32.mrf.mxu3 }
 0x87a   :  { %15566 = vst [vmem:[#allocation42_spill] sm:$0xff] %v12635_v34  ;;  %v12637_v49 = vpop.f32.mrf.mxu2  ;;  %v8725_v22 = vpop.eup %8724 }
 0x87b   :  { %15567 = vst [vmem:[#allocation208_spill] sm:$0xff] %v12637_v49  ;;  %v12640_v23 = vpop.f32.mrf.mxu1  ;;  %v15573_v49 = vld [vmem:[#allocation44_spill] sm:$0xff] }
 0x87c   :  { %15568 = vst [vmem:[#allocation209_spill] sm:$0xff] %v12640_v23 }
 0x87e   :  { %4638 = vmatmul.f32.gmra.mxu1 %v15569_v28  ;;  %5145 = vmatmul.f32.gmra.mxu3 %v8723_v4  ;;  %v3975_v28 = vadd.f32 %v12062_v3, %v1801_v47  ;;  %v8727_v55 = vpop.eup %8726  ;;  %v1812_v9 = vpop.f32.mrf.mxu0  ;;  %v15579_v47 = vld [vmem:[#allocation46_spill] sm:$0xff] }
 0x87f   :  { %5546 = vmatmul.f32.gmra.mxu2 %v15521_v16 }
 0x880   :  { %8728 = vtanh.f32 %v3975_v28 }
 0x881   :  { %v12645_v57 = vpop.f32.mrf.mxu3 }
 0x882   :  { %15570 = vst [vmem:[#allocation43_spill] sm:$0xff] %v12645_v57  ;;  %v12647_v38 = vpop.f32.mrf.mxu2 }
 0x883   :  { %15571 = vst [vmem:[#allocation210_spill] sm:$0xff] %v12647_v38  ;;  %v12650_v34 = vpop.f32.mrf.mxu1  ;;  %v15576_v38 = vld [vmem:[#allocation45_spill] sm:$0xff] }
 0x884   :  { %15572 = vst [vmem:[#allocation211_spill] sm:$0xff] %v12650_v34 }
 0x886   :  { %4641 = vmatmul.f32.gmra.mxu1 %v15573_v49  ;;  %5148 = vmatmul.f32.gmra.mxu3 %v8725_v22  ;;  %v1804_v49 = vadd.f32 %v12610_v36, %v1803_v46  ;;  %v8729_v3 = vpop.eup %8728  ;;  %v1815_v46 = vpop.f32.mrf.mxu0 }
 0x887   :  { %5549 = vmatmul.f32.gmra.mxu2 %v15521_v16 }
 0x888   :  { %v3976_v22 = vadd.f32 %v12077_v41, %v1804_v49  ;;  %v15582_v49 = vld [vmem:[#allocation47_spill] sm:$0xff] }
 0x889   :  { %v12655_v2 = vpop.f32.mrf.mxu3 }
 0x88a   :  { %15574 = vst [vmem:[#allocation44_spill] sm:$0xff] %v12655_v2  ;;  %v12657_v4 = vpop.f32.mrf.mxu2  ;;  %8730 = vtanh.f32 %v3976_v22  ;;  %v12686_v22 = vld [vmem:[%s15095_s6] ss:$0 sm:$0xff] }
 0x88b   :  { %15575 = vst [vmem:[#allocation212_spill] sm:$0xff] %v12657_v4  ;;  %v12660_v57 = vpop.f32.mrf.mxu1 }
 0x88e   :  { %4644 = vmatmul.f32.gmra.mxu1 %v15576_v38  ;;  %5151 = vmatmul.f32.gmra.mxu3 %v8727_v55  ;;  %v1807_v38 = vadd.f32 %v12610_v36, %v1806_v40  ;;  %v4502_v40 = vadd.f32 %v12686_v22, %v12140_v59  ;;  %v4505_v59 = vadd.f32 %v12686_v22, %v12160_v18 }
 0x88f   :  { %5552 = vmatmul.f32.gmra.mxu2 %v15521_v16  ;;  %v1816_v18 = vadd.f32 %v12610_v36, %v1815_v46 }
 0x890   :  { %v8731_v41 = vpop.eup %8730 }
 0x891   :  { %v12665_v43 = vpop.f32.mrf.mxu3 }
 0x892   :  { %15577 = vst [vmem:[#allocation45_spill] sm:$0xff] %v12665_v43  ;;  %v12667_v0 = vpop.f32.mrf.mxu2  ;;  %v3977_v43 = vadd.f32 %v12092_v37, %v1807_v38  ;;  %v1818_v37 = vpop.f32.mrf.mxu0 }
 0x893   :  { %15578 = vst [vmem:[#allocation213_spill] sm:$0xff] %v12667_v0  ;;  %v12670_v2 = vpop.f32.mrf.mxu1 }
 0x894   :  { %8732 = vtanh.f32 %v3977_v43 }
 0x896   :  { %4647 = vmatmul.f32.gmra.mxu1 %v15579_v47  ;;  %5154 = vmatmul.f32.gmra.mxu3 %v8729_v3 }
 0x897   :  { %5555 = vmatmul.f32.gmra.mxu2 %v15521_v16  ;;  %v1810_v16 = vadd.f32 %v12610_v36, %v1809_v48  ;;  %v1813_v48 = vadd.f32 %v12610_v36, %v1812_v9  ;;  %v15586_v9 = vld [vmem:[#allocation49_spill] sm:$0xff] }
 0x899   :  { %v12675_v28 = vpop.f32.mrf.mxu3  ;;  %v3978_v38 = vadd.f32 %v12107_v60, %v1810_v16  ;;  %v3979_v60 = vadd.f32 %v12122_v61, %v1813_v48  ;;  %v4508_v61 = vadd.f32 %v12686_v22, %v12173_v13 }
 0x89a   :  { %15580 = vst [vmem:[#allocation46_spill] sm:$0xff] %v12675_v28  ;;  %v12677_v55 = vpop.f32.mrf.mxu2  ;;  %v8733_v28 = vpop.eup %8732 }
 0x89b   :  { %15581 = vst [vmem:[#allocation214_spill] sm:$0xff] %v12677_v55  ;;  %v12680_v0 = vpop.f32.mrf.mxu1  ;;  %v15584_v55 = vld [vmem:[#allocation48_spill] sm:$0xff] }
 0x89e   :  { %4650 = vmatmul.f32.gmra.mxu1 %v15582_v49  ;;  %5157 = vmatmul.f32.gmra.mxu3 %v8731_v41 }
 0x8a1   :  { %v12691_v3 = vpop.f32.mrf.mxu3 }
 0x8a2   :  { %15583 = vst [vmem:[#allocation47_spill] sm:$0xff] %v12691_v3  ;;  %v12693_v47 = vpop.f32.mrf.mxu2 }
 0x8a3   :  { %v5641_v41 = vadd.f32 %v12693_v47, %v4502_v40  ;;  %v12697_v49 = vpop.f32.mrf.mxu1 }
 0x8a5   :  { %8734 = vtanh.f32 %v5641_v41 }
 0x8a6   :  { %4653 = vmatmul.f32.gmra.mxu1 %v15584_v55  ;;  %5160 = vmatmul.f32.gmra.mxu3 %v8733_v28  ;;  %8736 = vtanh.f32 %v3978_v38  ;;  %v1821_v55 = vpop.f32.mrf.mxu0 }
 0x8a9   :  { %v12703_v43 = vpop.f32.mrf.mxu3 }
 0x8aa   :  { %15585 = vst [vmem:[#allocation48_spill] sm:$0xff] %v12703_v43  ;;  %v12705_v3 = vpop.f32.mrf.mxu2 }
 0x8ab   :  { %v5642_v16 = vadd.f32 %v12705_v3, %v4505_v59  ;;  %v12709_v40 = vpop.f32.mrf.mxu1  ;;  %v12711_v41 = vpop.eup %8734  ;;  %v3980_v59 = vadd.f32 %v12135_v39, %v1816_v18  ;;  %v4511_v39 = vadd.f32 %v12686_v22, %v12186_v21  ;;  %v15590_v21 = vld [vmem:[#allocation51_spill] sm:$0xff] }
 0x8ac   :  { %v8737_v28 = vpop.eup %8736  ;;  %5886 = vmatmul.f32.vlgmr.msra.gmra.mxu2 %v12711_v41 }
 0x8ad   :  { %8738 = vtanh.f32 %v5642_v16  ;;  %6458 = vmatpush.msra.mxu2 %v12149_v52 }
 0x8ae   :  { %4656 = vmatmul.f32.gmra.mxu1 %v15586_v9  ;;  %5163 = vmatmul.f32.gmra.mxu3 %v8737_v28  ;;  %8740 = vtanh.f32 %v3979_v60  ;;  %v1824_v13 = vpop.f32.mrf.mxu0  ;;  %v15588_v60 = vld [vmem:[#allocation50_spill] sm:$0xff] }
 0x8af   :  { %6459 = vmatpush.msra.mxu2 %v12195_v8  ;;  %v1819_v8 = vadd.f32 %v12610_v36, %v1818_v37 }
 0x8b1   :  { %v12719_v38 = vpop.f32.mrf.mxu3  ;;  %6460 = vmatpush.msra.mxu2 %v12256_v17  ;;  %v4096_v18 = vadd.f32 %v12153_v58, %v1819_v8 }
 0x8b2   :  { %15587 = vst [vmem:[#allocation49_spill] sm:$0xff] %v12719_v38  ;;  %v12722_v48 = vpop.f32.mrf.mxu2 }
 0x8b3   :  { %v5643_v16 = vadd.f32 %v12722_v48, %v4508_v61  ;;  %v12726_v9 = vpop.f32.mrf.mxu1  ;;  %v12729_v46 = vpop.eup %8738  ;;  %6461 = vmatpush.msra.mxu2 %v12293_v33 }
 0x8b4   :  { %v8741_v52 = vpop.eup %8740  ;;  %5889 = vmatmul.f32.gmra.mxu2 %v12729_v46 }
 0x8b5   :  { %8742 = vtanh.f32 %v5643_v16  ;;  %6462 = vmatpush.msra.mxu2 %v12312_v27  ;;  %v1822_v27 = vadd.f32 %v12610_v36, %v1821_v55 }
 0x8b6   :  { %4659 = vmatmul.f32.gmra.mxu1 %v15588_v60  ;;  %5166 = vmatmul.f32.gmra.mxu3 %v8741_v52  ;;  %8744 = vtanh.f32 %v3980_v59  ;;  %v1827_v58 = vpop.f32.mrf.mxu0  ;;  %v4514_v59 = vadd.f32 %v12686_v22, %v12206_v56  ;;  %v15592_v56 = vld [vmem:[#allocation52_spill] sm:$0xff] }
 0x8b7   :  { %6463 = vmatpush.msra.mxu2 %v12321_v50  ;;  %v4097_v60 = vadd.f32 %v12166_v5, %v1822_v27  ;;  %v4517_v5 = vadd.f32 %v12686_v22, %v12219_v30  ;;  %v15594_v30 = vld [vmem:[#allocation53_spill] sm:$0xff] }
 0x8b9   :  { %v12737_v28 = vpop.f32.mrf.mxu3  ;;  %6464 = vmatpush.msra.mxu2 %v12332_v12 }
 0x8ba   :  { %15589 = vst [vmem:[#allocation50_spill] sm:$0xff] %v12737_v28  ;;  %v12740_v17 = vpop.f32.mrf.mxu2 }
 0x8bb   :  { %v5644_v61 = vadd.f32 %v12740_v17, %v4511_v39  ;;  %v12744_v16 = vpop.f32.mrf.mxu1  ;;  %v12747_v37 = vpop.eup %8742  ;;  %6465 = vmatpush.msra.mxu2 %v12339_v32  ;;  %v1825_v32 = vadd.f32 %v12610_v36, %v1824_v13 }
 0x8bc   :  { %v8745_v33 = vpop.eup %8744  ;;  %5892 = vmatmul.f32.gmra.mxu2 %v12747_v37 }
 0x8bd   :  { %8746 = vtanh.f32 %v5644_v61  ;;  %6466 = vmatpush.msra.mxu2 %v12347_v53 }
 0x8be   :  { %4662 = vmatmul.f32.gmra.mxu1 %v15590_v21  ;;  %5169 = vmatmul.f32.gmra.mxu3 %v8745_v33  ;;  %8748 = vtanh.f32 %v4096_v18  ;;  %v1830_v53 = vpop.f32.mrf.mxu0  ;;  %v4098_v33 = vadd.f32 %v12179_v54, %v1825_v32  ;;  %v4520_v54 = vadd.f32 %v12686_v22, %v12232_v42  ;;  %v15596_v42 = vld [vmem:[#allocation54_spill] sm:$0xff] }
 0x8bf   :  { %6467 = vmatpush.msra.mxu2 %v12356_v10 }
 0x8c1   :  { %v12755_v52 = vpop.f32.mrf.mxu3  ;;  %6468 = vmatpush.msra.mxu2 %v12369_v44  ;;  %v1828_v44 = vadd.f32 %v12610_v36, %v1827_v58 }
 0x8c2   :  { %15591 = vst [vmem:[#allocation51_spill] sm:$0xff] %v12755_v52  ;;  %v12758_v50 = vpop.f32.mrf.mxu2 }
 0x8c3   :  { %v5645_v8 = vadd.f32 %v12758_v50, %v4514_v59  ;;  %v12762_v39 = vpop.f32.mrf.mxu1  ;;  %v12765_v55 = vpop.eup %8746  ;;  %6469 = vmatpush.msra.mxu2 %v12377_v6 }
 0x8c4   :  { %v8749_v12 = vpop.eup %8748  ;;  %5895 = vmatmul.f32.gmra.mxu2 %v12765_v55 }
 0x8c5   :  { %8750 = vtanh.f32 %v5645_v8  ;;  %6470 = vmatpush.msra.mxu2 %v12385_v24 }
 0x8c6   :  { %4665 = vmatmul.f32.gmra.mxu1 %v15592_v56  ;;  %5172 = vmatmul.f32.gmra.mxu3 %v8749_v12  ;;  %8752 = vtanh.f32 %v4097_v60  ;;  %v4099_v60 = vadd.f32 %v12199_v26, %v1828_v44  ;;  %v1833_v24 = vpop.f32.mrf.mxu0  ;;  %v4523_v26 = vadd.f32 %v12686_v22, %v12247_v29 }
 0x8c7   :  { %6471 = vmatpush.msra.mxu2 %v12396_v14  ;;  %v1831_v14 = vadd.f32 %v12610_v36, %v1830_v53  ;;  %v1834_v29 = vadd.f32 %v12610_v36, %v1833_v24  ;;  %v15600_v24 = vld [vmem:[#allocation56_spill] sm:$0xff] }
 0x8c9   :  { %v12773_v18 = vpop.f32.mrf.mxu3  ;;  %6472 = vmatpush.msra.mxu2 %v12405_v15 }
 0x8ca   :  { %15593 = vst [vmem:[#allocation52_spill] sm:$0xff] %v12773_v18  ;;  %v12776_v61 = vpop.f32.mrf.mxu2 }
 0x8cb   :  { %v5646_v21 = vadd.f32 %v12776_v61, %v4517_v5  ;;  %v12780_v27 = vpop.f32.mrf.mxu1  ;;  %v12783_v13 = vpop.eup %8750  ;;  %6473 = vmatpush.msra.mxu2 %v12413_v20  ;;  %v4100_v5 = vadd.f32 %v12212_v51, %v1831_v14  ;;  %v15598_v20 = vld [vmem:[#allocation55_spill] sm:$0xff]  ;;  %v4526_v51 = vadd.f32 %v12686_v22, %v12267_v31 }
 0x8cc   :  { %v8753_v10 = vpop.eup %8752  ;;  %5898 = vmatmul.f32.gmra.mxu2 %v12783_v13 }
 0x8cd   :  { %8754 = vtanh.f32 %v5646_v21 }
 0x8ce   :  { %4668 = vmatmul.f32.gmra.mxu1 %v15594_v30  ;;  %5175 = vmatmul.f32.gmra.mxu3 %v8753_v10  ;;  %8756 = vtanh.f32 %v4098_v33  ;;  %v1836_v53 = vpop.f32.mrf.mxu0 }
 0x8cf   :  { %v1837_v31 = vadd.f32 %v12610_v36, %v1836_v53  ;;  %v15603_v53 = vld [vmem:[#allocation57_spill] sm:$0xff] }
 0x8d1   :  { %v12791_v59 = vpop.f32.mrf.mxu3 }
 0x8d2   :  { %15595 = vst [vmem:[#allocation53_spill] sm:$0xff] %v12791_v59  ;;  %v12794_v6 = vpop.f32.mrf.mxu2 }
 0x8d3   :  { %v5647_v8 = vadd.f32 %v12794_v6, %v4520_v54  ;;  %v12798_v12 = vpop.f32.mrf.mxu1  ;;  %v12801_v58 = vpop.eup %8754 }
 0x8d4   :  { %v8757_v56 = vpop.eup %8756  ;;  %5901 = vmatmul.f32.gmra.mxu2 %v12801_v58 }
 0x8d5   :  { %8758 = vtanh.f32 %v5647_v8 }
 0x8d6   :  { %4671 = vmatmul.f32.gmra.mxu1 %v15596_v42  ;;  %5178 = vmatmul.f32.gmra.mxu3 %v8757_v56  ;;  %8760 = vtanh.f32 %v4099_v60  ;;  %v4101_v60 = vadd.f32 %v12225_v19, %v1834_v29  ;;  %v4529_v19 = vadd.f32 %v12686_v22, %v12279_v35 }
 0x8d9   :  { %v12809_v32 = vpop.f32.mrf.mxu3 }
 0x8da   :  { %15597 = vst [vmem:[#allocation54_spill] sm:$0xff] %v12809_v32  ;;  %v12811_v15 = vpop.f32.mrf.mxu2 }
 0x8db   :  { %v5648_v33 = vadd.f32 %v12811_v15, %v4523_v26  ;;  %v12815_v21 = vpop.f32.mrf.mxu1  ;;  %v12817_v10 = vpop.eup %8758 }
 0x8dc   :  { %v8761_v30 = vpop.eup %8760  ;;  %5904 = vmatmul.f32.gmra.mxu2 %v12817_v10  ;;  %v1839_v26 = vpop.f32.mrf.mxu0 }
 0x8dd   :  { %8762 = vtanh.f32 %v5648_v33  ;;  %v1840_v35 = vadd.f32 %v12610_v36, %v1839_v26  ;;  %v15607_v26 = vld [vmem:[#allocation58_spill] sm:$0xff] }
 0x8de   :  { %4674 = vmatmul.f32.gmra.mxu1 %v15598_v20  ;;  %5181 = vmatmul.f32.gmra.mxu3 %v8761_v30  ;;  %8764 = vtanh.f32 %v4100_v5  ;;  %v15602_v30 = vld [vmem:[#allocation16_spill] sm:$0xff] }
 0x8df   :  { %v4102_v20 = vadd.f32 %v15602_v30, %v1837_v31 }
 0x8e1   :  { %v12824_v44 = vpop.f32.mrf.mxu3 }
 0x8e2   :  { %15599 = vst [vmem:[#allocation55_spill] sm:$0xff] %v12824_v44  ;;  %v12826_v54 = vpop.f32.mrf.mxu2 }
 0x8e3   :  { %v5649_v8 = vadd.f32 %v12826_v54, %v4526_v51  ;;  %v12830_v56 = vpop.f32.mrf.mxu1  ;;  %v12832_v42 = vpop.eup %8762 }
 0x8e4   :  { %v8765_v14 = vpop.eup %8764  ;;  %5907 = vmatmul.f32.gmra.mxu2 %v12832_v42 }
 0x8e5   :  { %8766 = vtanh.f32 %v5649_v8 }
 0x8e6   :  { %4677 = vmatmul.f32.gmra.mxu1 %v15600_v24  ;;  %5184 = vmatmul.f32.gmra.mxu3 %v8765_v14  ;;  %8768 = vtanh.f32 %v4101_v60  ;;  %v15604_v60 = vld [vmem:[#allocation154_spill] sm:$0xff] }
 0x8e7   :  { %v4532_v24 = vadd.f32 %v12686_v22, %v15604_v60 }
 0x8e9   :  { %v12839_v5 = vpop.f32.mrf.mxu3 }
 0x8ea   :  { %15601 = vst [vmem:[#allocation56_spill] sm:$0xff] %v12839_v5  ;;  %v12841_v33 = vpop.f32.mrf.mxu2  ;;  %v15606_v5 = vld [vmem:[#allocation17_spill] sm:$0xff] }
 0x8eb   :  { %v5650_v29 = vadd.f32 %v12841_v33, %v4529_v19  ;;  %v12845_v51 = vpop.f32.mrf.mxu1  ;;  %v12847_v8 = vpop.eup %8766  ;;  %v4103_v44 = vadd.f32 %v15606_v5, %v1840_v35 }
 0x8ec   :  { %v8769_v14 = vpop.eup %8768  ;;  %5910 = vmatmul.f32.gmra.mxu2 %v12847_v8  ;;  %v1842_v19 = vpop.f32.mrf.mxu0 }
 0x8ed   :  { %8770 = vtanh.f32 %v5650_v29 }
 0x8ee   :  { %4680 = vmatmul.f32.gmra.mxu1 %v15603_v53  ;;  %5187 = vmatmul.f32.gmra.mxu3 %v8769_v14  ;;  %8772 = vtanh.f32 %v4102_v20  ;;  %v1843_v20 = vadd.f32 %v12610_v36, %v1842_v19  ;;  %v15608_v53 = vld [vmem:[#allocation21_spill] sm:$0xff] }
 0x8ef   :  { %v4535_v60 = vadd.f32 %v12686_v22, %v15608_v53  ;;  %v15612_v53 = vld [vmem:[#allocation157_spill] sm:$0xff] }
 0x8f1   :  { %v12854_v31 = vpop.f32.mrf.mxu3 }
 0x8f2   :  { %15605 = vst [vmem:[#allocation16_spill] sm:$0xff] %v12854_v31  ;;  %v12856_v30 = vpop.f32.mrf.mxu2 }
 0x8f3   :  { %v5651_v32 = vadd.f32 %v12856_v30, %v4532_v24  ;;  %v12860_v59 = vpop.f32.mrf.mxu1  ;;  %v12862_v29 = vpop.eup %8770  ;;  %v15610_v24 = vld [vmem:[#allocation152_spill] sm:$0xff] }
 0x8f4   :  { %v8773_v14 = vpop.eup %8772  ;;  %5913 = vmatmul.f32.gmra.mxu2 %v12862_v29  ;;  %v4104_v31 = vadd.f32 %v15610_v24, %v1843_v20  ;;  %v4538_v20 = vadd.f32 %v12686_v22, %v15612_v53  ;;  %v15617_v53 = vld [vmem:[#allocation24_spill] sm:$0xff] }
 0x8f5   :  { %8774 = vtanh.f32 %v5651_v32 }
 0x8f6   :  { %4683 = vmatmul.f32.gmra.mxu1 %v15607_v26  ;;  %5190 = vmatmul.f32.gmra.mxu3 %v8773_v14  ;;  %8776 = vtanh.f32 %v4103_v44  ;;  %v1845_v26 = vpop.f32.mrf.mxu0  ;;  %v15611_v44 = vld [vmem:[#allocation59_spill] sm:$0xff] }
 0x8f7   :  { %v1846_v19 = vadd.f32 %v12610_v36, %v1845_v26  ;;  %v15616_v26 = vld [vmem:[#allocation8_spill] sm:$0xff] }
 0x8f9   :  { %v12869_v5 = vpop.f32.mrf.mxu3 }
 0x8fa   :  { %15609 = vst [vmem:[#allocation57_spill] sm:$0xff] %v12869_v5  ;;  %v12871_v35 = vpop.f32.mrf.mxu2  ;;  %v15614_v5 = vld [vmem:[#allocation153_spill] sm:$0xff] }
 0x8fb   :  { %v5652_v18 = vadd.f32 %v12871_v35, %v4535_v60  ;;  %v12875_v52 = vpop.f32.mrf.mxu1  ;;  %v12877_v32 = vpop.eup %8774  ;;  %v4105_v28 = vadd.f32 %v15614_v5, %v1846_v19  ;;  %v4541_v5 = vadd.f32 %v12686_v22, %v15617_v53  ;;  %v15623_v53 = vld [vmem:[#allocation160_spill] sm:$0xff] }
 0x8fc   :  { %v8777_v14 = vpop.eup %8776  ;;  %5916 = vmatmul.f32.gmra.mxu2 %v12877_v32 }
 0x8fd   :  { %8778 = vtanh.f32 %v5652_v18 }
 0x8fe   :  { %4686 = vmatmul.f32.gmra.mxu1 %v15611_v44  ;;  %5193 = vmatmul.f32.gmra.mxu3 %v8777_v14  ;;  %8780 = vtanh.f32 %v4104_v31  ;;  %v15615_v31 = vld [vmem:[#allocation60_spill] sm:$0xff]  ;;  %v1849_v14 = vadd.f32 %v12610_v36, %v15616_v26 }
 0x901   :  { %v12884_v24 = vpop.f32.mrf.mxu3 }
 0x902   :  { %15613 = vst [vmem:[#allocation154_spill] sm:$0xff] %v12884_v24  ;;  %v12886_v60 = vpop.f32.mrf.mxu2  ;;  %v15619_v24 = vld [vmem:[#allocation20_spill] sm:$0xff] }
 0x903   :  { %v5653_v38 = vadd.f32 %v12886_v60, %v4538_v20  ;;  %v12890_v43 = vpop.f32.mrf.mxu1  ;;  %v12892_v18 = vpop.eup %8778  ;;  %v4106_v4 = vadd.f32 %v15619_v24, %v1849_v14  ;;  %v4544_v24 = vadd.f32 %v12686_v22, %v15623_v53  ;;  %v15629_v53 = vld [vmem:[#allocation27_spill] sm:$0xff] }
 0x904   :  { %v8781_v44 = vpop.eup %8780  ;;  %5919 = vmatmul.f32.gmra.mxu2 %v12892_v18 }
 0x905   :  { %8782 = vtanh.f32 %v5653_v38 }
 0x906   :  { %4689 = vmatmul.f32.gmra.mxu1 %v15615_v31  ;;  %5196 = vmatmul.f32.gmra.mxu3 %v8781_v44  ;;  %8784 = vtanh.f32 %v4105_v28  ;;  %v15621_v28 = vld [vmem:[#allocation61_spill] sm:$0xff] }
 0x907   :  { %v15622_v31 = vld [vmem:[#allocation9_spill] sm:$0xff] }
 0x908   :  { %v1852_v26 = vadd.f32 %v12610_v36, %v15622_v31 }
 0x909   :  { %v12900_v19 = vpop.f32.mrf.mxu3 }
 0x90a   :  { %15618 = vst [vmem:[#allocation17_spill] sm:$0xff] %v12900_v19  ;;  %v12902_v20 = vpop.f32.mrf.mxu2  ;;  %v15625_v19 = vld [vmem:[#allocation156_spill] sm:$0xff] }
 0x90b   :  { %v5654_v63 = vadd.f32 %v12902_v20, %v4541_v5  ;;  %v12906_v34 = vpop.f32.mrf.mxu1  ;;  %v12908_v38 = vpop.eup %8782 }
 0x90c   :  { %15620 = vst [vmem:[#allocation58_spill] sm:$0xff] %v12906_v34  ;;  %v8785_v44 = vpop.eup %8784  ;;  %5922 = vmatmul.f32.gmra.mxu2 %v12908_v38  ;;  %v4107_v34 = vadd.f32 %v15625_v19, %v1852_v26  ;;  %v4547_v19 = vadd.f32 %v12686_v22, %v15629_v53 }
 0x90d   :  { %8786 = vtanh.f32 %v5654_v63 }
 0x90e   :  { %4692 = vmatmul.f32.gmra.mxu1 %v15621_v28  ;;  %5199 = vmatmul.f32.gmra.mxu3 %v8785_v44  ;;  %8788 = vtanh.f32 %v4106_v4  ;;  %v15627_v4 = vld [vmem:[#allocation62_spill] sm:$0xff] }
 0x90f   :  { %v15628_v28 = vld [vmem:[#allocation10_spill] sm:$0xff] }
 0x910   :  { %v1855_v31 = vadd.f32 %v12610_v36, %v15628_v28 }
 0x911   :  { %v12916_v14 = vpop.f32.mrf.mxu3 }
 0x912   :  { %15624 = vst [vmem:[#allocation21_spill] sm:$0xff] %v12916_v14  ;;  %v12918_v5 = vpop.f32.mrf.mxu2  ;;  %v15631_v14 = vld [vmem:[#allocation23_spill] sm:$0xff] }
 0x913   :  { %v5655_v23 = vadd.f32 %v12918_v5, %v4544_v24  ;;  %v12922_v1 = vpop.f32.mrf.mxu1  ;;  %v12924_v63 = vpop.eup %8786 }
 0x914   :  { %15626 = vst [vmem:[#allocation152_spill] sm:$0xff] %v12922_v1  ;;  %v8789_v44 = vpop.eup %8788  ;;  %5925 = vmatmul.f32.gmra.mxu2 %v12924_v63  ;;  %v4108_v1 = vadd.f32 %v15631_v14, %v1855_v31  ;;  %v15636_v14 = vld [vmem:[#allocation159_spill] sm:$0xff] }
 0x915   :  { %8790 = vtanh.f32 %v5655_v23 }
 0x916   :  { %4695 = vmatmul.f32.gmra.mxu1 %v15627_v4  ;;  %5202 = vmatmul.f32.gmra.mxu3 %v8789_v44  ;;  %8792 = vtanh.f32 %v4107_v34  ;;  %v15633_v34 = vld [vmem:[#allocation63_spill] sm:$0xff] }
 0x917   :  { %v15634_v4 = vld [vmem:[#allocation11_spill] sm:$0xff] }
 0x918   :  { %v1858_v28 = vadd.f32 %v12610_v36, %v15634_v4 }
 0x919   :  { %v12932_v26 = vpop.f32.mrf.mxu3 }
 0x91a   :  { %15630 = vst [vmem:[#allocation59_spill] sm:$0xff] %v12932_v26  ;;  %v12934_v24 = vpop.f32.mrf.mxu2  ;;  %v4109_v31 = vadd.f32 %v15636_v14, %v1858_v28  ;;  %v15643_v14 = vld [vmem:[#allocation65_spill] sm:$0xff] }
 0x91b   :  { %v5656_v7 = vadd.f32 %v12934_v24, %v4547_v19  ;;  %v12938_v11 = vpop.f32.mrf.mxu1  ;;  %v12940_v23 = vpop.eup %8790 }
 0x91c   :  { %15632 = vst [vmem:[#allocation157_spill] sm:$0xff] %v12938_v11  ;;  %v8793_v44 = vpop.eup %8792  ;;  %5928 = vmatmul.f32.gmra.mxu2 %v12940_v23 }
 0x91d   :  { %8794 = vtanh.f32 %v5656_v7  ;;  %v15639_v7 = vld [vmem:[#allocation12_spill] sm:$0xff] }
 0x91e   :  { %4698 = vmatmul.f32.gmra.mxu1 %v15633_v34  ;;  %5205 = vmatmul.f32.gmra.mxu3 %v8793_v44  ;;  %8796 = vtanh.f32 %v4108_v1  ;;  %v1861_v1 = vadd.f32 %v12610_v36, %v15639_v7  ;;  %v15641_v34 = vld [vmem:[#allocation26_spill] sm:$0xff] }
 0x91f   :  { %8798 = vtanh.f32 %v4109_v31 }
 0x920   :  { %v4110_v4 = vadd.f32 %v15641_v34, %v1861_v1 }
 0x921   :  { %v12946_v53 = vpop.f32.mrf.mxu3 }
 0x922   :  { %15635 = vst [vmem:[#allocation153_spill] sm:$0xff] %v12946_v53  ;;  %8800 = vtanh.f32 %v4110_v4  ;;  %v12975_v4 = vld [vmem:[%s15096_s7] ss:$0 sm:$0xff] }
 0x923   :  { %v12949_v19 = vpop.f32.mrf.mxu1  ;;  %v12951_v26 = vpop.eup %8794 }
 0x924   :  { %15637 = vst [vmem:[#allocation60_spill] sm:$0xff] %v12949_v19  ;;  %v8797_v11 = vpop.eup %8796  ;;  %5931 = vmatmul.f32.gmra.mxu2 %v12951_v26  ;;  %v4598_v19 = vadd.f32 %v12686_v22, %v12660_v57  ;;  %v12980_v57 = vld [vmem:[%s15096_s7 + $0x1] ss:$0 sm:$0xff] }
 0x925   :  { %v8799_v28 = vpop.eup %8798 }
 0x926   :  { %4701 = vmatmul.f32.gmra.mxu1 %v15638_v62  ;;  %5208 = vmatmul.f32.gmra.mxu3 %v8797_v11  ;;  %v15644_v11 = vld [vmem:[#allocation13_spill] sm:$0xff] }
 0x927   :  { %v1864_v31 = vadd.f32 %v12610_v36, %v15644_v11  ;;  %v15648_v36 = vld [vmem:[#allocation66_spill] sm:$0xff] }
 0x928   :  { %v8801_v34 = vpop.eup %8800 }
 0x929   :  { %v12957_v44 = vpop.f32.mrf.mxu3 }
 0x92a   :  { %15640 = vst [vmem:[#allocation8_spill] sm:$0xff] %v12957_v44  ;;  %v15646_v44 = vld [vmem:[#allocation162_spill] sm:$0xff] }
 0x92b   :  { %v12960_v53 = vpop.f32.mrf.mxu1  ;;  %v4111_v45 = vadd.f32 %v15646_v44, %v1864_v31  ;;  %v5673_v31 = vmul.f32 %v12711_v41, %v12975_v4  ;;  %v13006_v41 = vld [vmem:[%s15094_s5 + $0x70] sm:$0xff] }
 0x92c   :  { %15642 = vst [vmem:[#allocation24_spill] sm:$0xff] %v12960_v53 }
 0x92e   :  { %4704 = vmatmul.f32.gmra.mxu1 %v15643_v14  ;;  %5211 = vmatmul.f32.gmra.mxu3 %v8799_v28  ;;  %v15649_v28 = vld [vmem:[#allocation168_spill] sm:$0xff] }
 0x92f   :  { %v5887_v62 = vpop.f32.mrf.mxu2  ;;  %v4454_v14 = vadd.f32 %v12686_v22, %v15649_v28 }
 0x930   :  { %v5935_v25 = vadd.f32 %v5887_v62, %v4598_v19 }
 0x931   :  { %v12967_v7 = vpop.f32.mrf.mxu3 }
 0x932   :  { %15645 = vst [vmem:[#allocation20_spill] sm:$0xff] %v12967_v7  ;;  %8802 = vtanh.f32 %v5935_v25  ;;  %v4601_v25 = vadd.f32 %v12686_v22, %v12670_v2  ;;  %v12998_v2 = vld [vmem:[%s15094_s5 + $0x78] sm:$0xff] }
 0x933   :  { %v12970_v1 = vpop.f32.mrf.mxu1  ;;  %8804 = vtanh.f32 %v4111_v45 }
 0x934   :  { %15647 = vst [vmem:[#allocation61_spill] sm:$0xff] %v12970_v1 }
 0x936   :  { %4707 = vmatmul.f32.gmra.mxu1 %v15648_v36  ;;  %5214 = vmatmul.f32.gmra.mxu3 %v8801_v34  ;;  %v5559_v34 = vadd.f32 %v12693_v47, %v4454_v14  ;;  %v15652_v47 = vld [vmem:[#allocation67_spill] sm:$0xff]  ;;  %v15653_v14 = vld [vmem:[#allocation169_spill] sm:$0xff] }
 0x937   :  { %v5890_v19 = vpop.f32.mrf.mxu2 }
 0x938   :  { %v8803_v44 = vpop.eup %8802  ;;  %v5936_v62 = vadd.f32 %v5890_v19, %v4601_v25  ;;  %v4604_v19 = vadd.f32 %v12686_v22, %v12680_v0  ;;  %v13025_v0 = vld [vmem:[%s15094_s5 + $0x60] sm:$0xff] }
 0x939   :  { %v12987_v11 = vpop.f32.mrf.mxu3  ;;  %v5967_v7 = vmul.f32 %v8803_v44, %v12980_v57  ;;  %6180 = vmatmul.f32.vlgmr.msrb.gmra.mxu2 %v8803_v44  ;;  %v8805_v25 = vpop.eup %8804 }
 0x93a   :  { %15650 = vst [vmem:[#allocation9_spill] sm:$0xff] %v12987_v11  ;;  %8806 = vtanh.f32 %v5936_v62  ;;  %6752 = vmatpush.msrb.mxu2 %v12998_v2  ;;  %v4457_v62 = vadd.f32 %v12686_v22, %v15653_v14 }
 0x93b   :  { %v12993_v45 = vpop.f32.mrf.mxu1  ;;  %v13001_v36 = vadd.f32 %v5967_v7, %v5673_v31  ;;  %8808 = vtanh.f32 %v5559_v34  ;;  %v13015_v7 = vld [vmem:[%s15094_s5 + $0x68] sm:$0xff]  ;;  %v5674_v34 = vmul.f32 %v12729_v46, %v12975_v4  ;;  %v13047_v46 = vld [vmem:[%s15094_s5 + $0x50] sm:$0xff] }
 0x93c   :  { %15651 = vst [vmem:[#allocation160_spill] sm:$0xff] %v12993_v45  ;;  %6753 = vmatpush.msrb.mxu2 %v13006_v41 }
 0x93e   :  { %4710 = vmatmul.f32.gmra.mxu1 %v15652_v47  ;;  %5217 = vmatmul.f32.gmra.mxu3 %v8805_v25  ;;  %v5560_v47 = vadd.f32 %v12705_v3, %v4457_v62  ;;  %v15657_v3 = vld [vmem:[#allocation68_spill] sm:$0xff] }
 0x93f   :  { %6754 = vmatpush.msrb.mxu2 %v13015_v7  ;;  %v5893_v44 = vpop.f32.mrf.mxu2  ;;  %v13058_v62 = vld [vmem:[%s15094_s5 + $0x48] sm:$0xff] }
 0x940   :  { %v8807_v28 = vpop.eup %8806  ;;  %v5937_v31 = vadd.f32 %v5893_v44, %v4604_v19  ;;  %v13037_v19 = vld [vmem:[%s15094_s5 + $0x58] sm:$0xff] }
 0x941   :  { %v13020_v11 = vpop.f32.mrf.mxu3  ;;  %6755 = vmatpush.msrb.mxu2 %v13025_v0  ;;  %v5968_v25 = vmul.f32 %v8807_v28, %v12980_v57 }
 0x942   :  { %15654 = vst [vmem:[#allocation156_spill] sm:$0xff] %v13020_v11  ;;  %6183 = vmatmul.f32.gmra.mxu2 %v8807_v28  ;;  %8810 = vtanh.f32 %v5937_v31  ;;  %v13042_v11 = vpop.eup %8808  ;;  %v4607_v28 = vadd.f32 %v12686_v22, %v12697_v49  ;;  %v13069_v49 = vld [vmem:[%s15094_s5 + $0x40] sm:$0xff] }
 0x943   :  { %v13032_v14 = vpop.f32.mrf.mxu1  ;;  %6756 = vmatpush.msrb.mxu2 %v13037_v19  ;;  %v13040_v44 = vadd.f32 %v5968_v25, %v5674_v34  ;;  %15656 = vst [vmem:[#allocation10_spill] sm:$0xff] %v13042_v11  ;;  %8812 = vtanh.f32 %v5560_v47  ;;  %v15658_v25 = vld [vmem:[#allocation170_spill] sm:$0xff]  ;;  %v5675_v47 = vmul.f32 %v12747_v37, %v12975_v4 }
 0x944   :  { %15655 = vst [vmem:[#allocation62_spill] sm:$0xff] %v13032_v14 }
 0x945   :  { %6757 = vmatpush.msrb.mxu2 %v13047_v46 }
 0x946   :  { %4713 = vmatmul.f32.gmra.mxu1 %v15657_v3  ;;  %5739 = vmatmul.f32.vlgmr.msra.gmra.mxu3 %v13042_v11  ;;  %v4460_v3 = vadd.f32 %v12686_v22, %v15658_v25 }
 0x947   :  { %6311 = vmatpush.msra.mxu3 %v12998_v2  ;;  %6758 = vmatpush.msrb.mxu2 %v13058_v62  ;;  %v5896_v31 = vpop.f32.mrf.mxu2 }
 0x948   :  { %v8811_v34 = vpop.eup %8810  ;;  %v5938_v14 = vadd.f32 %v5896_v31, %v4607_v28  ;;  %v5561_v25 = vadd.f32 %v12722_v48, %v4460_v3  ;;  %v13082_v31 = vld [vmem:[%s15094_s5 + $0x38] sm:$0xff]  ;;  %v13093_v48 = vld [vmem:[%s15094_s5 + $0x30] sm:$0xff] }
 0x949   :  { %v13063_v45 = vpop.f32.mrf.mxu3  ;;  %6312 = vmatpush.msra.mxu3 %v13006_v41  ;;  %6759 = vmatpush.msrb.mxu2 %v13069_v49  ;;  %v5969_v1 = vmul.f32 %v8811_v34, %v12980_v57  ;;  %15661 = vst [vmem:[#allocation63_spill] sm:$0xff] %v13082_v31  ;;  %v13087_v37 = vpop.eup %8812 }
 0x94a   :  { %15659 = vst [vmem:[#allocation27_spill] sm:$0xff] %v13063_v45  ;;  %6186 = vmatmul.f32.gmra.mxu2 %v8811_v34  ;;  %8814 = vtanh.f32 %v5938_v14  ;;  %v15664_v14 = vld [vmem:[#allocation69_spill] sm:$0xff]  ;;  %v4610_v34 = vadd.f32 %v12686_v22, %v12709_v40  ;;  %v13115_v40 = vld [vmem:[%s15094_s5 + $0x20] sm:$0xff] }
 0x94b   :  { %v13076_v28 = vpop.f32.mrf.mxu1  ;;  %6313 = vmatpush.msra.mxu3 %v13015_v7  ;;  %6760 = vmatpush.msrb.mxu2 %v13082_v31  ;;  %v13085_v45 = vadd.f32 %v5969_v1, %v5675_v47  ;;  %15662 = vst [vmem:[#allocation11_spill] sm:$0xff] %v13087_v37  ;;  %8816 = vtanh.f32 %v5561_v25  ;;  %v13104_v1 = vld [vmem:[%s15094_s5 + $0x28] sm:$0xff]  ;;  %v5676_v25 = vmul.f32 %v12765_v55, %v12975_v4 }
 0x94c   :  { %15660 = vst [vmem:[#allocation23_spill] sm:$0xff] %v13076_v28  ;;  %v15665_v28 = vld [vmem:[#allocation171_spill] sm:$0xff] }
 0x94d   :  { %6314 = vmatpush.msra.mxu3 %v13025_v0  ;;  %15663 = vst [vmem:[#allocation159_spill] sm:$0xff] %v13093_v48  ;;  %6761 = vmatpush.msrb.mxu2 %v13093_v48 }
 0x94e   :  { %4716 = vmatmul.f32.gmra.mxu1 %v15664_v14  ;;  %5742 = vmatmul.f32.gmra.mxu3 %v13087_v37  ;;  %v4463_v14 = vadd.f32 %v12686_v22, %v15665_v28 }
 0x94f   :  { %6315 = vmatpush.msra.mxu3 %v13037_v19  ;;  %6762 = vmatpush.msrb.mxu2 %v13104_v1  ;;  %v5899_v3 = vpop.f32.mrf.mxu2 }
 0x950   :  { %v8815_v47 = vpop.eup %8814  ;;  %v5939_v53 = vadd.f32 %v5899_v3, %v4610_v34  ;;  %v5562_v28 = vadd.f32 %v12740_v17, %v4463_v14  ;;  %v13128_v3 = vld [vmem:[%s15094_s5 + $0x18] sm:$0xff]  ;;  %v13139_v17 = vld [vmem:[%s15094_s5 + $0x10] sm:$0xff] }
 0x951   :  { %v13109_v37 = vpop.f32.mrf.mxu3  ;;  %6316 = vmatpush.msra.mxu3 %v13047_v46  ;;  %6763 = vmatpush.msrb.mxu2 %v13115_v40  ;;  %v5970_v11 = vmul.f32 %v8815_v47, %v12980_v57  ;;  %v13133_v55 = vpop.eup %8816 }
 0x952   :  { %15666 = vst [vmem:[#allocation64_spill] sm:$0xff] %v13109_v37  ;;  %6189 = vmatmul.f32.gmra.mxu2 %v8815_v47  ;;  %8818 = vtanh.f32 %v5939_v53  ;;  %v15670_v53 = vld [vmem:[#allocation70_spill] sm:$0xff]  ;;  %v4613_v47 = vadd.f32 %v12686_v22, %v12726_v9  ;;  %v13161_v9 = vld [vmem:[%s15094_s5] sm:$0xff] }
 0x953   :  { %v13122_v34 = vpop.f32.mrf.mxu1  ;;  %6317 = vmatpush.msra.mxu3 %v13058_v62  ;;  %6764 = vmatpush.msrb.mxu2 %v13128_v3  ;;  %v13131_v37 = vadd.f32 %v5970_v11, %v5676_v25  ;;  %15669 = vst [vmem:[#allocation65_spill] sm:$0xff] %v13133_v55  ;;  %8820 = vtanh.f32 %v5562_v28  ;;  %v13150_v11 = vld [vmem:[%s15094_s5 + $0x8] sm:$0xff]  ;;  %v5677_v28 = vmul.f32 %v12783_v13, %v12975_v4 }
 0x954   :  { %15667 = vst [vmem:[#allocation12_spill] sm:$0xff] %v13122_v34  ;;  %v15671_v34 = vld [vmem:[#allocation172_spill] sm:$0xff]  ;;  %v4616_v13 = vadd.f32 %v12686_v22, %v12744_v16 }
 0x955   :  { %15668 = vst [vmem:[#allocation26_spill] sm:$0xff] %v13131_v37  ;;  %6318 = vmatpush.msra.mxu3 %v13069_v49  ;;  %6765 = vmatpush.msrb.mxu2 %v13139_v17 }
 0x956   :  { %4719 = vmatmul.f32.gmra.mxu1 %v15670_v53  ;;  %5745 = vmatmul.f32.gmra.mxu3 %v13133_v55  ;;  %v4466_v53 = vadd.f32 %v12686_v22, %v15671_v34 }
 0x957   :  { %6319 = vmatpush.msra.mxu3 %v13082_v31  ;;  %6766 = vmatpush.msrb.mxu2 %v13150_v11  ;;  %v5902_v14 = vpop.f32.mrf.mxu2 }
 0x958   :  { %v8819_v25 = vpop.eup %8818  ;;  %v5940_v37 = vadd.f32 %v5902_v14, %v4613_v47  ;;  %v5563_v34 = vadd.f32 %v12758_v50, %v4466_v53 }
 0x959   :  { %v13155_v55 = vpop.f32.mrf.mxu3  ;;  %6320 = vmatpush.msra.mxu3 %v13093_v48  ;;  %6767 = vmatpush.msrb.mxu2 %v13161_v9  ;;  %v5971_v31 = vmul.f32 %v8819_v25, %v12980_v57  ;;  %v15675_v48 = vld [vmem:[#allocation71_spill] sm:$0xff] }
 0x95a   :  { %15672 = vst [vmem:[#allocation13_spill] sm:$0xff] %v13155_v55  ;;  %6192 = vmatmul.f32.gmra.mxu2 %v8819_v25  ;;  %8822 = vtanh.f32 %v5940_v37  ;;  %v13173_v55 = vpop.eup %8820  ;;  %v15676_v25 = vld [vmem:[#allocation173_spill] sm:$0xff] }
 0x95b   :  { %v13168_v47 = vpop.f32.mrf.mxu1  ;;  %6321 = vmatpush.msra.mxu3 %v13104_v1  ;;  %v13171_v14 = vadd.f32 %v5971_v31, %v5677_v28  ;;  %15674 = vst [vmem:[#allocation66_spill] sm:$0xff] %v13173_v55  ;;  %8824 = vtanh.f32 %v5563_v34  ;;  %v4469_v31 = vadd.f32 %v12686_v22, %v15676_v25  ;;  %v15681_v25 = vld [vmem:[#allocation174_spill] sm:$0xff] }
 0x95c   :  { %15673 = vst [vmem:[#allocation162_spill] sm:$0xff] %v13168_v47 }
 0x95d   :  { %6322 = vmatpush.msra.mxu3 %v13115_v40  ;;  %v5564_v16 = vadd.f32 %v12776_v61, %v4469_v31  ;;  %v4472_v31 = vadd.f32 %v12686_v22, %v15681_v25 }
 0x95e   :  { %4722 = vmatmul.f32.gmra.mxu1 %v15675_v48  ;;  %5748 = vmatmul.f32.gmra.mxu3 %v13173_v55  ;;  %v5678_v48 = vmul.f32 %v12801_v58, %v12975_v4  ;;  %v4619_v58 = vadd.f32 %v12686_v22, %v12762_v39 }
 0x95f   :  { %6323 = vmatpush.msra.mxu3 %v13128_v3  ;;  %v5905_v50 = vpop.f32.mrf.mxu2 }
 0x960   :  { %v8823_v37 = vpop.eup %8822  ;;  %v5941_v53 = vadd.f32 %v5905_v50, %v4616_v13  ;;  %v15680_v50 = vld [vmem:[#allocation72_spill] sm:$0xff] }
 0x961   :  { %v13183_v28 = vpop.f32.mrf.mxu3  ;;  %6324 = vmatpush.msra.mxu3 %v13139_v17  ;;  %v5972_v47 = vmul.f32 %v8823_v37, %v12980_v57  ;;  %v13195_v13 = vpop.eup %8824 }
 0x962   :  { %15677 = vst [vmem:[#allocation168_spill] sm:$0xff] %v13183_v28  ;;  %6195 = vmatmul.f32.gmra.mxu2 %v8823_v37  ;;  %8826 = vtanh.f32 %v5941_v53 }
 0x963   :  { %v13190_v34 = vpop.f32.mrf.mxu1  ;;  %6325 = vmatpush.msra.mxu3 %v13150_v11  ;;  %v13193_v55 = vadd.f32 %v5972_v47, %v5678_v48  ;;  %15679 = vst [vmem:[#allocation169_spill] sm:$0xff] %v13195_v13  ;;  %8828 = vtanh.f32 %v5564_v16  ;;  %v5679_v48 = vmul.f32 %v12817_v10, %v12975_v4 }
 0x964   :  { %15678 = vst [vmem:[#allocation67_spill] sm:$0xff] %v13190_v34 }
 0x965   :  { %6326 = vmatpush.msra.mxu3 %v13161_v9 }
 0x966   :  { %4725 = vmatmul.f32.gmra.mxu1 %v15680_v50  ;;  %5751 = vmatmul.f32.gmra.mxu3 %v13195_v13  ;;  %v5565_v50 = vadd.f32 %v12794_v6, %v4472_v31  ;;  %v15683_v13 = vld [vmem:[#allocation73_spill] sm:$0xff] }
 0x967   :  { %v5908_v61 = vpop.f32.mrf.mxu2 }
 0x968   :  { %v8827_v37 = vpop.eup %8826  ;;  %v5942_v53 = vadd.f32 %v5908_v61, %v4619_v58  ;;  %v4622_v58 = vadd.f32 %v12686_v22, %v12780_v27 }
 0x969   :  { %v13204_v47 = vpop.f32.mrf.mxu3  ;;  %v5973_v28 = vmul.f32 %v8827_v37, %v12980_v57  ;;  %v13214_v16 = vpop.eup %8828 }
 0x96a   :  { %15682 = vst [vmem:[#allocation68_spill] sm:$0xff] %v13204_v47  ;;  %6198 = vmatmul.f32.gmra.mxu2 %v8827_v37  ;;  %8830 = vtanh.f32 %v5942_v53  ;;  %v15684_v37 = vld [vmem:[#allocation175_spill] sm:$0xff]  ;;  %v15686_v47 = vld [vmem:[#allocation74_spill] sm:$0xff] }
 0x96b   :  { %v13210_v34 = vpop.f32.mrf.mxu1  ;;  %v13212_v39 = vadd.f32 %v5973_v28, %v5679_v48  ;;  %8832 = vtanh.f32 %v5565_v50  ;;  %v4475_v6 = vadd.f32 %v12686_v22, %v15684_v37  ;;  %v5680_v28 = vmul.f32 %v12832_v42, %v12975_v4 }
 0x96e   :  { %4728 = vmatmul.f32.gmra.mxu1 %v15683_v13  ;;  %5754 = vmatmul.f32.gmra.mxu3 %v13214_v16  ;;  %v5566_v13 = vadd.f32 %v12811_v15, %v4475_v6 }
 0x96f   :  { %v5911_v10 = vpop.f32.mrf.mxu2 }
 0x970   :  { %v8831_v61 = vpop.eup %8830  ;;  %v5943_v25 = vadd.f32 %v5911_v10, %v4622_v58  ;;  %v4625_v58 = vadd.f32 %v12686_v22, %v12798_v12 }
 0x971   :  { %v13222_v31 = vpop.f32.mrf.mxu3  ;;  %v5974_v53 = vmul.f32 %v8831_v61, %v12980_v57  ;;  %v13232_v50 = vpop.eup %8832 }
 0x972   :  { %15685 = vst [vmem:[#allocation170_spill] sm:$0xff] %v13222_v31  ;;  %6201 = vmatmul.f32.gmra.mxu2 %v8831_v61  ;;  %8834 = vtanh.f32 %v5943_v25  ;;  %v15687_v61 = vld [vmem:[#allocation176_spill] sm:$0xff]  ;;  %v5681_v25 = vmul.f32 %v12847_v8, %v12975_v4  ;;  %v15689_v31 = vld [vmem:[#allocation75_spill] sm:$0xff] }
 0x973   :  { %v13228_v48 = vpop.f32.mrf.mxu1  ;;  %v13230_v27 = vadd.f32 %v5974_v53, %v5680_v28  ;;  %8836 = vtanh.f32 %v5566_v13  ;;  %v4478_v15 = vadd.f32 %v12686_v22, %v15687_v61 }
 0x976   :  { %4731 = vmatmul.f32.gmra.mxu1 %v15686_v47  ;;  %5757 = vmatmul.f32.gmra.mxu3 %v13232_v50  ;;  %v5567_v47 = vadd.f32 %v12826_v54, %v4478_v15 }
 0x977   :  { %v5914_v42 = vpop.f32.mrf.mxu2 }
 0x978   :  { %v8835_v10 = vpop.eup %8834  ;;  %v5944_v37 = vadd.f32 %v5914_v42, %v4625_v58  ;;  %v4628_v58 = vadd.f32 %v12686_v22, %v12815_v21 }
 0x979   :  { %v13240_v6 = vpop.f32.mrf.mxu3  ;;  %v5975_v28 = vmul.f32 %v8835_v10, %v12980_v57  ;;  %v13250_v13 = vpop.eup %8836 }
 0x97a   :  { %15688 = vst [vmem:[#allocation69_spill] sm:$0xff] %v13240_v6  ;;  %6204 = vmatmul.f32.gmra.mxu2 %v8835_v10  ;;  %8838 = vtanh.f32 %v5944_v37  ;;  %v15690_v10 = vld [vmem:[#allocation177_spill] sm:$0xff]  ;;  %v5682_v37 = vmul.f32 %v12862_v29, %v12975_v4  ;;  %v15693_v6 = vld [vmem:[#allocation76_spill] sm:$0xff] }
 0x97b   :  { %v13246_v53 = vpop.f32.mrf.mxu1  ;;  %v13248_v12 = vadd.f32 %v5975_v28, %v5681_v25  ;;  %8840 = vtanh.f32 %v5567_v47  ;;  %v4481_v54 = vadd.f32 %v12686_v22, %v15690_v10 }
 0x97e   :  { %4734 = vmatmul.f32.gmra.mxu1 %v15689_v31  ;;  %5760 = vmatmul.f32.gmra.mxu3 %v13250_v13  ;;  %v5568_v31 = vadd.f32 %v12841_v33, %v4481_v54 }
 0x97f   :  { %v5917_v8 = vpop.f32.mrf.mxu2 }
 0x980   :  { %v8839_v42 = vpop.eup %8838  ;;  %v5945_v61 = vadd.f32 %v5917_v8, %v4628_v58  ;;  %v4631_v58 = vadd.f32 %v12686_v22, %v12830_v56 }
 0x981   :  { %v13258_v15 = vpop.f32.mrf.mxu3  ;;  %v5976_v25 = vmul.f32 %v8839_v42, %v12980_v57  ;;  %v13268_v47 = vpop.eup %8840 }
 0x982   :  { %15691 = vst [vmem:[#allocation171_spill] sm:$0xff] %v13258_v15  ;;  %6207 = vmatmul.f32.gmra.mxu2 %v8839_v42  ;;  %8842 = vtanh.f32 %v5945_v61  ;;  %v15694_v42 = vld [vmem:[#allocation178_spill] sm:$0xff]  ;;  %v5683_v61 = vmul.f32 %v12877_v32, %v12975_v4  ;;  %v15696_v15 = vld [vmem:[#allocation77_spill] sm:$0xff] }
 0x983   :  { %v13264_v28 = vpop.f32.mrf.mxu1  ;;  %v13266_v21 = vadd.f32 %v5976_v25, %v5682_v37  ;;  %8844 = vtanh.f32 %v5568_v31  ;;  %v4484_v33 = vadd.f32 %v12686_v22, %v15694_v42 }
 0x984   :  { %15692 = vst [vmem:[#allocation70_spill] sm:$0xff] %v13264_v28 }
 0x986   :  { %4737 = vmatmul.f32.gmra.mxu1 %v15693_v6  ;;  %5763 = vmatmul.f32.gmra.mxu3 %v13268_v47  ;;  %v5569_v6 = vadd.f32 %v12856_v30, %v4484_v33 }
 0x987   :  { %v5920_v29 = vpop.f32.mrf.mxu2 }
 0x988   :  { %v8843_v8 = vpop.eup %8842  ;;  %v5946_v10 = vadd.f32 %v5920_v29, %v4631_v58  ;;  %v4634_v58 = vadd.f32 %v12686_v22, %v12845_v51 }
 0x989   :  { %v13276_v54 = vpop.f32.mrf.mxu3  ;;  %v5977_v37 = vmul.f32 %v8843_v8, %v12980_v57  ;;  %v13286_v31 = vpop.eup %8844 }
 0x98a   :  { %15695 = vst [vmem:[#allocation172_spill] sm:$0xff] %v13276_v54  ;;  %6210 = vmatmul.f32.gmra.mxu2 %v8843_v8  ;;  %8846 = vtanh.f32 %v5946_v10  ;;  %v15697_v8 = vld [vmem:[#allocation179_spill] sm:$0xff]  ;;  %v5684_v10 = vmul.f32 %v12892_v18, %v12975_v4  ;;  %v15699_v54 = vld [vmem:[#allocation78_spill] sm:$0xff] }
 0x98b   :  { %v13282_v25 = vpop.f32.mrf.mxu1  ;;  %v13284_v56 = vadd.f32 %v5977_v37, %v5683_v61  ;;  %8848 = vtanh.f32 %v5569_v6  ;;  %v4487_v30 = vadd.f32 %v12686_v22, %v15697_v8  ;;  %v13311_v22 = vld [vmem:[%s15095_s6] ss:$0 sm:$0xff] }
 0x98c   :  { %v4637_v18 = vadd.f32 %v13311_v22, %v12860_v59 }
 0x98e   :  { %4740 = vmatmul.f32.gmra.mxu1 %v15696_v15  ;;  %5766 = vmatmul.f32.gmra.mxu3 %v13286_v31  ;;  %v5570_v15 = vadd.f32 %v12871_v35, %v4487_v30 }
 0x98f   :  { %v5923_v32 = vpop.f32.mrf.mxu2 }
 0x990   :  { %v8847_v29 = vpop.eup %8846  ;;  %v5947_v42 = vadd.f32 %v5923_v32, %v4634_v58  ;;  %v15700_v32 = vld [vmem:[#allocation180_spill] sm:$0xff] }
 0x991   :  { %v13294_v33 = vpop.f32.mrf.mxu3  ;;  %v5978_v61 = vmul.f32 %v8847_v29, %v12980_v57  ;;  %v13304_v6 = vpop.eup %8848 }
 0x992   :  { %15698 = vst [vmem:[#allocation71_spill] sm:$0xff] %v13294_v33  ;;  %6213 = vmatmul.f32.gmra.mxu2 %v8847_v29  ;;  %8850 = vtanh.f32 %v5947_v42  ;;  %v4490_v29 = vadd.f32 %v13311_v22, %v15700_v32  ;;  %v15702_v33 = vld [vmem:[#allocation79_spill] sm:$0xff] }
 0x993   :  { %v13300_v37 = vpop.f32.mrf.mxu1  ;;  %v13302_v51 = vadd.f32 %v5978_v61, %v5684_v10  ;;  %8852 = vtanh.f32 %v5570_v15 }
 0x994   :  { %v5571_v10 = vadd.f32 %v12886_v60, %v4490_v29 }
 0x996   :  { %4743 = vmatmul.f32.gmra.mxu1 %v15699_v54  ;;  %5769 = vmatmul.f32.gmra.mxu3 %v13304_v6  ;;  %v5685_v54 = vmul.f32 %v12908_v38, %v12975_v4 }
 0x997   :  { %v5926_v35 = vpop.f32.mrf.mxu2 }
 0x998   :  { %v8851_v58 = vpop.eup %8850  ;;  %v5948_v8 = vadd.f32 %v5926_v35, %v4637_v18  ;;  %v4640_v18 = vadd.f32 %v13311_v22, %v12875_v52 }
 0x999   :  { %v13317_v30 = vpop.f32.mrf.mxu3  ;;  %v5979_v42 = vmul.f32 %v8851_v58, %v12980_v57  ;;  %v13327_v15 = vpop.eup %8852 }
 0x99a   :  { %15701 = vst [vmem:[#allocation173_spill] sm:$0xff] %v13317_v30  ;;  %6216 = vmatmul.f32.gmra.mxu2 %v8851_v58  ;;  %8854 = vtanh.f32 %v5948_v8  ;;  %v15703_v58 = vld [vmem:[#allocation181_spill] sm:$0xff]  ;;  %v5686_v8 = vmul.f32 %v12924_v63, %v12975_v4  ;;  %v15705_v30 = vld [vmem:[#allocation80_spill] sm:$0xff] }
 0x99b   :  { %v13323_v61 = vpop.f32.mrf.mxu1  ;;  %v13325_v59 = vadd.f32 %v5979_v42, %v5685_v54  ;;  %8856 = vtanh.f32 %v5571_v10  ;;  %v4493_v60 = vadd.f32 %v13311_v22, %v15703_v58 }
 0x99e   :  { %4746 = vmatmul.f32.gmra.mxu1 %v15702_v33  ;;  %5772 = vmatmul.f32.gmra.mxu3 %v13327_v15  ;;  %v5572_v33 = vadd.f32 %v12902_v20, %v4493_v60 }
 0x99f   :  { %v5929_v38 = vpop.f32.mrf.mxu2 }
 0x9a0   :  { %v8855_v35 = vpop.eup %8854  ;;  %v5949_v32 = vadd.f32 %v5929_v38, %v4640_v18  ;;  %v4643_v18 = vadd.f32 %v13311_v22, %v12890_v43 }
 0x9a1   :  { %v13335_v29 = vpop.f32.mrf.mxu3  ;;  %v5980_v54 = vmul.f32 %v8855_v35, %v12980_v57  ;;  %v13345_v10 = vpop.eup %8856 }
 0x9a2   :  { %15704 = vst [vmem:[#allocation72_spill] sm:$0xff] %v13335_v29  ;;  %6219 = vmatmul.f32.gmra.mxu2 %v8855_v35  ;;  %8858 = vtanh.f32 %v5949_v32  ;;  %v15706_v35 = vld [vmem:[#allocation182_spill] sm:$0xff]  ;;  %v5687_v32 = vmul.f32 %v12940_v23, %v12975_v4  ;;  %v15708_v29 = vld [vmem:[#allocation81_spill] sm:$0xff] }
 0x9a3   :  { %v13341_v42 = vpop.f32.mrf.mxu1  ;;  %v13343_v52 = vadd.f32 %v5980_v54, %v5686_v8  ;;  %8860 = vtanh.f32 %v5572_v33  ;;  %v4496_v20 = vadd.f32 %v13311_v22, %v15706_v35 }
 0x9a6   :  { %4749 = vmatmul.f32.gmra.mxu1 %v15705_v30  ;;  %5775 = vmatmul.f32.gmra.mxu3 %v13345_v10  ;;  %v5573_v30 = vadd.f32 %v12918_v5, %v4496_v20  ;;  %v5688_v5 = vmul.f32 %v12951_v26, %v12975_v4  ;;  %v4694_v26 = vadd.f32 %v13311_v22, %v13282_v25 }
 0x9a7   :  { %v5932_v63 = vpop.f32.mrf.mxu2  ;;  %v4697_v25 = vadd.f32 %v13311_v22, %v13300_v37 }
 0x9a8   :  { %v8859_v38 = vpop.eup %8858  ;;  %v5950_v58 = vadd.f32 %v5932_v63, %v4643_v18  ;;  %v15709_v63 = vld [vmem:[#allocation183_spill] sm:$0xff] }
 0x9a9   :  { %v13353_v60 = vpop.f32.mrf.mxu3  ;;  %v5981_v8 = vmul.f32 %v8859_v38, %v12980_v57  ;;  %v13363_v33 = vpop.eup %8860  ;;  %v4499_v23 = vadd.f32 %v13311_v22, %v15709_v63 }
 0x9aa   :  { %15707 = vst [vmem:[#allocation174_spill] sm:$0xff] %v13353_v60  ;;  %6222 = vmatmul.f32.gmra.mxu2 %v8859_v38  ;;  %8862 = vtanh.f32 %v5950_v58 }
 0x9ab   :  { %v13359_v54 = vpop.f32.mrf.mxu1  ;;  %v13361_v43 = vadd.f32 %v5981_v8, %v5687_v32  ;;  %8864 = vtanh.f32 %v5573_v30  ;;  %v5574_v20 = vadd.f32 %v12934_v24, %v4499_v23  ;;  %v15712_v8 = vld [vmem:[#allocation82_spill] sm:$0xff] }
 0x9ad   :  { %8866 = vtanh.f32 %v5574_v20 }
 0x9ae   :  { %4752 = vmatmul.f32.gmra.mxu1 %v15708_v29  ;;  %5778 = vmatmul.f32.gmra.mxu3 %v13363_v33 }
 0x9b0   :  { %v8863_v18 = vpop.eup %8862 }
 0x9b1   :  { %v13369_v35 = vpop.f32.mrf.mxu3  ;;  %v5982_v38 = vmul.f32 %v8863_v18, %v12980_v57  ;;  %v13379_v32 = vpop.eup %8864 }
 0x9b2   :  { %15710 = vst [vmem:[#allocation73_spill] sm:$0xff] %v13369_v35  ;;  %6225 = vmatmul.f32.gmra.mxu2 %v8863_v18  ;;  %v15715_v18 = vld [vmem:[#allocation83_spill] sm:$0xff] }
 0x9b3   :  { %v13375_v58 = vpop.f32.mrf.mxu1  ;;  %v13377_v29 = vadd.f32 %v5982_v38, %v5688_v5  ;;  %15711 = vst [vmem:[#allocation175_spill] sm:$0xff] %v13379_v32  ;;  %v13389_v4 = vpop.eup %8866  ;;  %v13398_v5 = vld [vmem:[%s15096_s7 + $0x2] ss:$0 sm:$0xff] }
 0x9b4   :  { %15714 = vst [vmem:[#allocation176_spill] sm:$0xff] %v13389_v4 }
 0x9b6   :  { %4755 = vmatmul.f32.gmra.mxu1 %v15712_v8  ;;  %5781 = vmatmul.f32.gmra.mxu3 %v13379_v32 }
 0x9b9   :  { %v13383_v30 = vpop.f32.mrf.mxu3 }
 0x9ba   :  { %15713 = vst [vmem:[#allocation74_spill] sm:$0xff] %v13383_v30 }
 0x9bb   :  { %v13385_v63 = vpop.f32.mrf.mxu1 }
 0x9bc   :  { %v6181_v24 = vpop.f32.mrf.mxu2 }
 0x9bd   :  { %v6229_v57 = vadd.f32 %v6181_v24, %v4694_v26  ;;  %v15717_v24 = vld [vmem:[#allocation84_spill] sm:$0xff] }
 0x9be   :  { %4758 = vmatmul.f32.gmra.mxu1 %v15715_v18  ;;  %5784 = vmatmul.f32.gmra.mxu3 %v13389_v4 }
 0x9bf   :  { %8868 = vtanh.f32 %v6229_v57  ;;  %v15718_v57 = vld [vmem:[#allocation163_spill] sm:$0xff] }
 0x9c1   :  { %v13393_v23 = vpop.f32.mrf.mxu3 }
 0x9c2   :  { %15716 = vst [vmem:[#allocation75_spill] sm:$0xff] %v13393_v23  ;;  %v4550_v23 = vadd.f32 %v13311_v22, %v15718_v57 }
 0x9c3   :  { %v13400_v38 = vpop.f32.mrf.mxu1 }
 0x9c5   :  { %v6184_v20 = vpop.f32.mrf.mxu2  ;;  %v8869_v8 = vpop.eup %8868 }
 0x9c6   :  { %v6230_v26 = vadd.f32 %v6184_v20, %v4697_v25  ;;  %4761 = vmatmul.f32.gmra.mxu1 %v15717_v24  ;;  %v6261_v18 = vmul.f32 %v8869_v8, %v13398_v5  ;;  %6474 = vmatmul.f32.vlgmr.msra.gmra.mxu2 %v8869_v8  ;;  %v4700_v25 = vadd.f32 %v13311_v22, %v13323_v61  ;;  %v15719_v24 = vld [vmem:[#allocation85_spill] sm:$0xff] }
 0x9c7   :  { %7046 = vmatpush.msra.mxu2 %v12998_v2 }
 0x9c8   :  { %8870 = vtanh.f32 %v6230_v26  ;;  %v13410_v35 = vadd.f32 %v6261_v18, %v13001_v36 }
 0x9c9   :  { %v5740_v30 = vpop.f32.mrf.mxu3  ;;  %7047 = vmatpush.msra.mxu2 %v13006_v41 }
 0x9ca   :  { %v5788_v60 = vadd.f32 %v5740_v30, %v4550_v23  ;;  %v15720_v30 = vld [vmem:[#allocation184_spill] sm:$0xff] }
 0x9cb   :  { %v13413_v37 = vpop.f32.mrf.mxu1  ;;  %7048 = vmatpush.msra.mxu2 %v13015_v7  ;;  %v4553_v23 = vadd.f32 %v13311_v22, %v15720_v30  ;;  %v15722_v30 = vld [vmem:[#allocation185_spill] sm:$0xff] }
 0x9cc   :  { %8872 = vtanh.f32 %v5788_v60 }
 0x9cd   :  { %v6187_v20 = vpop.f32.mrf.mxu2  ;;  %7049 = vmatpush.msra.mxu2 %v13025_v0 }
 0x9ce   :  { %v8871_v8 = vpop.eup %8870  ;;  %v6231_v26 = vadd.f32 %v6187_v20, %v4700_v25  ;;  %4764 = vmatmul.f32.gmra.mxu1 %v15719_v24  ;;  %v4703_v20 = vadd.f32 %v13311_v22, %v13341_v42  ;;  %v15721_v24 = vld [vmem:[#allocation86_spill] sm:$0xff] }
 0x9cf   :  { %v6262_v36 = vmul.f32 %v8871_v8, %v13398_v5  ;;  %6477 = vmatmul.f32.gmra.mxu2 %v8871_v8 }
 0x9d0   :  { %8874 = vtanh.f32 %v6231_v26  ;;  %7050 = vmatpush.msra.mxu2 %v13037_v19 }
 0x9d1   :  { %v13425_v61 = vadd.f32 %v6262_v36, %v13040_v44  ;;  %v5743_v60 = vpop.f32.mrf.mxu3 }
 0x9d2   :  { %v13427_v18 = vpop.eup %8872  ;;  %v5789_v57 = vadd.f32 %v5743_v60, %v4553_v23  ;;  %7051 = vmatpush.msra.mxu2 %v13047_v46  ;;  %v4556_v23 = vadd.f32 %v13311_v22, %v15722_v30 }
 0x9d3   :  { %v13430_v25 = vpop.f32.mrf.mxu1  ;;  %6033 = vmatmul.f32.vlgmr.msrb.gmra.mxu3 %v13427_v18 }
 0x9d4   :  { %8876 = vtanh.f32 %v5789_v57  ;;  %6605 = vmatpush.msrb.mxu3 %v12998_v2  ;;  %7052 = vmatpush.msra.mxu2 %v13058_v62 }
 0x9d5   :  { %v6190_v44 = vpop.f32.mrf.mxu2 }
 0x9d6   :  { %v8875_v8 = vpop.eup %8874  ;;  %v6232_v26 = vadd.f32 %v6190_v44, %v4703_v20  ;;  %4767 = vmatmul.f32.gmra.mxu1 %v15721_v24  ;;  %6606 = vmatpush.msrb.mxu3 %v13006_v41  ;;  %v15723_v41 = vld [vmem:[#allocation63_spill] sm:$0xff] }
 0x9d7   :  { %v6263_v36 = vmul.f32 %v8875_v8, %v13398_v5  ;;  %6480 = vmatmul.f32.gmra.mxu2 %v8875_v8  ;;  %v15725_v24 = vld [vmem:[#allocation87_spill] sm:$0xff] }
 0x9d8   :  { %8878 = vtanh.f32 %v6232_v26  ;;  %6607 = vmatpush.msrb.mxu3 %v13015_v7  ;;  %7053 = vmatpush.msra.mxu2 %v13069_v49  ;;  %v4706_v7 = vadd.f32 %v13311_v22, %v13359_v54 }
 0x9d9   :  { %v13445_v2 = vadd.f32 %v6263_v36, %v13085_v45  ;;  %v5746_v42 = vpop.f32.mrf.mxu3  ;;  %v15724_v45 = vld [vmem:[#allocation159_spill] sm:$0xff] }
 0x9da   :  { %v13447_v60 = vpop.eup %8876  ;;  %v5790_v57 = vadd.f32 %v5746_v42, %v4556_v23  ;;  %6608 = vmatpush.msrb.mxu3 %v13025_v0  ;;  %7054 = vmatpush.msra.mxu2 %v15723_v41  ;;  %v15726_v36 = vld [vmem:[#allocation187_spill] sm:$0xff] }
 0x9db   :  { %v13451_v20 = vpop.f32.mrf.mxu1  ;;  %6036 = vmatmul.f32.gmra.mxu3 %v13447_v60  ;;  %v4559_v30 = vadd.f32 %v13311_v22, %v15726_v36 }
 0x9dc   :  { %8880 = vtanh.f32 %v5790_v57  ;;  %6609 = vmatpush.msrb.mxu3 %v13037_v19  ;;  %7055 = vmatpush.msra.mxu2 %v15724_v45  ;;  %v15727_v19 = vld [vmem:[#allocation26_spill] sm:$0xff] }
 0x9dd   :  { %v6193_v44 = vpop.f32.mrf.mxu2 }
 0x9de   :  { %v8879_v8 = vpop.eup %8878  ;;  %v6233_v26 = vadd.f32 %v6193_v44, %v4706_v7  ;;  %4770 = vmatmul.f32.gmra.mxu1 %v15725_v24  ;;  %6610 = vmatpush.msrb.mxu3 %v13047_v46  ;;  %v15729_v24 = vld [vmem:[#allocation189_spill] sm:$0xff] }
 0x9df   :  { %v6264_v0 = vmul.f32 %v8879_v8, %v13398_v5  ;;  %6483 = vmatmul.f32.gmra.mxu2 %v8879_v8 }
 0x9e0   :  { %8882 = vtanh.f32 %v6233_v26  ;;  %6611 = vmatpush.msrb.mxu3 %v13058_v62  ;;  %7056 = vmatpush.msra.mxu2 %v13104_v1  ;;  %v4709_v62 = vadd.f32 %v13311_v22, %v13375_v58  ;;  %v15728_v26 = vld [vmem:[#allocation88_spill] sm:$0xff] }
 0x9e1   :  { %v13466_v54 = vadd.f32 %v6264_v0, %v15727_v19  ;;  %v5749_v23 = vpop.f32.mrf.mxu3  ;;  %v4562_v0 = vadd.f32 %v13311_v22, %v15729_v24 }
 0x9e2   :  { %v13468_v42 = vpop.eup %8880  ;;  %v5791_v57 = vadd.f32 %v5749_v23, %v4559_v30  ;;  %6612 = vmatpush.msrb.mxu3 %v13069_v49  ;;  %7057 = vmatpush.msra.mxu2 %v13115_v40 }
 0x9e3   :  { %v13472_v46 = vpop.f32.mrf.mxu1  ;;  %6039 = vmatmul.f32.gmra.mxu3 %v13468_v42 }
 0x9e4   :  { %8884 = vtanh.f32 %v5791_v57  ;;  %6613 = vmatpush.msrb.mxu3 %v15723_v41  ;;  %7058 = vmatpush.msra.mxu2 %v13128_v3  ;;  %v15730_v57 = vld [vmem:[#allocation89_spill] sm:$0xff] }
 0x9e5   :  { %v6196_v7 = vpop.f32.mrf.mxu2 }
 0x9e6   :  { %v8883_v44 = vpop.eup %8882  ;;  %v6234_v8 = vadd.f32 %v6196_v7, %v4709_v62  ;;  %4773 = vmatmul.f32.gmra.mxu1 %v15728_v26  ;;  %6614 = vmatpush.msrb.mxu3 %v15724_v45  ;;  %v15731_v62 = vld [vmem:[#allocation191_spill] sm:$0xff] }
 0x9e7   :  { %v6265_v49 = vmul.f32 %v8883_v44, %v13398_v5  ;;  %6486 = vmatmul.f32.gmra.mxu2 %v8883_v44  ;;  %v4565_v7 = vadd.f32 %v13311_v22, %v15731_v62 }
 0x9e8   :  { %8886 = vtanh.f32 %v6234_v8  ;;  %6615 = vmatpush.msrb.mxu3 %v13104_v1  ;;  %7059 = vmatpush.msra.mxu2 %v13139_v17  ;;  %v4712_v1 = vadd.f32 %v13311_v22, %v13385_v63 }
 0x9e9   :  { %v13487_v58 = vadd.f32 %v6265_v49, %v13171_v14  ;;  %v5752_v41 = vpop.f32.mrf.mxu3 }
 0x9ea   :  { %v13489_v36 = vpop.eup %8884  ;;  %v5792_v30 = vadd.f32 %v5752_v41, %v4562_v0  ;;  %6616 = vmatpush.msrb.mxu3 %v13115_v40  ;;  %7060 = vmatpush.msra.mxu2 %v13150_v11  ;;  %v15732_v0 = vld [vmem:[#allocation90_spill] sm:$0xff]  ;;  %v15733_v41 = vld [vmem:[#allocation193_spill] sm:$0xff] }
 0x9eb   :  { %v13493_v45 = vpop.f32.mrf.mxu1  ;;  %6042 = vmatmul.f32.gmra.mxu3 %v13489_v36 }
 0x9ec   :  { %8888 = vtanh.f32 %v5792_v30  ;;  %6617 = vmatpush.msrb.mxu3 %v13128_v3  ;;  %7061 = vmatpush.msra.mxu2 %v13161_v9  ;;  %v4568_v30 = vadd.f32 %v13311_v22, %v15733_v41 }
 0x9ed   :  { %v6199_v14 = vpop.f32.mrf.mxu2 }
 0x9ee   :  { %v8887_v19 = vpop.eup %8886  ;;  %v6235_v23 = vadd.f32 %v6199_v14, %v4712_v1  ;;  %4776 = vmatmul.f32.gmra.mxu1 %v15730_v57  ;;  %6618 = vmatpush.msrb.mxu3 %v13139_v17  ;;  %v4715_v17 = vadd.f32 %v13311_v22, %v13400_v38 }
 0x9ef   :  { %v6266_v40 = vmul.f32 %v8887_v19, %v13398_v5  ;;  %6489 = vmatmul.f32.gmra.mxu2 %v8887_v19 }
 0x9f0   :  { %8890 = vtanh.f32 %v6235_v23  ;;  %6619 = vmatpush.msrb.mxu3 %v13150_v11  ;;  %v4718_v23 = vadd.f32 %v13311_v22, %v13413_v37 }
 0x9f1   :  { %v13507_v3 = vadd.f32 %v6266_v40, %v13193_v55  ;;  %v5755_v63 = vpop.f32.mrf.mxu3 }
 0x9f2   :  { %v13509_v44 = vpop.eup %8888  ;;  %v5793_v8 = vadd.f32 %v5755_v63, %v4565_v7  ;;  %6620 = vmatpush.msrb.mxu3 %v13161_v9  ;;  %v15734_v7 = vld [vmem:[#allocation91_spill] sm:$0xff] }
 0x9f3   :  { %v13512_v26 = vpop.f32.mrf.mxu1  ;;  %6045 = vmatmul.f32.gmra.mxu3 %v13509_v44  ;;  %v15735_v63 = vld [vmem:[#allocation195_spill] sm:$0xff] }
 0x9f4   :  { %8892 = vtanh.f32 %v5793_v8  ;;  %v4571_v8 = vadd.f32 %v13311_v22, %v15735_v63 }
 0x9f5   :  { %v6202_v49 = vpop.f32.mrf.mxu2 }
 0x9f6   :  { %v8891_v24 = vpop.eup %8890  ;;  %v6236_v11 = vadd.f32 %v6202_v49, %v4715_v17  ;;  %4779 = vmatmul.f32.gmra.mxu1 %v15732_v0  ;;  %v4721_v0 = vadd.f32 %v13311_v22, %v13430_v25 }
 0x9f7   :  { %v6267_v55 = vmul.f32 %v8891_v24, %v13398_v5  ;;  %6492 = vmatmul.f32.gmra.mxu2 %v8891_v24 }
 0x9f8   :  { %8894 = vtanh.f32 %v6236_v11 }
 0x9f9   :  { %v13522_v9 = vadd.f32 %v6267_v55, %v13212_v39  ;;  %v5758_v1 = vpop.f32.mrf.mxu3 }
 0x9fa   :  { %v13524_v14 = vpop.eup %8892  ;;  %v5794_v38 = vadd.f32 %v5758_v1, %v4568_v30  ;;  %v15737_v1 = vld [vmem:[#allocation92_spill] sm:$0xff] }
 0x9fb   :  { %v13526_v19 = vpop.f32.mrf.mxu1  ;;  %6048 = vmatmul.f32.gmra.mxu3 %v13524_v14 }
 0x9fc   :  { %8896 = vtanh.f32 %v5794_v38  ;;  %v15738_v38 = vld [vmem:[#allocation197_spill] sm:$0xff] }
 0x9fd   :  { %v6205_v57 = vpop.f32.mrf.mxu2 }
 0x9fe   :  { %v8895_v40 = vpop.eup %8894  ;;  %v6237_v62 = vadd.f32 %v6205_v57, %v4718_v23  ;;  %4782 = vmatmul.f32.gmra.mxu1 %v15734_v7  ;;  %v4574_v23 = vadd.f32 %v13311_v22, %v15738_v38  ;;  %v4727_v38 = vadd.f32 %v13311_v22, %v13472_v46 }
 0x9ff   :  { %v6268_v39 = vmul.f32 %v8895_v40, %v13398_v5  ;;  %6495 = vmatmul.f32.gmra.mxu2 %v8895_v40 }
 0xa00   :  { %8898 = vtanh.f32 %v6237_v62 }
 0xa01   :  { %v13536_v17 = vadd.f32 %v6268_v39, %v13230_v27  ;;  %v5761_v49 = vpop.f32.mrf.mxu3  ;;  %v4724_v39 = vadd.f32 %v13311_v22, %v13451_v20 }
 0xa02   :  { %v13538_v24 = vpop.eup %8896  ;;  %v5795_v37 = vadd.f32 %v5761_v49, %v4571_v8 }
 0xa03   :  { %15736 = vst [vmem:[#allocation177_spill] sm:$0xff] %v13536_v17  ;;  %v13540_v11 = vpop.f32.mrf.mxu1  ;;  %6051 = vmatmul.f32.gmra.mxu3 %v13538_v24 }
 0xa04   :  { %8900 = vtanh.f32 %v5795_v37  ;;  %v15741_v37 = vld [vmem:[#allocation93_spill] sm:$0xff] }
 0xa05   :  { %v6208_v55 = vpop.f32.mrf.mxu2 }
 0xa06   :  { %v8899_v41 = vpop.eup %8898  ;;  %v6238_v30 = vadd.f32 %v6208_v55, %v4721_v0  ;;  %4785 = vmatmul.f32.gmra.mxu1 %v15737_v1  ;;  %v15742_v0 = vld [vmem:[#allocation199_spill] sm:$0xff] }
 0xa07   :  { %v6269_v27 = vmul.f32 %v8899_v41, %v13398_v5  ;;  %6498 = vmatmul.f32.gmra.mxu2 %v8899_v41  ;;  %v4577_v55 = vadd.f32 %v13311_v22, %v15742_v0 }
 0xa08   :  { %8902 = vtanh.f32 %v6238_v30 }
 0xa09   :  { %v13550_v57 = vadd.f32 %v6269_v27, %v13248_v12  ;;  %v5764_v40 = vpop.f32.mrf.mxu3 }
 0xa0a   :  { %v13552_v62 = vpop.eup %8900  ;;  %v5796_v25 = vadd.f32 %v5764_v40, %v4574_v23 }
 0xa0b   :  { %15739 = vst [vmem:[#allocation76_spill] sm:$0xff] %v13550_v57  ;;  %v13554_v7 = vpop.f32.mrf.mxu1  ;;  %6054 = vmatmul.f32.gmra.mxu3 %v13552_v62 }
 0xa0c   :  { %15740 = vst [vmem:[#allocation178_spill] sm:$0xff] %v13554_v7  ;;  %8904 = vtanh.f32 %v5796_v25 }
 0xa0d   :  { %v6211_v63 = vpop.f32.mrf.mxu2 }
 0xa0e   :  { %v8903_v8 = vpop.eup %8902  ;;  %v6239_v49 = vadd.f32 %v6211_v63, %v4724_v39  ;;  %4788 = vmatmul.f32.gmra.mxu1 %v15741_v37  ;;  %v15745_v39 = vld [vmem:[#allocation94_spill] sm:$0xff]  ;;  %v15746_v63 = vld [vmem:[#allocation201_spill] sm:$0xff] }
 0xa0f   :  { %v6270_v12 = vmul.f32 %v8903_v8, %v13398_v5  ;;  %6501 = vmatmul.f32.gmra.mxu2 %v8903_v8  ;;  %v4580_v8 = vadd.f32 %v13311_v22, %v15746_v63 }
 0xa10   :  { %8906 = vtanh.f32 %v6239_v49 }
 0xa11   :  { %v13564_v41 = vadd.f32 %v6270_v12, %v13266_v21  ;;  %v5767_v30 = vpop.f32.mrf.mxu3 }
 0xa12   :  { %v13566_v1 = vpop.eup %8904  ;;  %v5797_v20 = vadd.f32 %v5767_v30, %v4577_v55  ;;  %v4730_v55 = vadd.f32 %v13311_v22, %v13493_v45 }
 0xa13   :  { %15743 = vst [vmem:[#allocation77_spill] sm:$0xff] %v13564_v41  ;;  %v13568_v27 = vpop.f32.mrf.mxu1  ;;  %6057 = vmatmul.f32.gmra.mxu3 %v13566_v1 }
 0xa14   :  { %15744 = vst [vmem:[#allocation179_spill] sm:$0xff] %v13568_v27  ;;  %8908 = vtanh.f32 %v5797_v20 }
 0xa15   :  { %v6214_v23 = vpop.f32.mrf.mxu2 }
 0xa16   :  { %v8907_v40 = vpop.eup %8906  ;;  %v6240_v25 = vadd.f32 %v6214_v23, %v4727_v38  ;;  %4791 = vmatmul.f32.gmra.mxu1 %v15745_v39  ;;  %v15749_v23 = vld [vmem:[#allocation95_spill] sm:$0xff] }
 0xa17   :  { %v6271_v21 = vmul.f32 %v8907_v40, %v13398_v5  ;;  %6504 = vmatmul.f32.gmra.mxu2 %v8907_v40  ;;  %v15750_v40 = vld [vmem:[#allocation203_spill] sm:$0xff] }
 0xa18   :  { %8910 = vtanh.f32 %v6240_v25  ;;  %v4583_v25 = vadd.f32 %v13311_v22, %v15750_v40 }
 0xa19   :  { %v13578_v49 = vadd.f32 %v6271_v21, %v13284_v56  ;;  %v5770_v37 = vpop.f32.mrf.mxu3 }
 0xa1a   :  { %v13580_v12 = vpop.eup %8908  ;;  %v5798_v46 = vadd.f32 %v5770_v37, %v4580_v8  ;;  %v4733_v37 = vadd.f32 %v13311_v22, %v13512_v26 }
 0xa1b   :  { %15747 = vst [vmem:[#allocation78_spill] sm:$0xff] %v13578_v49  ;;  %v13582_v0 = vpop.f32.mrf.mxu1  ;;  %6060 = vmatmul.f32.gmra.mxu3 %v13580_v12 }
 0xa1c   :  { %15748 = vst [vmem:[#allocation180_spill] sm:$0xff] %v13582_v0  ;;  %8912 = vtanh.f32 %v5798_v46 }
 0xa1d   :  { %v6217_v30 = vpop.f32.mrf.mxu2 }
 0xa1e   :  { %v8911_v20 = vpop.eup %8910  ;;  %v6241_v38 = vadd.f32 %v6217_v30, %v4730_v55  ;;  %4794 = vmatmul.f32.gmra.mxu1 %v15749_v23 }
 0xa1f   :  { %v6272_v56 = vmul.f32 %v8911_v20, %v13398_v5  ;;  %6507 = vmatmul.f32.gmra.mxu2 %v8911_v20  ;;  %v15753_v20 = vld [vmem:[#allocation96_spill] sm:$0xff] }
 0xa20   :  { %8914 = vtanh.f32 %v6241_v38  ;;  %v15754_v38 = vld [vmem:[#allocation205_spill] sm:$0xff] }
 0xa21   :  { %v13592_v39 = vadd.f32 %v6272_v56, %v13302_v51  ;;  %v5773_v21 = vpop.f32.mrf.mxu3  ;;  %v4586_v23 = vadd.f32 %v13311_v22, %v15754_v38 }
 0xa22   :  { %v13594_v63 = vpop.eup %8912  ;;  %v5799_v45 = vadd.f32 %v5773_v21, %v4583_v25 }
 0xa23   :  { %15751 = vst [vmem:[#allocation79_spill] sm:$0xff] %v13592_v39  ;;  %v13596_v8 = vpop.f32.mrf.mxu1  ;;  %6063 = vmatmul.f32.gmra.mxu3 %v13594_v63 }
 0xa24   :  { %15752 = vst [vmem:[#allocation181_spill] sm:$0xff] %v13596_v8  ;;  %8916 = vtanh.f32 %v5799_v45  ;;  %v4736_v45 = vadd.f32 %v13311_v22, %v13526_v19 }
 0xa25   :  { %v6220_v46 = vpop.f32.mrf.mxu2 }
 0xa26   :  { %v8915_v55 = vpop.eup %8914  ;;  %v6242_v30 = vadd.f32 %v6220_v46, %v4733_v37  ;;  %4797 = vmatmul.f32.gmra.mxu1 %v15753_v20  ;;  %v15757_v20 = vld [vmem:[#allocation97_spill] sm:$0xff] }
 0xa27   :  { %v6273_v51 = vmul.f32 %v8915_v55, %v13398_v5  ;;  %6510 = vmatmul.f32.gmra.mxu2 %v8915_v55 }
 0xa28   :  { %8918 = vtanh.f32 %v6242_v30  ;;  %v15758_v30 = vld [vmem:[#allocation207_spill] sm:$0xff] }
 0xa29   :  { %v13606_v56 = vadd.f32 %v6273_v51, %v13325_v59  ;;  %v5776_v40 = vpop.f32.mrf.mxu3  ;;  %v4589_v51 = vadd.f32 %v13311_v22, %v15758_v30  ;;  %v15761_v30 = vld [vmem:[#allocation98_spill] sm:$0xff] }
 0xa2a   :  { %v13608_v25 = vpop.eup %8916  ;;  %v5800_v26 = vadd.f32 %v5776_v40, %v4586_v23 }
 0xa2b   :  { %15755 = vst [vmem:[#allocation80_spill] sm:$0xff] %v13606_v56  ;;  %v13610_v21 = vpop.f32.mrf.mxu1  ;;  %6066 = vmatmul.f32.gmra.mxu3 %v13608_v25  ;;  %v15790_v56 = vld [vmem:[#allocation105_spill] sm:$0xff] }
 0xa2c   :  { %15756 = vst [vmem:[#allocation182_spill] sm:$0xff] %v13610_v21  ;;  %8920 = vtanh.f32 %v5800_v26 }
 0xa2d   :  { %v6223_v37 = vpop.f32.mrf.mxu2 }
 0xa2e   :  { %v8919_v46 = vpop.eup %8918  ;;  %v6243_v55 = vadd.f32 %v6223_v37, %v4736_v45  ;;  %4800 = vmatmul.f32.gmra.mxu1 %v15757_v20  ;;  %v4739_v45 = vadd.f32 %v13311_v22, %v13540_v11 }
 0xa2f   :  { %v6274_v59 = vmul.f32 %v8919_v46, %v13398_v5  ;;  %6513 = vmatmul.f32.gmra.mxu2 %v8919_v46 }
 0xa30   :  { %8922 = vtanh.f32 %v6243_v55  ;;  %v15762_v55 = vld [vmem:[#allocation209_spill] sm:$0xff] }
 0xa31   :  { %v13620_v38 = vadd.f32 %v6274_v59, %v13343_v52  ;;  %v5779_v23 = vpop.f32.mrf.mxu3  ;;  %v4592_v59 = vadd.f32 %v13311_v22, %v15762_v55 }
 0xa32   :  { %v13622_v40 = vpop.eup %8920  ;;  %v5801_v19 = vadd.f32 %v5779_v23, %v4589_v51 }
 0xa33   :  { %15759 = vst [vmem:[#allocation81_spill] sm:$0xff] %v13620_v38  ;;  %v13624_v26 = vpop.f32.mrf.mxu1  ;;  %6069 = vmatmul.f32.gmra.mxu3 %v13622_v40 }
 0xa34   :  { %15760 = vst [vmem:[#allocation183_spill] sm:$0xff] %v13624_v26  ;;  %8924 = vtanh.f32 %v5801_v19 }
 0xa35   :  { %v6226_v37 = vpop.f32.mrf.mxu2 }
 0xa36   :  { %v8923_v46 = vpop.eup %8922  ;;  %v6244_v20 = vadd.f32 %v6226_v37, %v4739_v45  ;;  %4803 = vmatmul.f32.gmra.mxu1 %v15761_v30  ;;  %v15765_v37 = vld [vmem:[#allocation99_spill] sm:$0xff] }
 0xa37   :  { %v6275_v52 = vmul.f32 %v8923_v46, %v13398_v5  ;;  %6516 = vmatmul.f32.gmra.mxu2 %v8923_v46  ;;  %v15766_v30 = vld [vmem:[#allocation211_spill] sm:$0xff] }
 0xa38   :  { %8926 = vtanh.f32 %v6244_v20  ;;  %v4595_v20 = vadd.f32 %v13311_v22, %v15766_v30  ;;  %v15773_v30 = vld [vmem:[#allocation101_spill] sm:$0xff] }
 0xa39   :  { %v13634_v51 = vadd.f32 %v6275_v52, %v13361_v43  ;;  %v5782_v23 = vpop.f32.mrf.mxu3 }
 0xa3a   :  { %v13636_v26 = vpop.eup %8924  ;;  %v5802_v11 = vadd.f32 %v5782_v23, %v4592_v59 }
 0xa3b   :  { %15763 = vst [vmem:[#allocation82_spill] sm:$0xff] %v13634_v51  ;;  %v13638_v19 = vpop.f32.mrf.mxu1  ;;  %6072 = vmatmul.f32.gmra.mxu3 %v13636_v26 }
 0xa3c   :  { %15764 = vst [vmem:[#allocation83_spill] sm:$0xff] %v13638_v19  ;;  %8928 = vtanh.f32 %v5802_v11  ;;  %v15770_v11 = vld [vmem:[#allocation100_spill] sm:$0xff] }
 0xa3e   :  { %v8927_v45 = vpop.eup %8926  ;;  %4806 = vmatmul.f32.gmra.mxu1 %v15765_v37 }
 0xa3f   :  { %v6276_v46 = vmul.f32 %v8927_v45, %v13398_v5  ;;  %6519 = vmatmul.f32.gmra.mxu2 %v8927_v45 }
 0xa41   :  { %v13646_v43 = vadd.f32 %v6276_v46, %v13377_v29  ;;  %v5785_v52 = vpop.f32.mrf.mxu3  ;;  %v15775_v46 = vld [vmem:[#allocation58_spill] sm:$0xff] }
 0xa42   :  { %v13648_v55 = vpop.eup %8928  ;;  %v5803_v59 = vadd.f32 %v5785_v52, %v4595_v20  ;;  %v4646_v20 = vadd.f32 %v13311_v22, %v15775_v46  ;;  %v15776_v52 = vld [vmem:[#allocation102_spill] sm:$0xff]  ;;  %v13679_v46 = vld [vmem:[%s15096_s7] ss:$0 sm:$0xff] }
 0xa43   :  { %15767 = vst [vmem:[#allocation84_spill] sm:$0xff] %v13646_v43  ;;  %v13650_v23 = vpop.f32.mrf.mxu1  ;;  %6075 = vmatmul.f32.gmra.mxu3 %v13648_v55  ;;  %v5597_v28 = vmul.f32 %v13679_v46, %v13214_v16 }
 0xa44   :  { %15768 = vst [vmem:[#allocation163_spill] sm:$0xff] %v13648_v55  ;;  %8930 = vtanh.f32 %v5803_v59 }
 0xa45   :  { %15769 = vst [vmem:[#allocation85_spill] sm:$0xff] %v13650_v23 }
 0xa46   :  { %4809 = vmatmul.f32.gmra.mxu1 %v15770_v11  ;;  %v13670_v11 = vld [vmem:[%s15096_s7 + $0x1] ss:$0 sm:$0xff] }
 0xa4a   :  { %v13654_v37 = vpop.eup %8930 }
 0xa4b   :  { %15771 = vst [vmem:[#allocation184_spill] sm:$0xff] %v13654_v37  ;;  %v13656_v45 = vpop.f32.mrf.mxu1  ;;  %6078 = vmatmul.f32.gmra.mxu3 %v13654_v37 }
 0xa4c   :  { %15772 = vst [vmem:[#allocation86_spill] sm:$0xff] %v13656_v45  ;;  %v15778_v45 = vld [vmem:[#allocation152_spill] sm:$0xff] }
 0xa4e   :  { %4812 = vmatmul.f32.gmra.mxu1 %v15773_v30  ;;  %v5821_v30 = vmul.f32 %v13670_v11, %v13427_v18  ;;  %v13688_v18 = vld [vmem:[%s15094_s5 + $0x78] sm:$0xff] }
 0xa53   :  { %v13660_v29 = vpop.f32.mrf.mxu1 }
 0xa54   :  { %15774 = vst [vmem:[#allocation185_spill] sm:$0xff] %v13660_v29  ;;  %v4649_v29 = vadd.f32 %v13311_v22, %v15778_v45 }
 0xa56   :  { %4815 = vmatmul.f32.gmra.mxu1 %v15776_v52  ;;  %v6034_v23 = vpop.f32.mrf.mxu3 }
 0xa57   :  { %v6082_v19 = vadd.f32 %v6034_v23, %v4646_v20  ;;  %v15779_v23 = vld [vmem:[#allocation10_spill] sm:$0xff]  ;;  %v15780_v20 = vld [vmem:[#allocation103_spill] sm:$0xff] }
 0xa59   :  { %8932 = vtanh.f32 %v6082_v19  ;;  %v5592_v19 = vmul.f32 %v13679_v46, %v15779_v23 }
 0xa5b   :  { %v13665_v59 = vpop.f32.mrf.mxu1  ;;  %v5837_v51 = vadd.f32 %v5821_v30, %v5592_v19 }
 0xa5c   :  { %15777 = vst [vmem:[#allocation63_spill] sm:$0xff] %v13665_v59 }
 0xa5e   :  { %4818 = vmatmul.f32.gmra.mxu1 %v15780_v20  ;;  %v6037_v52 = vpop.f32.mrf.mxu3  ;;  %v15785_v20 = vld [vmem:[#allocation104_spill] sm:$0xff] }
 0xa5f   :  { %v8933_v59 = vpop.eup %8932  ;;  %v6083_v43 = vadd.f32 %v6037_v52, %v4649_v29  ;;  %v13698_v29 = vld [vmem:[%s15094_s5 + $0x70] sm:$0xff] }
 0xa60   :  { %v6115_v21 = vmul.f32 %v8933_v59, %v13398_v5  ;;  %6327 = vmatmul.f32.vlgmr.msra.gmra.mxu3 %v8933_v59  ;;  %v15783_v59 = vld [vmem:[#allocation157_spill] sm:$0xff] }
 0xa61   :  { %8934 = vtanh.f32 %v6083_v43  ;;  %6899 = vmatpush.msra.mxu3 %v13688_v18  ;;  %v5822_v43 = vmul.f32 %v13670_v11, %v13447_v60  ;;  %v4652_v30 = vadd.f32 %v13311_v22, %v15783_v59  ;;  %v13717_v60 = vld [vmem:[%s15094_s5 + $0x60] sm:$0xff] }
 0xa62   :  { %v13691_v45 = vadd.f32 %v6115_v21, %v5837_v51  ;;  %v13708_v21 = vld [vmem:[%s15094_s5 + $0x68] sm:$0xff]  ;;  %v15784_v51 = vld [vmem:[#allocation11_spill] sm:$0xff] }
 0xa63   :  { %v13693_v23 = vpop.f32.mrf.mxu1  ;;  %6900 = vmatpush.msra.mxu3 %v13698_v29  ;;  %v5593_v19 = vmul.f32 %v13679_v46, %v15784_v51  ;;  %v13724_v51 = vld [vmem:[%s15094_s5 + $0x58] sm:$0xff] }
 0xa64   :  { %15781 = vst [vmem:[#allocation159_spill] sm:$0xff] %v13691_v45 }
 0xa65   :  { %15782 = vst [vmem:[#allocation87_spill] sm:$0xff] %v13693_v23  ;;  %6901 = vmatpush.msra.mxu3 %v13708_v21  ;;  %v5838_v59 = vadd.f32 %v5822_v43, %v5593_v19  ;;  %v15789_v19 = vld [vmem:[#allocation65_spill] sm:$0xff] }
 0xa66   :  { %4821 = vmatmul.f32.gmra.mxu1 %v15785_v20  ;;  %v6040_v52 = vpop.f32.mrf.mxu3 }
 0xa67   :  { %v8935_v23 = vpop.eup %8934  ;;  %v6084_v38 = vadd.f32 %v6040_v52, %v4652_v30  ;;  %6902 = vmatpush.msra.mxu3 %v13717_v60  ;;  %v13734_v52 = vld [vmem:[%s15094_s5 + $0x50] sm:$0xff] }
 0xa68   :  { %v6116_v8 = vmul.f32 %v8935_v23, %v13398_v5  ;;  %6330 = vmatmul.f32.gmra.mxu3 %v8935_v23  ;;  %v15788_v23 = vld [vmem:[#allocation60_spill] sm:$0xff] }
 0xa69   :  { %8936 = vtanh.f32 %v6084_v38  ;;  %6903 = vmatpush.msra.mxu3 %v13724_v51  ;;  %v5823_v38 = vmul.f32 %v13670_v11, %v13468_v42  ;;  %v4655_v43 = vadd.f32 %v13311_v22, %v15788_v23  ;;  %v13755_v23 = vld [vmem:[%s15094_s5 + $0x40] sm:$0xff] }
 0xa6a   :  { %v13727_v30 = vadd.f32 %v6116_v8, %v5838_v59  ;;  %v13744_v8 = vld [vmem:[%s15094_s5 + $0x48] sm:$0xff]  ;;  %v5594_v59 = vmul.f32 %v13679_v46, %v15789_v19  ;;  %v13762_v19 = vld [vmem:[%s15094_s5 + $0x38] sm:$0xff] }
 0xa6b   :  { %v13729_v20 = vpop.f32.mrf.mxu1  ;;  %6904 = vmatpush.msra.mxu3 %v13734_v52 }
 0xa6c   :  { %15786 = vst [vmem:[#allocation187_spill] sm:$0xff] %v13727_v30  ;;  %v5839_v39 = vadd.f32 %v5823_v38, %v5594_v59  ;;  %v15793_v38 = vld [vmem:[#allocation24_spill] sm:$0xff] }
 0xa6d   :  { %15787 = vst [vmem:[#allocation26_spill] sm:$0xff] %v13729_v20  ;;  %6905 = vmatpush.msra.mxu3 %v13744_v8  ;;  %v13749_v20 = vpop.f32.mrf.mxu2  ;;  %v4658_v59 = vadd.f32 %v13311_v22, %v15793_v38 }
 0xa6e   :  { %4824 = vmatmul.f32.gmra.mxu1 %v15790_v56  ;;  %v6043_v30 = vpop.f32.mrf.mxu3 }
 0xa6f   :  { %v8937_v0 = vpop.eup %8936  ;;  %v6085_v42 = vadd.f32 %v6043_v30, %v4655_v43  ;;  %6906 = vmatpush.msra.mxu3 %v13755_v23  ;;  %v13772_v43 = vld [vmem:[%s15094_s5 + $0x30] sm:$0xff] }
 0xa70   :  { %v6117_v45 = vmul.f32 %v8937_v0, %v13398_v5  ;;  %6333 = vmatmul.f32.gmra.mxu3 %v8937_v0  ;;  %v5824_v0 = vmul.f32 %v13670_v11, %v13489_v36  ;;  %v13791_v36 = vld [vmem:[%s15094_s5 + $0x20] sm:$0xff] }
 0xa71   :  { %8938 = vtanh.f32 %v6085_v42  ;;  %6907 = vmatpush.msra.mxu3 %v13762_v19 }
 0xa72   :  { %v13765_v56 = vadd.f32 %v6117_v45, %v5839_v39  ;;  %v13782_v39 = vld [vmem:[%s15094_s5 + $0x28] sm:$0xff]  ;;  %v15794_v45 = vld [vmem:[#allocation66_spill] sm:$0xff] }
 0xa73   :  { %v13767_v30 = vpop.f32.mrf.mxu1  ;;  %6908 = vmatpush.msra.mxu3 %v13772_v43  ;;  %v5595_v42 = vmul.f32 %v13679_v46, %v15794_v45 }
 0xa74   :  { %15791 = vst [vmem:[#allocation88_spill] sm:$0xff] %v13765_v56 }
 0xa75   :  { %15792 = vst [vmem:[#allocation189_spill] sm:$0xff] %v13767_v30  ;;  %6909 = vmatpush.msra.mxu3 %v13782_v39  ;;  %v15795_v30 = vld [vmem:[#allocation106_spill] sm:$0xff]  ;;  %v5840_v38 = vadd.f32 %v5824_v0, %v5595_v42  ;;  %v13794_v7 = vpop.f32.mrf.mxu2  ;;  %v15799_v42 = vld [vmem:[#allocation169_spill] sm:$0xff] }
 0xa76   :  { %4827 = vmatmul.f32.gmra.mxu1 %v15795_v30  ;;  %v6046_v56 = vpop.f32.mrf.mxu3  ;;  %v13800_v30 = vld [vmem:[%s15094_s5 + $0x18] sm:$0xff]  ;;  %v13810_v0 = vld [vmem:[%s15094_s5 + $0x10] sm:$0xff] }
 0xa77   :  { %v8939_v27 = vpop.eup %8938  ;;  %v6086_v49 = vadd.f32 %v6046_v56, %v4658_v59  ;;  %6910 = vmatpush.msra.mxu3 %v13791_v36 }
 0xa78   :  { %v6118_v41 = vmul.f32 %v8939_v27, %v13398_v5  ;;  %6336 = vmatmul.f32.gmra.mxu3 %v8939_v27  ;;  %v5825_v27 = vmul.f32 %v13670_v11, %v13509_v44  ;;  %v13829_v44 = vld [vmem:[%s15094_s5] sm:$0xff] }
 0xa79   :  { %8940 = vtanh.f32 %v6086_v49  ;;  %6911 = vmatpush.msra.mxu3 %v13800_v30  ;;  %v15798_v49 = vld [vmem:[#allocation61_spill] sm:$0xff] }
 0xa7a   :  { %v13803_v56 = vadd.f32 %v6118_v41, %v5840_v38  ;;  %v4661_v45 = vadd.f32 %v13311_v22, %v15798_v49  ;;  %v13820_v41 = vld [vmem:[%s15094_s5 + $0x8] sm:$0xff]  ;;  %v5596_v38 = vmul.f32 %v13679_v46, %v15799_v42 }
 0xa7b   :  { %v13805_v59 = vpop.f32.mrf.mxu1  ;;  %6912 = vmatpush.msra.mxu3 %v13810_v0 }
 0xa7c   :  { %15796 = vst [vmem:[#allocation89_spill] sm:$0xff] %v13803_v56  ;;  %v5841_v49 = vadd.f32 %v5825_v27, %v5596_v38  ;;  %v15804_v27 = vld [vmem:[#allocation108_spill] sm:$0xff] }
 0xa7d   :  { %15797 = vst [vmem:[#allocation191_spill] sm:$0xff] %v13805_v59  ;;  %6913 = vmatpush.msra.mxu3 %v13820_v41  ;;  %v15800_v59 = vld [vmem:[#allocation107_spill] sm:$0xff]  ;;  %v13833_v17 = vpop.f32.mrf.mxu2 }
 0xa7e   :  { %4830 = vmatmul.f32.gmra.mxu1 %v15800_v59  ;;  %v6049_v56 = vpop.f32.mrf.mxu3 }
 0xa7f   :  { %v8941_v57 = vpop.eup %8940  ;;  %v6087_v4 = vadd.f32 %v6049_v56, %v4661_v45  ;;  %6914 = vmatpush.msra.mxu3 %v13829_v44  ;;  %v5826_v56 = vmul.f32 %v13670_v11, %v13524_v14  ;;  %v15803_v45 = vld [vmem:[#allocation160_spill] sm:$0xff]  ;;  %v5827_v14 = vmul.f32 %v13670_v11, %v13538_v24 }
 0xa80   :  { %v6119_v37 = vmul.f32 %v8941_v57, %v13398_v5  ;;  %6339 = vmatmul.f32.gmra.mxu3 %v8941_v57  ;;  %v4664_v32 = vadd.f32 %v13311_v22, %v15803_v45 }
 0xa81   :  { %8942 = vtanh.f32 %v6087_v4  ;;  %v5842_v55 = vadd.f32 %v5826_v56, %v5597_v28  ;;  %v5598_v28 = vmul.f32 %v13679_v46, %v13232_v50  ;;  %v15806_v56 = vld [vmem:[#allocation109_spill] sm:$0xff]  ;;  %v13866_v50 = vld [vmem:[%s15096_s7 + $0x3] ss:$0 sm:$0xff] }
 0xa82   :  { %v13835_v42 = vadd.f32 %v6119_v37, %v5841_v49 }
 0xa83   :  { %v13837_v59 = vpop.f32.mrf.mxu1 }
 0xa84   :  { %15801 = vst [vmem:[#allocation90_spill] sm:$0xff] %v13835_v42  ;;  %v15805_v42 = vld [vmem:[#allocation62_spill] sm:$0xff] }
 0xa85   :  { %15802 = vst [vmem:[#allocation193_spill] sm:$0xff] %v13837_v59  ;;  %v13851_v45 = vpop.f32.mrf.mxu2 }
 0xa86   :  { %4833 = vmatmul.f32.gmra.mxu1 %v15804_v27  ;;  %v6052_v38 = vpop.f32.mrf.mxu3  ;;  %v4667_v27 = vadd.f32 %v13311_v22, %v15805_v42 }
 0xa87   :  { %v8943_v57 = vpop.eup %8942  ;;  %v6088_v4 = vadd.f32 %v6052_v38, %v4664_v32 }
 0xa88   :  { %v6120_v37 = vmul.f32 %v8943_v57, %v13398_v5  ;;  %6342 = vmatmul.f32.gmra.mxu3 %v8943_v57 }
 0xa89   :  { %8944 = vtanh.f32 %v6088_v4  ;;  %v5843_v4 = vadd.f32 %v5827_v14, %v5598_v28  ;;  %v5599_v28 = vmul.f32 %v13679_v46, %v13250_v13 }
 0xa8a   :  { %v13847_v49 = vadd.f32 %v6120_v37, %v5842_v55 }
 0xa8b   :  { %v4789_v59 = vpop.f32.mrf.mxu1 }
 0xa8c   :  { %v4790_v16 = vadd.f32 %v13311_v22, %v4789_v59 }
 0xa8e   :  { %v6523_v32 = vadd.f32 %v13749_v20, %v4790_v16  ;;  %4836 = vmatmul.f32.gmra.mxu1 %v15806_v56  ;;  %v6055_v55 = vpop.f32.mrf.mxu3  ;;  %v5828_v20 = vmul.f32 %v13670_v11, %v13552_v62  ;;  %v15807_v16 = vld [vmem:[#allocation23_spill] sm:$0xff] }
 0xa8f   :  { %v8945_v38 = vpop.eup %8944  ;;  %v6089_v57 = vadd.f32 %v6055_v55, %v4667_v27  ;;  %v4670_v14 = vadd.f32 %v13311_v22, %v15807_v16  ;;  %v15808_v55 = vld [vmem:[#allocation110_spill] sm:$0xff]  ;;  %v5829_v16 = vmul.f32 %v13670_v11, %v13566_v1 }
 0xa90   :  { %v6121_v24 = vmul.f32 %v8945_v38, %v13398_v5  ;;  %8946 = vtanh.f32 %v6523_v32  ;;  %6345 = vmatmul.f32.gmra.mxu3 %v8945_v38  ;;  %v13875_v32 = vpop.f32.mrf.mxu2 }
 0xa91   :  { %8948 = vtanh.f32 %v6089_v57 }
 0xa92   :  { %v13861_v59 = vadd.f32 %v6121_v24, %v5843_v4  ;;  %v5844_v24 = vadd.f32 %v5828_v20, %v5599_v28 }
 0xa93   :  { %v4792_v37 = vpop.f32.mrf.mxu1 }
 0xa94   :  { %v4793_v42 = vadd.f32 %v13311_v22, %v4792_v37 }
 0xa96   :  { %v8947_v27 = vpop.eup %8946  ;;  %v6524_v56 = vadd.f32 %v13794_v7, %v4793_v42  ;;  %4839 = vmatmul.f32.gmra.mxu1 %v15808_v55  ;;  %v6058_v38 = vpop.f32.mrf.mxu3 }
 0xa97   :  { %v8949_v57 = vpop.eup %8948  ;;  %v6090_v4 = vadd.f32 %v6058_v38, %v4670_v14  ;;  %6768 = vmatmul.f32.vlgmr.msrb.gmra.mxu2 %v8947_v27  ;;  %v6555_v62 = vmul.f32 %v8947_v27, %v13866_v50  ;;  %v13895_v14 = vld [vmem:[%s15095_s6] ss:$0 sm:$0xff]  ;;  %v15809_v27 = vld [vmem:[#allocation12_spill] sm:$0xff] }
 0xa98   :  { %v6122_v37 = vmul.f32 %v8949_v57, %v13398_v5  ;;  %8950 = vtanh.f32 %v6524_v56  ;;  %6348 = vmatmul.f32.gmra.mxu3 %v8949_v57  ;;  %7340 = vmatpush.msrb.mxu2 %v13688_v18  ;;  %v5600_v56 = vmul.f32 %v13679_v46, %v13268_v47  ;;  %v15810_v38 = vld [vmem:[#allocation111_spill] sm:$0xff] }
 0xa99   :  { %8952 = vtanh.f32 %v6090_v4  ;;  %v13883_v13 = vadd.f32 %v6555_v62, %v13410_v35  ;;  %v4673_v35 = vadd.f32 %v13895_v14, %v15809_v27  ;;  %v15811_v27 = vld [vmem:[#allocation162_spill] sm:$0xff] }
 0xa9a   :  { %v13885_v7 = vadd.f32 %v6122_v37, %v5844_v24  ;;  %7341 = vmatpush.msrb.mxu2 %v13698_v29  ;;  %v5845_v62 = vadd.f32 %v5829_v16, %v5600_v56  ;;  %v13905_v24 = vpop.f32.mrf.mxu2  ;;  %v5830_v16 = vmul.f32 %v13670_v11, %v13580_v12 }
 0xa9b   :  { %v4795_v42 = vpop.f32.mrf.mxu1 }
 0xa9c   :  { %v4796_v20 = vadd.f32 %v13311_v22, %v4795_v42  ;;  %7342 = vmatpush.msrb.mxu2 %v13708_v21 }
 0xa9e   :  { %v8951_v28 = vpop.eup %8950  ;;  %v6525_v55 = vadd.f32 %v13833_v17, %v4796_v20  ;;  %4842 = vmatmul.f32.gmra.mxu1 %v15810_v38  ;;  %v6061_v1 = vpop.f32.mrf.mxu3  ;;  %7343 = vmatpush.msrb.mxu2 %v13717_v60 }
 0xa9f   :  { %v8953_v22 = vpop.eup %8952  ;;  %v6556_v57 = vmul.f32 %v8951_v28, %v13866_v50  ;;  %v6091_v4 = vadd.f32 %v6061_v1, %v4673_v35  ;;  %6771 = vmatmul.f32.gmra.mxu2 %v8951_v28  ;;  %v4676_v35 = vadd.f32 %v13895_v14, %v15811_v27 }
 0xaa0   :  { %v6123_v37 = vmul.f32 %v8953_v22, %v13398_v5  ;;  %8954 = vtanh.f32 %v6525_v55  ;;  %6351 = vmatmul.f32.gmra.mxu3 %v8953_v22  ;;  %7344 = vmatpush.msrb.mxu2 %v13724_v51  ;;  %v15812_v55 = vld [vmem:[#allocation112_spill] sm:$0xff] }
 0xaa1   :  { %8956 = vtanh.f32 %v6091_v4  ;;  %v13910_v47 = vadd.f32 %v6556_v57, %v13425_v61  ;;  %v5601_v61 = vmul.f32 %v13679_v46, %v13286_v31 }
 0xaa2   :  { %v13912_v17 = vadd.f32 %v6123_v37, %v5845_v62  ;;  %7345 = vmatpush.msrb.mxu2 %v13734_v52 }
 0xaa3   :  { %v4798_v42 = vpop.f32.mrf.mxu1  ;;  %v5846_v57 = vadd.f32 %v5830_v16, %v5601_v61  ;;  %v15814_v61 = vld [vmem:[#allocation113_spill] sm:$0xff] }
 0xaa4   :  { %v4799_v20 = vadd.f32 %v13895_v14, %v4798_v42  ;;  %7346 = vmatpush.msrb.mxu2 %v13744_v8  ;;  %v5831_v42 = vmul.f32 %v13670_v11, %v13594_v63 }
 0xaa6   :  { %v8955_v28 = vpop.eup %8954  ;;  %v6526_v56 = vadd.f32 %v13851_v45, %v4799_v20  ;;  %4845 = vmatmul.f32.gmra.mxu1 %v15812_v55  ;;  %v6064_v38 = vpop.f32.mrf.mxu3  ;;  %7347 = vmatpush.msrb.mxu2 %v13755_v23  ;;  %v15813_v20 = vld [vmem:[#allocation67_spill] sm:$0xff] }
 0xaa7   :  { %v8957_v1 = vpop.eup %8956  ;;  %v6557_v12 = vmul.f32 %v8955_v28, %v13866_v50  ;;  %v6092_v22 = vadd.f32 %v6064_v38, %v4676_v35  ;;  %6774 = vmatmul.f32.gmra.mxu2 %v8955_v28  ;;  %v6493_v45 = vpop.f32.mrf.mxu2  ;;  %v4679_v27 = vadd.f32 %v13895_v14, %v15813_v20  ;;  %v15815_v20 = vld [vmem:[#allocation114_spill] sm:$0xff] }
 0xaa8   :  { %v6124_v4 = vmul.f32 %v8957_v1, %v13398_v5  ;;  %8958 = vtanh.f32 %v6526_v56  ;;  %6354 = vmatmul.f32.gmra.mxu3 %v8957_v1  ;;  %7348 = vmatpush.msrb.mxu2 %v13762_v19 }
 0xaa9   :  { %8960 = vtanh.f32 %v6092_v22  ;;  %v13930_v31 = vadd.f32 %v6557_v12, %v13445_v2  ;;  %v5602_v2 = vmul.f32 %v13679_v46, %v13304_v6 }
 0xaaa   :  { %v13932_v62 = vadd.f32 %v6124_v4, %v5846_v57  ;;  %7349 = vmatpush.msrb.mxu2 %v13772_v43  ;;  %v5832_v57 = vmul.f32 %v13670_v11, %v13608_v25 }
 0xaab   :  { %v4801_v37 = vpop.f32.mrf.mxu1  ;;  %v5847_v1 = vadd.f32 %v5831_v42, %v5602_v2 }
 0xaac   :  { %v4802_v16 = vadd.f32 %v13895_v14, %v4801_v37  ;;  %7350 = vmatpush.msrb.mxu2 %v13782_v39 }
 0xaae   :  { %v8959_v35 = vpop.eup %8958  ;;  %v6527_v28 = vadd.f32 %v13875_v32, %v4802_v16  ;;  %4848 = vmatmul.f32.gmra.mxu1 %v15814_v61  ;;  %v6067_v56 = vpop.f32.mrf.mxu3  ;;  %7351 = vmatpush.msrb.mxu2 %v13791_v36 }
 0xaaf   :  { %v8961_v55 = vpop.eup %8960  ;;  %v6558_v63 = vmul.f32 %v8959_v35, %v13866_v50  ;;  %v6093_v38 = vadd.f32 %v6067_v56, %v4679_v27  ;;  %6777 = vmatmul.f32.gmra.mxu2 %v8959_v35  ;;  %v6496_v4 = vpop.f32.mrf.mxu2 }
 0xab0   :  { %v6125_v12 = vmul.f32 %v8961_v55, %v13398_v5  ;;  %8962 = vtanh.f32 %v6527_v28  ;;  %6357 = vmatmul.f32.gmra.mxu3 %v8961_v55  ;;  %7352 = vmatpush.msrb.mxu2 %v13800_v30  ;;  %v4682_v5 = vadd.f32 %v13895_v14, %v13210_v34  ;;  %v13970_v34 = vld [vmem:[%s15096_s7 + $0x2] ss:$0 sm:$0xff]  ;;  %v5833_v55 = vmul.f32 %v13670_v11, %v13622_v40 }
 0xab1   :  { %8964 = vtanh.f32 %v6093_v38  ;;  %v13950_v6 = vadd.f32 %v6558_v63, %v13466_v54  ;;  %v5603_v54 = vmul.f32 %v13679_v46, %v13327_v15  ;;  %v4685_v38 = vadd.f32 %v13895_v14, %v13228_v48 }
 0xab2   :  { %v13952_v32 = vadd.f32 %v6125_v12, %v5847_v1  ;;  %7353 = vmatpush.msrb.mxu2 %v13810_v0  ;;  %v5604_v12 = vmul.f32 %v13679_v46, %v13345_v10 }
 0xab3   :  { %v4804_v22 = vpop.f32.mrf.mxu1  ;;  %v5848_v28 = vadd.f32 %v5832_v57, %v5603_v54 }
 0xab4   :  { %v4805_v37 = vadd.f32 %v13895_v14, %v4804_v22  ;;  %7354 = vmatpush.msrb.mxu2 %v13820_v41  ;;  %v5849_v40 = vadd.f32 %v5833_v55, %v5604_v12  ;;  %v15818_v12 = vld [vmem:[#allocation163_spill] sm:$0xff] }
 0xab6   :  { %v8963_v42 = vpop.eup %8962  ;;  %v6528_v16 = vadd.f32 %v13905_v24, %v4805_v37  ;;  %4851 = vmatmul.f32.gmra.mxu1 %v15815_v20  ;;  %v6070_v27 = vpop.f32.mrf.mxu3  ;;  %7355 = vmatpush.msrb.mxu2 %v13829_v44  ;;  %v15816_v37 = vld [vmem:[#allocation115_spill] sm:$0xff]  ;;  %v5834_v20 = vmul.f32 %v13670_v11, %v13636_v26 }
 0xab7   :  { %v8965_v25 = vpop.eup %8964  ;;  %v6559_v35 = vmul.f32 %v8963_v42, %v13866_v50  ;;  %v6094_v2 = vadd.f32 %v6070_v27, %v4682_v5  ;;  %6780 = vmatmul.f32.gmra.mxu2 %v8963_v42  ;;  %v6499_v22 = vpop.f32.mrf.mxu2 }
 0xab8   :  { %v6126_v15 = vmul.f32 %v13970_v34, %v8965_v25  ;;  %8966 = vtanh.f32 %v6528_v16  ;;  %6360 = vmatmul.f32.gmra.mxu3 %v8965_v25  ;;  %v4688_v25 = vadd.f32 %v13895_v14, %v13246_v53 }
 0xab9   :  { %8968 = vtanh.f32 %v6094_v2  ;;  %v13974_v24 = vadd.f32 %v6559_v35, %v13487_v58  ;;  %v5605_v2 = vmul.f32 %v13679_v46, %v13363_v33 }
 0xaba   :  { %v13976_v61 = vadd.f32 %v6126_v15, %v5848_v28  ;;  %v15817_v15 = vld [vmem:[#allocation116_spill] sm:$0xff] }
 0xabb   :  { %v4807_v56 = vpop.f32.mrf.mxu1 }
 0xabc   :  { %v4808_v63 = vadd.f32 %v13895_v14, %v4807_v56 }
 0xabe   :  { %v8967_v1 = vpop.eup %8966  ;;  %v6529_v57 = vadd.f32 %v6493_v45, %v4808_v63  ;;  %4854 = vmatmul.f32.gmra.mxu1 %v15816_v37  ;;  %v6073_v58 = vpop.f32.mrf.mxu3 }
 0xabf   :  { %v8969_v5 = vpop.eup %8968  ;;  %v6560_v42 = vmul.f32 %v8967_v1, %v13866_v50  ;;  %v6095_v54 = vadd.f32 %v6073_v58, %v4685_v38  ;;  %6783 = vmatmul.f32.gmra.mxu2 %v8967_v1  ;;  %v5850_v38 = vadd.f32 %v5834_v20, %v5605_v2  ;;  %v6502_v26 = vpop.f32.mrf.mxu2  ;;  %v15819_v58 = vld [vmem:[#allocation70_spill] sm:$0xff] }
 0xac0   :  { %v6127_v16 = vmul.f32 %v13970_v34, %v8969_v5  ;;  %8970 = vtanh.f32 %v6529_v57  ;;  %6363 = vmatmul.f32.gmra.mxu3 %v8969_v5  ;;  %v5835_v57 = vmul.f32 %v13670_v11, %v15818_v12  ;;  %v4691_v5 = vadd.f32 %v13895_v14, %v15819_v58 }
 0xac1   :  { %8972 = vtanh.f32 %v6095_v54  ;;  %v13989_v48 = vadd.f32 %v6560_v42, %v13507_v3  ;;  %v15820_v54 = vld [vmem:[#allocation175_spill] sm:$0xff] }
 0xac2   :  { %v13991_v10 = vadd.f32 %v6127_v16, %v5849_v40  ;;  %v5606_v40 = vmul.f32 %v13679_v46, %v15820_v54 }
 0xac3   :  { %v4810_v45 = vpop.f32.mrf.mxu1 }
 0xac4   :  { %v4811_v27 = vadd.f32 %v13895_v14, %v4810_v45  ;;  %v15821_v45 = vld [vmem:[#allocation117_spill] sm:$0xff] }
 0xac6   :  { %v8971_v35 = vpop.eup %8970  ;;  %v6530_v28 = vadd.f32 %v6496_v4, %v4811_v27  ;;  %4857 = vmatmul.f32.gmra.mxu1 %v15817_v15  ;;  %v6076_v3 = vpop.f32.mrf.mxu3 }
 0xac7   :  { %v8973_v56 = vpop.eup %8972  ;;  %v6561_v55 = vmul.f32 %v8971_v35, %v13866_v50  ;;  %v6096_v63 = vadd.f32 %v6076_v3, %v4688_v25  ;;  %6786 = vmatmul.f32.gmra.mxu2 %v8971_v35  ;;  %v5851_v35 = vadd.f32 %v5835_v57, %v5606_v40  ;;  %v6505_v3 = vpop.f32.mrf.mxu2  ;;  %v15826_v40 = vld [vmem:[#allocation76_spill] sm:$0xff] }
 0xac8   :  { %v6128_v1 = vmul.f32 %v13970_v34, %v8973_v56  ;;  %8974 = vtanh.f32 %v6530_v28  ;;  %6366 = vmatmul.f32.gmra.mxu3 %v8973_v56  ;;  %v15822_v28 = vld [vmem:[#allocation177_spill] sm:$0xff] }
 0xac9   :  { %8976 = vtanh.f32 %v6096_v63  ;;  %v14004_v53 = vadd.f32 %v6561_v55, %v13522_v9  ;;  %v15823_v55 = vld [vmem:[#allocation184_spill] sm:$0xff] }
 0xaca   :  { %v14006_v33 = vadd.f32 %v6128_v1, %v5850_v38  ;;  %v5836_v63 = vmul.f32 %v13670_v11, %v15823_v55 }
 0xacb   :  { %v4813_v4 = vpop.f32.mrf.mxu1 }
 0xacc   :  { %v4814_v37 = vadd.f32 %v13895_v14, %v4813_v4  ;;  %v15824_v4 = vld [vmem:[#allocation176_spill] sm:$0xff] }
 0xacd   :  { %v5607_v12 = vmul.f32 %v13679_v46, %v15824_v4 }
 0xace   :  { %v8975_v42 = vpop.eup %8974  ;;  %v6531_v16 = vadd.f32 %v6499_v22, %v4814_v37  ;;  %4860 = vmatmul.f32.gmra.mxu1 %v15821_v45  ;;  %v6079_v9 = vpop.f32.mrf.mxu3  ;;  %v15825_v37 = vld [vmem:[#allocation118_spill] sm:$0xff] }
 0xacf   :  { %v8977_v20 = vpop.eup %8976  ;;  %v6562_v27 = vmul.f32 %v8975_v42, %v13866_v50  ;;  %v6097_v25 = vadd.f32 %v6079_v9, %v4691_v5  ;;  %6789 = vmatmul.f32.gmra.mxu2 %v8975_v42  ;;  %v5852_v42 = vadd.f32 %v5836_v63, %v5607_v12  ;;  %v6508_v9 = vpop.f32.mrf.mxu2  ;;  %v15830_v12 = vld [vmem:[#allocation120_spill] sm:$0xff] }
 0xad0   :  { %v6129_v2 = vmul.f32 %v13970_v34, %v8977_v20  ;;  %8978 = vtanh.f32 %v6531_v16  ;;  %6369 = vmatmul.f32.gmra.mxu3 %v8977_v20 }
 0xad1   :  { %8980 = vtanh.f32 %v6097_v25  ;;  %v14019_v15 = vadd.f32 %v6562_v27, %v15822_v28  ;;  %v15827_v27 = vld [vmem:[#allocation119_spill] sm:$0xff] }
 0xad2   :  { %v14021_v56 = vadd.f32 %v6129_v2, %v5851_v35  ;;  %v15829_v2 = vld [vmem:[#allocation178_spill] sm:$0xff] }
 0xad3   :  { %v4816_v22 = vpop.f32.mrf.mxu1  ;;  %v4742_v28 = vadd.f32 %v13895_v14, %v15829_v2  ;;  %v15834_v2 = vld [vmem:[#allocation159_spill] sm:$0xff] }
 0xad4   :  { %v4817_v38 = vadd.f32 %v13895_v14, %v4816_v22 }
 0xad6   :  { %v8979_v1 = vpop.eup %8978  ;;  %v6532_v57 = vadd.f32 %v6502_v26, %v4817_v38  ;;  %4863 = vmatmul.f32.gmra.mxu1 %v15825_v37  ;;  %v15831_v37 = vld [vmem:[#allocation78_spill] sm:$0xff] }
 0xad7   :  { %v8981_v58 = vpop.eup %8980  ;;  %v6563_v5 = vmul.f32 %v8979_v1, %v13866_v50  ;;  %6792 = vmatmul.f32.gmra.mxu2 %v8979_v1  ;;  %v6511_v4 = vpop.f32.mrf.mxu2 }
 0xad8   :  { %v6130_v54 = vmul.f32 %v13970_v34, %v8981_v58  ;;  %8982 = vtanh.f32 %v6532_v57  ;;  %6372 = vmatmul.f32.gmra.mxu3 %v8981_v58  ;;  %v15828_v34 = vld [vmem:[#allocation77_spill] sm:$0xff] }
 0xad9   :  { %v14032_v11 = vadd.f32 %v6563_v5, %v15826_v40  ;;  %v15832_v5 = vld [vmem:[#allocation179_spill] sm:$0xff] }
 0xada   :  { %v14034_v16 = vadd.f32 %v6130_v54, %v5852_v42  ;;  %v4745_v42 = vadd.f32 %v13895_v14, %v15832_v5 }
 0xadb   :  { %v4819_v45 = vpop.f32.mrf.mxu1 }
 0xadc   :  { %v4820_v46 = vadd.f32 %v13895_v14, %v4819_v45 }
 0xade   :  { %v8983_v26 = vpop.eup %8982  ;;  %v6533_v20 = vadd.f32 %v6505_v3, %v4820_v46  ;;  %4866 = vmatmul.f32.gmra.mxu1 %v15827_v27 }
 0xadf   :  { %v6564_v25 = vmul.f32 %v8983_v26, %v13866_v50  ;;  %6795 = vmatmul.f32.gmra.mxu2 %v8983_v26 }
 0xae0   :  { %8984 = vtanh.f32 %v6533_v20 }
 0xae1   :  { %v14040_v35 = vadd.f32 %v6564_v25, %v15828_v34  ;;  %v15833_v25 = vld [vmem:[#allocation121_spill] sm:$0xff] }
 0xae3   :  { %v4822_v22 = vpop.f32.mrf.mxu1  ;;  %v6328_v55 = vpop.f32.mrf.mxu3 }
 0xae4   :  { %v4823_v63 = vadd.f32 %v13895_v14, %v4822_v22  ;;  %v6376_v38 = vadd.f32 %v6328_v55, %v4742_v28  ;;  %v6514_v22 = vpop.f32.mrf.mxu2  ;;  %v15835_v55 = vld [vmem:[#allocation79_spill] sm:$0xff] }
 0xae6   :  { %v8985_v1 = vpop.eup %8984  ;;  %v6534_v3 = vadd.f32 %v6508_v9, %v4823_v63  ;;  %8986 = vtanh.f32 %v6376_v38  ;;  %4869 = vmatmul.f32.gmra.mxu1 %v15830_v12  ;;  %v15836_v38 = vld [vmem:[#allocation180_spill] sm:$0xff] }
 0xae7   :  { %v6565_v57 = vmul.f32 %v8985_v1, %v13866_v50  ;;  %6798 = vmatmul.f32.gmra.mxu2 %v8985_v1  ;;  %v4748_v1 = vadd.f32 %v13895_v14, %v15836_v38  ;;  %v15843_v38 = vld [vmem:[#allocation88_spill] sm:$0xff] }
 0xae8   :  { %8988 = vtanh.f32 %v6534_v3 }
 0xae9   :  { %v14048_v58 = vadd.f32 %v6565_v57, %v15831_v37 }
 0xaeb   :  { %v4825_v54 = vpop.f32.mrf.mxu1  ;;  %v6331_v40 = vpop.f32.mrf.mxu3 }
 0xaec   :  { %v8987_v45 = vpop.eup %8986  ;;  %v4826_v46 = vadd.f32 %v13895_v14, %v4825_v54  ;;  %v6377_v26 = vadd.f32 %v6331_v40, %v4745_v42  ;;  %v15837_v42 = vld [vmem:[#allocation122_spill] sm:$0xff]  ;;  %v15838_v54 = vld [vmem:[#allocation187_spill] sm:$0xff] }
 0xaed   :  { %v6409_v9 = vmul.f32 %v8987_v45, %v13866_v50  ;;  %6621 = vmatmul.f32.vlgmr.msrb.gmra.mxu3 %v8987_v45 }
 0xaee   :  { %v8989_v20 = vpop.eup %8988  ;;  %v6535_v27 = vadd.f32 %v6511_v4, %v4826_v46  ;;  %8990 = vtanh.f32 %v6377_v26  ;;  %4872 = vmatmul.f32.gmra.mxu1 %v15833_v25  ;;  %7193 = vmatpush.msrb.mxu3 %v13688_v18  ;;  %v15841_v46 = vld [vmem:[#allocation181_spill] sm:$0xff] }
 0xaef   :  { %v6566_v34 = vmul.f32 %v8989_v20, %v13866_v50  ;;  %6801 = vmatmul.f32.gmra.mxu2 %v8989_v20  ;;  %v14058_v28 = vadd.f32 %v6409_v9, %v15834_v2  ;;  %v4751_v26 = vadd.f32 %v13895_v14, %v15841_v46  ;;  %v6517_v9 = vpop.f32.mrf.mxu2 }
 0xaf0   :  { %8992 = vtanh.f32 %v6535_v27  ;;  %7194 = vmatpush.msrb.mxu3 %v13698_v29 }
 0xaf1   :  { %v14062_v63 = vadd.f32 %v6566_v34, %v15835_v55  ;;  %v15842_v55 = vld [vmem:[#allocation123_spill] sm:$0xff] }
 0xaf2   :  { %7195 = vmatpush.msrb.mxu3 %v13708_v21 }
 0xaf3   :  { %v4828_v4 = vpop.f32.mrf.mxu1  ;;  %v6334_v18 = vpop.f32.mrf.mxu3 }
 0xaf4   :  { %v8991_v3 = vpop.eup %8990  ;;  %v4829_v12 = vadd.f32 %v13895_v14, %v4828_v4  ;;  %v6378_v57 = vadd.f32 %v6334_v18, %v4748_v1  ;;  %7196 = vmatpush.msrb.mxu3 %v13717_v60  ;;  %v15839_v60 = vld [vmem:[#allocation80_spill] sm:$0xff]  ;;  %v15846_v18 = vld [vmem:[#allocation182_spill] sm:$0xff] }
 0xaf5   :  { %v6410_v37 = vmul.f32 %v8991_v3, %v13866_v50  ;;  %6624 = vmatmul.f32.gmra.mxu3 %v8991_v3  ;;  %v4754_v3 = vadd.f32 %v13895_v14, %v15846_v18 }
 0xaf6   :  { %v8993_v29 = vpop.eup %8992  ;;  %v6536_v5 = vadd.f32 %v6514_v22, %v4829_v12  ;;  %8994 = vtanh.f32 %v6378_v57  ;;  %4875 = vmatmul.f32.gmra.mxu1 %v15837_v42  ;;  %7197 = vmatpush.msrb.mxu3 %v13724_v51 }
 0xaf7   :  { %v6567_v21 = vmul.f32 %v8993_v29, %v13866_v50  ;;  %6804 = vmatmul.f32.gmra.mxu2 %v8993_v29  ;;  %v14074_v40 = vadd.f32 %v6410_v37, %v15838_v54  ;;  %v15847_v54 = vld [vmem:[#allocation124_spill] sm:$0xff] }
 0xaf8   :  { %8996 = vtanh.f32 %v6536_v5  ;;  %7198 = vmatpush.msrb.mxu3 %v13734_v52  ;;  %v6520_v5 = vpop.f32.mrf.mxu2 }
 0xaf9   :  { %v14078_v45 = vadd.f32 %v6567_v21, %v15839_v60  ;;  %v15848_v60 = vld [vmem:[#allocation89_spill] sm:$0xff] }
 0xafa   :  { %7199 = vmatpush.msrb.mxu3 %v13744_v8 }
 0xafb   :  { %15840 = vst [vmem:[#allocation91_spill] sm:$0xff] %v14078_v45  ;;  %v4831_v20 = vpop.f32.mrf.mxu1  ;;  %v6337_v51 = vpop.f32.mrf.mxu3 }
 0xafc   :  { %v8995_v27 = vpop.eup %8994  ;;  %v4832_v25 = vadd.f32 %v13895_v14, %v4831_v20  ;;  %v6379_v34 = vadd.f32 %v6337_v51, %v4751_v26  ;;  %7200 = vmatpush.msrb.mxu3 %v13755_v23  ;;  %v15844_v23 = vld [vmem:[#allocation81_spill] sm:$0xff] }
 0xafd   :  { %v6411_v2 = vmul.f32 %v8995_v27, %v13866_v50  ;;  %6627 = vmatmul.f32.gmra.mxu3 %v8995_v27 }
 0xafe   :  { %v8997_v52 = vpop.eup %8996  ;;  %v6537_v22 = vadd.f32 %v6517_v9, %v4832_v25  ;;  %8998 = vtanh.f32 %v6379_v34  ;;  %4878 = vmatmul.f32.gmra.mxu1 %v15842_v55  ;;  %7201 = vmatpush.msrb.mxu3 %v13762_v19  ;;  %v15851_v9 = vld [vmem:[#allocation183_spill] sm:$0xff] }
 0xaff   :  { %v6568_v8 = vmul.f32 %v8997_v52, %v13866_v50  ;;  %6807 = vmatmul.f32.gmra.mxu2 %v8997_v52  ;;  %v14090_v1 = vadd.f32 %v6411_v2, %v15843_v38  ;;  %v4757_v20 = vadd.f32 %v13895_v14, %v15851_v9  ;;  %v15856_v38 = vld [vmem:[#allocation83_spill] sm:$0xff]  ;;  %v15860_v9 = vld [vmem:[#allocation86_spill] sm:$0xff] }
 0xb00   :  { %9000 = vtanh.f32 %v6537_v22  ;;  %7202 = vmatpush.msrb.mxu3 %v13772_v43  ;;  %v15853_v22 = vld [vmem:[#allocation90_spill] sm:$0xff] }
 0xb01   :  { %v14094_v4 = vadd.f32 %v6568_v8, %v15844_v23  ;;  %v4760_v23 = vadd.f32 %v13895_v14, %v15856_v38 }
 0xb02   :  { %7203 = vmatpush.msrb.mxu3 %v13782_v39 }
 0xb03   :  { %15845 = vst [vmem:[#allocation195_spill] sm:$0xff] %v14094_v4  ;;  %v4834_v12 = vpop.f32.mrf.mxu1  ;;  %v6340_v57 = vpop.f32.mrf.mxu3 }
 0xb04   :  { %v8999_v19 = vpop.eup %8998  ;;  %v4835_v37 = vadd.f32 %v13895_v14, %v4834_v12  ;;  %v6380_v29 = vadd.f32 %v6340_v57, %v4754_v3  ;;  %7204 = vmatpush.msrb.mxu3 %v13791_v36  ;;  %v15849_v36 = vld [vmem:[#allocation82_spill] sm:$0xff] }
 0xb05   :  { %v6412_v42 = vmul.f32 %v8999_v19, %v13866_v50  ;;  %6630 = vmatmul.f32.gmra.mxu3 %v8999_v19  ;;  %v15857_v19 = vld [vmem:[#allocation126_spill] sm:$0xff] }
 0xb06   :  { %v9001_v43 = vpop.eup %9000  ;;  %v6538_v21 = vadd.f32 %v6520_v5, %v4835_v37  ;;  %9002 = vtanh.f32 %v6380_v29  ;;  %4881 = vmatmul.f32.gmra.mxu1 %v15847_v54  ;;  %7205 = vmatpush.msrb.mxu3 %v13800_v30  ;;  %v15858_v29 = vld [vmem:[#allocation85_spill] sm:$0xff] }
 0xb07   :  { %v6569_v39 = vmul.f32 %v9001_v43, %v13866_v50  ;;  %6810 = vmatmul.f32.gmra.mxu2 %v9001_v43  ;;  %v14106_v46 = vadd.f32 %v6412_v42, %v15848_v60  ;;  %v4763_v5 = vadd.f32 %v13895_v14, %v15858_v29  ;;  %v15859_v60 = vld [vmem:[#allocation127_spill] sm:$0xff] }
 0xb08   :  { %9004 = vtanh.f32 %v6538_v21  ;;  %7206 = vmatpush.msrb.mxu3 %v13810_v0  ;;  %v15852_v0 = vld [vmem:[#allocation125_spill] sm:$0xff] }
 0xb09   :  { %v14110_v26 = vadd.f32 %v6569_v39, %v15849_v36 }
 0xb0a   :  { %7207 = vmatpush.msrb.mxu3 %v13820_v41  ;;  %v15854_v41 = vld [vmem:[#allocation84_spill] sm:$0xff] }
 0xb0b   :  { %15850 = vst [vmem:[#allocation92_spill] sm:$0xff] %v14110_v26  ;;  %v14115_v51 = vpop.f32.mrf.mxu1  ;;  %v6343_v30 = vpop.f32.mrf.mxu3  ;;  %v15887_v26 = vld [vmem:[#allocation142_spill] sm:$0xff] }
 0xb0c   :  { %v9003_v27 = vpop.eup %9002  ;;  %v6381_v25 = vadd.f32 %v6343_v30, %v4757_v20  ;;  %7208 = vmatpush.msrb.mxu3 %v13829_v44 }
 0xb0d   :  { %v6413_v34 = vmul.f32 %v9003_v27, %v13866_v50  ;;  %6633 = vmatmul.f32.gmra.mxu3 %v9003_v27 }
 0xb0e   :  { %v9005_v2 = vpop.eup %9004  ;;  %9006 = vtanh.f32 %v6381_v25  ;;  %4884 = vmatmul.f32.gmra.mxu1 %v15852_v0 }
 0xb0f   :  { %v6570_v52 = vmul.f32 %v9005_v2, %v13866_v50  ;;  %6813 = vmatmul.f32.gmra.mxu2 %v9005_v2  ;;  %v14122_v55 = vadd.f32 %v6413_v34, %v15853_v22  ;;  %v15861_v2 = vld [vmem:[#allocation128_spill] sm:$0xff] }
 0xb11   :  { %v14125_v8 = vadd.f32 %v6570_v52, %v15854_v41  ;;  %v15862_v52 = vld [vmem:[#allocation185_spill] sm:$0xff] }
 0xb13   :  { %15855 = vst [vmem:[#allocation197_spill] sm:$0xff] %v14125_v8  ;;  %v14129_v44 = vpop.f32.mrf.mxu1  ;;  %v6346_v18 = vpop.f32.mrf.mxu3 }
 0xb14   :  { %v9007_v3 = vpop.eup %9006  ;;  %v6382_v12 = vadd.f32 %v6346_v18, %v4760_v23 }
 0xb15   :  { %v6414_v57 = vmul.f32 %v9007_v3, %v13866_v50  ;;  %6636 = vmatmul.f32.gmra.mxu3 %v9007_v3  ;;  %v15863_v3 = vld [vmem:[#allocation129_spill] sm:$0xff] }
 0xb16   :  { %9008 = vtanh.f32 %v6382_v12  ;;  %4887 = vmatmul.f32.gmra.mxu1 %v15857_v19 }
 0xb17   :  { %v14134_v37 = vadd.f32 %v6414_v57, %v13847_v49  ;;  %v4766_v49 = vadd.f32 %v13895_v14, %v15860_v9  ;;  %v15864_v57 = vld [vmem:[#allocation63_spill] sm:$0xff] }
 0xb1b   :  { %v14138_v42 = vpop.f32.mrf.mxu1  ;;  %v6349_v43 = vpop.f32.mrf.mxu3 }
 0xb1c   :  { %v9009_v21 = vpop.eup %9008  ;;  %v6383_v54 = vadd.f32 %v6349_v43, %v4763_v5 }
 0xb1d   :  { %v6415_v39 = vmul.f32 %v9009_v21, %v13866_v50  ;;  %6639 = vmatmul.f32.gmra.mxu3 %v9009_v21 }
 0xb1e   :  { %9010 = vtanh.f32 %v6383_v54  ;;  %4890 = vmatmul.f32.gmra.mxu1 %v15859_v60  ;;  %v15865_v54 = vld [vmem:[#allocation130_spill] sm:$0xff]  ;;  %v15866_v60 = vld [vmem:[#allocation87_spill] sm:$0xff] }
 0xb1f   :  { %v14143_v36 = vadd.f32 %v6415_v39, %v13861_v59  ;;  %v4769_v59 = vadd.f32 %v13895_v14, %v15862_v52  ;;  %v15868_v52 = vld [vmem:[#allocation26_spill] sm:$0xff] }
 0xb23   :  { %v14147_v20 = vpop.f32.mrf.mxu1  ;;  %v6352_v30 = vpop.f32.mrf.mxu3 }
 0xb24   :  { %v9011_v27 = vpop.eup %9010  ;;  %v6384_v25 = vadd.f32 %v6352_v30, %v4766_v49 }
 0xb25   :  { %v6416_v34 = vmul.f32 %v9011_v27, %v13866_v50  ;;  %6642 = vmatmul.f32.gmra.mxu3 %v9011_v27 }
 0xb26   :  { %9012 = vtanh.f32 %v6384_v25  ;;  %4893 = vmatmul.f32.gmra.mxu1 %v15861_v2 }
 0xb27   :  { %v14152_v0 = vadd.f32 %v6416_v34, %v13885_v7  ;;  %v4772_v7 = vadd.f32 %v13895_v14, %v15864_v57  ;;  %v15867_v34 = vld [vmem:[#allocation131_spill] sm:$0xff] }
 0xb2b   :  { %v14156_v22 = vpop.f32.mrf.mxu1  ;;  %v6355_v41 = vpop.f32.mrf.mxu3 }
 0xb2c   :  { %v9013_v38 = vpop.eup %9012  ;;  %v6385_v23 = vadd.f32 %v6355_v41, %v4769_v59  ;;  %v4850_v8 = vadd.f32 %v13895_v14, %v14156_v22 }
 0xb2d   :  { %v6417_v18 = vmul.f32 %v9013_v38, %v13866_v50  ;;  %6645 = vmatmul.f32.gmra.mxu3 %v9013_v38 }
 0xb2e   :  { %9014 = vtanh.f32 %v6385_v23  ;;  %4896 = vmatmul.f32.gmra.mxu1 %v15863_v3  ;;  %v15869_v3 = vld [vmem:[#allocation132_spill] sm:$0xff] }
 0xb2f   :  { %v14161_v12 = vadd.f32 %v6417_v18, %v13912_v17  ;;  %v4775_v17 = vadd.f32 %v13895_v14, %v15866_v60  ;;  %v15871_v60 = vld [vmem:[#allocation133_spill] sm:$0xff] }
 0xb33   :  { %v14165_v19 = vpop.f32.mrf.mxu1  ;;  %v6358_v29 = vpop.f32.mrf.mxu3 }
 0xb34   :  { %v9015_v5 = vpop.eup %9014  ;;  %v6386_v43 = vadd.f32 %v6358_v29, %v4772_v7  ;;  %v15870_v7 = vld [vmem:[#allocation189_spill] sm:$0xff]  ;;  %v4853_v4 = vadd.f32 %v13895_v14, %v14165_v19  ;;  %v14377_v19 = vld [vmem:[%s15094_s5] sm:$0xff] }
 0xb35   :  { %v6418_v21 = vmul.f32 %v9015_v5, %v13866_v50  ;;  %6648 = vmatmul.f32.gmra.mxu3 %v9015_v5 }
 0xb36   :  { %9016 = vtanh.f32 %v6386_v43  ;;  %4899 = vmatmul.f32.gmra.mxu1 %v15865_v54 }
 0xb37   :  { %v14170_v39 = vadd.f32 %v6418_v21, %v13932_v62  ;;  %v4778_v62 = vadd.f32 %v13895_v14, %v15868_v52 }
 0xb3b   :  { %v14174_v9 = vpop.f32.mrf.mxu1  ;;  %v6361_v49 = vpop.f32.mrf.mxu3 }
 0xb3c   :  { %v9017_v30 = vpop.eup %9016  ;;  %v6387_v27 = vadd.f32 %v6361_v49, %v4775_v17  ;;  %v15872_v49 = vld [vmem:[#allocation191_spill] sm:$0xff] }
 0xb3d   :  { %v6419_v25 = vmul.f32 %v9017_v30, %v13866_v50  ;;  %6651 = vmatmul.f32.gmra.mxu3 %v9017_v30 }
 0xb3e   :  { %9018 = vtanh.f32 %v6387_v27  ;;  %4902 = vmatmul.f32.gmra.mxu1 %v15867_v34 }
 0xb3f   :  { %v14179_v2 = vadd.f32 %v6419_v25, %v13952_v32  ;;  %v4781_v32 = vadd.f32 %v13895_v14, %v15870_v7 }
 0xb43   :  { %v14183_v59 = vpop.f32.mrf.mxu1  ;;  %v6364_v41 = vpop.f32.mrf.mxu3 }
 0xb44   :  { %v9019_v38 = vpop.eup %9018  ;;  %v6388_v23 = vadd.f32 %v6364_v41, %v4778_v62  ;;  %v15873_v62 = vld [vmem:[#allocation134_spill] sm:$0xff] }
 0xb45   :  { %v6420_v18 = vmul.f32 %v9019_v38, %v13866_v50  ;;  %6654 = vmatmul.f32.gmra.mxu3 %v9019_v38  ;;  %v15874_v38 = vld [vmem:[#allocation193_spill] sm:$0xff] }
 0xb46   :  { %9020 = vtanh.f32 %v6388_v23  ;;  %4905 = vmatmul.f32.gmra.mxu1 %v15869_v3 }
 0xb47   :  { %v14188_v57 = vadd.f32 %v6420_v18, %v13976_v61  ;;  %v4784_v61 = vadd.f32 %v13895_v14, %v15872_v49 }
 0xb4b   :  { %v14192_v29 = vpop.f32.mrf.mxu1  ;;  %v6367_v5 = vpop.f32.mrf.mxu3 }
 0xb4c   :  { %v9021_v43 = vpop.eup %9020  ;;  %v6389_v21 = vadd.f32 %v6367_v5, %v4781_v32  ;;  %v15875_v5 = vld [vmem:[#allocation135_spill] sm:$0xff] }
 0xb4d   :  { %v6421_v54 = vmul.f32 %v9021_v43, %v13866_v50  ;;  %6657 = vmatmul.f32.gmra.mxu3 %v9021_v43 }
 0xb4e   :  { %9022 = vtanh.f32 %v6389_v21  ;;  %4908 = vmatmul.f32.gmra.mxu1 %v15871_v60  ;;  %v15876_v60 = vld [vmem:[#allocation136_spill] sm:$0xff] }
 0xb4f   :  { %v14197_v17 = vadd.f32 %v6421_v54, %v13991_v10  ;;  %v4787_v10 = vadd.f32 %v13895_v14, %v15874_v38  ;;  %v4841_v38 = vadd.f32 %v13895_v14, %v14129_v44 }
 0xb53   :  { %v14201_v30 = vpop.f32.mrf.mxu1  ;;  %v6370_v27 = vpop.f32.mrf.mxu3 }
 0xb54   :  { %v9023_v25 = vpop.eup %9022  ;;  %v6390_v34 = vadd.f32 %v6370_v27, %v4784_v61  ;;  %v15878_v27 = vld [vmem:[#allocation137_spill] sm:$0xff] }
 0xb55   :  { %v6422_v52 = vmul.f32 %v9023_v25, %v13866_v50  ;;  %6660 = vmatmul.f32.gmra.mxu3 %v9023_v25  ;;  %v4838_v25 = vadd.f32 %v13895_v14, %v14115_v51 }
 0xb56   :  { %9024 = vtanh.f32 %v6390_v34  ;;  %4911 = vmatmul.f32.gmra.mxu1 %v15873_v62 }
 0xb57   :  { %v14206_v41 = vadd.f32 %v6422_v52, %v14006_v33 }
 0xb5b   :  { %v14210_v23 = vpop.f32.mrf.mxu1  ;;  %v6373_v18 = vpop.f32.mrf.mxu3 }
 0xb5c   :  { %v9025_v3 = vpop.eup %9024  ;;  %v6391_v7 = vadd.f32 %v6373_v18, %v4787_v10 }
 0xb5d   :  { %v6423_v32 = vmul.f32 %v9025_v3, %v13866_v50  ;;  %6663 = vmatmul.f32.gmra.mxu3 %v9025_v3 }
 0xb5e   :  { %9026 = vtanh.f32 %v6391_v7  ;;  %4914 = vmatmul.f32.gmra.mxu1 %v15875_v5  ;;  %v14247_v5 = vld [vmem:[%s15094_s5 + $0x78] sm:$0xff] }
 0xb5f   :  { %v14215_v43 = vadd.f32 %v6423_v32, %v14021_v56  ;;  %v6769_v56 = vpop.f32.mrf.mxu2 }
 0xb63   :  { %v14217_v21 = vpop.f32.mrf.mxu1 }
 0xb64   :  { %v9027_v33 = vpop.eup %9026 }
 0xb65   :  { %v6424_v54 = vmul.f32 %v9027_v33, %v13866_v50  ;;  %6666 = vmatmul.f32.gmra.mxu3 %v9027_v33  ;;  %v15879_v50 = vld [vmem:[#allocation138_spill] sm:$0xff] }
 0xb66   :  { %4917 = vmatmul.f32.gmra.mxu1 %v15876_v60  ;;  %v14256_v33 = vld [vmem:[%s15094_s5 + $0x70] sm:$0xff]  ;;  %v4844_v60 = vadd.f32 %v13895_v14, %v14138_v42 }
 0xb67   :  { %v14222_v49 = vadd.f32 %v6424_v54, %v14034_v16  ;;  %v14235_v16 = vld [vmem:[%s15096_s7 + $0x4] ss:$0 sm:$0xff]  ;;  %v14239_v3 = vpop.f32.mrf.mxu2  ;;  %v15881_v54 = vld [vmem:[#allocation139_spill] sm:$0xff] }
 0xb69   :  { %15877 = vst [vmem:[#allocation93_spill] sm:$0xff] %v14222_v49  ;;  %v15888_v49 = vld [vmem:[#allocation143_spill] sm:$0xff] }
 0xb6b   :  { %v14224_v61 = vpop.f32.mrf.mxu1 }
 0xb6e   :  { %4920 = vmatmul.f32.gmra.mxu1 %v15878_v27  ;;  %v14265_v27 = vld [vmem:[%s15094_s5 + $0x68] sm:$0xff] }
 0xb6f   :  { %v14275_v42 = vpop.f32.mrf.mxu2 }
 0xb70   :  { %v6622_v34 = vpop.f32.mrf.mxu3 }
 0xb71   :  { %v6670_v52 = vadd.f32 %v6622_v34, %v4838_v25 }
 0xb73   :  { %9028 = vtanh.f32 %v6670_v52  ;;  %v14229_v62 = vpop.f32.mrf.mxu1  ;;  %v14271_v52 = vld [vmem:[%s15094_s5 + $0x60] sm:$0xff] }
 0xb76   :  { %4923 = vmatmul.f32.gmra.mxu1 %v15879_v50 }
 0xb78   :  { %v6625_v10 = vpop.f32.mrf.mxu3 }
 0xb79   :  { %v9029_v18 = vpop.eup %9028  ;;  %v6671_v51 = vadd.f32 %v6625_v10, %v4841_v38  ;;  %v14282_v10 = vld [vmem:[%s15094_s5 + $0x58] sm:$0xff] }
 0xb7a   :  { %6915 = vmatmul.f32.vlgmr.msra.gmra.mxu3 %v9029_v18  ;;  %v6703_v7 = vmul.f32 %v9029_v18, %v14235_v16 }
 0xb7b   :  { %9030 = vtanh.f32 %v6671_v51  ;;  %v14242_v32 = vpop.f32.mrf.mxu1  ;;  %7487 = vmatpush.msra.mxu3 %v14247_v5  ;;  %v14291_v51 = vld [vmem:[%s15094_s5 + $0x50] sm:$0xff] }
 0xb7c   :  { %v14251_v44 = vadd.f32 %v6703_v7, %v14058_v28  ;;  %v15883_v7 = vld [vmem:[#allocation140_spill] sm:$0xff] }
 0xb7d   :  { %7488 = vmatpush.msra.mxu3 %v14256_v33 }
 0xb7e   :  { %15880 = vst [vmem:[#allocation199_spill] sm:$0xff] %v14251_v44  ;;  %4926 = vmatmul.f32.gmra.mxu1 %v15881_v54  ;;  %v4847_v54 = vadd.f32 %v13895_v14, %v14147_v20  ;;  %v15885_v44 = vld [vmem:[#allocation141_spill] sm:$0xff] }
 0xb7f   :  { %7489 = vmatpush.msra.mxu3 %v14265_v27 }
 0xb80   :  { %v6628_v28 = vpop.f32.mrf.mxu3 }
 0xb81   :  { %v9031_v25 = vpop.eup %9030  ;;  %v6672_v34 = vadd.f32 %v6628_v28, %v4844_v60  ;;  %7490 = vmatpush.msra.mxu3 %v14271_v52  ;;  %v14300_v60 = vld [vmem:[%s15094_s5 + $0x48] sm:$0xff] }
 0xb82   :  { %v6704_v50 = vmul.f32 %v9031_v25, %v14235_v16  ;;  %6918 = vmatmul.f32.gmra.mxu3 %v9031_v25 }
 0xb83   :  { %9032 = vtanh.f32 %v6672_v34  ;;  %v14277_v38 = vpop.f32.mrf.mxu1  ;;  %7491 = vmatpush.msra.mxu3 %v14282_v10  ;;  %v14306_v34 = vld [vmem:[%s15094_s5 + $0x40] sm:$0xff] }
 0xb84   :  { %v14286_v18 = vadd.f32 %v6704_v50, %v14074_v40 }
 0xb85   :  { %7492 = vmatpush.msra.mxu3 %v14291_v51 }
 0xb86   :  { %15882 = vst [vmem:[#allocation94_spill] sm:$0xff] %v14286_v18  ;;  %4929 = vmatmul.f32.gmra.mxu1 %v15883_v7  ;;  %v14313_v7 = vld [vmem:[%s15094_s5 + $0x38] sm:$0xff]  ;;  %v14320_v18 = vpop.f32.mrf.mxu2 }
 0xb87   :  { %7493 = vmatpush.msra.mxu3 %v14300_v60 }
 0xb88   :  { %v6631_v40 = vpop.f32.mrf.mxu3 }
 0xb89   :  { %v9033_v28 = vpop.eup %9032  ;;  %v6673_v25 = vadd.f32 %v6631_v40, %v4847_v54  ;;  %7494 = vmatpush.msra.mxu3 %v14306_v34 }
 0xb8a   :  { %v6705_v50 = vmul.f32 %v9033_v28, %v14235_v16  ;;  %6921 = vmatmul.f32.gmra.mxu3 %v9033_v28  ;;  %v14325_v28 = vld [vmem:[%s15094_s5 + $0x30] sm:$0xff] }
 0xb8b   :  { %9034 = vtanh.f32 %v6673_v25  ;;  %v4885_v20 = vpop.f32.mrf.mxu1  ;;  %7495 = vmatpush.msra.mxu3 %v14313_v7 }
 0xb8c   :  { %v4886_v54 = vadd.f32 %v13895_v14, %v4885_v20  ;;  %v14318_v40 = vadd.f32 %v6705_v50, %v14090_v1  ;;  %v14334_v1 = vld [vmem:[%s15094_s5 + $0x28] sm:$0xff] }
 0xb8d   :  { %7496 = vmatpush.msra.mxu3 %v14325_v28 }
 0xb8e   :  { %15884 = vst [vmem:[#allocation201_spill] sm:$0xff] %v14318_v40  ;;  %v6817_v25 = vadd.f32 %v6769_v56, %v4886_v54  ;;  %4932 = vmatmul.f32.gmra.mxu1 %v15885_v44  ;;  %v14340_v56 = vld [vmem:[%s15094_s5 + $0x20] sm:$0xff]  ;;  %v14347_v54 = vld [vmem:[%s15094_s5 + $0x18] sm:$0xff]  ;;  %v14364_v45 = vpop.f32.mrf.mxu2 }
 0xb8f   :  { %7497 = vmatpush.msra.mxu3 %v14334_v1 }
 0xb90   :  { %9036 = vtanh.f32 %v6817_v25  ;;  %v6634_v50 = vpop.f32.mrf.mxu3 }
 0xb91   :  { %v9035_v20 = vpop.eup %9034  ;;  %v6674_v40 = vadd.f32 %v6634_v50, %v4850_v8  ;;  %7498 = vmatpush.msra.mxu3 %v14340_v56  ;;  %v14357_v50 = vld [vmem:[%s15094_s5 + $0x10] sm:$0xff] }
 0xb92   :  { %v6706_v22 = vmul.f32 %v9035_v20, %v14235_v16  ;;  %6924 = vmatmul.f32.gmra.mxu3 %v9035_v20 }
 0xb93   :  { %9038 = vtanh.f32 %v6674_v40  ;;  %v4888_v44 = vpop.f32.mrf.mxu1  ;;  %7499 = vmatpush.msra.mxu3 %v14347_v54 }
 0xb94   :  { %v4889_v8 = vadd.f32 %v13895_v14, %v4888_v44  ;;  %v14352_v25 = vadd.f32 %v6706_v22, %v14106_v46  ;;  %v14369_v46 = vld [vmem:[%s15094_s5 + $0x8] sm:$0xff] }
 0xb95   :  { %7500 = vmatpush.msra.mxu3 %v14357_v50 }
 0xb96   :  { %15886 = vst [vmem:[#allocation95_spill] sm:$0xff] %v14352_v25  ;;  %v9037_v40 = vpop.eup %9036  ;;  %v6818_v20 = vadd.f32 %v14239_v3, %v4889_v8  ;;  %4935 = vmatmul.f32.gmra.mxu1 %v15887_v26 }
 0xb97   :  { %7062 = vmatmul.f32.vlgmr.msra.gmra.mxu2 %v9037_v40  ;;  %7501 = vmatpush.msra.mxu3 %v14369_v46  ;;  %v6849_v22 = vmul.f32 %v9037_v40, %v14235_v16 }
 0xb98   :  { %9040 = vtanh.f32 %v6818_v20  ;;  %v6637_v44 = vpop.f32.mrf.mxu3  ;;  %7634 = vmatpush.msra.mxu2 %v14247_v5 }
 0xb99   :  { %v9039_v26 = vpop.eup %9038  ;;  %v6675_v3 = vadd.f32 %v6637_v44, %v4853_v4  ;;  %7502 = vmatpush.msra.mxu3 %v14377_v19  ;;  %v14381_v8 = vadd.f32 %v6849_v22, %v13883_v13  ;;  %v4856_v13 = vadd.f32 %v13895_v14, %v14174_v9  ;;  %v14405_v9 = vld [vmem:[%s15095_s6] ss:$0 sm:$0xff] }
 0xb9a   :  { %v6707_v25 = vmul.f32 %v9039_v26, %v14235_v16  ;;  %6927 = vmatmul.f32.gmra.mxu3 %v9039_v26  ;;  %7635 = vmatpush.msra.mxu2 %v14256_v33 }
 0xb9b   :  { %9042 = vtanh.f32 %v6675_v3  ;;  %v4891_v40 = vpop.f32.mrf.mxu1  ;;  %v15889_v3 = vld [vmem:[#allocation144_spill] sm:$0xff] }
 0xb9c   :  { %v4892_v5 = vadd.f32 %v13895_v14, %v4891_v40  ;;  %7636 = vmatpush.msra.mxu2 %v14265_v27  ;;  %v14388_v4 = vadd.f32 %v6707_v25, %v14122_v55  ;;  %v6784_v55 = vpop.f32.mrf.mxu2 }
 0xb9e   :  { %v9041_v20 = vpop.eup %9040  ;;  %v6819_v44 = vadd.f32 %v14275_v42, %v4892_v5  ;;  %4938 = vmatmul.f32.gmra.mxu1 %v15888_v49  ;;  %7637 = vmatpush.msra.mxu2 %v14271_v52 }
 0xb9f   :  { %7065 = vmatmul.f32.gmra.mxu2 %v9041_v20  ;;  %v6850_v33 = vmul.f32 %v9041_v20, %v14235_v16 }
 0xba0   :  { %9044 = vtanh.f32 %v6819_v44  ;;  %v6640_v22 = vpop.f32.mrf.mxu3  ;;  %7638 = vmatpush.msra.mxu2 %v14282_v10 }
 0xba1   :  { %v9043_v27 = vpop.eup %9042  ;;  %v6676_v25 = vadd.f32 %v6640_v22, %v4856_v13  ;;  %v14398_v26 = vadd.f32 %v6850_v33, %v13910_v47 }
 0xba2   :  { %v6708_v49 = vmul.f32 %v9043_v27, %v14235_v16  ;;  %6930 = vmatmul.f32.gmra.mxu3 %v9043_v27  ;;  %7639 = vmatpush.msra.mxu2 %v14291_v51  ;;  %v4859_v51 = vadd.f32 %v14405_v9, %v14183_v59 }
 0xba3   :  { %9046 = vtanh.f32 %v6676_v25  ;;  %v4894_v14 = vpop.f32.mrf.mxu1 }
 0xba4   :  { %v4895_v52 = vadd.f32 %v14405_v9, %v4894_v14  ;;  %7640 = vmatpush.msra.mxu2 %v14300_v60  ;;  %v14410_v42 = vadd.f32 %v6708_v49, %v14134_v37 }
 0xba6   :  { %v9045_v47 = vpop.eup %9044  ;;  %v6820_v10 = vadd.f32 %v14320_v18, %v4895_v52  ;;  %4941 = vmatmul.f32.gmra.mxu1 %v15889_v3  ;;  %7641 = vmatpush.msra.mxu2 %v14306_v34  ;;  %v6787_v34 = vpop.f32.mrf.mxu2 }
 0xba7   :  { %7068 = vmatmul.f32.gmra.mxu2 %v9045_v47  ;;  %v6851_v40 = vmul.f32 %v9045_v47, %v14235_v16  ;;  %v15891_v47 = vld [vmem:[#allocation146_spill] sm:$0xff] }
 0xba8   :  { %9048 = vtanh.f32 %v6820_v10  ;;  %v6643_v5 = vpop.f32.mrf.mxu3  ;;  %7642 = vmatpush.msra.mxu2 %v14313_v7 }
 0xba9   :  { %v9047_v60 = vpop.eup %9046  ;;  %v6677_v37 = vadd.f32 %v6643_v5, %v4859_v51  ;;  %v14420_v20 = vadd.f32 %v6851_v40, %v13930_v31  ;;  %v15890_v31 = vld [vmem:[#allocation145_spill] sm:$0xff] }
 0xbaa   :  { %v6709_v18 = vmul.f32 %v9047_v60, %v14235_v16  ;;  %6933 = vmatmul.f32.gmra.mxu3 %v9047_v60  ;;  %7643 = vmatpush.msra.mxu2 %v14325_v28  ;;  %v4862_v28 = vadd.f32 %v14405_v9, %v14192_v29  ;;  %v15892_v60 = vld [vmem:[#allocation147_spill] sm:$0xff] }
 0xbab   :  { %9050 = vtanh.f32 %v6677_v37  ;;  %v4897_v59 = vpop.f32.mrf.mxu1 }
 0xbac   :  { %v4898_v44 = vadd.f32 %v14405_v9, %v4897_v59  ;;  %7644 = vmatpush.msra.mxu2 %v14334_v1  ;;  %v14427_v13 = vadd.f32 %v6709_v18, %v14143_v36  ;;  %v4868_v18 = vadd.f32 %v14405_v9, %v14210_v23 }
 0xbae   :  { %v9049_v7 = vpop.eup %9048  ;;  %v6821_v33 = vadd.f32 %v14364_v45, %v4898_v44  ;;  %4944 = vmatmul.f32.gmra.mxu1 %v15890_v31  ;;  %7645 = vmatpush.msra.mxu2 %v14340_v56 }
 0xbaf   :  { %7071 = vmatmul.f32.gmra.mxu2 %v9049_v7  ;;  %v6852_v22 = vmul.f32 %v9049_v7, %v14235_v16 }
 0xbb0   :  { %9052 = vtanh.f32 %v6821_v33  ;;  %v6646_v27 = vpop.f32.mrf.mxu3  ;;  %7646 = vmatpush.msra.mxu2 %v14347_v54  ;;  %v6790_v54 = vpop.f32.mrf.mxu2 }
 0xbb1   :  { %v9051_v1 = vpop.eup %9050  ;;  %v6678_v36 = vadd.f32 %v6646_v27, %v4862_v28  ;;  %v14437_v25 = vadd.f32 %v6852_v22, %v13950_v6  ;;  %v4865_v6 = vadd.f32 %v14405_v9, %v14201_v30  ;;  %v4871_v27 = vadd.f32 %v14405_v9, %v14217_v21 }
 0xbb2   :  { %v6710_v45 = vmul.f32 %v9051_v1, %v14235_v16  ;;  %6936 = vmatmul.f32.gmra.mxu3 %v9051_v1  ;;  %7647 = vmatpush.msra.mxu2 %v14357_v50 }
 0xbb3   :  { %9054 = vtanh.f32 %v6678_v36  ;;  %v4900_v56 = vpop.f32.mrf.mxu1 }
 0xbb4   :  { %v4901_v29 = vadd.f32 %v14405_v9, %v4900_v56  ;;  %7648 = vmatpush.msra.mxu2 %v14369_v46  ;;  %v14444_v49 = vadd.f32 %v6710_v45, %v14152_v0 }
 0xbb6   :  { %v9053_v14 = vpop.eup %9052  ;;  %v6822_v52 = vadd.f32 %v6784_v55, %v4901_v29  ;;  %4947 = vmatmul.f32.gmra.mxu1 %v15891_v47  ;;  %7649 = vmatpush.msra.mxu2 %v14377_v19 }
 0xbb7   :  { %7074 = vmatmul.f32.gmra.mxu2 %v9053_v14  ;;  %v6853_v50 = vmul.f32 %v9053_v14, %v14235_v16 }
 0xbb8   :  { %9056 = vtanh.f32 %v6822_v52  ;;  %v6649_v10 = vpop.f32.mrf.mxu3  ;;  %v6793_v37 = vpop.f32.mrf.mxu2 }
 0xbb9   :  { %v9055_v3 = vpop.eup %9054  ;;  %v6679_v46 = vadd.f32 %v6649_v10, %v4865_v6  ;;  %v14452_v0 = vadd.f32 %v6853_v50, %v13974_v24  ;;  %v4874_v6 = vadd.f32 %v14405_v9, %v14224_v61 }
 0xbba   :  { %v6711_v51 = vmul.f32 %v9055_v3, %v14235_v16  ;;  %6939 = vmatmul.f32.gmra.mxu3 %v9055_v3 }
 0xbbb   :  { %9058 = vtanh.f32 %v6679_v46  ;;  %v4903_v55 = vpop.f32.mrf.mxu1 }
 0xbbc   :  { %v4904_v19 = vadd.f32 %v14405_v9, %v4903_v55  ;;  %v14457_v40 = vadd.f32 %v6711_v51, %v14161_v12 }
 0xbbe   :  { %v9057_v30 = vpop.eup %9056  ;;  %v6823_v5 = vadd.f32 %v6787_v34, %v4904_v19  ;;  %4950 = vmatmul.f32.gmra.mxu1 %v15892_v60  ;;  %v4877_v60 = vadd.f32 %v14405_v9, %v14229_v62 }
 0xbbf   :  { %7077 = vmatmul.f32.gmra.mxu2 %v9057_v30  ;;  %v6854_v24 = vmul.f32 %v9057_v30, %v14235_v16 }
 0xbc0   :  { %9060 = vtanh.f32 %v6823_v5  ;;  %v6652_v59 = vpop.f32.mrf.mxu3  ;;  %v6796_v45 = vpop.f32.mrf.mxu2 }
 0xbc1   :  { %v9059_v44 = vpop.eup %9058  ;;  %v6680_v7 = vadd.f32 %v6652_v59, %v4868_v18  ;;  %v14464_v33 = vadd.f32 %v6854_v24, %v13989_v48 }
 0xbc2   :  { %v6712_v12 = vmul.f32 %v9059_v44, %v14235_v16  ;;  %6942 = vmatmul.f32.gmra.mxu3 %v9059_v44 }
 0xbc3   :  { %9062 = vtanh.f32 %v6680_v7  ;;  %v4906_v34 = vpop.f32.mrf.mxu1 }
 0xbc4   :  { %v4907_v31 = vadd.f32 %v14405_v9, %v4906_v34  ;;  %v14469_v28 = vadd.f32 %v6712_v12, %v14170_v39 }
 0xbc6   :  { %v9061_v23 = vpop.eup %9060  ;;  %v6824_v22 = vadd.f32 %v6790_v54, %v4907_v31 }
 0xbc7   :  { %7080 = vmatmul.f32.gmra.mxu2 %v9061_v23  ;;  %v6855_v1 = vmul.f32 %v9061_v23, %v14235_v16  ;;  %v4880_v23 = vadd.f32 %v14405_v9, %v14242_v32 }
 0xbc8   :  { %9064 = vtanh.f32 %v6824_v22  ;;  %v6655_v48 = vpop.f32.mrf.mxu3 }
 0xbc9   :  { %v9063_v36 = vpop.eup %9062  ;;  %v6681_v56 = vadd.f32 %v6655_v48, %v4871_v27  ;;  %v14475_v29 = vadd.f32 %v6855_v1, %v14004_v53 }
 0xbca   :  { %v6713_v14 = vmul.f32 %v9063_v36, %v14235_v16  ;;  %6945 = vmatmul.f32.gmra.mxu3 %v9063_v36 }
 0xbcb   :  { %9066 = vtanh.f32 %v6681_v56  ;;  %v4909_v39 = vpop.f32.mrf.mxu1 }
 0xbcc   :  { %v4910_v54 = vadd.f32 %v14405_v9, %v4909_v39  ;;  %v14480_v21 = vadd.f32 %v6713_v14, %v14179_v2  ;;  %v6799_v2 = vpop.f32.mrf.mxu2 }
 0xbce   :  { %v9065_v52 = vpop.eup %9064  ;;  %v6825_v47 = vadd.f32 %v6793_v37, %v4910_v54  ;;  %v4883_v54 = vadd.f32 %v14405_v9, %v14277_v38 }
 0xbcf   :  { %7083 = vmatmul.f32.gmra.mxu2 %v9065_v52  ;;  %v6856_v50 = vmul.f32 %v9065_v52, %v14235_v16 }
 0xbd0   :  { %9068 = vtanh.f32 %v6825_v47  ;;  %v6658_v53 = vpop.f32.mrf.mxu3 }
 0xbd1   :  { %v9067_v10 = vpop.eup %9066  ;;  %v6682_v3 = vadd.f32 %v6658_v53, %v4874_v6  ;;  %v14486_v46 = vadd.f32 %v6856_v50, %v14019_v15 }
 0xbd2   :  { %v6714_v51 = vmul.f32 %v9067_v10, %v14235_v16  ;;  %6948 = vmatmul.f32.gmra.mxu3 %v9067_v10 }
 0xbd3   :  { %9070 = vtanh.f32 %v6682_v3  ;;  %v4912_v55 = vpop.f32.mrf.mxu1 }
 0xbd4   :  { %v4913_v19 = vadd.f32 %v14405_v9, %v4912_v55  ;;  %v14491_v61 = vadd.f32 %v6714_v51, %v14188_v57  ;;  %v6802_v62 = vpop.f32.mrf.mxu2 }
 0xbd6   :  { %v9069_v30 = vpop.eup %9068  ;;  %v6826_v5 = vadd.f32 %v6796_v45, %v4913_v19 }
 0xbd7   :  { %7086 = vmatmul.f32.gmra.mxu2 %v9069_v30  ;;  %v6857_v15 = vmul.f32 %v9069_v30, %v14235_v16 }
 0xbd8   :  { %9072 = vtanh.f32 %v6826_v5  ;;  %v6661_v37 = vpop.f32.mrf.mxu3 }
 0xbd9   :  { %v9071_v18 = vpop.eup %9070  ;;  %v6683_v24 = vadd.f32 %v6661_v37, %v4877_v60  ;;  %v14497_v59 = vadd.f32 %v6857_v15, %v14032_v11  ;;  %v15893_v15 = vld [vmem:[#allocation93_spill] sm:$0xff] }
 0xbda   :  { %v6715_v44 = vmul.f32 %v9071_v18, %v14235_v16  ;;  %6951 = vmatmul.f32.gmra.mxu3 %v9071_v18 }
 0xbdb   :  { %9074 = vtanh.f32 %v6683_v24  ;;  %v4915_v57 = vpop.f32.mrf.mxu1 }
 0xbdc   :  { %v4916_v7 = vadd.f32 %v14405_v9, %v4915_v57  ;;  %v14502_v12 = vadd.f32 %v6715_v44, %v14197_v17  ;;  %v6805_v39 = vpop.f32.mrf.mxu2  ;;  %v15894_v44 = vld [vmem:[#allocation91_spill] sm:$0xff] }
 0xbde   :  { %v9073_v34 = vpop.eup %9072  ;;  %v6827_v31 = vadd.f32 %v6799_v2, %v4916_v7 }
 0xbdf   :  { %7089 = vmatmul.f32.gmra.mxu2 %v9073_v34  ;;  %v6858_v11 = vmul.f32 %v9073_v34, %v14235_v16 }
 0xbe0   :  { %9076 = vtanh.f32 %v6827_v31  ;;  %v6664_v22 = vpop.f32.mrf.mxu3 }
 0xbe1   :  { %v9075_v27 = vpop.eup %9074  ;;  %v6684_v1 = vadd.f32 %v6664_v22, %v4880_v23  ;;  %v14508_v48 = vadd.f32 %v6858_v11, %v14040_v35  ;;  %v15895_v22 = vld [vmem:[#allocation195_spill] sm:$0xff] }
 0xbe2   :  { %v6716_v36 = vmul.f32 %v9075_v27, %v14235_v16  ;;  %6954 = vmatmul.f32.gmra.mxu3 %v9075_v27 }
 0xbe3   :  { %9078 = vtanh.f32 %v6684_v1  ;;  %v4918_v17 = vpop.f32.mrf.mxu1 }
 0xbe4   :  { %v4919_v45 = vadd.f32 %v14405_v9, %v4918_v17  ;;  %v14513_v56 = vadd.f32 %v6716_v36, %v14206_v41  ;;  %v6808_v19 = vpop.f32.mrf.mxu2 }
 0xbe6   :  { %v9077_v32 = vpop.eup %9076  ;;  %v6828_v14 = vadd.f32 %v6802_v62, %v4919_v45 }
 0xbe7   :  { %7092 = vmatmul.f32.gmra.mxu2 %v9077_v32  ;;  %v6859_v35 = vmul.f32 %v9077_v32, %v14235_v16 }
 0xbe8   :  { %9080 = vtanh.f32 %v6828_v14  ;;  %v6667_v52 = vpop.f32.mrf.mxu3 }
 0xbe9   :  { %v9079_v47 = vpop.eup %9078  ;;  %v6685_v6 = vadd.f32 %v6667_v52, %v4883_v54  ;;  %v14519_v50 = vadd.f32 %v6859_v35, %v14048_v58  ;;  %v15896_v54 = vld [vmem:[#allocation92_spill] sm:$0xff] }
 0xbea   :  { %v6717_v53 = vmul.f32 %v9079_v47, %v14235_v16  ;;  %6957 = vmatmul.f32.gmra.mxu3 %v9079_v47 }
 0xbeb   :  { %9082 = vtanh.f32 %v6685_v6  ;;  %v4921_v41 = vpop.f32.mrf.mxu1 }
 0xbec   :  { %v4922_v10 = vadd.f32 %v14405_v9, %v4921_v41  ;;  %v14524_v3 = vadd.f32 %v6717_v53, %v14215_v43 }
 0xbee   :  { %v9081_v38 = vpop.eup %9080  ;;  %v6829_v51 = vadd.f32 %v6805_v39, %v4922_v10 }
 0xbef   :  { %7095 = vmatmul.f32.gmra.mxu2 %v9081_v38  ;;  %v6860_v2 = vmul.f32 %v9081_v38, %v14235_v16  ;;  %v15897_v38 = vld [vmem:[#allocation197_spill] sm:$0xff] }
 0xbf0   :  { %9084 = vtanh.f32 %v6829_v51 }
 0xbf1   :  { %v9083_v55 = vpop.eup %9082  ;;  %v14528_v58 = vadd.f32 %v6860_v2, %v14062_v63  ;;  %v6811_v63 = vpop.f32.mrf.mxu2 }
 0xbf2   :  { %v6718_v30 = vmul.f32 %v9083_v55, %v14235_v16  ;;  %6960 = vmatmul.f32.gmra.mxu3 %v9083_v55  ;;  %v14557_v55 = vld [vmem:[%s15096_s7 + $0x5] ss:$0 sm:$0xff] }
 0xbf3   :  { %v4924_v5 = vpop.f32.mrf.mxu1 }
 0xbf4   :  { %v4925_v60 = vadd.f32 %v14405_v9, %v4924_v5  ;;  %v14533_v43 = vadd.f32 %v6718_v30, %v15893_v15 }
 0xbf6   :  { %v9085_v37 = vpop.eup %9084  ;;  %v6830_v18 = vadd.f32 %v6808_v19, %v4925_v60 }
 0xbf7   :  { %7098 = vmatmul.f32.gmra.mxu2 %v9085_v37  ;;  %v6861_v24 = vmul.f32 %v9085_v37, %v14235_v16 }
 0xbf8   :  { %9086 = vtanh.f32 %v6830_v18  ;;  %v15899_v18 = vld [vmem:[#allocation199_spill] sm:$0xff] }
 0xbf9   :  { %v14537_v57 = vadd.f32 %v6861_v24, %v15894_v44  ;;  %v6814_v17 = vpop.f32.mrf.mxu2 }
 0xbfb   :  { %v4927_v7 = vpop.f32.mrf.mxu1 }
 0xbfc   :  { %v4928_v62 = vadd.f32 %v14405_v9, %v4927_v7 }
 0xbfd   :  { %v6916_v34 = vpop.f32.mrf.mxu3 }
 0xbfe   :  { %v9087_v31 = vpop.eup %9086  ;;  %v6831_v23 = vadd.f32 %v6811_v63, %v4928_v62 }
 0xbff   :  { %7101 = vmatmul.f32.gmra.mxu2 %v9087_v31  ;;  %v6862_v11 = vmul.f32 %v9087_v31, %v14235_v16 }
 0xc00   :  { %9088 = vtanh.f32 %v6831_v23 }
 0xc01   :  { %v14542_v27 = vadd.f32 %v6862_v11, %v15895_v22  ;;  %v15900_v22 = vld [vmem:[#allocation155_spill] sm:$0xff] }
 0xc03   :  { %v4930_v1 = vpop.f32.mrf.mxu1 }
 0xc04   :  { %v4931_v36 = vadd.f32 %v14405_v9, %v4930_v1  ;;  %v4985_v1 = vadd.f32 %v14405_v9, %v15900_v22 }
 0xc05   :  { %v6919_v45 = vpop.f32.mrf.mxu3 }
 0xc06   :  { %v9089_v32 = vpop.eup %9088  ;;  %v6832_v14 = vadd.f32 %v6814_v17, %v4931_v36  ;;  %v15901_v36 = vld [vmem:[#allocation94_spill] sm:$0xff] }
 0xc07   :  { %7104 = vmatmul.f32.gmra.mxu2 %v9089_v32  ;;  %v6863_v39 = vmul.f32 %v9089_v32, %v14235_v16 }
 0xc08   :  { %9090 = vtanh.f32 %v6832_v14 }
 0xc09   :  { %v14547_v35 = vadd.f32 %v6863_v39, %v15896_v54 }
 0xc0b   :  { %v4933_v52 = vpop.f32.mrf.mxu1 }
 0xc0c   :  { %v4934_v47 = vadd.f32 %v14405_v9, %v4933_v52 }
 0xc0d   :  { %v6922_v6 = vpop.f32.mrf.mxu3 }
 0xc0e   :  { %v9091_v53 = vpop.eup %9090  ;;  %v6964_v41 = vadd.f32 %v6916_v34, %v4934_v47 }
 0xc0f   :  { %7107 = vmatmul.f32.gmra.mxu2 %v9091_v53  ;;  %v6864_v10 = vmul.f32 %v9091_v53, %v14235_v16  ;;  %v15898_v16 = vld [vmem:[#allocation19_spill] sm:$0xff] }
 0xc10   :  { %9092 = vtanh.f32 %v6964_v41  ;;  %v4982_v37 = vadd.f32 %v14405_v9, %v15898_v16 }
 0xc11   :  { %v14552_v51 = vadd.f32 %v6864_v10, %v15897_v38  ;;  %v15902_v38 = vld [vmem:[#allocation22_spill] sm:$0xff] }
 0xc13   :  { %v4936_v2 = vpop.f32.mrf.mxu1 }
 0xc14   :  { %v4937_v19 = vadd.f32 %v14405_v9, %v4936_v2  ;;  %v4988_v2 = vadd.f32 %v14405_v9, %v15902_v38 }
 0xc15   :  { %v6925_v30 = vpop.f32.mrf.mxu3 }
 0xc16   :  { %v9093_v5 = vpop.eup %9092  ;;  %v6965_v60 = vadd.f32 %v6919_v45, %v4937_v19  ;;  %v15903_v19 = vld [vmem:[#allocation201_spill] sm:$0xff] }
 0xc17   :  { %7209 = vmatmul.f32.vlgmr.msrb.gmra.mxu3 %v9093_v5  ;;  %v6997_v15 = vmul.f32 %v9093_v5, %v14557_v55 }
 0xc18   :  { %9094 = vtanh.f32 %v6965_v60 }
 0xc19   :  { %v14564_v24 = vadd.f32 %v6997_v15, %v15899_v18 }
 0xc1a   :  { %v7063_v44 = vpop.f32.mrf.mxu2 }
 0xc1b   :  { %v7111_v63 = vadd.f32 %v7063_v44, %v4982_v37  ;;  %v4939_v7 = vpop.f32.mrf.mxu1 }
 0xc1c   :  { %v4940_v62 = vadd.f32 %v14405_v9, %v4939_v7 }
 0xc1d   :  { %9096 = vtanh.f32 %v7111_v63  ;;  %v6928_v34 = vpop.f32.mrf.mxu3 }
 0xc1e   :  { %v9095_v31 = vpop.eup %9094  ;;  %v6966_v23 = vadd.f32 %v6922_v6, %v4940_v62 }
 0xc1f   :  { %7212 = vmatmul.f32.gmra.mxu3 %v9095_v31  ;;  %v6998_v11 = vmul.f32 %v9095_v31, %v14557_v55  ;;  %v15904_v31 = vld [vmem:[#allocation158_spill] sm:$0xff] }
 0xc20   :  { %9098 = vtanh.f32 %v6966_v23  ;;  %v4991_v23 = vadd.f32 %v14405_v9, %v15904_v31 }
 0xc21   :  { %v14571_v17 = vadd.f32 %v6998_v11, %v15901_v36  ;;  %v15905_v11 = vld [vmem:[#allocation95_spill] sm:$0xff] }
 0xc22   :  { %v7066_v45 = vpop.f32.mrf.mxu2 }
 0xc23   :  { %v9097_v32 = vpop.eup %9096  ;;  %v7112_v14 = vadd.f32 %v7066_v45, %v4985_v1  ;;  %v4942_v39 = vpop.f32.mrf.mxu1 }
 0xc24   :  { %v4943_v54 = vadd.f32 %v14405_v9, %v4942_v39  ;;  %7356 = vmatmul.f32.vlgmr.msrb.gmra.mxu2 %v9097_v32  ;;  %v7143_v52 = vmul.f32 %v9097_v32, %v14557_v55 }
 0xc25   :  { %9100 = vtanh.f32 %v7112_v14  ;;  %v6931_v47 = vpop.f32.mrf.mxu3  ;;  %v15906_v14 = vld [vmem:[#allocation148_spill] sm:$0xff] }
 0xc26   :  { %v9099_v6 = vpop.eup %9098  ;;  %v6967_v53 = vadd.f32 %v6925_v30, %v4943_v54  ;;  %v14576_v41 = vadd.f32 %v7143_v52, %v14381_v8 }
 0xc27   :  { %7215 = vmatmul.f32.gmra.mxu3 %v9099_v6  ;;  %v6999_v10 = vmul.f32 %v9099_v6, %v14557_v55 }
 0xc28   :  { %9102 = vtanh.f32 %v6967_v53 }
 0xc29   :  { %v14582_v5 = vadd.f32 %v6999_v10, %v15903_v19 }
 0xc2a   :  { %v7069_v60 = vpop.f32.mrf.mxu2 }
 0xc2b   :  { %v9101_v15 = vpop.eup %9100  ;;  %v7113_v16 = vadd.f32 %v7069_v60, %v4988_v2  ;;  %v4945_v37 = vpop.f32.mrf.mxu1  ;;  %v15907_v2 = vld [vmem:[#allocation25_spill] sm:$0xff] }
 0xc2c   :  { %v4946_v18 = vadd.f32 %v14405_v9, %v4945_v37  ;;  %7359 = vmatmul.f32.gmra.mxu2 %v9101_v15  ;;  %v7144_v8 = vmul.f32 %v9101_v15, %v14557_v55  ;;  %v4994_v19 = vadd.f32 %v14405_v9, %v15907_v2 }
 0xc2d   :  { %9104 = vtanh.f32 %v7113_v16  ;;  %v6934_v30 = vpop.f32.mrf.mxu3 }
 0xc2e   :  { %v9103_v44 = vpop.eup %9102  ;;  %v6968_v63 = vadd.f32 %v6928_v34, %v4946_v18  ;;  %v14587_v7 = vadd.f32 %v7144_v8, %v14398_v26  ;;  %v4955_v34 = vadd.f32 %v14405_v9, %v15906_v14 }
 0xc2f   :  { %7218 = vmatmul.f32.gmra.mxu3 %v9103_v44  ;;  %v7000_v62 = vmul.f32 %v9103_v44, %v14557_v55 }
 0xc30   :  { %9106 = vtanh.f32 %v6968_v63 }
 0xc31   :  { %v14593_v22 = vadd.f32 %v7000_v62, %v15905_v11 }
 0xc32   :  { %v7072_v1 = vpop.f32.mrf.mxu2 }
 0xc33   :  { %v9105_v36 = vpop.eup %9104  ;;  %v7114_v45 = vadd.f32 %v7072_v1, %v4991_v23  ;;  %v4948_v32 = vpop.f32.mrf.mxu1 }
 0xc34   :  { %v4949_v26 = vadd.f32 %v14405_v9, %v4948_v32  ;;  %7362 = vmatmul.f32.gmra.mxu2 %v9105_v36  ;;  %v7145_v39 = vmul.f32 %v9105_v36, %v14557_v55 }
 0xc35   :  { %9108 = vtanh.f32 %v7114_v45  ;;  %v6937_v54 = vpop.f32.mrf.mxu3  ;;  %v15909_v45 = vld [vmem:[#allocation161_spill] sm:$0xff] }
 0xc36   :  { %v9107_v52 = vpop.eup %9106  ;;  %v6969_v6 = vadd.f32 %v6931_v47, %v4949_v26  ;;  %v6971_v53 = vadd.f32 %v6937_v54, %v4955_v34  ;;  %v14600_v10 = vadd.f32 %v7145_v39, %v14420_v20  ;;  %v15908_v47 = vld [vmem:[#allocation14_spill] sm:$0xff]  ;;  %v4997_v32 = vadd.f32 %v14405_v9, %v15909_v45  ;;  %v15910_v39 = vld [vmem:[#allocation149_spill] sm:$0xff] }
 0xc37   :  { %7221 = vmatmul.f32.gmra.mxu3 %v9107_v52  ;;  %v7001_v38 = vmul.f32 %v9107_v52, %v14557_v55  ;;  %v4958_v8 = vadd.f32 %v14405_v9, %v15908_v47  ;;  %v4961_v54 = vadd.f32 %v14405_v9, %v15910_v39 }
 0xc38   :  { %9110 = vtanh.f32 %v6969_v6 }
 0xc39   :  { %9112 = vtanh.f32 %v6971_v53  ;;  %v14606_v60 = vadd.f32 %v7001_v38, %v14388_v4 }
 0xc3a   :  { %v7075_v15 = vpop.f32.mrf.mxu2 }
 0xc3b   :  { %v9109_v16 = vpop.eup %9108  ;;  %v7115_v37 = vadd.f32 %v7075_v15, %v4994_v19  ;;  %v4951_v18 = vpop.f32.mrf.mxu1  ;;  %v15911_v15 = vld [vmem:[#allocation28_spill] sm:$0xff] }
 0xc3c   :  { %v4952_v20 = vadd.f32 %v14405_v9, %v4951_v18  ;;  %7365 = vmatmul.f32.gmra.mxu2 %v9109_v16  ;;  %v7146_v44 = vmul.f32 %v9109_v16, %v14557_v55  ;;  %v5000_v16 = vadd.f32 %v14405_v9, %v15911_v15 }
 0xc3d   :  { %9114 = vtanh.f32 %v7115_v37  ;;  %v6940_v63 = vpop.f32.mrf.mxu3 }
 0xc3e   :  { %v9111_v62 = vpop.eup %9110  ;;  %v6970_v31 = vadd.f32 %v6934_v30, %v4952_v20  ;;  %v6972_v23 = vadd.f32 %v6940_v63, %v4958_v8  ;;  %v14613_v4 = vadd.f32 %v7146_v44, %v14437_v25  ;;  %v15912_v20 = vld [vmem:[#allocation15_spill] sm:$0xff] }
 0xc3f   :  { %v9113_v11 = vpop.eup %9112  ;;  %7224 = vmatmul.f32.gmra.mxu3 %v9111_v62  ;;  %v7002_v1 = vmul.f32 %v9111_v62, %v14557_v55  ;;  %v4964_v44 = vadd.f32 %v14405_v9, %v15912_v20 }
 0xc40   :  { %9116 = vtanh.f32 %v6970_v31  ;;  %v7004_v36 = vmul.f32 %v9113_v11, %v14557_v55 }
 0xc41   :  { %9118 = vtanh.f32 %v6972_v23  ;;  %v14620_v14 = vadd.f32 %v7002_v1, %v14410_v42 }
 0xc42   :  { %v7078_v34 = vpop.f32.mrf.mxu2  ;;  %v14623_v30 = vadd.f32 %v7004_v36, %v14444_v49 }
 0xc43   :  { %v9115_v25 = vpop.eup %9114  ;;  %v7116_v26 = vadd.f32 %v7078_v34, %v4997_v32 }
 0xc44   :  { %7368 = vmatmul.f32.gmra.mxu2 %v9115_v25  ;;  %v7147_v52 = vmul.f32 %v9115_v25, %v14557_v55 }
 0xc45   :  { %9120 = vtanh.f32 %v7116_v26  ;;  %v6943_v6 = vpop.f32.mrf.mxu3  ;;  %v15914_v26 = vld [vmem:[#allocation166_spill] sm:$0xff] }
 0xc46   :  { %v9117_v53 = vpop.eup %9116  ;;  %v6973_v38 = vadd.f32 %v6943_v6, %v4961_v54  ;;  %v14629_v2 = vadd.f32 %v7147_v52, %v14452_v0  ;;  %v4967_v39 = vadd.f32 %v14405_v9, %v15914_v26 }
 0xc47   :  { %v9119_v42 = vpop.eup %9118  ;;  %7227 = vmatmul.f32.gmra.mxu3 %v9117_v53  ;;  %v7003_v49 = vmul.f32 %v9117_v53, %v14557_v55  ;;  %v15915_v53 = vld [vmem:[#allocation165_spill] sm:$0xff] }
 0xc48   :  { %9122 = vtanh.f32 %v6973_v38  ;;  %v7005_v19 = vmul.f32 %v9119_v42, %v14557_v55  ;;  %v5006_v38 = vadd.f32 %v14405_v9, %v15915_v53 }
 0xc49   :  { %v14636_v37 = vadd.f32 %v7003_v49, %v14427_v13 }
 0xc4a   :  { %v7081_v18 = vpop.f32.mrf.mxu2  ;;  %v14639_v47 = vadd.f32 %v7005_v19, %v14457_v40  ;;  %v15913_v40 = vld [vmem:[#allocation164_spill] sm:$0xff] }
 0xc4b   :  { %v9121_v8 = vpop.eup %9120  ;;  %v7117_v0 = vadd.f32 %v7081_v18, %v5000_v16  ;;  %v5003_v36 = vadd.f32 %v14405_v9, %v15913_v40  ;;  %v15916_v18 = vld [vmem:[#allocation150_spill] sm:$0xff] }
 0xc4c   :  { %7371 = vmatmul.f32.gmra.mxu2 %v9121_v8  ;;  %v7148_v63 = vmul.f32 %v9121_v8, %v14557_v55  ;;  %v4970_v8 = vadd.f32 %v14405_v9, %v15916_v18 }
 0xc4d   :  { %9124 = vtanh.f32 %v7117_v0  ;;  %v6946_v62 = vpop.f32.mrf.mxu3 }
 0xc4e   :  { %v9123_v31 = vpop.eup %9122  ;;  %v6974_v23 = vadd.f32 %v6946_v62, %v4964_v44  ;;  %v14645_v1 = vadd.f32 %v7148_v63, %v14464_v33  ;;  %v15917_v63 = vld [vmem:[#allocation186_spill] sm:$0xff] }
 0xc4f   :  { %7230 = vmatmul.f32.gmra.mxu3 %v9113_v11  ;;  %v7006_v13 = vmul.f32 %v9123_v31, %v14557_v55  ;;  %v5009_v62 = vadd.f32 %v14405_v9, %v15917_v63 }
 0xc50   :  { %9126 = vtanh.f32 %v6974_v23 }
 0xc51   :  { %v14651_v45 = vadd.f32 %v7006_v13, %v14469_v28 }
 0xc52   :  { %v7084_v32 = vpop.f32.mrf.mxu2 }
 0xc53   :  { %v9125_v34 = vpop.eup %9124  ;;  %v7118_v25 = vadd.f32 %v7084_v32, %v5003_v36  ;;  %v15918_v32 = vld [vmem:[#allocation151_spill] sm:$0xff] }
 0xc54   :  { %7374 = vmatmul.f32.gmra.mxu2 %v9125_v34  ;;  %v7149_v33 = vmul.f32 %v9125_v34, %v14557_v55  ;;  %v4973_v34 = vadd.f32 %v14405_v9, %v15918_v32 }
 0xc55   :  { %9128 = vtanh.f32 %v7118_v25  ;;  %v6949_v11 = vpop.f32.mrf.mxu3 }
 0xc56   :  { %v9127_v54 = vpop.eup %9126  ;;  %v6975_v52 = vadd.f32 %v6949_v11, %v4967_v39  ;;  %v14657_v6 = vadd.f32 %v7149_v33, %v14475_v29  ;;  %v15919_v33 = vld [vmem:[#allocation188_spill] sm:$0xff] }
 0xc57   :  { %7233 = vmatmul.f32.gmra.mxu3 %v9119_v42  ;;  %v7007_v28 = vmul.f32 %v9127_v54, %v14557_v55  ;;  %v5012_v11 = vadd.f32 %v14405_v9, %v15919_v33 }
 0xc58   :  { %9130 = vtanh.f32 %v6975_v52 }
 0xc59   :  { %v14663_v49 = vadd.f32 %v7007_v28, %v14480_v21 }
 0xc5a   :  { %v7087_v19 = vpop.f32.mrf.mxu2 }
 0xc5b   :  { %v9129_v15 = vpop.eup %9128  ;;  %v7119_v16 = vadd.f32 %v7087_v19, %v5006_v38  ;;  %v15920_v19 = vld [vmem:[#allocation167_spill] sm:$0xff] }
 0xc5c   :  { %7377 = vmatmul.f32.gmra.mxu2 %v9129_v15  ;;  %v7150_v29 = vmul.f32 %v9129_v15, %v14557_v55  ;;  %v4976_v15 = vadd.f32 %v14405_v9, %v15920_v19 }
 0xc5d   :  { %9132 = vtanh.f32 %v7119_v16  ;;  %v6952_v42 = vpop.f32.mrf.mxu3 }
 0xc5e   :  { %v9131_v0 = vpop.eup %9130  ;;  %v6976_v20 = vadd.f32 %v6952_v42, %v4970_v8  ;;  %v14669_v44 = vadd.f32 %v7150_v29, %v14486_v46  ;;  %v15921_v29 = vld [vmem:[#allocation190_spill] sm:$0xff] }
 0xc5f   :  { %7236 = vmatmul.f32.gmra.mxu3 %v9123_v31  ;;  %v7008_v21 = vmul.f32 %v9131_v0, %v14557_v55  ;;  %v5015_v42 = vadd.f32 %v14405_v9, %v15921_v29 }
 0xc60   :  { %9134 = vtanh.f32 %v6976_v20 }
 0xc61   :  { %v14675_v23 = vadd.f32 %v7008_v21, %v14491_v61 }
 0xc62   :  { %v7090_v13 = vpop.f32.mrf.mxu2 }
 0xc63   :  { %v9133_v40 = vpop.eup %9132  ;;  %v7120_v36 = vadd.f32 %v7090_v13, %v5009_v62  ;;  %v15922_v13 = vld [vmem:[#allocation18_spill] sm:$0xff] }
 0xc64   :  { %7380 = vmatmul.f32.gmra.mxu2 %v9133_v40  ;;  %v7151_v46 = vmul.f32 %v9133_v40, %v14557_v55  ;;  %v4979_v40 = vadd.f32 %v14405_v9, %v15922_v13 }
 0xc65   :  { %9136 = vtanh.f32 %v7120_v36  ;;  %v6955_v31 = vpop.f32.mrf.mxu3 }
 0xc66   :  { %v9135_v25 = vpop.eup %9134  ;;  %v6977_v26 = vadd.f32 %v6955_v31, %v4973_v34  ;;  %v14681_v39 = vadd.f32 %v7151_v46, %v14497_v59  ;;  %v15923_v46 = vld [vmem:[#allocation192_spill] sm:$0xff] }
 0xc67   :  { %7239 = vmatmul.f32.gmra.mxu3 %v9127_v54  ;;  %v7009_v61 = vmul.f32 %v9135_v25, %v14557_v55  ;;  %v5018_v31 = vadd.f32 %v14405_v9, %v15923_v46 }
 0xc68   :  { %9138 = vtanh.f32 %v6977_v26 }
 0xc69   :  { %v14687_v52 = vadd.f32 %v7009_v61, %v14502_v12 }
 0xc6a   :  { %v7093_v28 = vpop.f32.mrf.mxu2 }
 0xc6b   :  { %v9137_v53 = vpop.eup %9136  ;;  %v7121_v38 = vadd.f32 %v7093_v28, %v5012_v11 }
 0xc6c   :  { %7383 = vmatmul.f32.gmra.mxu2 %v9137_v53  ;;  %v7152_v59 = vmul.f32 %v9137_v53, %v14557_v55 }
 0xc6d   :  { %9140 = vtanh.f32 %v7121_v38  ;;  %v6958_v54 = vpop.f32.mrf.mxu3  ;;  %v15924_v38 = vld [vmem:[#allocation194_spill] sm:$0xff] }
 0xc6e   :  { %v9139_v16 = vpop.eup %9138  ;;  %v6978_v18 = vadd.f32 %v6958_v54, %v4976_v15  ;;  %v14693_v8 = vadd.f32 %v7152_v59, %v14508_v48  ;;  %v5021_v19 = vadd.f32 %v14405_v9, %v15924_v38 }
 0xc6f   :  { %7242 = vmatmul.f32.gmra.mxu3 %v9131_v0  ;;  %v7010_v12 = vmul.f32 %v9139_v16, %v14557_v55 }
 0xc70   :  { %9142 = vtanh.f32 %v6978_v18 }
 0xc71   :  { %v14699_v20 = vadd.f32 %v7010_v12, %v14513_v56 }
 0xc72   :  { %v7096_v21 = vpop.f32.mrf.mxu2 }
 0xc73   :  { %v9141_v63 = vpop.eup %9140  ;;  %v7122_v62 = vadd.f32 %v7096_v21, %v5015_v42 }
 0xc74   :  { %7386 = vmatmul.f32.gmra.mxu2 %v9141_v63  ;;  %v7153_v48 = vmul.f32 %v9141_v63, %v14557_v55 }
 0xc75   :  { %9144 = vtanh.f32 %v7122_v62  ;;  %v6961_v0 = vpop.f32.mrf.mxu3  ;;  %v15926_v62 = vld [vmem:[#allocation198_spill] sm:$0xff] }
 0xc76   :  { %v9143_v36 = vpop.eup %9142  ;;  %v6979_v32 = vadd.f32 %v6961_v0, %v4979_v40  ;;  %v14705_v34 = vadd.f32 %v7153_v48, %v14519_v50  ;;  %v5027_v13 = vadd.f32 %v14405_v9, %v15926_v62 }
 0xc77   :  { %7245 = vmatmul.f32.gmra.mxu3 %v9135_v25  ;;  %v7011_v56 = vmul.f32 %v9143_v36, %v14557_v55 }
 0xc78   :  { %9146 = vtanh.f32 %v6979_v32  ;;  %v15927_v32 = vld [vmem:[#allocation200_spill] sm:$0xff] }
 0xc79   :  { %v14711_v26 = vadd.f32 %v7011_v56, %v14524_v3  ;;  %v5030_v56 = vadd.f32 %v14405_v9, %v15927_v32 }
 0xc7a   :  { %v7099_v61 = vpop.f32.mrf.mxu2 }
 0xc7b   :  { %v9145_v33 = vpop.eup %9144  ;;  %v7123_v11 = vadd.f32 %v7099_v61, %v5018_v31 }
 0xc7c   :  { %7389 = vmatmul.f32.gmra.mxu2 %v9145_v33  ;;  %v7154_v28 = vmul.f32 %v9145_v33, %v14557_v55 }
 0xc7d   :  { %9148 = vtanh.f32 %v7123_v11  ;;  %v14748_v11 = vld [vmem:[%s15096_s7 + $0x6] ss:$0 sm:$0xff] }
 0xc7e   :  { %v9147_v53 = vpop.eup %9146  ;;  %v14715_v50 = vadd.f32 %v7154_v28, %v14528_v58  ;;  %v15925_v58 = vld [vmem:[#allocation196_spill] sm:$0xff] }
 0xc7f   :  { %7248 = vmatmul.f32.gmra.mxu3 %v9139_v16  ;;  %v7012_v25 = vmul.f32 %v9147_v53, %v14557_v55  ;;  %v5024_v16 = vadd.f32 %v14405_v9, %v15925_v58 }
 0xc81   :  { %v14721_v3 = vadd.f32 %v7012_v25, %v14533_v43 }
 0xc82   :  { %v7102_v15 = vpop.f32.mrf.mxu2 }
 0xc83   :  { %v9149_v59 = vpop.eup %9148  ;;  %v7124_v54 = vadd.f32 %v7102_v15, %v5021_v19 }
 0xc84   :  { %7392 = vmatmul.f32.gmra.mxu2 %v9149_v59  ;;  %v7155_v18 = vmul.f32 %v9149_v59, %v14557_v55 }
 0xc85   :  { %9150 = vtanh.f32 %v7124_v54 }
 0xc86   :  { %v14725_v12 = vadd.f32 %v7155_v18, %v14537_v57  ;;  %v15930_v18 = vld [vmem:[#allocation204_spill] sm:$0xff] }
 0xc87   :  { %7251 = vmatmul.f32.gmra.mxu3 %v9143_v36  ;;  %v5036_v58 = vadd.f32 %v14405_v9, %v15930_v18 }
 0xc8a   :  { %v7105_v29 = vpop.f32.mrf.mxu2 }
 0xc8b   :  { %v9151_v42 = vpop.eup %9150  ;;  %v7125_v21 = vadd.f32 %v7105_v29, %v5024_v16 }
 0xc8c   :  { %7395 = vmatmul.f32.gmra.mxu2 %v9151_v42  ;;  %v7156_v43 = vmul.f32 %v9151_v42, %v14557_v55 }
 0xc8d   :  { %9152 = vtanh.f32 %v7125_v21 }
 0xc8e   :  { %v14731_v63 = vadd.f32 %v7156_v43, %v14542_v27  ;;  %v15931_v43 = vld [vmem:[#allocation37_spill] sm:$0xff] }
 0xc8f   :  { %7254 = vmatmul.f32.gmra.mxu3 %v9147_v53  ;;  %v5081_v62 = vadd.f32 %v14405_v9, %v15931_v43 }
 0xc92   :  { %v7108_v57 = vpop.f32.mrf.mxu2 }
 0xc93   :  { %v9153_v40 = vpop.eup %9152  ;;  %v7126_v48 = vadd.f32 %v7108_v57, %v5027_v13 }
 0xc94   :  { %7398 = vmatmul.f32.gmra.mxu2 %v9153_v40  ;;  %v7157_v0 = vmul.f32 %v9153_v40, %v14557_v55 }
 0xc95   :  { %9154 = vtanh.f32 %v7126_v48  ;;  %v15932_v48 = vld [vmem:[#allocation206_spill] sm:$0xff] }
 0xc96   :  { %v14737_v36 = vadd.f32 %v7157_v0, %v14547_v35  ;;  %v15928_v35 = vld [vmem:[#allocation202_spill] sm:$0xff]  ;;  %v5039_v0 = vadd.f32 %v14405_v9, %v15932_v48 }
 0xc97   :  { %v5033_v28 = vadd.f32 %v14405_v9, %v15928_v35 }
 0xc9a   :  { %v7210_v46 = vpop.f32.mrf.mxu3 }
 0xc9b   :  { %v9155_v27 = vpop.eup %9154  ;;  %v7258_v31 = vadd.f32 %v7210_v46, %v5030_v56 }
 0xc9c   :  { %7401 = vmatmul.f32.gmra.mxu2 %v9155_v27  ;;  %v7158_v61 = vmul.f32 %v9155_v27, %v14557_v55  ;;  %v15929_v55 = vld [vmem:[#allocation36_spill] sm:$0xff] }
 0xc9d   :  { %9156 = vtanh.f32 %v7258_v31  ;;  %v5078_v15 = vadd.f32 %v14405_v9, %v15929_v55  ;;  %v15933_v9 = vld [vmem:[#allocation38_spill] sm:$0xff] }
 0xc9e   :  { %v14743_v33 = vadd.f32 %v7158_v61, %v14552_v51  ;;  %v14776_v61 = vld [vmem:[%s15095_s6] ss:$0 sm:$0xff] }
 0xc9f   :  { %v5084_v35 = vadd.f32 %v14776_v61, %v15933_v9 }
 0xca2   :  { %v7213_v53 = vpop.f32.mrf.mxu3 }
 0xca3   :  { %v9157_v25 = vpop.eup %9156  ;;  %v7259_v38 = vadd.f32 %v7213_v53, %v5033_v28 }
 0xca4   :  { %7503 = vmatmul.f32.vlgmr.msra.gmra.mxu3 %v9157_v25  ;;  %v7291_v19 = vmul.f32 %v9157_v25, %v14748_v11 }
 0xca5   :  { %9158 = vtanh.f32 %v7259_v38 }
 0xca6   :  { %v14756_v51 = vadd.f32 %v7291_v19, %v14564_v24 }
 0xca7   :  { %v7357_v59 = vpop.f32.mrf.mxu2 }
 0xca8   :  { %v7405_v54 = vadd.f32 %v7357_v59, %v5078_v15 }
 0xcaa   :  { %9160 = vtanh.f32 %v7405_v54  ;;  %v7216_v16 = vpop.f32.mrf.mxu3 }
 0xcab   :  { %v9159_v29 = vpop.eup %9158  ;;  %v7260_v42 = vadd.f32 %v7216_v16, %v5036_v58  ;;  %v15935_v58 = vld [vmem:[#allocation39_spill] sm:$0xff] }
 0xcac   :  { %7506 = vmatmul.f32.gmra.mxu3 %v9159_v29  ;;  %v7292_v21 = vmul.f32 %v9159_v29, %v14748_v11  ;;  %v5087_v16 = vadd.f32 %v14776_v61, %v15935_v58 }
 0xcad   :  { %9162 = vtanh.f32 %v7260_v42 }
 0xcae   :  { %v14764_v13 = vadd.f32 %v7292_v21, %v14571_v17 }
 0xcaf   :  { %v7360_v24 = vpop.f32.mrf.mxu2 }
 0xcb0   :  { %v9161_v57 = vpop.eup %9160  ;;  %v7406_v40 = vadd.f32 %v7360_v24, %v5081_v62  ;;  %v15936_v62 = vld [vmem:[#allocation210_spill] sm:$0xff] }
 0xcb1   :  { %7650 = vmatmul.f32.vlgmr.msra.gmra.mxu2 %v9161_v57  ;;  %v7437_v32 = vmul.f32 %v9161_v57, %v14748_v11  ;;  %v5045_v24 = vadd.f32 %v14776_v61, %v15936_v62 }
 0xcb2   :  { %9164 = vtanh.f32 %v7406_v40  ;;  %v7219_v56 = vpop.f32.mrf.mxu3 }
 0xcb3   :  { %v9163_v46 = vpop.eup %9162  ;;  %v7261_v27 = vadd.f32 %v7219_v56, %v5039_v0  ;;  %v14770_v31 = vadd.f32 %v7437_v32, %v14576_v41  ;;  %v15934_v41 = vld [vmem:[#allocation208_spill] sm:$0xff] }
 0xcb4   :  { %7509 = vmatmul.f32.gmra.mxu3 %v9163_v46  ;;  %v7293_v17 = vmul.f32 %v9163_v46, %v14748_v11  ;;  %v5042_v19 = vadd.f32 %v14776_v61, %v15934_v41  ;;  %v15937_v32 = vld [vmem:[#allocation40_spill] sm:$0xff] }
 0xcb5   :  { %9166 = vtanh.f32 %v7261_v27  ;;  %v5090_v56 = vadd.f32 %v14776_v61, %v15937_v32 }
 0xcb6   :  { %v14781_v28 = vadd.f32 %v7293_v17, %v14582_v5 }
 0xcb7   :  { %v7363_v53 = vpop.f32.mrf.mxu2 }
 0xcb8   :  { %v9165_v25 = vpop.eup %9164  ;;  %v7407_v38 = vadd.f32 %v7363_v53, %v5084_v35  ;;  %v15938_v35 = vld [vmem:[#allocation212_spill] sm:$0xff] }
 0xcb9   :  { %7653 = vmatmul.f32.gmra.mxu2 %v9165_v25  ;;  %v7438_v55 = vmul.f32 %v9165_v25, %v14748_v11  ;;  %v5048_v53 = vadd.f32 %v14776_v61, %v15938_v35 }
 0xcba   :  { %9168 = vtanh.f32 %v7407_v38  ;;  %v7222_v15 = vpop.f32.mrf.mxu3 }
 0xcbb   :  { %v9167_v59 = vpop.eup %9166  ;;  %v7262_v54 = vadd.f32 %v7222_v15, %v5042_v19  ;;  %v14787_v18 = vadd.f32 %v7438_v55, %v14587_v7  ;;  %v15939_v55 = vld [vmem:[#allocation41_spill] sm:$0xff] }
 0xcbc   :  { %7512 = vmatmul.f32.gmra.mxu3 %v9167_v59  ;;  %v7294_v5 = vmul.f32 %v9167_v59, %v14748_v11  ;;  %v5093_v15 = vadd.f32 %v14776_v61, %v15939_v55 }
 0xcbd   :  { %9170 = vtanh.f32 %v7262_v54 }
 0xcbe   :  { %v14793_v29 = vadd.f32 %v7294_v5, %v14593_v22 }
 0xcbf   :  { %v7366_v42 = vpop.f32.mrf.mxu2 }
 0xcc0   :  { %v9169_v21 = vpop.eup %9168  ;;  %v7408_v43 = vadd.f32 %v7366_v42, %v5087_v16  ;;  %v15940_v16 = vld [vmem:[#allocation213_spill] sm:$0xff] }
 0xcc1   :  { %7656 = vmatmul.f32.gmra.mxu2 %v9169_v21  ;;  %v7439_v7 = vmul.f32 %v9169_v21, %v14748_v11  ;;  %v5051_v42 = vadd.f32 %v14776_v61, %v15940_v16 }
 0xcc2   :  { %9172 = vtanh.f32 %v7408_v43  ;;  %v7225_v57 = vpop.f32.mrf.mxu3 }
 0xcc3   :  { %v9171_v40 = vpop.eup %9170  ;;  %v7263_v48 = vadd.f32 %v7225_v57, %v5045_v24  ;;  %v14799_v0 = vadd.f32 %v7439_v7, %v14600_v10  ;;  %v15941_v7 = vld [vmem:[#allocation42_spill] sm:$0xff] }
 0xcc4   :  { %7515 = vmatmul.f32.gmra.mxu3 %v9171_v40  ;;  %v7295_v22 = vmul.f32 %v9171_v40, %v14748_v11  ;;  %v5096_v57 = vadd.f32 %v14776_v61, %v15941_v7 }
 0xcc5   :  { %9174 = vtanh.f32 %v7263_v48 }
 0xcc6   :  { %v14805_v46 = vadd.f32 %v7295_v22, %v14606_v60 }
 0xcc7   :  { %v7369_v27 = vpop.f32.mrf.mxu2 }
 0xcc8   :  { %v9173_v17 = vpop.eup %9172  ;;  %v7409_v9 = vadd.f32 %v7369_v27, %v5090_v56  ;;  %v15942_v56 = vld [vmem:[#allocation214_spill] sm:$0xff] }
 0xcc9   :  { %7659 = vmatmul.f32.gmra.mxu2 %v9173_v17  ;;  %v7440_v10 = vmul.f32 %v9173_v17, %v14748_v11  ;;  %v5054_v27 = vadd.f32 %v14776_v61, %v15942_v56 }
 0xcca   :  { %9176 = vtanh.f32 %v7409_v9  ;;  %v7228_v25 = vpop.f32.mrf.mxu3 }
 0xccb   :  { %v9175_v38 = vpop.eup %9174  ;;  %v7264_v41 = vadd.f32 %v7228_v25, %v5048_v53  ;;  %v14811_v19 = vadd.f32 %v7440_v10, %v14613_v4  ;;  %v15943_v10 = vld [vmem:[#allocation43_spill] sm:$0xff] }
 0xccc   :  { %7518 = vmatmul.f32.gmra.mxu3 %v9175_v38  ;;  %v7296_v60 = vmul.f32 %v9175_v38, %v14748_v11  ;;  %v5099_v25 = vadd.f32 %v14776_v61, %v15943_v10 }
 0xccd   :  { %9178 = vtanh.f32 %v7264_v41 }
 0xcce   :  { %v14817_v59 = vadd.f32 %v7296_v60, %v14620_v14 }
 0xccf   :  { %v7372_v54 = vpop.f32.mrf.mxu2 }
 0xcd0   :  { %v9177_v5 = vpop.eup %9176  ;;  %v7410_v58 = vadd.f32 %v7372_v54, %v5093_v15  ;;  %v15944_v15 = vld [vmem:[#allocation29_spill] sm:$0xff] }
 0xcd1   :  { %7662 = vmatmul.f32.gmra.mxu2 %v9177_v5  ;;  %v7441_v4 = vmul.f32 %v9177_v5, %v14748_v11  ;;  %v5057_v54 = vadd.f32 %v14776_v61, %v15944_v15 }
 0xcd2   :  { %9180 = vtanh.f32 %v7410_v58  ;;  %v7231_v21 = vpop.f32.mrf.mxu3 }
 0xcd3   :  { %v9179_v43 = vpop.eup %9178  ;;  %v7265_v62 = vadd.f32 %v7231_v21, %v5051_v42  ;;  %v14823_v24 = vadd.f32 %v7441_v4, %v14629_v2  ;;  %v15945_v4 = vld [vmem:[#allocation44_spill] sm:$0xff] }
 0xcd4   :  { %7521 = vmatmul.f32.gmra.mxu3 %v9179_v43  ;;  %v7297_v14 = vmul.f32 %v9179_v43, %v14748_v11  ;;  %v5102_v21 = vadd.f32 %v14776_v61, %v15945_v4 }
 0xcd5   :  { %9182 = vtanh.f32 %v7265_v62 }
 0xcd6   :  { %v14829_v40 = vadd.f32 %v7297_v14, %v14636_v37 }
 0xcd7   :  { %v7375_v48 = vpop.f32.mrf.mxu2 }
 0xcd8   :  { %v9181_v22 = vpop.eup %9180  ;;  %v7411_v32 = vadd.f32 %v7375_v48, %v5096_v57  ;;  %v15946_v57 = vld [vmem:[#allocation30_spill] sm:$0xff] }
 0xcd9   :  { %7665 = vmatmul.f32.gmra.mxu2 %v9181_v22  ;;  %v7442_v2 = vmul.f32 %v9181_v22, %v14748_v11  ;;  %v5060_v48 = vadd.f32 %v14776_v61, %v15946_v57 }
 0xcda   :  { %9184 = vtanh.f32 %v7411_v32  ;;  %v7234_v17 = vpop.f32.mrf.mxu3 }
 0xcdb   :  { %v9183_v9 = vpop.eup %9182  ;;  %v7266_v35 = vadd.f32 %v7234_v17, %v5054_v27  ;;  %v14835_v53 = vadd.f32 %v7442_v2, %v14645_v1  ;;  %v15947_v2 = vld [vmem:[#allocation45_spill] sm:$0xff] }
 0xcdc   :  { %7524 = vmatmul.f32.gmra.mxu3 %v9183_v9  ;;  %v7298_v37 = vmul.f32 %v9183_v9, %v14748_v11  ;;  %v5105_v17 = vadd.f32 %v14776_v61, %v15947_v2 }
 0xcdd   :  { %9186 = vtanh.f32 %v7266_v35 }
 0xcde   :  { %v14841_v38 = vadd.f32 %v7298_v37, %v14623_v30 }
 0xcdf   :  { %v7378_v41 = vpop.f32.mrf.mxu2 }
 0xce0   :  { %v9185_v60 = vpop.eup %9184  ;;  %v7412_v55 = vadd.f32 %v7378_v41, %v5099_v25  ;;  %v15948_v25 = vld [vmem:[#allocation31_spill] sm:$0xff] }
 0xce1   :  { %7668 = vmatmul.f32.gmra.mxu2 %v9185_v60  ;;  %v7443_v1 = vmul.f32 %v9185_v60, %v14748_v11  ;;  %v5063_v41 = vadd.f32 %v14776_v61, %v15948_v25 }
 0xce2   :  { %9188 = vtanh.f32 %v7412_v55  ;;  %v7237_v5 = vpop.f32.mrf.mxu3 }
 0xce3   :  { %v9187_v58 = vpop.eup %9186  ;;  %v7267_v16 = vadd.f32 %v7237_v5, %v5057_v54  ;;  %v14847_v42 = vadd.f32 %v7443_v1, %v14657_v6  ;;  %v15949_v1 = vld [vmem:[#allocation46_spill] sm:$0xff] }
 0xce4   :  { %7527 = vmatmul.f32.gmra.mxu3 %v9187_v58  ;;  %v7299_v30 = vmul.f32 %v9187_v58, %v14748_v11  ;;  %v5108_v5 = vadd.f32 %v14776_v61, %v15949_v1 }
 0xce5   :  { %9190 = vtanh.f32 %v7267_v16 }
 0xce6   :  { %v14853_v43 = vadd.f32 %v7299_v30, %v14639_v47 }
 0xce7   :  { %v7381_v62 = vpop.f32.mrf.mxu2 }
 0xce8   :  { %v9189_v14 = vpop.eup %9188  ;;  %v7413_v7 = vadd.f32 %v7381_v62, %v5102_v21  ;;  %v15950_v21 = vld [vmem:[#allocation32_spill] sm:$0xff] }
 0xce9   :  { %7671 = vmatmul.f32.gmra.mxu2 %v9189_v14  ;;  %v7444_v6 = vmul.f32 %v9189_v14, %v14748_v11  ;;  %v5066_v62 = vadd.f32 %v14776_v61, %v15950_v21 }
 0xcea   :  { %9192 = vtanh.f32 %v7413_v7  ;;  %v7240_v22 = vpop.f32.mrf.mxu3 }
 0xceb   :  { %v9191_v32 = vpop.eup %9190  ;;  %v7268_v56 = vadd.f32 %v7240_v22, %v5060_v48  ;;  %v14859_v27 = vadd.f32 %v7444_v6, %v14669_v44  ;;  %v15951_v6 = vld [vmem:[#allocation47_spill] sm:$0xff] }
 0xcec   :  { %7530 = vmatmul.f32.gmra.mxu3 %v9191_v32  ;;  %v7300_v47 = vmul.f32 %v9191_v32, %v14748_v11  ;;  %v5111_v22 = vadd.f32 %v14776_v61, %v15951_v6 }
 0xced   :  { %9194 = vtanh.f32 %v7268_v56 }
 0xcee   :  { %v14865_v9 = vadd.f32 %v7300_v47, %v14651_v45 }
 0xcef   :  { %v7384_v35 = vpop.f32.mrf.mxu2 }
 0xcf0   :  { %v9193_v37 = vpop.eup %9192  ;;  %v7414_v10 = vadd.f32 %v7384_v35, %v5105_v17  ;;  %v15952_v17 = vld [vmem:[#allocation33_spill] sm:$0xff] }
 0xcf1   :  { %7674 = vmatmul.f32.gmra.mxu2 %v9193_v37  ;;  %v7445_v44 = vmul.f32 %v9193_v37, %v14748_v11  ;;  %v5069_v35 = vadd.f32 %v14776_v61, %v15952_v17 }
 0xcf2   :  { %9196 = vtanh.f32 %v7414_v10  ;;  %v7243_v60 = vpop.f32.mrf.mxu3 }
 0xcf3   :  { %v9195_v55 = vpop.eup %9194  ;;  %v7269_v15 = vadd.f32 %v7243_v60, %v5063_v41  ;;  %v14871_v54 = vadd.f32 %v7445_v44, %v14681_v39  ;;  %v15953_v44 = vld [vmem:[#allocation48_spill] sm:$0xff] }
 0xcf4   :  { %7533 = vmatmul.f32.gmra.mxu3 %v9195_v55  ;;  %v7301_v45 = vmul.f32 %v9195_v55, %v14748_v11  ;;  %v5114_v60 = vadd.f32 %v14776_v61, %v15953_v44 }
 0xcf5   :  { %9198 = vtanh.f32 %v7269_v15 }
 0xcf6   :  { %v14877_v58 = vadd.f32 %v7301_v45, %v14663_v49 }
 0xcf7   :  { %v7387_v16 = vpop.f32.mrf.mxu2 }
 0xcf8   :  { %v9197_v30 = vpop.eup %9196  ;;  %v7415_v4 = vadd.f32 %v7387_v16, %v5108_v5  ;;  %v15954_v5 = vld [vmem:[#allocation34_spill] sm:$0xff] }
 0xcf9   :  { %7677 = vmatmul.f32.gmra.mxu2 %v9197_v30  ;;  %v7446_v39 = vmul.f32 %v9197_v30, %v14748_v11  ;;  %v5072_v16 = vadd.f32 %v14776_v61, %v15954_v5 }
 0xcfa   :  { %9200 = vtanh.f32 %v7415_v4  ;;  %v7246_v14 = vpop.f32.mrf.mxu3 }
 0xcfb   :  { %v9199_v7 = vpop.eup %9198  ;;  %v7270_v57 = vadd.f32 %v7246_v14, %v5066_v62  ;;  %v14883_v48 = vadd.f32 %v7446_v39, %v14693_v8  ;;  %v15955_v39 = vld [vmem:[#allocation49_spill] sm:$0xff] }
 0xcfc   :  { %7536 = vmatmul.f32.gmra.mxu3 %v9199_v7  ;;  %v7302_v49 = vmul.f32 %v9199_v7, %v14748_v11  ;;  %v5117_v14 = vadd.f32 %v14776_v61, %v15955_v39 }
 0xcfd   :  { %9202 = vtanh.f32 %v7270_v57 }
 0xcfe   :  { %v14889_v32 = vadd.f32 %v7302_v49, %v14675_v23 }
 0xcff   :  { %v7390_v56 = vpop.f32.mrf.mxu2 }
 0xd00   :  { %v9201_v47 = vpop.eup %9200  ;;  %v7416_v2 = vadd.f32 %v7390_v56, %v5111_v22  ;;  %v15956_v22 = vld [vmem:[#allocation35_spill] sm:$0xff] }
 0xd01   :  { %7680 = vmatmul.f32.gmra.mxu2 %v9201_v47  ;;  %v7447_v8 = vmul.f32 %v9201_v47, %v14748_v11  ;;  %v5075_v56 = vadd.f32 %v14776_v61, %v15956_v22 }
 0xd02   :  { %9204 = vtanh.f32 %v7416_v2  ;;  %v7249_v37 = vpop.f32.mrf.mxu3 }
 0xd03   :  { %v9203_v10 = vpop.eup %9202  ;;  %v7271_v25 = vadd.f32 %v7249_v37, %v5069_v35  ;;  %v14895_v41 = vadd.f32 %v7447_v8, %v14705_v34  ;;  %v15957_v8 = vld [vmem:[#allocation50_spill] sm:$0xff] }
 0xd04   :  { %7539 = vmatmul.f32.gmra.mxu3 %v9203_v10  ;;  %v7303_v23 = vmul.f32 %v9203_v10, %v14748_v11  ;;  %v5120_v37 = vadd.f32 %v14776_v61, %v15957_v8 }
 0xd05   :  { %9206 = vtanh.f32 %v7271_v25 }
 0xd06   :  { %v14901_v55 = vadd.f32 %v7303_v23, %v14687_v52 }
 0xd07   :  { %v7393_v15 = vpop.f32.mrf.mxu2 }
 0xd08   :  { %v9205_v45 = vpop.eup %9204  ;;  %v7417_v1 = vadd.f32 %v7393_v15, %v5114_v60 }
 0xd09   :  { %7683 = vmatmul.f32.gmra.mxu2 %v9205_v45  ;;  %v7448_v34 = vmul.f32 %v9205_v45, %v14748_v11 }
 0xd0a   :  { %9208 = vtanh.f32 %v7417_v1  ;;  %v7252_v30 = vpop.f32.mrf.mxu3  ;;  %v15958_v1 = vld [vmem:[#allocation51_spill] sm:$0xff] }
 0xd0b   :  { %v9207_v4 = vpop.eup %9206  ;;  %v7272_v21 = vadd.f32 %v7252_v30, %v5072_v16  ;;  %v14907_v62 = vadd.f32 %v7448_v34, %v14715_v50  ;;  %v5123_v5 = vadd.f32 %v14776_v61, %v15958_v1 }
 0xd0c   :  { %7542 = vmatmul.f32.gmra.mxu3 %v9207_v4  ;;  %v7304_v52 = vmul.f32 %v9207_v4, %v14748_v11 }
 0xd0d   :  { %9210 = vtanh.f32 %v7272_v21 }
 0xd0e   :  { %v14913_v7 = vadd.f32 %v7304_v52, %v14699_v20 }
 0xd0f   :  { %v7396_v57 = vpop.f32.mrf.mxu2 }
 0xd10   :  { %v9209_v49 = vpop.eup %9208  ;;  %v7418_v6 = vadd.f32 %v7396_v57, %v5117_v14 }
 0xd11   :  { %7686 = vmatmul.f32.gmra.mxu2 %v9209_v49  ;;  %v7449_v50 = vmul.f32 %v9209_v49, %v14748_v11 }
 0xd12   :  { %9212 = vtanh.f32 %v7418_v6  ;;  %v7255_v47 = vpop.f32.mrf.mxu3  ;;  %v14950_v6 = vld [vmem:[%s15096_s7 + $0x7] ss:$0 sm:$0xff]  ;;  %s9412_s7 = smov [#allocation5]  }
 0xd13   :  { %v9211_v2 = vpop.eup %9210  ;;  %v7273_v17 = vadd.f32 %v7255_v47, %v5075_v56  ;;  %v14919_v35 = vadd.f32 %v7449_v50, %v14725_v12  ;;  %s7927_s24 = sshll.u32 %s9412_s7, 4  ;;  %s7928_s24 = int_to_ptr.vmem [resolvable:$true] %s7927_s24 }
 0xd14   :  { %7545 = vmatmul.f32.gmra.mxu3 %v9211_v2  ;;  %v7305_v20 = vmul.f32 %v9211_v2, %v14748_v11 }
 0xd15   :  { %9214 = vtanh.f32 %v7273_v17  ;;  %v15961_v17 = vld [vmem:[#allocation27_spill] sm:$0xff] }
 0xd16   :  { %v14925_v10 = vadd.f32 %v7305_v20, %v14711_v26 }
 0xd17   :  { %v7399_v25 = vpop.f32.mrf.mxu2 }
 0xd18   :  { %v9213_v23 = vpop.eup %9212  ;;  %v7419_v44 = vadd.f32 %v7399_v25, %v5120_v37  ;;  %v15962_v37 = vld [vmem:[#allocation54_spill] sm:$0xff] }
 0xd19   :  { %7689 = vmatmul.f32.gmra.mxu2 %v9213_v23  ;;  %v7450_v60 = vmul.f32 %v9213_v23, %v14748_v11  ;;  %v5132_v25 = vadd.f32 %v14776_v61, %v15962_v37 }
 0xd1a   :  { %9216 = vtanh.f32 %v7419_v44 }
 0xd1b   :  { %v9215_v15 = vpop.eup %9214  ;;  %v14929_v12 = vadd.f32 %v7450_v60, %v14731_v63  ;;  %v15959_v63 = vld [vmem:[#allocation52_spill] sm:$0xff] }
 0xd1c   :  { %7548 = vmatmul.f32.gmra.mxu3 %v9215_v15  ;;  %v7306_v45 = vmul.f32 %v9215_v15, %v14748_v11  ;;  %v5126_v52 = vadd.f32 %v14776_v61, %v15959_v63 }
 0xd1e   :  { %v14935_v26 = vadd.f32 %v7306_v45, %v14721_v3  ;;  %v15963_v45 = vld [vmem:[#allocation64_spill] sm:$0xff] }
 0xd1f   :  { %v7402_v16 = vpop.f32.mrf.mxu2  ;;  %v5177_v1 = vadd.f32 %v14776_v61, %v15963_v45  ;;  %v15968_v45 = vld [vmem:[#allocation16_spill] sm:$0xff] }
 0xd20   :  { %v9217_v34 = vpop.eup %9216  ;;  %v7420_v30 = vadd.f32 %v7402_v16, %v5123_v5 }
 0xd21   :  { %7692 = vmatmul.f32.gmra.mxu2 %v9217_v34  ;;  %v7451_v4 = vmul.f32 %v9217_v34, %v14748_v11 }
 0xd22   :  { %9218 = vtanh.f32 %v7420_v30  ;;  %v15964_v30 = vld [vmem:[#allocation55_spill] sm:$0xff] }
 0xd23   :  { %v14939_v21 = vadd.f32 %v7451_v4, %v14737_v36  ;;  %v15960_v36 = vld [vmem:[#allocation53_spill] sm:$0xff]  ;;  %v5135_v4 = vadd.f32 %v14776_v61, %v15964_v30 }
 0xd24   :  { %v5129_v22 = vadd.f32 %v14776_v61, %v15960_v36 }
 0xd27   :  { %v7504_v39 = vpop.f32.mrf.mxu3 }
 0xd28   :  { %v9219_v14 = vpop.eup %9218  ;;  %v7552_v57 = vadd.f32 %v7504_v39, %v5126_v52 }
 0xd29   :  { %7695 = vmatmul.f32.gmra.mxu2 %v9219_v14  ;;  %v7452_v3 = vmul.f32 %v9219_v14, %v14748_v11  ;;  %v5174_v11 = vadd.f32 %v14776_v61, %v15961_v17 }
 0xd2a   :  { %9220 = vtanh.f32 %v7552_v57 }
 0xd2b   :  { %v14945_v49 = vadd.f32 %v7452_v3, %v14743_v33 }
 0xd2f   :  { %v7507_v56 = vpop.f32.mrf.mxu3 }
 0xd30   :  { %v9221_v50 = vpop.eup %9220  ;;  %v7553_v47 = vadd.f32 %v7507_v56, %v5129_v22 }
 0xd31   :  { %v7585_v2 = vmul.f32 %v9221_v50, %v14950_v6 }
 0xd32   :  { %9222 = vtanh.f32 %v7553_v47 }
 0xd33   :  { %v7601_v33 = vadd.f32 %v7585_v2, %v14756_v51  ;;  %v15966_v2 = vld [vmem:[#allocation56_spill] sm:$0xff] }
 0xd34   :  { %v7651_v20 = vpop.f32.mrf.mxu2  ;;  %v5138_v17 = vadd.f32 %v14776_v61, %v15966_v2 }
 0xd35   :  { %v7699_v8 = vadd.f32 %v7651_v20, %v5174_v11  ;;  %7764 = vxpose.xlu0.b32.start [1/16] %v7601_v33, 128 }
 0xd37   :  { %9224 = vtanh.f32 %v7699_v8  ;;  %v7510_v23 = vpop.f32.mrf.mxu3 }
 0xd38   :  { %v9223_v44 = vpop.eup %9222  ;;  %v7554_v60 = vadd.f32 %v7510_v23, %v5132_v25 }
 0xd39   :  { %v7586_v15 = vmul.f32 %v9223_v44, %v14950_v6 }
 0xd3a   :  { %9226 = vtanh.f32 %v7554_v60 }
 0xd3b   :  { %v7602_v5 = vadd.f32 %v7586_v15, %v14764_v13  ;;  %v15965_v13 = vld [vmem:[#allocation13_spill] sm:$0xff] }
 0xd3c   :  { %v7654_v16 = vpop.f32.mrf.mxu2  ;;  %v5180_v36 = vadd.f32 %v14776_v61, %v15965_v13 }
 0xd3d   :  { %v9225_v51 = vpop.eup %9224  ;;  %v7700_v34 = vadd.f32 %v7654_v16, %v5177_v1  ;;  %7765 = vxpose.xlu0.b32.cont [2/16] %v7602_v5, 128  ;;  %v5141_v1 = vadd.f32 %v14776_v61, %v15968_v45 }
 0xd3e   :  { %v7731_v63 = vmul.f32 %v9225_v51, %v14950_v6 }
 0xd3f   :  { %9228 = vtanh.f32 %v7700_v34  ;;  %v7513_v52 = vpop.f32.mrf.mxu3 }
 0xd40   :  { %v9227_v39 = vpop.eup %9226  ;;  %v7555_v14 = vadd.f32 %v7513_v52, %v5135_v4  ;;  %v7747_v57 = vadd.f32 %v7731_v63, %v14770_v31 }
 0xd41   :  { %v7587_v3 = vmul.f32 %v9227_v39, %v14950_v6 }
 0xd42   :  { %9230 = vtanh.f32 %v7555_v14  ;;  %7848 = vxpose.xlu1.b32.start [1/16] %v7747_v57, 128  ;;  %v15970_v57 = vld [vmem:[#allocation57_spill] sm:$0xff] }
 0xd43   :  { %v7603_v22 = vadd.f32 %v7587_v3, %v14781_v28  ;;  %v15967_v28 = vld [vmem:[#allocation168_spill] sm:$0xff]  ;;  %v5144_v3 = vadd.f32 %v14776_v61, %v15970_v57  ;;  %v15976_v57 = vld [vmem:[#allocation21_spill] sm:$0xff] }
 0xd44   :  { %v7657_v56 = vpop.f32.mrf.mxu2  ;;  %v5183_v25 = vadd.f32 %v14776_v61, %v15967_v28 }
 0xd45   :  { %v9229_v50 = vpop.eup %9228  ;;  %v7701_v47 = vadd.f32 %v7657_v56, %v5180_v36  ;;  %7766 = vxpose.xlu0.b32.cont [3/16] %v7603_v22, 128 }
 0xd46   :  { %v7732_v11 = vmul.f32 %v9229_v50, %v14950_v6 }
 0xd47   :  { %9232 = vtanh.f32 %v7701_v47  ;;  %v7516_v31 = vpop.f32.mrf.mxu3 }
 0xd48   :  { %v9231_v33 = vpop.eup %9230  ;;  %v7556_v20 = vadd.f32 %v7516_v31, %v5138_v17  ;;  %v7748_v8 = vadd.f32 %v7732_v11, %v14787_v18 }
 0xd49   :  { %v7588_v37 = vmul.f32 %v9231_v33, %v14950_v6  ;;  %v15972_v33 = vld [vmem:[#allocation154_spill] sm:$0xff] }
 0xd4a   :  { %9234 = vtanh.f32 %v7556_v20  ;;  %7849 = vxpose.xlu1.b32.cont [2/16] %v7748_v8, 128  ;;  %v5147_v20 = vadd.f32 %v14776_v61, %v15972_v33 }
 0xd4b   :  { %v7604_v23 = vadd.f32 %v7588_v37, %v14793_v29  ;;  %v15969_v29 = vld [vmem:[#allocation68_spill] sm:$0xff] }
 0xd4c   :  { %v7660_v44 = vpop.f32.mrf.mxu2  ;;  %v5186_v4 = vadd.f32 %v14776_v61, %v15969_v29 }
 0xd4d   :  { %v9233_v60 = vpop.eup %9232  ;;  %v7702_v15 = vadd.f32 %v7660_v44, %v5183_v25  ;;  %7767 = vxpose.xlu0.b32.cont [4/16] %v7604_v23, 128 }
 0xd4e   :  { %v7733_v5 = vmul.f32 %v9233_v60, %v14950_v6 }
 0xd4f   :  { %9236 = vtanh.f32 %v7702_v15  ;;  %v7519_v18 = vpop.f32.mrf.mxu3 }
 0xd50   :  { %v9235_v16 = vpop.eup %9234  ;;  %v7557_v51 = vadd.f32 %v7519_v18, %v5141_v1  ;;  %v7749_v34 = vadd.f32 %v7733_v5, %v14799_v0  ;;  %v15974_v5 = vld [vmem:[#allocation17_spill] sm:$0xff] }
 0xd51   :  { %v7589_v30 = vmul.f32 %v9235_v16, %v14950_v6  ;;  %v5150_v18 = vadd.f32 %v14776_v61, %v15974_v5 }
 0xd52   :  { %9238 = vtanh.f32 %v7557_v51  ;;  %7850 = vxpose.xlu1.b32.cont [3/16] %v7749_v34, 128 }
 0xd53   :  { %v7605_v63 = vadd.f32 %v7589_v30, %v14805_v46  ;;  %v15971_v46 = vld [vmem:[#allocation170_spill] sm:$0xff] }
 0xd54   :  { %v7663_v52 = vpop.f32.mrf.mxu2  ;;  %v5189_v47 = vadd.f32 %v14776_v61, %v15971_v46 }
 0xd55   :  { %v9237_v39 = vpop.eup %9236  ;;  %v7703_v14 = vadd.f32 %v7663_v52, %v5186_v4  ;;  %7768 = vxpose.xlu0.b32.cont [5/16] %v7605_v63, 128 }
 0xd56   :  { %v7734_v13 = vmul.f32 %v9237_v39, %v14950_v6 }
 0xd57   :  { %9240 = vtanh.f32 %v7703_v14  ;;  %v7522_v0 = vpop.f32.mrf.mxu3 }
 0xd58   :  { %v9239_v36 = vpop.eup %9238  ;;  %v7558_v22 = vadd.f32 %v7522_v0, %v5144_v3  ;;  %v7750_v56 = vadd.f32 %v7734_v13, %v14811_v19  ;;  %v5153_v3 = vadd.f32 %v14776_v61, %v15976_v57 }
 0xd59   :  { %v7590_v50 = vmul.f32 %v9239_v36, %v14950_v6 }
 0xd5a   :  { %9242 = vtanh.f32 %v7558_v22  ;;  %7851 = vxpose.xlu1.b32.cont [4/16] %v7750_v56, 128 }
 0xd5b   :  { %v7606_v2 = vadd.f32 %v7590_v50, %v14817_v59  ;;  %v15973_v59 = vld [vmem:[#allocation69_spill] sm:$0xff] }
 0xd5c   :  { %v7666_v17 = vpop.f32.mrf.mxu2  ;;  %v5192_v44 = vadd.f32 %v14776_v61, %v15973_v59 }
 0xd5d   :  { %v9241_v11 = vpop.eup %9240  ;;  %v7704_v31 = vadd.f32 %v7666_v17, %v5189_v47  ;;  %7769 = vxpose.xlu0.b32.cont [6/16] %v7606_v2, 128 }
 0xd5e   :  { %v7735_v8 = vmul.f32 %v9241_v11, %v14950_v6  ;;  %v15978_v11 = vld [vmem:[#allocation59_spill] sm:$0xff] }
 0xd5f   :  { %9244 = vtanh.f32 %v7704_v31  ;;  %v7525_v19 = vpop.f32.mrf.mxu3  ;;  %v5156_v31 = vadd.f32 %v14776_v61, %v15978_v11 }
 0xd60   :  { %v9243_v37 = vpop.eup %9242  ;;  %v7559_v28 = vadd.f32 %v7525_v19, %v5147_v20  ;;  %v7751_v25 = vadd.f32 %v7735_v8, %v14823_v24 }
 0xd61   :  { %v7591_v23 = vmul.f32 %v9243_v37, %v14950_v6 }
 0xd62   :  { %9246 = vtanh.f32 %v7559_v28  ;;  %7852 = vxpose.xlu1.b32.cont [5/16] %v7751_v25, 128 }
 0xd63   :  { %v7607_v60 = vadd.f32 %v7591_v23, %v14829_v40  ;;  %v15975_v40 = vld [vmem:[#allocation171_spill] sm:$0xff] }
 0xd64   :  { %v7669_v15 = vpop.f32.mrf.mxu2  ;;  %v5195_v4 = vadd.f32 %v14776_v61, %v15975_v40  ;;  %v15982_v40 = vld [vmem:[#allocation8_spill] sm:$0xff] }
 0xd65   :  { %v9245_v45 = vpop.eup %9244  ;;  %v7705_v1 = vadd.f32 %v7669_v15, %v5192_v44  ;;  %7770 = vxpose.xlu0.b32.cont [7/16] %v7607_v60, 128  ;;  %v15980_v60 = vld [vmem:[#allocation153_spill] sm:$0xff] }
 0xd66   :  { %v7736_v16 = vmul.f32 %v9245_v45, %v14950_v6  ;;  %v5159_v15 = vadd.f32 %v14776_v61, %v15980_v60 }
 0xd67   :  { %9248 = vtanh.f32 %v7705_v1  ;;  %v7528_v24 = vpop.f32.mrf.mxu3 }
 0xd68   :  { %v9247_v51 = vpop.eup %9246  ;;  %v7560_v34 = vadd.f32 %v7528_v24, %v5150_v18  ;;  %v7752_v30 = vadd.f32 %v7736_v16, %v14835_v53 }
 0xd69   :  { %v7592_v29 = vmul.f32 %v9247_v51, %v14950_v6 }
 0xd6a   :  { %9250 = vtanh.f32 %v7560_v34  ;;  %7853 = vxpose.xlu1.b32.cont [6/16] %v7752_v30, 128 }
 0xd6b   :  { %v7608_v63 = vadd.f32 %v7592_v29, %v14841_v38  ;;  %v15977_v38 = vld [vmem:[#allocation172_spill] sm:$0xff] }
 0xd6c   :  { %v7672_v52 = vpop.f32.mrf.mxu2  ;;  %v5198_v50 = vadd.f32 %v14776_v61, %v15977_v38 }
 0xd6d   :  { %v9249_v39 = vpop.eup %9248  ;;  %v7706_v14 = vadd.f32 %v7672_v52, %v5195_v4  ;;  %7771 = vxpose.xlu0.b32.cont [8/16] %v7608_v63, 128  ;;  %v5162_v4 = vadd.f32 %v14776_v61, %v15982_v40 }
 0xd6e   :  { %v7737_v13 = vmul.f32 %v9249_v39, %v14950_v6 }
 0xd6f   :  { %9252 = vtanh.f32 %v7706_v14  ;;  %v7531_v53 = vpop.f32.mrf.mxu3 }
 0xd70   :  { %v9251_v0 = vpop.eup %9250  ;;  %v7561_v36 = vadd.f32 %v7531_v53, %v5153_v3  ;;  %v7753_v22 = vadd.f32 %v7737_v13, %v14847_v42 }
 0xd71   :  { %v7593_v56 = vmul.f32 %v9251_v0, %v14950_v6 }
 0xd72   :  { %9254 = vtanh.f32 %v7561_v36  ;;  %7854 = vxpose.xlu1.b32.cont [7/16] %v7753_v22, 128  ;;  %v15984_v22 = vld [vmem:[#allocation20_spill] sm:$0xff] }
 0xd73   :  { %v7609_v46 = vadd.f32 %v7593_v56, %v14853_v43  ;;  %v15979_v43 = vld [vmem:[#allocation71_spill] sm:$0xff]  ;;  %v5165_v56 = vadd.f32 %v14776_v61, %v15984_v22  ;;  %v9411_v22 = vmov 0  }
 0xd74   :  { %v7675_v47 = vpop.f32.mrf.mxu2  ;;  %v5201_v28 = vadd.f32 %v14776_v61, %v15979_v43  ;;  %8248 = vset.pattern.permute.xlu2 %v9411_v22 }
 0xd75   :  { %v9253_v2 = vpop.eup %9252  ;;  %v7707_v17 = vadd.f32 %v7675_v47, %v5198_v50  ;;  %7772 = vxpose.xlu0.b32.cont [9/16] %v7609_v46, 128 }
 0xd76   :  { %v7738_v33 = vmul.f32 %v9253_v2, %v14950_v6 }
 0xd77   :  { %9256 = vtanh.f32 %v7707_v17  ;;  %v7534_v42 = vpop.f32.mrf.mxu3 }
 0xd78   :  { %v9255_v20 = vpop.eup %9254  ;;  %v7562_v8 = vadd.f32 %v7534_v42, %v5156_v31  ;;  %v7754_v19 = vadd.f32 %v7738_v33, %v14859_v27 }
 0xd79   :  { %v7594_v37 = vmul.f32 %v9255_v20, %v14950_v6  ;;  %v15986_v20 = vld [vmem:[#allocation9_spill] sm:$0xff] }
 0xd7a   :  { %9258 = vtanh.f32 %v7562_v8  ;;  %7855 = vxpose.xlu1.b32.cont [8/16] %v7754_v19, 128  ;;  %v5168_v8 = vadd.f32 %v14776_v61, %v15986_v20 }
 0xd7b   :  { %v7610_v25 = vadd.f32 %v7594_v37, %v14865_v9  ;;  %v15981_v9 = vld [vmem:[#allocation173_spill] sm:$0xff] }
 0xd7c   :  { %v7678_v23 = vpop.f32.mrf.mxu2  ;;  %v5204_v24 = vadd.f32 %v14776_v61, %v15981_v9 }
 0xd7d   :  { %v9257_v59 = vpop.eup %9256  ;;  %v7708_v44 = vadd.f32 %v7678_v23, %v5201_v28  ;;  %7773 = vxpose.xlu0.b32.cont [10/16] %v7610_v25, 128 }
 0xd7e   :  { %v7739_v45 = vmul.f32 %v9257_v59, %v14950_v6 }
 0xd7f   :  { %9260 = vtanh.f32 %v7708_v44  ;;  %v7537_v27 = vpop.f32.mrf.mxu3 }
 0xd80   :  { %v9259_v1 = vpop.eup %9258  ;;  %v7563_v5 = vadd.f32 %v7537_v27, %v5159_v15  ;;  %v7755_v18 = vadd.f32 %v7739_v45, %v14871_v54  ;;  %v15988_v45 = vld [vmem:[#allocation156_spill] sm:$0xff] }
 0xd81   :  { %v7595_v16 = vmul.f32 %v9259_v1, %v14950_v6  ;;  %v5171_v27 = vadd.f32 %v14776_v61, %v15988_v45 }
 0xd82   :  { %9262 = vtanh.f32 %v7563_v5  ;;  %7856 = vxpose.xlu1.b32.cont [9/16] %v7755_v18, 128 }
 0xd83   :  { %v7611_v51 = vadd.f32 %v7595_v16, %v14877_v58  ;;  %v15983_v58 = vld [vmem:[#allocation72_spill] sm:$0xff] }
 0xd84   :  { %v7681_v34 = vpop.f32.mrf.mxu2  ;;  %v5207_v3 = vadd.f32 %v14776_v61, %v15983_v58 }
 0xd85   :  { %v9261_v30 = vpop.eup %9260  ;;  %v7709_v29 = vadd.f32 %v7681_v34, %v5204_v24  ;;  %7774 = vxpose.xlu0.b32.cont [11/16] %v7611_v51, 128 }
 0xd86   :  { %v7740_v63 = vmul.f32 %v9261_v30, %v14950_v6 }
 0xd87   :  { %9264 = vtanh.f32 %v7709_v29  ;;  %v7540_v54 = vpop.f32.mrf.mxu3 }
 0xd88   :  { %v9263_v52 = vpop.eup %9262  ;;  %v7564_v39 = vadd.f32 %v7540_v54, %v5162_v4  ;;  %v7756_v14 = vadd.f32 %v7740_v63, %v14883_v48  ;;  %v15990_v54 = vld [vmem:[#allocation75_spill] sm:$0xff] }
 0xd89   :  { %v7596_v57 = vmul.f32 %v9263_v52, %v14950_v6  ;;  %v5219_v52 = vadd.f32 %v14776_v61, %v15990_v54 }
 0xd8a   :  { %9266 = vtanh.f32 %v7564_v39  ;;  %7857 = vxpose.xlu1.b32.cont [10/16] %v7756_v14, 128 }
 0xd8b   :  { %v7612_v13 = vadd.f32 %v7596_v57, %v14889_v32  ;;  %v15985_v32 = vld [vmem:[#allocation174_spill] sm:$0xff] }
 0xd8c   :  { %v7684_v53 = vpop.f32.mrf.mxu2  ;;  %v5210_v17 = vadd.f32 %v14776_v61, %v15985_v32 }
 0xd8d   :  { %v9265_v0 = vpop.eup %9264  ;;  %v7710_v36 = vadd.f32 %v7684_v53, %v5207_v3  ;;  %7775 = vxpose.xlu0.b32.cont [12/16] %v7612_v13, 128 }
 0xd8e   :  { %v7741_v38 = vmul.f32 %v9265_v0, %v14950_v6 }
 0xd8f   :  { %9268 = vtanh.f32 %v7710_v36  ;;  %v7543_v48 = vpop.f32.mrf.mxu3 }
 0xd90   :  { %v9267_v50 = vpop.eup %9266  ;;  %v7565_v46 = vadd.f32 %v7543_v48, %v5165_v56  ;;  %v7757_v47 = vadd.f32 %v7741_v38, %v14895_v41 }
 0xd91   :  { %v7597_v2 = vmul.f32 %v9267_v50, %v14950_v6 }
 0xd92   :  { %9270 = vtanh.f32 %v7565_v46  ;;  %7858 = vxpose.xlu1.b32.cont [11/16] %v7757_v47, 128 }
 0xd93   :  { %v7613_v11 = vadd.f32 %v7597_v2, %v14901_v55  ;;  %v15987_v55 = vld [vmem:[#allocation73_spill] sm:$0xff] }
 0xd94   :  { %v7687_v31 = vpop.f32.mrf.mxu2  ;;  %v5213_v23 = vadd.f32 %v14776_v61, %v15987_v55 }
 0xd95   :  { %v9269_v33 = vpop.eup %9268  ;;  %v7711_v42 = vadd.f32 %v7687_v31, %v5210_v17  ;;  %7776 = vxpose.xlu0.b32.cont [13/16] %v7613_v11, 128 }
 0xd96   :  { %v7742_v19 = vmul.f32 %v9269_v33, %v14950_v6 }
 0xd97   :  { %9272 = vtanh.f32 %v7711_v42  ;;  %v7546_v41 = vpop.f32.mrf.mxu3 }
 0xd98   :  { %v9271_v37 = vpop.eup %9270  ;;  %v7566_v43 = vadd.f32 %v7546_v41, %v5168_v8  ;;  %v7758_v28 = vadd.f32 %v7742_v19, %v14907_v62 }
 0xd99   :  { %v7598_v25 = vmul.f32 %v9271_v37, %v14950_v6 }
 0xd9a   :  { %9274 = vtanh.f32 %v7566_v43  ;;  %7859 = vxpose.xlu1.b32.cont [12/16] %v7758_v28, 128 }
 0xd9b   :  { %v7614_v59 = vadd.f32 %v7598_v25, %v14913_v7  ;;  %v15989_v7 = vld [vmem:[#allocation74_spill] sm:$0xff] }
 0xd9c   :  { %v7690_v44 = vpop.f32.mrf.mxu2  ;;  %v5216_v24 = vadd.f32 %v14776_v61, %v15989_v7 }
 0xd9d   :  { %v9273_v60 = vpop.eup %9272  ;;  %v7712_v15 = vadd.f32 %v7690_v44, %v5213_v23  ;;  %7777 = vxpose.xlu0.b32.cont [14/16] %v7614_v59, 128 }
 0xd9e   :  { %v7743_v1 = vmul.f32 %v9273_v60, %v14950_v6 }
 0xd9f   :  { %9276 = vtanh.f32 %v7712_v15  ;;  %v7549_v62 = vpop.f32.mrf.mxu3 }
 0xda0   :  { %v9275_v5 = vpop.eup %9274  ;;  %v7567_v18 = vadd.f32 %v7549_v62, %v5171_v27  ;;  %v7759_v16 = vadd.f32 %v7743_v1, %v14919_v35 }
 0xda1   :  { %v7599_v9 = vmul.f32 %v9275_v5, %v14950_v6 }
 0xda2   :  { %9278 = vtanh.f32 %v7567_v18  ;;  %7860 = vxpose.xlu1.b32.cont [13/16] %v7759_v16, 128 }
 0xda3   :  { %v7615_v51 = vadd.f32 %v7599_v9, %v14925_v10 }
 0xda4   :  { %v7693_v34 = vpop.f32.mrf.mxu2 }
 0xda5   :  { %v9277_v30 = vpop.eup %9276  ;;  %v7713_v29 = vadd.f32 %v7693_v34, %v5216_v24  ;;  %7778 = vxpose.xlu0.b32.cont [15/16] %v7615_v51, 128 }
 0xda6   :  { %v7744_v40 = vmul.f32 %v9277_v30, %v14950_v6 }
 0xda7   :  { %9280 = vtanh.f32 %v7713_v29 }
 0xda8   :  { %v9279_v4 = vpop.eup %9278  ;;  %v7760_v63 = vadd.f32 %v7744_v40, %v14929_v12 }
 0xda9   :  { %v7600_v35 = vmul.f32 %v9279_v4, %v14950_v6 }
 0xdaa   :  { %7861 = vxpose.xlu1.b32.cont [14/16] %v7760_v63, 128 }
 0xdab   :  { %v7616_v39 = vadd.f32 %v7600_v35, %v14935_v26  ;;  %v7763_v26 = vld [vmem:[#allocation4] sm:$0x1] }
 0xdac   :  { %v7696_v14 = vpop.f32.mrf.mxu2  ;;  %7819 = vperm.xlu2 %8248, %v7763_v26  }
 0xdad   :  { %v9281_v10 = vpop.eup %9280  ;;  %v7714_v57 = vadd.f32 %v7696_v14, %v5219_v52  ;;  %7779 = vxpose.xlu0.b32.end [16/16] %v7616_v39, 128 }
 0xdae   :  { %v7745_v58 = vmul.f32 %v9281_v10, %v14950_v6 }
 0xdaf   :  { %9282 = vtanh.f32 %v7714_v57 }
 0xdb0   :  { %v7761_v3 = vadd.f32 %v7745_v58, %v14939_v21 }
 0xdb2   :  { %7862 = vxpose.xlu1.b32.cont [15/16] %v7761_v3, 128 }
 0xdb5   :  { %v9283_v13 = vpop.eup %9282 }
 0xdb6   :  { %v7746_v12 = vmul.f32 %v9283_v13, %v14950_v6 }
 0xdb8   :  { %v7762_v53 = vadd.f32 %v7746_v12, %v14945_v49 }
 0xdba   :  { %7863 = vxpose.xlu1.b32.end [16/16] %v7762_v53, 128 }
 0xdd9   :  { %v7780_v0 = vpop.trf.xlu0 }
 0xde1   :  { %v7781_v61 = vpop.trf.xlu0 }
 0xde2   :  { %v7796_v36 = vadd.f32 %v7781_v61, %v7780_v0 }
 0xde6   :  { %v7864_v56 = vpop.trf.xlu1 }
 0xde9   :  { %v7782_v38 = vpop.trf.xlu0 }
 0xdea   :  { %v7797_v48 = vadd.f32 %v7796_v36, %v7782_v38 }
 0xdee   :  { %v7865_v50 = vpop.trf.xlu1 }
 0xdef   :  { %v7880_v46 = vadd.f32 %v7865_v50, %v7864_v56 }
 0xdf1   :  { %v7783_v21 = vpop.trf.xlu0 }
 0xdf2   :  { %v7798_v47 = vadd.f32 %v7797_v48, %v7783_v21 }
 0xdf6   :  { %v7866_v2 = vpop.trf.xlu1 }
 0xdf7   :  { %v7881_v32 = vadd.f32 %v7880_v46, %v7866_v2 }
 0xdf9   :  { %v7784_v6 = vpop.trf.xlu0 }
 0xdfa   :  { %v7799_v17 = vadd.f32 %v7798_v47, %v7784_v6 }
 0xdfe   :  { %v7867_v49 = vpop.trf.xlu1 }
 0xdff   :  { %v7882_v11 = vadd.f32 %v7881_v32, %v7867_v49 }
 0xe01   :  { %v7785_v31 = vpop.trf.xlu0 }
 0xe02   :  { %v7800_v15 = vadd.f32 %v7799_v17, %v7785_v31 }
 0xe06   :  { %v7868_v33 = vpop.trf.xlu1  ;;  %v7820_v53 = vpop.permute.xlu2 %7819 }
 0xe07   :  { %v7883_v42 = vadd.f32 %v7882_v11, %v7868_v33  ;;  %v7822_v26 = vperm.slane %v7820_v53, 0 }
 0xe09   :  { %v7786_v20 = vpop.trf.xlu0 }
 0xe0a   :  { %v7801_v27 = vadd.f32 %v7800_v15, %v7786_v20 }
 0xe0e   :  { %v7869_v8 = vpop.trf.xlu1 }
 0xe0f   :  { %v7884_v51 = vadd.f32 %v7883_v42, %v7869_v8 }
 0xe11   :  { %v7787_v19 = vpop.trf.xlu0 }
 0xe12   :  { %v7802_v62 = vadd.f32 %v7801_v27, %v7787_v19 }
 0xe14   :  { %8249 = vset.pattern.permute.xlu0 %v9411_v22 }
 0xe16   :  { %v7870_v41 = vpop.trf.xlu1 }
 0xe17   :  { %v7885_v30 = vadd.f32 %v7884_v51, %v7870_v41 }
 0xe19   :  { %v7788_v37 = vpop.trf.xlu0 }
 0xe1a   :  { %v7803_v5 = vadd.f32 %v7802_v62, %v7788_v37  ;;  %v7843_v37 = vlaneseq }
 0xe1c   :  { %vm15078_vm4 = vcmp.lt.s32.totalorder %v7843_v37, 128 }
 0xe1e   :  { %v7871_v43 = vpop.trf.xlu1 }
 0xe1f   :  { %v7886_v4 = vadd.f32 %v7885_v30, %v7871_v43 }
 0xe21   :  { %v7789_v28 = vpop.trf.xlu0 }
 0xe22   :  { %v7804_v18 = vadd.f32 %v7803_v5, %v7789_v28 }
 0xe26   :  { %v7872_v25 = vpop.trf.xlu1 }
 0xe27   :  { %v7887_v35 = vadd.f32 %v7886_v4, %v7872_v25 }
 0xe29   :  { %v7790_v55 = vpop.trf.xlu0 }
 0xe2a   :  { %v7805_v9 = vadd.f32 %v7804_v18, %v7790_v55 }
 0xe2e   :  { %v7873_v23 = vpop.trf.xlu1 }
 0xe2f   :  { %v7888_v39 = vadd.f32 %v7887_v35, %v7873_v23 }
 0xe31   :  { %v7791_v59 = vpop.trf.xlu0 }
 0xe32   :  { %v7806_v24 = vadd.f32 %v7805_v9, %v7791_v59 }
 0xe36   :  { %v7874_v44 = vpop.trf.xlu1 }
 0xe37   :  { %v7889_v10 = vadd.f32 %v7888_v39, %v7874_v44 }
 0xe39   :  { %v7792_v60 = vpop.trf.xlu0 }
 0xe3a   :  { %v7807_v34 = vadd.f32 %v7806_v24, %v7792_v60 }
 0xe3e   :  { %v7875_v45 = vpop.trf.xlu1 }
 0xe3f   :  { %v7890_v3 = vadd.f32 %v7889_v10, %v7875_v45 }
 0xe41   :  { %v7793_v1 = vpop.trf.xlu0 }
 0xe42   :  { %v7808_v29 = vadd.f32 %v7807_v34, %v7793_v1 }
 0xe46   :  { %v7876_v16 = vpop.trf.xlu1 }
 0xe47   :  { %v7891_v12 = vadd.f32 %v7890_v3, %v7876_v16 }
 0xe49   :  { %v7794_v7 = vpop.trf.xlu0 }
 0xe4a   :  { %v7809_v63 = vadd.f32 %v7808_v29, %v7794_v7 }
 0xe4e   :  { %v7877_v40 = vpop.trf.xlu1 }
 0xe4f   :  { %v7892_v61 = vadd.f32 %v7891_v12, %v7877_v40 }
 0xe51   :  { %v7795_v54 = vpop.trf.xlu0 }
 0xe52   :  { %v7810_v52 = vadd.f32 %v7809_v63, %v7795_v54 }
 0xe54   :  { %v7811_v14 = vrot.slane %v7810_v52, 4 }
 0xe56   :  { %v7812_v57 = vadd.f32 %v7811_v14, %v7810_v52  ;;  %v7878_v58 = vpop.trf.xlu1 }
 0xe57   :  { %v7893_v22 = vadd.f32 %v7892_v61, %v7878_v58 }
 0xe58   :  { %v7813_v13 = vrot.slane %v7812_v57, 2 }
 0xe5a   :  { %v7814_v0 = vadd.f32 %v7813_v13, %v7812_v57 }
 0xe5c   :  { %v7815_v36 = vrot.slane %v7814_v0, 1 }
 0xe5e   :  { %v7816_v56 = vadd.f32 %v7815_v36, %v7814_v0  ;;  %v7879_v38 = vpop.trf.xlu1 }
 0xe5f   :  { %v7894_v48 = vadd.f32 %v7893_v22, %v7879_v38 }
 0xe60   :  { %v7823_v50 = vadd.f32 %v7822_v26, %v7816_v56 }
 0xe61   :  { %v7895_v46 = vrot.slane %v7894_v48, 4 }
 0xe62   :  { %v8210_v21 = vmul.f32 -1.442695, %v7823_v50 }
 0xe63   :  { %v7896_v47 = vadd.f32 %v7895_v46, %v7894_v48 }
 0xe64   :  { %9284 = vpow2.f32 %v8210_v21 }
 0xe65   :  { %v7897_v2 = vrot.slane %v7896_v47, 2 }
 0xe67   :  { %v7898_v32 = vadd.f32 %v7897_v2, %v7896_v47 }
 0xe69   :  { %v7899_v6 = vrot.slane %v7898_v32, 1 }
 0xe6a   :  { %v9285_v17 = vpop.eup %9284 }
 0xe6b   :  { %v7827_v49 = vadd.f32 1.0, %v9285_v17  ;;  %v7900_v11 = vadd.f32 %v7899_v6, %v7898_v32 }
 0xe6d   :  { %9286 = vrcp.f32 %v7827_v49  ;;  %v7901_v31 = vadd.f32 %v7900_v11, %v7822_v26  ;;  %v7839_v41 = vand.u32 2147483648, %v7827_v49  ;;  %v7837_v25 = vand.u32 2147483647, %v7827_v49 }
 0xe6e   :  { %vm7833_vm2 = vweird.f32 %v7827_v49 }
 0xe6f   :  { %v8211_v33 = vmul.f32 -1.442695, %v7901_v31  ;;  %v7840_v23 = vor.u32 1.1754944e-38, %v7839_v41  ;;  %vm7838_vm5 = vcmp.eq.f32.partialorder %v7837_v25, 8.507059e+37 }
 0xe71   :  { %9288 = vpow2.f32 %v8211_v33 }
 0xe73   :  { %v9287_v42 = vpop.eup %9286 }
 0xe74   :  { %v7829_v20 = vmul.f32 %v9287_v42, %v7827_v49  ;;  %vm7834_vm1 = vweird.f32 %v9287_v42 }
 0xe75   :  { %vm7835_vm3 = vmor %vm7833_vm2, %vm7834_vm1 }
 0xe76   :  { %v7830_v8 = vsub.f32 1.0, %v7829_v20 }
 0xe77   :  { %v9289_v19 = vpop.eup %9288 }
 0xe78   :  { %v7905_v43 = vadd.f32 1.0, %v9289_v19  ;;  %v7831_v28 = vmul.f32 %v9287_v42, %v7830_v8 }
 0xe7a   :  { %9290 = vrcp.f32 %v7905_v43  ;;  %v7832_v55 = vadd.f32 %v9287_v42, %v7831_v28  ;;  %v7917_v1 = vand.u32 2147483648, %v7905_v43  ;;  %v7915_v5 = vand.u32 2147483647, %v7905_v43 }
 0xe7b   :  { %vm7911_vm7 = vweird.f32 %v7905_v43 }
 0xe7c   :  { %v7836_v44 = vsel %vm7835_vm3, %v9287_v42, %v7832_v55  ;;  %v7918_v16 = vor.u32 1.1754944e-38, %v7917_v1  ;;  %vm7916_vm9 = vcmp.eq.f32.partialorder %v7915_v5, 8.507059e+37 }
 0xe7d   :  { %v7841_v60 = vsel %vm7838_vm5, %v7840_v23, %v7836_v44 }
 0xe7e   :  { %7847 = vst.msk [vmem:[#allocation5] sm:$0x1] %vm15078_vm4, %v7841_v60 }
 0xe80   :  { %v9291_v15 = vpop.eup %9290 }
 0xe81   :  { %v7907_v45 = vmul.f32 %v9291_v15, %v7905_v43  ;;  %vm7912_vm6 = vweird.f32 %v9291_v15 }
 0xe82   :  { %vm7913_vm8 = vmor %vm7911_vm7, %vm7912_vm6 }
 0xe83   :  { %v7908_v27 = vsub.f32 1.0, %v7907_v45 }
 0xe85   :  { %v7909_v62 = vmul.f32 %v9291_v15, %v7908_v27 }
 0xe87   :  { %v7910_v18 = vadd.f32 %v9291_v15, %v7909_v62 }
 0xe89   :  { %v7914_v9 = vsel %vm7913_vm8, %v9291_v15, %v7910_v18 }
 0xe8a   :  { %v7919_v7 = vsel %vm7916_vm9, %v7918_v16, %v7914_v9 }
 0xe8b   :  { %7921 = vst.msk [vmem:[#allocation5 + $0x1] sm:$0x1] %vm15078_vm4, %v7919_v7 }
 0xe8c   :  { %7932 = dma.vmem_to_hbm [thread:$0]  %s7928_s24, 32, %s7930_s2, [#allocation6]  }
 0xe8d   :  { %9408 = dma.done.wait [#allocation6], 32  }
 0xe8e   :  { %9409 = vsyncadd [#allocation6], 4294967264 }
 0xe8f   :  { %7937 = vsyncpa [#allocation6], 1 }

</bundles_post_ra>
